<compile_context>
chip_gen: v6e
topology: v6e:2x2x1
jax: 0.10.0
libtpu: 0.0.40
codegen_flags: <defaults>
</compile_context>

<pallas_src>
import functools
import math

import jax
import jax.numpy as jnp
from jax import lax
from jax.experimental import pallas as pl
from jax.experimental.pallas import tpu as pltpu


# ---------------------------------------------------------------------------
# Static shape plumbing
# ---------------------------------------------------------------------------
def _dims(N, H, W):
    Hs, Ws = (H + 1) // 2, (W + 1) // 2      # even-subsampled input (for cnna)
    h1, w1 = Hs - 2, Ws - 2                  # after cnna (as 3x3 / stride 1)
    h2, w2 = h1 - 2, w1 - 2                  # after cnnb
    h3, w3 = h2 - 2, w2 - 2                  # after cnnc
    S = Ws                                   # common per-h row stride
    SN = Hs * Ws                             # per-batch row stride
    L1 = (N - 1) * SN + (h1 - 1) * S + w1    # overscan lengths per layer
    L2 = (N - 1) * SN + (h2 - 1) * S + w2
    L3 = (N - 1) * SN + (h3 - 1) * S + w3
    return dict(N=N, Hs=Hs, Ws=Ws, h1=h1, w1=w1, h2=h2, w2=w2, h3=h3, w3=w3,
                S=S, SN=SN, L1=L1, L2=L2, L3=L3)


# ---------------------------------------------------------------------------
# The single fused kernel: conv -> relu -> conv -> relu -> conv -> relu -> fc
# ---------------------------------------------------------------------------
def _fused_kernel(xe_ref, w1_ref, b1_ref, w2_ref, b2_ref, w3_ref, b3_ref,
                  wl_ref, bl_ref, o_ref, r1_ref, r2_ref, r3_ref, *, d):
    S, SN, N = d["S"], d["SN"], d["N"]
    f32 = jnp.float32

    def conv3x3_relu(src_ref, w_ref, b_ref, dst_ref, L):
        # 9-tap im2col-free conv: sum over taps of shifted-slice matmuls.
        cout = w_ref.shape[-1]
        acc = jnp.zeros((L, cout), f32)
        for i in range(3):
            for j in range(3):
                acc += jnp.dot(src_ref[pl.ds(i * S + j, L), :],
                               w_ref[i * 3 + j],
                               preferred_element_type=f32)
        dst_ref[...] = jnp.maximum(acc + b_ref[...], 0.0)

    conv3x3_relu(xe_ref, w1_ref, b1_ref, r1_ref, d["L1"])   # cnna + relu
    conv3x3_relu(r1_ref, w2_ref, b2_ref, r2_ref, d["L2"])   # cnnb + relu
    conv3x3_relu(r2_ref, w3_ref, b3_ref, r3_ref, d["L3"])   # cnnc + relu

    # Final linear.  wl_ref[r] is the (96, 60) weight slab for spatial
    # position r = ho*w3 + wo (NCHW flatten order folded in at init).
    for n in range(N):
        out = jnp.zeros((1, 60), f32)
        for ho in range(d["h3"]):
            for wo in range(d["w3"]):
                p = n * SN + ho * S + wo          # valid row of conv3 output
                r = ho * d["w3"] + wo
                out += jnp.dot(r3_ref[pl.ds(p, 1), :], wl_ref[r],
                               preferred_element_type=f32)
        o_ref[pl.ds(n, 1), :] = out + bl_ref[...]


def fused_forward(xe, w1, b1, w2, b2, w3, b3, wl, bl, *, d):
    kernel = functools.partial(_fused_kernel, d=d)
    return pl.pallas_call(
        kernel,
        out_shape=jax.ShapeDtypeStruct((d["N"], 60), jnp.float32),
        scratch_shapes=[
            pltpu.VMEM((d["L1"], 32), jnp.float32),   # relu(cnna) activations
            pltpu.VMEM((d["L2"], 64), jnp.float32),   # relu(cnnb) activations
            pltpu.VMEM((d["L3"], 96), jnp.float32),   # relu(cnnc) activations
        ],
    )(xe, w1, b1, w2, b2, w3, b3, wl, bl)


# ---------------------------------------------------------------------------
# Forward wrapper (mirrors RNN.forward; everything after `return (0, x3)`
# in the PyTorch code is dead and omitted)
# ---------------------------------------------------------------------------
@jax.jit
def rnn_forward(params, x_nhwc):
    N, H, W, _ = x_nhwc.shape
    d = _dims(N, H, W)
    # cnna has stride=2 and dilation=2 => only even pixels are read.
    xe = x_nhwc[:, ::2, ::2, :].reshape(N * d["SN"], 3)
    return fused_forward(xe,
                         params["w1"], params["b1"],
                         params["w2"], params["b2"],
                         params["w3"], params["b3"],
                         params["wl"], params["bl"], d=d)


# ---------------------------------------------------------------------------
# Parameters: PyTorch-style init, converted ONCE to the kernel layout
# ---------------------------------------------------------------------------
def init_torch_params(key):
    ks = jax.random.split(key, 8)

    def u(k, shape, fan):
        b = 1.0 / math.sqrt(fan)
        return jax.random.uniform(k, shape, jnp.float32, -b, b)

    return {
        "wa": u(ks[0], (32, 3, 3, 3), 3 * 9),   "ba": u(ks[1], (32,), 3 * 9),
        "wb": u(ks[2], (64, 32, 3, 3), 32 * 9), "bb": u(ks[3], (64,), 32 * 9),
        "wc": u(ks[4], (96, 64, 3, 3), 64 * 9), "bc": u(ks[5], (96,), 64 * 9),
        "wl": u(ks[6], (60, 2688), 2688),       "bl": u(ks[7], (60,), 2688),
    }


def convert_params(tp, d):
    """PyTorch layouts -> kernel layouts (done once, outside the jitted path)."""
    def conv_w(w):                     # (Cout, Cin, kh, kw) -> (kh*kw, Cin, Cout)
        cout, cin, kh, kw = w.shape
        return jnp.transpose(w, (2, 3, 1, 0)).reshape(kh * kw, cin, cout)

    # Linear weight: torch flattens x3 in NCHW order => feature = c*28 + r,
    # r = ho*w3 + wo.  Re-layout to (r, c, o) so the kernel consumes per-r slabs.
    wl = tp["wl"].reshape(60, 96, d["h3"] * d["w3"])   # (o, c, r)
    wl = jnp.transpose(wl, (2, 1, 0))                  # (r, c, o)
    return {
        "w1": conv_w(tp["wa"]), "b1": tp["ba"].reshape(1, -1),
        "w2": conv_w(tp["wb"]), "b2": tp["bb"].reshape(1, -1),
        "w3": conv_w(tp["wc"]), "b3": tp["bc"].reshape(1, -1),
        "wl": wl, "bl": tp["bl"].reshape(1, -1),
    }


# ---------------------------------------------------------------------------
# Pure-XLA reference of the same forward pass (for a numerical sanity check)
# ---------------------------------------------------------------------------
def ref_forward(tp, x_nhwc):
    x = jnp.transpose(x_nhwc, (0, 3, 1, 2))            # NHWC -> NCHW

    def conv(z, w, b, stride=1, dilation=1):
        y = lax.conv_general_dilated(
            z, w, window_strides=(stride, stride), padding="VALID",
            rhs_dilation=(dilation, dilation),
            dimension_numbers=("NCHW", "OIHW", "NCHW"))
        return jax.nn.relu(y + b.reshape(1, -1, 1, 1))

    x1 = conv(x, tp["wa"], tp["ba"], stride=2, dilation=2)
    x2 = conv(x1, tp["wb"], tp["bb"])
    x3 = conv(x2, tp["wc"], tp["bc"])
    flat = x3.reshape(x.shape[0], -1)                  # NCHW flatten order
    return flat @ tp["wl"].T + tp["bl"]


if __name__ == "__main__":
    key = jax.random.PRNGKey(0)
    pkey, xkey = jax.random.split(key)

    # Input sized so the flattened conv stack is exactly 2688 features:
    # H=19, W=25 -> cnna: 8x11 -> cnnb: 6x9 -> cnnc: 4x7 ; 96*4*7 = 2688.
    x = jax.random.normal(xkey, (2, 19, 25, 3), dtype=jnp.float32)

    torch_params = init_torch_params(pkey)
    d = _dims(*x.shape[:3])
    params = convert_params(torch_params, d)

    x3 = rnn_forward(params, x)
    jax.block_until_ready(x3)
    result = (0, x3)                                   # matches `return (0, x3)`

    assert x3.shape == (2, 60), x3.shape
    assert x3.dtype == jnp.float32

    # Numerical cross-check against the pure-XLA reference.
    ref = ref_forward(torch_params, x)
    max_err = float(jnp.max(jnp.abs(x3 - ref)))
    assert jnp.allclose(x3, ref, atol=2e-3, rtol=2e-3), max_err

    print("KERNEL_OK")
</pallas_src>

<mosaic_0001>
module attributes {stable_mosaic.version = 11 : i64} {
  func.func @_fused_kernel(%arg0: memref<260x3xf32, #tpu.memory_space<vmem>>, %arg1: memref<9x3x32xf32, #tpu.memory_space<vmem>>, %arg2: memref<1x32xf32, #tpu.memory_space<vmem>>, %arg3: memref<9x32x64xf32, #tpu.memory_space<vmem>>, %arg4: memref<1x64xf32, #tpu.memory_space<vmem>>, %arg5: memref<9x64x96xf32, #tpu.memory_space<vmem>>, %arg6: memref<1x96xf32, #tpu.memory_space<vmem>>, %arg7: memref<28x96x60xf32, #tpu.memory_space<vmem>>, %arg8: memref<1x60xf32, #tpu.memory_space<vmem>>, %arg9: memref<2x60xf32, #tpu.memory_space<vmem>>, %arg10: memref<232x32xf32, #tpu.memory_space<vmem>>, %arg11: memref<204x64xf32, #tpu.memory_space<vmem>>, %arg12: memref<176x96xf32, #tpu.memory_space<vmem>>) attributes {dimension_semantics = [], scalar_prefetch = 0 : i64, scratch_operands = 3 : i64, tpu.core_type = #tpu.core_type<tc>} {
    %cst = arith.constant 0.000000e+00 : f32
    %0 = vector.broadcast %cst : f32 to vector<232x32xf32>
    %c0 = arith.constant 0 : index
    %c0_0 = arith.constant 0 : index
    %1 = vector.load %arg0[%c0, %c0_0] : memref<260x3xf32, #tpu.memory_space<vmem>>, vector<232x3xf32>
    %c0_1 = arith.constant 0 : index
    %c0_2 = arith.constant 0 : index
    %c0_3 = arith.constant 0 : index
    %2 = vector.load %arg1[%c0_1, %c0_2, %c0_3] : memref<9x3x32xf32, #tpu.memory_space<vmem>>, vector<1x3x32xf32>
    %3 = vector.shape_cast %2 : vector<1x3x32xf32> to vector<3x32xf32>
    %cst_4 = arith.constant dense<0.000000e+00> : vector<232x32xf32>
    %4 = tpu.matmul %1, %3, %cst_4 {dimension_numbers = #tpu.dot_dimension_numbers<[1], [0], [0], [1], [0, 0, 1, 1], [], []>} : vector<232x3xf32>, vector<3x32xf32>, vector<232x32xf32> -> vector<232x32xf32>
    %5 = arith.addf %0, %4 : vector<232x32xf32>
    %c1 = arith.constant 1 : index
    %c0_5 = arith.constant 0 : index
    %6 = vector.load %arg0[%c1, %c0_5] : memref<260x3xf32, #tpu.memory_space<vmem>>, vector<232x3xf32>
    %c1_6 = arith.constant 1 : index
    %c0_7 = arith.constant 0 : index
    %c0_8 = arith.constant 0 : index
    %7 = vector.load %arg1[%c1_6, %c0_7, %c0_8] : memref<9x3x32xf32, #tpu.memory_space<vmem>>, vector<1x3x32xf32>
    %8 = vector.shape_cast %7 : vector<1x3x32xf32> to vector<3x32xf32>
    %cst_9 = arith.constant dense<0.000000e+00> : vector<232x32xf32>
    %9 = tpu.matmul %6, %8, %cst_9 {dimension_numbers = #tpu.dot_dimension_numbers<[1], [0], [0], [1], [0, 0, 1, 1], [], []>} : vector<232x3xf32>, vector<3x32xf32>, vector<232x32xf32> -> vector<232x32xf32>
    %10 = arith.addf %5, %9 : vector<232x32xf32>
    %c2 = arith.constant 2 : index
    %c0_10 = arith.constant 0 : index
    %11 = vector.load %arg0[%c2, %c0_10] : memref<260x3xf32, #tpu.memory_space<vmem>>, vector<232x3xf32>
    %c2_11 = arith.constant 2 : index
    %c0_12 = arith.constant 0 : index
    %c0_13 = arith.constant 0 : index
    %12 = vector.load %arg1[%c2_11, %c0_12, %c0_13] : memref<9x3x32xf32, #tpu.memory_space<vmem>>, vector<1x3x32xf32>
    %13 = vector.shape_cast %12 : vector<1x3x32xf32> to vector<3x32xf32>
    %cst_14 = arith.constant dense<0.000000e+00> : vector<232x32xf32>
    %14 = tpu.matmul %11, %13, %cst_14 {dimension_numbers = #tpu.dot_dimension_numbers<[1], [0], [0], [1], [0, 0, 1, 1], [], []>} : vector<232x3xf32>, vector<3x32xf32>, vector<232x32xf32> -> vector<232x32xf32>
    %15 = arith.addf %10, %14 : vector<232x32xf32>
    %c13 = arith.constant 13 : index
    %c0_15 = arith.constant 0 : index
    %16 = vector.load %arg0[%c13, %c0_15] : memref<260x3xf32, #tpu.memory_space<vmem>>, vector<232x3xf32>
    %c3 = arith.constant 3 : index
    %c0_16 = arith.constant 0 : index
    %c0_17 = arith.constant 0 : index
    %17 = vector.load %arg1[%c3, %c0_16, %c0_17] : memref<9x3x32xf32, #tpu.memory_space<vmem>>, vector<1x3x32xf32>
    %18 = vector.shape_cast %17 : vector<1x3x32xf32> to vector<3x32xf32>
    %cst_18 = arith.constant dense<0.000000e+00> : vector<232x32xf32>
    %19 = tpu.matmul %16, %18, %cst_18 {dimension_numbers = #tpu.dot_dimension_numbers<[1], [0], [0], [1], [0, 0, 1, 1], [], []>} : vector<232x3xf32>, vector<3x32xf32>, vector<232x32xf32> -> vector<232x32xf32>
    %20 = arith.addf %15, %19 : vector<232x32xf32>
    %c14 = arith.constant 14 : index
    %c0_19 = arith.constant 0 : index
    %21 = vector.load %arg0[%c14, %c0_19] : memref<260x3xf32, #tpu.memory_space<vmem>>, vector<232x3xf32>
    %c4 = arith.constant 4 : index
    %c0_20 = arith.constant 0 : index
    %c0_21 = arith.constant 0 : index
    %22 = vector.load %arg1[%c4, %c0_20, %c0_21] : memref<9x3x32xf32, #tpu.memory_space<vmem>>, vector<1x3x32xf32>
    %23 = vector.shape_cast %22 : vector<1x3x32xf32> to vector<3x32xf32>
    %cst_22 = arith.constant dense<0.000000e+00> : vector<232x32xf32>
    %24 = tpu.matmul %21, %23, %cst_22 {dimension_numbers = #tpu.dot_dimension_numbers<[1], [0], [0], [1], [0, 0, 1, 1], [], []>} : vector<232x3xf32>, vector<3x32xf32>, vector<232x32xf32> -> vector<232x32xf32>
    %25 = arith.addf %20, %24 : vector<232x32xf32>
    %c15 = arith.constant 15 : index
    %c0_23 = arith.constant 0 : index
    %26 = vector.load %arg0[%c15, %c0_23] : memref<260x3xf32, #tpu.memory_space<vmem>>, vector<232x3xf32>
    %c5 = arith.constant 5 : index
    %c0_24 = arith.constant 0 : index
    %c0_25 = arith.constant 0 : index
    %27 = vector.load %arg1[%c5, %c0_24, %c0_25] : memref<9x3x32xf32, #tpu.memory_space<vmem>>, vector<1x3x32xf32>
    %28 = vector.shape_cast %27 : vector<1x3x32xf32> to vector<3x32xf32>
    %cst_26 = arith.constant dense<0.000000e+00> : vector<232x32xf32>
    %29 = tpu.matmul %26, %28, %cst_26 {dimension_numbers = #tpu.dot_dimension_numbers<[1], [0], [0], [1], [0, 0, 1, 1], [], []>} : vector<232x3xf32>, vector<3x32xf32>, vector<232x32xf32> -> vector<232x32xf32>
    %30 = arith.addf %25, %29 : vector<232x32xf32>
    %c26 = arith.constant 26 : index
    %c0_27 = arith.constant 0 : index
    %31 = vector.load %arg0[%c26, %c0_27] : memref<260x3xf32, #tpu.memory_space<vmem>>, vector<232x3xf32>
    %c6 = arith.constant 6 : index
    %c0_28 = arith.constant 0 : index
    %c0_29 = arith.constant 0 : index
    %32 = vector.load %arg1[%c6, %c0_28, %c0_29] : memref<9x3x32xf32, #tpu.memory_space<vmem>>, vector<1x3x32xf32>
    %33 = vector.shape_cast %32 : vector<1x3x32xf32> to vector<3x32xf32>
    %cst_30 = arith.constant dense<0.000000e+00> : vector<232x32xf32>
    %34 = tpu.matmul %31, %33, %cst_30 {dimension_numbers = #tpu.dot_dimension_numbers<[1], [0], [0], [1], [0, 0, 1, 1], [], []>} : vector<232x3xf32>, vector<3x32xf32>, vector<232x32xf32> -> vector<232x32xf32>
    %35 = arith.addf %30, %34 : vector<232x32xf32>
    %c27 = arith.constant 27 : index
    %c0_31 = arith.constant 0 : index
    %36 = vector.load %arg0[%c27, %c0_31] : memref<260x3xf32, #tpu.memory_space<vmem>>, vector<232x3xf32>
    %c7 = arith.constant 7 : index
    %c0_32 = arith.constant 0 : index
    %c0_33 = arith.constant 0 : index
    %37 = vector.load %arg1[%c7, %c0_32, %c0_33] : memref<9x3x32xf32, #tpu.memory_space<vmem>>, vector<1x3x32xf32>
    %38 = vector.shape_cast %37 : vector<1x3x32xf32> to vector<3x32xf32>
    %cst_34 = arith.constant dense<0.000000e+00> : vector<232x32xf32>
    %39 = tpu.matmul %36, %38, %cst_34 {dimension_numbers = #tpu.dot_dimension_numbers<[1], [0], [0], [1], [0, 0, 1, 1], [], []>} : vector<232x3xf32>, vector<3x32xf32>, vector<232x32xf32> -> vector<232x32xf32>
    %40 = arith.addf %35, %39 : vector<232x32xf32>
    %c28 = arith.constant 28 : index
    %c0_35 = arith.constant 0 : index
    %41 = vector.load %arg0[%c28, %c0_35] : memref<260x3xf32, #tpu.memory_space<vmem>>, vector<232x3xf32>
    %c8 = arith.constant 8 : index
    %c0_36 = arith.constant 0 : index
    %c0_37 = arith.constant 0 : index
    %42 = vector.load %arg1[%c8, %c0_36, %c0_37] : memref<9x3x32xf32, #tpu.memory_space<vmem>>, vector<1x3x32xf32>
    %43 = vector.shape_cast %42 : vector<1x3x32xf32> to vector<3x32xf32>
    %cst_38 = arith.constant dense<0.000000e+00> : vector<232x32xf32>
    %44 = tpu.matmul %41, %43, %cst_38 {dimension_numbers = #tpu.dot_dimension_numbers<[1], [0], [0], [1], [0, 0, 1, 1], [], []>} : vector<232x3xf32>, vector<3x32xf32>, vector<232x32xf32> -> vector<232x32xf32>
    %45 = arith.addf %40, %44 : vector<232x32xf32>
    %c0_39 = arith.constant 0 : index
    %c0_40 = arith.constant 0 : index
    %46 = vector.load %arg2[%c0_39, %c0_40] : memref<1x32xf32, #tpu.memory_space<vmem>>, vector<1x32xf32>
    %47 = vector.broadcast %46 : vector<1x32xf32> to vector<232x32xf32>
    %48 = arith.addf %45, %47 : vector<232x32xf32>
    %cst_41 = arith.constant 0.000000e+00 : f32
    %49 = vector.broadcast %cst_41 : f32 to vector<232x32xf32>
    %50 = arith.maximumf %48, %49 : vector<232x32xf32>
    %c0_42 = arith.constant 0 : index
    %c0_43 = arith.constant 0 : index
    %51 = vector.load %arg10[%c0_42, %c0_43] : memref<232x32xf32, #tpu.memory_space<vmem>>, vector<232x32xf32>
    tpu.vector_store %arg10[%c0_42, %c0_43], %50 {strides = array<i32>} : memref<232x32xf32, #tpu.memory_space<vmem>>, vector<232x32xf32>,
    %cst_44 = arith.constant 0.000000e+00 : f32
    %52 = vector.broadcast %cst_44 : f32 to vector<204x64xf32>
    %c0_45 = arith.constant 0 : index
    %c0_46 = arith.constant 0 : index
    %53 = vector.load %arg10[%c0_45, %c0_46] : memref<232x32xf32, #tpu.memory_space<vmem>>, vector<204x32xf32>
    %c0_47 = arith.constant 0 : index
    %c0_48 = arith.constant 0 : index
    %c0_49 = arith.constant 0 : index
    %54 = vector.load %arg3[%c0_47, %c0_48, %c0_49] : memref<9x32x64xf32, #tpu.memory_space<vmem>>, vector<1x32x64xf32>
    %55 = vector.shape_cast %54 : vector<1x32x64xf32> to vector<32x64xf32>
    %cst_50 = arith.constant dense<0.000000e+00> : vector<204x64xf32>
    %56 = tpu.matmul %53, %55, %cst_50 {dimension_numbers = #tpu.dot_dimension_numbers<[1], [0], [0], [1], [0, 0, 1, 1], [], []>} : vector<204x32xf32>, vector<32x64xf32>, vector<204x64xf32> -> vector<204x64xf32>
    %57 = arith.addf %52, %56 : vector<204x64xf32>
    %c1_51 = arith.constant 1 : index
    %c0_52 = arith.constant 0 : index
    %58 = vector.load %arg10[%c1_51, %c0_52] : memref<232x32xf32, #tpu.memory_space<vmem>>, vector<204x32xf32>
    %c1_53 = arith.constant 1 : index
    %c0_54 = arith.constant 0 : index
    %c0_55 = arith.constant 0 : index
    %59 = vector.load %arg3[%c1_53, %c0_54, %c0_55] : memref<9x32x64xf32, #tpu.memory_space<vmem>>, vector<1x32x64xf32>
    %60 = vector.shape_cast %59 : vector<1x32x64xf32> to vector<32x64xf32>
    %cst_56 = arith.constant dense<0.000000e+00> : vector<204x64xf32>
    %61 = tpu.matmul %58, %60, %cst_56 {dimension_numbers = #tpu.dot_dimension_numbers<[1], [0], [0], [1], [0, 0, 1, 1], [], []>} : vector<204x32xf32>, vector<32x64xf32>, vector<204x64xf32> -> vector<204x64xf32>
    %62 = arith.addf %57, %61 : vector<204x64xf32>
    %c2_57 = arith.constant 2 : index
    %c0_58 = arith.constant 0 : index
    %63 = vector.load %arg10[%c2_57, %c0_58] : memref<232x32xf32, #tpu.memory_space<vmem>>, vector<204x32xf32>
    %c2_59 = arith.constant 2 : index
    %c0_60 = arith.constant 0 : index
    %c0_61 = arith.constant 0 : index
    %64 = vector.load %arg3[%c2_59, %c0_60, %c0_61] : memref<9x32x64xf32, #tpu.memory_space<vmem>>, vector<1x32x64xf32>
    %65 = vector.shape_cast %64 : vector<1x32x64xf32> to vector<32x64xf32>
    %cst_62 = arith.constant dense<0.000000e+00> : vector<204x64xf32>
    %66 = tpu.matmul %63, %65, %cst_62 {dimension_numbers = #tpu.dot_dimension_numbers<[1], [0], [0], [1], [0, 0, 1, 1], [], []>} : vector<204x32xf32>, vector<32x64xf32>, vector<204x64xf32> -> vector<204x64xf32>
    %67 = arith.addf %62, %66 : vector<204x64xf32>
    %c13_63 = arith.constant 13 : index
    %c0_64 = arith.constant 0 : index
    %68 = vector.load %arg10[%c13_63, %c0_64] : memref<232x32xf32, #tpu.memory_space<vmem>>, vector<204x32xf32>
    %c3_65 = arith.constant 3 : index
    %c0_66 = arith.constant 0 : index
    %c0_67 = arith.constant 0 : index
    %69 = vector.load %arg3[%c3_65, %c0_66, %c0_67] : memref<9x32x64xf32, #tpu.memory_space<vmem>>, vector<1x32x64xf32>
    %70 = vector.shape_cast %69 : vector<1x32x64xf32> to vector<32x64xf32>
    %cst_68 = arith.constant dense<0.000000e+00> : vector<204x64xf32>
    %71 = tpu.matmul %68, %70, %cst_68 {dimension_numbers = #tpu.dot_dimension_numbers<[1], [0], [0], [1], [0, 0, 1, 1], [], []>} : vector<204x32xf32>, vector<32x64xf32>, vector<204x64xf32> -> vector<204x64xf32>
    %72 = arith.addf %67, %71 : vector<204x64xf32>
    %c14_69 = arith.constant 14 : index
    %c0_70 = arith.constant 0 : index
    %73 = vector.load %arg10[%c14_69, %c0_70] : memref<232x32xf32, #tpu.memory_space<vmem>>, vector<204x32xf32>
    %c4_71 = arith.constant 4 : index
    %c0_72 = arith.constant 0 : index
    %c0_73 = arith.constant 0 : index
    %74 = vector.load %arg3[%c4_71, %c0_72, %c0_73] : memref<9x32x64xf32, #tpu.memory_space<vmem>>, vector<1x32x64xf32>
    %75 = vector.shape_cast %74 : vector<1x32x64xf32> to vector<32x64xf32>
    %cst_74 = arith.constant dense<0.000000e+00> : vector<204x64xf32>
    %76 = tpu.matmul %73, %75, %cst_74 {dimension_numbers = #tpu.dot_dimension_numbers<[1], [0], [0], [1], [0, 0, 1, 1], [], []>} : vector<204x32xf32>, vector<32x64xf32>, vector<204x64xf32> -> vector<204x64xf32>
    %77 = arith.addf %72, %76 : vector<204x64xf32>
    %c15_75 = arith.constant 15 : index
    %c0_76 = arith.constant 0 : index
    %78 = vector.load %arg10[%c15_75, %c0_76] : memref<232x32xf32, #tpu.memory_space<vmem>>, vector<204x32xf32>
    %c5_77 = arith.constant 5 : index
    %c0_78 = arith.constant 0 : index
    %c0_79 = arith.constant 0 : index
    %79 = vector.load %arg3[%c5_77, %c0_78, %c0_79] : memref<9x32x64xf32, #tpu.memory_space<vmem>>, vector<1x32x64xf32>
    %80 = vector.shape_cast %79 : vector<1x32x64xf32> to vector<32x64xf32>
    %cst_80 = arith.constant dense<0.000000e+00> : vector<204x64xf32>
    %81 = tpu.matmul %78, %80, %cst_80 {dimension_numbers = #tpu.dot_dimension_numbers<[1], [0], [0], [1], [0, 0, 1, 1], [], []>} : vector<204x32xf32>, vector<32x64xf32>, vector<204x64xf32> -> vector<204x64xf32>
    %82 = arith.addf %77, %81 : vector<204x64xf32>
    %c26_81 = arith.constant 26 : index
    %c0_82 = arith.constant 0 : index
    %83 = vector.load %arg10[%c26_81, %c0_82] : memref<232x32xf32, #tpu.memory_space<vmem>>, vector<204x32xf32>
    %c6_83 = arith.constant 6 : index
    %c0_84 = arith.constant 0 : index
    %c0_85 = arith.constant 0 : index
    %84 = vector.load %arg3[%c6_83, %c0_84, %c0_85] : memref<9x32x64xf32, #tpu.memory_space<vmem>>, vector<1x32x64xf32>
    %85 = vector.shape_cast %84 : vector<1x32x64xf32> to vector<32x64xf32>
    %cst_86 = arith.constant dense<0.000000e+00> : vector<204x64xf32>
    %86 = tpu.matmul %83, %85, %cst_86 {dimension_numbers = #tpu.dot_dimension_numbers<[1], [0], [0], [1], [0, 0, 1, 1], [], []>} : vector<204x32xf32>, vector<32x64xf32>, vector<204x64xf32> -> vector<204x64xf32>
    %87 = arith.addf %82, %86 : vector<204x64xf32>
    %c27_87 = arith.constant 27 : index
    %c0_88 = arith.constant 0 : index
    %88 = vector.load %arg10[%c27_87, %c0_88] : memref<232x32xf32, #tpu.memory_space<vmem>>, vector<204x32xf32>
    %c7_89 = arith.constant 7 : index
    %c0_90 = arith.constant 0 : index
    %c0_91 = arith.constant 0 : index
    %89 = vector.load %arg3[%c7_89, %c0_90, %c0_91] : memref<9x32x64xf32, #tpu.memory_space<vmem>>, vector<1x32x64xf32>
    %90 = vector.shape_cast %89 : vector<1x32x64xf32> to vector<32x64xf32>
    %cst_92 = arith.constant dense<0.000000e+00> : vector<204x64xf32>
    %91 = tpu.matmul %88, %90, %cst_92 {dimension_numbers = #tpu.dot_dimension_numbers<[1], [0], [0], [1], [0, 0, 1, 1], [], []>} : vector<204x32xf32>, vector<32x64xf32>, vector<204x64xf32> -> vector<204x64xf32>
    %92 = arith.addf %87, %91 : vector<204x64xf32>
    %c28_93 = arith.constant 28 : index
    %c0_94 = arith.constant 0 : index
    %93 = vector.load %arg10[%c28_93, %c0_94] : memref<232x32xf32, #tpu.memory_space<vmem>>, vector<204x32xf32>
    %c8_95 = arith.constant 8 : index
    %c0_96 = arith.constant 0 : index
    %c0_97 = arith.constant 0 : index
    %94 = vector.load %arg3[%c8_95, %c0_96, %c0_97] : memref<9x32x64xf32, #tpu.memory_space<vmem>>, vector<1x32x64xf32>
    %95 = vector.shape_cast %94 : vector<1x32x64xf32> to vector<32x64xf32>
    %cst_98 = arith.constant dense<0.000000e+00> : vector<204x64xf32>
    %96 = tpu.matmul %93, %95, %cst_98 {dimension_numbers = #tpu.dot_dimension_numbers<[1], [0], [0], [1], [0, 0, 1, 1], [], []>} : vector<204x32xf32>, vector<32x64xf32>, vector<204x64xf32> -> vector<204x64xf32>
    %97 = arith.addf %92, %96 : vector<204x64xf32>
    %c0_99 = arith.constant 0 : index
    %c0_100 = arith.constant 0 : index
    %98 = vector.load %arg4[%c0_99, %c0_100] : memref<1x64xf32, #tpu.memory_space<vmem>>, vector<1x64xf32>
    %99 = vector.broadcast %98 : vector<1x64xf32> to vector<204x64xf32>
    %100 = arith.addf %97, %99 : vector<204x64xf32>
    %cst_101 = arith.constant 0.000000e+00 : f32
    %101 = vector.broadcast %cst_101 : f32 to vector<204x64xf32>
    %102 = arith.maximumf %100, %101 : vector<204x64xf32>
    %c0_102 = arith.constant 0 : index
    %c0_103 = arith.constant 0 : index
    %103 = vector.load %arg11[%c0_102, %c0_103] : memref<204x64xf32, #tpu.memory_space<vmem>>, vector<204x64xf32>
    tpu.vector_store %arg11[%c0_102, %c0_103], %102 {strides = array<i32>} : memref<204x64xf32, #tpu.memory_space<vmem>>, vector<204x64xf32>,
    %cst_104 = arith.constant 0.000000e+00 : f32
    %104 = vector.broadcast %cst_104 : f32 to vector<176x96xf32>
    %c0_105 = arith.constant 0 : index
    %c0_106 = arith.constant 0 : index
    %105 = vector.load %arg11[%c0_105, %c0_106] : memref<204x64xf32, #tpu.memory_space<vmem>>, vector<176x64xf32>
    %c0_107 = arith.constant 0 : index
    %c0_108 = arith.constant 0 : index
    %c0_109 = arith.constant 0 : index
    %106 = vector.load %arg5[%c0_107, %c0_108, %c0_109] : memref<9x64x96xf32, #tpu.memory_space<vmem>>, vector<1x64x96xf32>
    %107 = vector.shape_cast %106 : vector<1x64x96xf32> to vector<64x96xf32>
    %cst_110 = arith.constant dense<0.000000e+00> : vector<176x96xf32>
    %108 = tpu.matmul %105, %107, %cst_110 {dimension_numbers = #tpu.dot_dimension_numbers<[1], [0], [0], [1], [0, 0, 1, 1], [], []>} : vector<176x64xf32>, vector<64x96xf32>, vector<176x96xf32> -> vector<176x96xf32>
    %109 = arith.addf %104, %108 : vector<176x96xf32>
    %c1_111 = arith.constant 1 : index
    %c0_112 = arith.constant 0 : index
    %110 = vector.load %arg11[%c1_111, %c0_112] : memref<204x64xf32, #tpu.memory_space<vmem>>, vector<176x64xf32>
    %c1_113 = arith.constant 1 : index
    %c0_114 = arith.constant 0 : index
    %c0_115 = arith.constant 0 : index
    %111 = vector.load %arg5[%c1_113, %c0_114, %c0_115] : memref<9x64x96xf32, #tpu.memory_space<vmem>>, vector<1x64x96xf32>
    %112 = vector.shape_cast %111 : vector<1x64x96xf32> to vector<64x96xf32>
    %cst_116 = arith.constant dense<0.000000e+00> : vector<176x96xf32>
    %113 = tpu.matmul %110, %112, %cst_116 {dimension_numbers = #tpu.dot_dimension_numbers<[1], [0], [0], [1], [0, 0, 1, 1], [], []>} : vector<176x64xf32>, vector<64x96xf32>, vector<176x96xf32> -> vector<176x96xf32>
    %114 = arith.addf %109, %113 : vector<176x96xf32>
    %c2_117 = arith.constant 2 : index
    %c0_118 = arith.constant 0 : index
    %115 = vector.load %arg11[%c2_117, %c0_118] : memref<204x64xf32, #tpu.memory_space<vmem>>, vector<176x64xf32>
    %c2_119 = arith.constant 2 : index
    %c0_120 = arith.constant 0 : index
    %c0_121 = arith.constant 0 : index
    %116 = vector.load %arg5[%c2_119, %c0_120, %c0_121] : memref<9x64x96xf32, #tpu.memory_space<vmem>>, vector<1x64x96xf32>
    %117 = vector.shape_cast %116 : vector<1x64x96xf32> to vector<64x96xf32>
    %cst_122 = arith.constant dense<0.000000e+00> : vector<176x96xf32>
    %118 = tpu.matmul %115, %117, %cst_122 {dimension_numbers = #tpu.dot_dimension_numbers<[1], [0], [0], [1], [0, 0, 1, 1], [], []>} : vector<176x64xf32>, vector<64x96xf32>, vector<176x96xf32> -> vector<176x96xf32>
    %119 = arith.addf %114, %118 : vector<176x96xf32>
    %c13_123 = arith.constant 13 : index
    %c0_124 = arith.constant 0 : index
    %120 = vector.load %arg11[%c13_123, %c0_124] : memref<204x64xf32, #tpu.memory_space<vmem>>, vector<176x64xf32>
    %c3_125 = arith.constant 3 : index
    %c0_126 = arith.constant 0 : index
    %c0_127 = arith.constant 0 : index
    %121 = vector.load %arg5[%c3_125, %c0_126, %c0_127] : memref<9x64x96xf32, #tpu.memory_space<vmem>>, vector<1x64x96xf32>
    %122 = vector.shape_cast %121 : vector<1x64x96xf32> to vector<64x96xf32>
    %cst_128 = arith.constant dense<0.000000e+00> : vector<176x96xf32>
    %123 = tpu.matmul %120, %122, %cst_128 {dimension_numbers = #tpu.dot_dimension_numbers<[1], [0], [0], [1], [0, 0, 1, 1], [], []>} : vector<176x64xf32>, vector<64x96xf32>, vector<176x96xf32> -> vector<176x96xf32>
    %124 = arith.addf %119, %123 : vector<176x96xf32>
    %c14_129 = arith.constant 14 : index
    %c0_130 = arith.constant 0 : index
    %125 = vector.load %arg11[%c14_129, %c0_130] : memref<204x64xf32, #tpu.memory_space<vmem>>, vector<176x64xf32>
    %c4_131 = arith.constant 4 : index
    %c0_132 = arith.constant 0 : index
    %c0_133 = arith.constant 0 : index
    %126 = vector.load %arg5[%c4_131, %c0_132, %c0_133] : memref<9x64x96xf32, #tpu.memory_space<vmem>>, vector<1x64x96xf32>
    %127 = vector.shape_cast %126 : vector<1x64x96xf32> to vector<64x96xf32>
    %cst_134 = arith.constant dense<0.000000e+00> : vector<176x96xf32>
    %128 = tpu.matmul %125, %127, %cst_134 {dimension_numbers = #tpu.dot_dimension_numbers<[1], [0], [0], [1], [0, 0, 1, 1], [], []>} : vector<176x64xf32>, vector<64x96xf32>, vector<176x96xf32> -> vector<176x96xf32>
    %129 = arith.addf %124, %128 : vector<176x96xf32>
    %c15_135 = arith.constant 15 : index
    %c0_136 = arith.constant 0 : index
    %130 = vector.load %arg11[%c15_135, %c0_136] : memref<204x64xf32, #tpu.memory_space<vmem>>, vector<176x64xf32>
    %c5_137 = arith.constant 5 : index
    %c0_138 = arith.constant 0 : index
    %c0_139 = arith.constant 0 : index
    %131 = vector.load %arg5[%c5_137, %c0_138, %c0_139] : memref<9x64x96xf32, #tpu.memory_space<vmem>>, vector<1x64x96xf32>
    %132 = vector.shape_cast %131 : vector<1x64x96xf32> to vector<64x96xf32>
    %cst_140 = arith.constant dense<0.000000e+00> : vector<176x96xf32>
    %133 = tpu.matmul %130, %132, %cst_140 {dimension_numbers = #tpu.dot_dimension_numbers<[1], [0], [0], [1], [0, 0, 1, 1], [], []>} : vector<176x64xf32>, vector<64x96xf32>, vector<176x96xf32> -> vector<176x96xf32>
    %134 = arith.addf %129, %133 : vector<176x96xf32>
    %c26_141 = arith.constant 26 : index
    %c0_142 = arith.constant 0 : index
    %135 = vector.load %arg11[%c26_141, %c0_142] : memref<204x64xf32, #tpu.memory_space<vmem>>, vector<176x64xf32>
    %c6_143 = arith.constant 6 : index
    %c0_144 = arith.constant 0 : index
    %c0_145 = arith.constant 0 : index
    %136 = vector.load %arg5[%c6_143, %c0_144, %c0_145] : memref<9x64x96xf32, #tpu.memory_space<vmem>>, vector<1x64x96xf32>
    %137 = vector.shape_cast %136 : vector<1x64x96xf32> to vector<64x96xf32>
    %cst_146 = arith.constant dense<0.000000e+00> : vector<176x96xf32>
    %138 = tpu.matmul %135, %137, %cst_146 {dimension_numbers = #tpu.dot_dimension_numbers<[1], [0], [0], [1], [0, 0, 1, 1], [], []>} : vector<176x64xf32>, vector<64x96xf32>, vector<176x96xf32> -> vector<176x96xf32>
    %139 = arith.addf %134, %138 : vector<176x96xf32>
    %c27_147 = arith.constant 27 : index
    %c0_148 = arith.constant 0 : index
    %140 = vector.load %arg11[%c27_147, %c0_148] : memref<204x64xf32, #tpu.memory_space<vmem>>, vector<176x64xf32>
    %c7_149 = arith.constant 7 : index
    %c0_150 = arith.constant 0 : index
    %c0_151 = arith.constant 0 : index
    %141 = vector.load %arg5[%c7_149, %c0_150, %c0_151] : memref<9x64x96xf32, #tpu.memory_space<vmem>>, vector<1x64x96xf32>
    %142 = vector.shape_cast %141 : vector<1x64x96xf32> to vector<64x96xf32>
    %cst_152 = arith.constant dense<0.000000e+00> : vector<176x96xf32>
    %143 = tpu.matmul %140, %142, %cst_152 {dimension_numbers = #tpu.dot_dimension_numbers<[1], [0], [0], [1], [0, 0, 1, 1], [], []>} : vector<176x64xf32>, vector<64x96xf32>, vector<176x96xf32> -> vector<176x96xf32>
    %144 = arith.addf %139, %143 : vector<176x96xf32>
    %c28_153 = arith.constant 28 : index
    %c0_154 = arith.constant 0 : index
    %145 = vector.load %arg11[%c28_153, %c0_154] : memref<204x64xf32, #tpu.memory_space<vmem>>, vector<176x64xf32>
    %c8_155 = arith.constant 8 : index
    %c0_156 = arith.constant 0 : index
    %c0_157 = arith.constant 0 : index
    %146 = vector.load %arg5[%c8_155, %c0_156, %c0_157] : memref<9x64x96xf32, #tpu.memory_space<vmem>>, vector<1x64x96xf32>
    %147 = vector.shape_cast %146 : vector<1x64x96xf32> to vector<64x96xf32>
    %cst_158 = arith.constant dense<0.000000e+00> : vector<176x96xf32>
    %148 = tpu.matmul %145, %147, %cst_158 {dimension_numbers = #tpu.dot_dimension_numbers<[1], [0], [0], [1], [0, 0, 1, 1], [], []>} : vector<176x64xf32>, vector<64x96xf32>, vector<176x96xf32> -> vector<176x96xf32>
    %149 = arith.addf %144, %148 : vector<176x96xf32>
    %c0_159 = arith.constant 0 : index
    %c0_160 = arith.constant 0 : index
    %150 = vector.load %arg6[%c0_159, %c0_160] : memref<1x96xf32, #tpu.memory_space<vmem>>, vector<1x96xf32>
    %151 = vector.broadcast %150 : vector<1x96xf32> to vector<176x96xf32>
    %152 = arith.addf %149, %151 : vector<176x96xf32>
    %cst_161 = arith.constant 0.000000e+00 : f32
    %153 = vector.broadcast %cst_161 : f32 to vector<176x96xf32>
    %154 = arith.maximumf %152, %153 : vector<176x96xf32>
    %c0_162 = arith.constant 0 : index
    %c0_163 = arith.constant 0 : index
    %155 = vector.load %arg12[%c0_162, %c0_163] : memref<176x96xf32, #tpu.memory_space<vmem>>, vector<176x96xf32>
    tpu.vector_store %arg12[%c0_162, %c0_163], %154 {strides = array<i32>} : memref<176x96xf32, #tpu.memory_space<vmem>>, vector<176x96xf32>,
    %cst_164 = arith.constant 0.000000e+00 : f32
    %156 = vector.broadcast %cst_164 : f32 to vector<1x60xf32>
    %c0_165 = arith.constant 0 : index
    %c0_166 = arith.constant 0 : index
    %157 = vector.load %arg12[%c0_165, %c0_166] : memref<176x96xf32, #tpu.memory_space<vmem>>, vector<1x96xf32>
    %c0_167 = arith.constant 0 : index
    %c0_168 = arith.constant 0 : index
    %c0_169 = arith.constant 0 : index
    %158 = vector.load %arg7[%c0_167, %c0_168, %c0_169] : memref<28x96x60xf32, #tpu.memory_space<vmem>>, vector<1x96x60xf32>
    %159 = vector.shape_cast %158 : vector<1x96x60xf32> to vector<96x60xf32>
    %cst_170 = arith.constant dense<0.000000e+00> : vector<1x60xf32>
    %160 = tpu.matmul %157, %159, %cst_170 {dimension_numbers = #tpu.dot_dimension_numbers<[1], [0], [0], [1], [0, 0, 1, 1], [], []>} : vector<1x96xf32>, vector<96x60xf32>, vector<1x60xf32> -> vector<1x60xf32>
    %161 = arith.addf %156, %160 : vector<1x60xf32>
    %c1_171 = arith.constant 1 : index
    %c0_172 = arith.constant 0 : index
    %162 = vector.load %arg12[%c1_171, %c0_172] : memref<176x96xf32, #tpu.memory_space<vmem>>, vector<1x96xf32>
    %c1_173 = arith.constant 1 : index
    %c0_174 = arith.constant 0 : index
    %c0_175 = arith.constant 0 : index
    %163 = vector.load %arg7[%c1_173, %c0_174, %c0_175] : memref<28x96x60xf32, #tpu.memory_space<vmem>>, vector<1x96x60xf32>
    %164 = vector.shape_cast %163 : vector<1x96x60xf32> to vector<96x60xf32>
    %cst_176 = arith.constant dense<0.000000e+00> : vector<1x60xf32>
    %165 = tpu.matmul %162, %164, %cst_176 {dimension_numbers = #tpu.dot_dimension_numbers<[1], [0], [0], [1], [0, 0, 1, 1], [], []>} : vector<1x96xf32>, vector<96x60xf32>, vector<1x60xf32> -> vector<1x60xf32>
    %166 = arith.addf %161, %165 : vector<1x60xf32>
    %c2_177 = arith.constant 2 : index
    %c0_178 = arith.constant 0 : index
    %167 = vector.load %arg12[%c2_177, %c0_178] : memref<176x96xf32, #tpu.memory_space<vmem>>, vector<1x96xf32>
    %c2_179 = arith.constant 2 : index
    %c0_180 = arith.constant 0 : index
    %c0_181 = arith.constant 0 : index
    %168 = vector.load %arg7[%c2_179, %c0_180, %c0_181] : memref<28x96x60xf32, #tpu.memory_space<vmem>>, vector<1x96x60xf32>
    %169 = vector.shape_cast %168 : vector<1x96x60xf32> to vector<96x60xf32>
    %cst_182 = arith.constant dense<0.000000e+00> : vector<1x60xf32>
    %170 = tpu.matmul %167, %169, %cst_182 {dimension_numbers = #tpu.dot_dimension_numbers<[1], [0], [0], [1], [0, 0, 1, 1], [], []>} : vector<1x96xf32>, vector<96x60xf32>, vector<1x60xf32> -> vector<1x60xf32>
    %171 = arith.addf %166, %170 : vector<1x60xf32>
    %c3_183 = arith.constant 3 : index
    %c0_184 = arith.constant 0 : index
    %172 = vector.load %arg12[%c3_183, %c0_184] : memref<176x96xf32, #tpu.memory_space<vmem>>, vector<1x96xf32>
    %c3_185 = arith.constant 3 : index
    %c0_186 = arith.constant 0 : index
    %c0_187 = arith.constant 0 : index
    %173 = vector.load %arg7[%c3_185, %c0_186, %c0_187] : memref<28x96x60xf32, #tpu.memory_space<vmem>>, vector<1x96x60xf32>
    %174 = vector.shape_cast %173 : vector<1x96x60xf32> to vector<96x60xf32>
    %cst_188 = arith.constant dense<0.000000e+00> : vector<1x60xf32>
    %175 = tpu.matmul %172, %174, %cst_188 {dimension_numbers = #tpu.dot_dimension_numbers<[1], [0], [0], [1], [0, 0, 1, 1], [], []>} : vector<1x96xf32>, vector<96x60xf32>, vector<1x60xf32> -> vector<1x60xf32>
    %176 = arith.addf %171, %175 : vector<1x60xf32>
    %c4_189 = arith.constant 4 : index
    %c0_190 = arith.constant 0 : index
    %177 = vector.load %arg12[%c4_189, %c0_190] : memref<176x96xf32, #tpu.memory_space<vmem>>, vector<1x96xf32>
    %c4_191 = arith.constant 4 : index
    %c0_192 = arith.constant 0 : index
    %c0_193 = arith.constant 0 : index
    %178 = vector.load %arg7[%c4_191, %c0_192, %c0_193] : memref<28x96x60xf32, #tpu.memory_space<vmem>>, vector<1x96x60xf32>
    %179 = vector.shape_cast %178 : vector<1x96x60xf32> to vector<96x60xf32>
    %cst_194 = arith.constant dense<0.000000e+00> : vector<1x60xf32>
    %180 = tpu.matmul %177, %179, %cst_194 {dimension_numbers = #tpu.dot_dimension_numbers<[1], [0], [0], [1], [0, 0, 1, 1], [], []>} : vector<1x96xf32>, vector<96x60xf32>, vector<1x60xf32> -> vector<1x60xf32>
    %181 = arith.addf %176, %180 : vector<1x60xf32>
    %c5_195 = arith.constant 5 : index
    %c0_196 = arith.constant 0 : index
    %182 = vector.load %arg12[%c5_195, %c0_196] : memref<176x96xf32, #tpu.memory_space<vmem>>, vector<1x96xf32>
    %c5_197 = arith.constant 5 : index
    %c0_198 = arith.constant 0 : index
    %c0_199 = arith.constant 0 : index
    %183 = vector.load %arg7[%c5_197, %c0_198, %c0_199] : memref<28x96x60xf32, #tpu.memory_space<vmem>>, vector<1x96x60xf32>
    %184 = vector.shape_cast %183 : vector<1x96x60xf32> to vector<96x60xf32>
    %cst_200 = arith.constant dense<0.000000e+00> : vector<1x60xf32>
    %185 = tpu.matmul %182, %184, %cst_200 {dimension_numbers = #tpu.dot_dimension_numbers<[1], [0], [0], [1], [0, 0, 1, 1], [], []>} : vector<1x96xf32>, vector<96x60xf32>, vector<1x60xf32> -> vector<1x60xf32>
    %186 = arith.addf %181, %185 : vector<1x60xf32>
    %c6_201 = arith.constant 6 : index
    %c0_202 = arith.constant 0 : index
    %187 = vector.load %arg12[%c6_201, %c0_202] : memref<176x96xf32, #tpu.memory_space<vmem>>, vector<1x96xf32>
    %c6_203 = arith.constant 6 : index
    %c0_204 = arith.constant 0 : index
    %c0_205 = arith.constant 0 : index
    %188 = vector.load %arg7[%c6_203, %c0_204, %c0_205] : memref<28x96x60xf32, #tpu.memory_space<vmem>>, vector<1x96x60xf32>
    %189 = vector.shape_cast %188 : vector<1x96x60xf32> to vector<96x60xf32>
    %cst_206 = arith.constant dense<0.000000e+00> : vector<1x60xf32>
    %190 = tpu.matmul %187, %189, %cst_206 {dimension_numbers = #tpu.dot_dimension_numbers<[1], [0], [0], [1], [0, 0, 1, 1], [], []>} : vector<1x96xf32>, vector<96x60xf32>, vector<1x60xf32> -> vector<1x60xf32>
    %191 = arith.addf %186, %190 : vector<1x60xf32>
    %c13_207 = arith.constant 13 : index
    %c0_208 = arith.constant 0 : index
    %192 = vector.load %arg12[%c13_207, %c0_208] : memref<176x96xf32, #tpu.memory_space<vmem>>, vector<1x96xf32>
    %c7_209 = arith.constant 7 : index
    %c0_210 = arith.constant 0 : index
    %c0_211 = arith.constant 0 : index
    %193 = vector.load %arg7[%c7_209, %c0_210, %c0_211] : memref<28x96x60xf32, #tpu.memory_space<vmem>>, vector<1x96x60xf32>
    %194 = vector.shape_cast %193 : vector<1x96x60xf32> to vector<96x60xf32>
    %cst_212 = arith.constant dense<0.000000e+00> : vector<1x60xf32>
    %195 = tpu.matmul %192, %194, %cst_212 {dimension_numbers = #tpu.dot_dimension_numbers<[1], [0], [0], [1], [0, 0, 1, 1], [], []>} : vector<1x96xf32>, vector<96x60xf32>, vector<1x60xf32> -> vector<1x60xf32>
    %196 = arith.addf %191, %195 : vector<1x60xf32>
    %c14_213 = arith.constant 14 : index
    %c0_214 = arith.constant 0 : index
    %197 = vector.load %arg12[%c14_213, %c0_214] : memref<176x96xf32, #tpu.memory_space<vmem>>, vector<1x96xf32>
    %c8_215 = arith.constant 8 : index
    %c0_216 = arith.constant 0 : index
    %c0_217 = arith.constant 0 : index
    %198 = vector.load %arg7[%c8_215, %c0_216, %c0_217] : memref<28x96x60xf32, #tpu.memory_space<vmem>>, vector<1x96x60xf32>
    %199 = vector.shape_cast %198 : vector<1x96x60xf32> to vector<96x60xf32>
    %cst_218 = arith.constant dense<0.000000e+00> : vector<1x60xf32>
    %200 = tpu.matmul %197, %199, %cst_218 {dimension_numbers = #tpu.dot_dimension_numbers<[1], [0], [0], [1], [0, 0, 1, 1], [], []>} : vector<1x96xf32>, vector<96x60xf32>, vector<1x60xf32> -> vector<1x60xf32>
    %201 = arith.addf %196, %200 : vector<1x60xf32>
    %c15_219 = arith.constant 15 : index
    %c0_220 = arith.constant 0 : index
    %202 = vector.load %arg12[%c15_219, %c0_220] : memref<176x96xf32, #tpu.memory_space<vmem>>, vector<1x96xf32>
    %c9 = arith.constant 9 : index
    %c0_221 = arith.constant 0 : index
    %c0_222 = arith.constant 0 : index
    %203 = vector.load %arg7[%c9, %c0_221, %c0_222] : memref<28x96x60xf32, #tpu.memory_space<vmem>>, vector<1x96x60xf32>
    %204 = vector.shape_cast %203 : vector<1x96x60xf32> to vector<96x60xf32>
    %cst_223 = arith.constant dense<0.000000e+00> : vector<1x60xf32>
    %205 = tpu.matmul %202, %204, %cst_223 {dimension_numbers = #tpu.dot_dimension_numbers<[1], [0], [0], [1], [0, 0, 1, 1], [], []>} : vector<1x96xf32>, vector<96x60xf32>, vector<1x60xf32> -> vector<1x60xf32>
    %206 = arith.addf %201, %205 : vector<1x60xf32>
    %c16 = arith.constant 16 : index
    %c0_224 = arith.constant 0 : index
    %207 = vector.load %arg12[%c16, %c0_224] : memref<176x96xf32, #tpu.memory_space<vmem>>, vector<1x96xf32>
    %c10 = arith.constant 10 : index
    %c0_225 = arith.constant 0 : index
    %c0_226 = arith.constant 0 : index
    %208 = vector.load %arg7[%c10, %c0_225, %c0_226] : memref<28x96x60xf32, #tpu.memory_space<vmem>>, vector<1x96x60xf32>
    %209 = vector.shape_cast %208 : vector<1x96x60xf32> to vector<96x60xf32>
    %cst_227 = arith.constant dense<0.000000e+00> : vector<1x60xf32>
    %210 = tpu.matmul %207, %209, %cst_227 {dimension_numbers = #tpu.dot_dimension_numbers<[1], [0], [0], [1], [0, 0, 1, 1], [], []>} : vector<1x96xf32>, vector<96x60xf32>, vector<1x60xf32> -> vector<1x60xf32>
    %211 = arith.addf %206, %210 : vector<1x60xf32>
    %c17 = arith.constant 17 : index
    %c0_228 = arith.constant 0 : index
    %212 = vector.load %arg12[%c17, %c0_228] : memref<176x96xf32, #tpu.memory_space<vmem>>, vector<1x96xf32>
    %c11 = arith.constant 11 : index
    %c0_229 = arith.constant 0 : index
    %c0_230 = arith.constant 0 : index
    %213 = vector.load %arg7[%c11, %c0_229, %c0_230] : memref<28x96x60xf32, #tpu.memory_space<vmem>>, vector<1x96x60xf32>
    %214 = vector.shape_cast %213 : vector<1x96x60xf32> to vector<96x60xf32>
    %cst_231 = arith.constant dense<0.000000e+00> : vector<1x60xf32>
    %215 = tpu.matmul %212, %214, %cst_231 {dimension_numbers = #tpu.dot_dimension_numbers<[1], [0], [0], [1], [0, 0, 1, 1], [], []>} : vector<1x96xf32>, vector<96x60xf32>, vector<1x60xf32> -> vector<1x60xf32>
    %216 = arith.addf %211, %215 : vector<1x60xf32>
    %c18 = arith.constant 18 : index
    %c0_232 = arith.constant 0 : index
    %217 = vector.load %arg12[%c18, %c0_232] : memref<176x96xf32, #tpu.memory_space<vmem>>, vector<1x96xf32>
    %c12 = arith.constant 12 : index
    %c0_233 = arith.constant 0 : index
    %c0_234 = arith.constant 0 : index
    %218 = vector.load %arg7[%c12, %c0_233, %c0_234] : memref<28x96x60xf32, #tpu.memory_space<vmem>>, vector<1x96x60xf32>
    %219 = vector.shape_cast %218 : vector<1x96x60xf32> to vector<96x60xf32>
    %cst_235 = arith.constant dense<0.000000e+00> : vector<1x60xf32>
    %220 = tpu.matmul %217, %219, %cst_235 {dimension_numbers = #tpu.dot_dimension_numbers<[1], [0], [0], [1], [0, 0, 1, 1], [], []>} : vector<1x96xf32>, vector<96x60xf32>, vector<1x60xf32> -> vector<1x60xf32>
    %221 = arith.addf %216, %220 : vector<1x60xf32>
    %c19 = arith.constant 19 : index
    %c0_236 = arith.constant 0 : index
    %222 = vector.load %arg12[%c19, %c0_236] : memref<176x96xf32, #tpu.memory_space<vmem>>, vector<1x96xf32>
    %c13_237 = arith.constant 13 : index
    %c0_238 = arith.constant 0 : index
    %c0_239 = arith.constant 0 : index
    %223 = vector.load %arg7[%c13_237, %c0_238, %c0_239] : memref<28x96x60xf32, #tpu.memory_space<vmem>>, vector<1x96x60xf32>
    %224 = vector.shape_cast %223 : vector<1x96x60xf32> to vector<96x60xf32>
    %cst_240 = arith.constant dense<0.000000e+00> : vector<1x60xf32>
    %225 = tpu.matmul %222, %224, %cst_240 {dimension_numbers = #tpu.dot_dimension_numbers<[1], [0], [0], [1], [0, 0, 1, 1], [], []>} : vector<1x96xf32>, vector<96x60xf32>, vector<1x60xf32> -> vector<1x60xf32>
    %226 = arith.addf %221, %225 : vector<1x60xf32>
    %c26_241 = arith.constant 26 : index
    %c0_242 = arith.constant 0 : index
    %227 = vector.load %arg12[%c26_241, %c0_242] : memref<176x96xf32, #tpu.memory_space<vmem>>, vector<1x96xf32>
    %c14_243 = arith.constant 14 : index
    %c0_244 = arith.constant 0 : index
    %c0_245 = arith.constant 0 : index
    %228 = vector.load %arg7[%c14_243, %c0_244, %c0_245] : memref<28x96x60xf32, #tpu.memory_space<vmem>>, vector<1x96x60xf32>
    %229 = vector.shape_cast %228 : vector<1x96x60xf32> to vector<96x60xf32>
    %cst_246 = arith.constant dense<0.000000e+00> : vector<1x60xf32>
    %230 = tpu.matmul %227, %229, %cst_246 {dimension_numbers = #tpu.dot_dimension_numbers<[1], [0], [0], [1], [0, 0, 1, 1], [], []>} : vector<1x96xf32>, vector<96x60xf32>, vector<1x60xf32> -> vector<1x60xf32>
    %231 = arith.addf %226, %230 : vector<1x60xf32>
    %c27_247 = arith.constant 27 : index
    %c0_248 = arith.constant 0 : index
    %232 = vector.load %arg12[%c27_247, %c0_248] : memref<176x96xf32, #tpu.memory_space<vmem>>, vector<1x96xf32>
    %c15_249 = arith.constant 15 : index
    %c0_250 = arith.constant 0 : index
    %c0_251 = arith.constant 0 : index
    %233 = vector.load %arg7[%c15_249, %c0_250, %c0_251] : memref<28x96x60xf32, #tpu.memory_space<vmem>>, vector<1x96x60xf32>
    %234 = vector.shape_cast %233 : vector<1x96x60xf32> to vector<96x60xf32>
    %cst_252 = arith.constant dense<0.000000e+00> : vector<1x60xf32>
    %235 = tpu.matmul %232, %234, %cst_252 {dimension_numbers = #tpu.dot_dimension_numbers<[1], [0], [0], [1], [0, 0, 1, 1], [], []>} : vector<1x96xf32>, vector<96x60xf32>, vector<1x60xf32> -> vector<1x60xf32>
    %236 = arith.addf %231, %235 : vector<1x60xf32>
    %c28_253 = arith.constant 28 : index
    %c0_254 = arith.constant 0 : index
    %237 = vector.load %arg12[%c28_253, %c0_254] : memref<176x96xf32, #tpu.memory_space<vmem>>, vector<1x96xf32>
    %c16_255 = arith.constant 16 : index
    %c0_256 = arith.constant 0 : index
    %c0_257 = arith.constant 0 : index
    %238 = vector.load %arg7[%c16_255, %c0_256, %c0_257] : memref<28x96x60xf32, #tpu.memory_space<vmem>>, vector<1x96x60xf32>
    %239 = vector.shape_cast %238 : vector<1x96x60xf32> to vector<96x60xf32>
    %cst_258 = arith.constant dense<0.000000e+00> : vector<1x60xf32>
    %240 = tpu.matmul %237, %239, %cst_258 {dimension_numbers = #tpu.dot_dimension_numbers<[1], [0], [0], [1], [0, 0, 1, 1], [], []>} : vector<1x96xf32>, vector<96x60xf32>, vector<1x60xf32> -> vector<1x60xf32>
    %241 = arith.addf %236, %240 : vector<1x60xf32>
    %c29 = arith.constant 29 : index
    %c0_259 = arith.constant 0 : index
    %242 = vector.load %arg12[%c29, %c0_259] : memref<176x96xf32, #tpu.memory_space<vmem>>, vector<1x96xf32>
    %c17_260 = arith.constant 17 : index
    %c0_261 = arith.constant 0 : index
    %c0_262 = arith.constant 0 : index
    %243 = vector.load %arg7[%c17_260, %c0_261, %c0_262] : memref<28x96x60xf32, #tpu.memory_space<vmem>>, vector<1x96x60xf32>
    %244 = vector.shape_cast %243 : vector<1x96x60xf32> to vector<96x60xf32>
    %cst_263 = arith.constant dense<0.000000e+00> : vector<1x60xf32>
    %245 = tpu.matmul %242, %244, %cst_263 {dimension_numbers = #tpu.dot_dimension_numbers<[1], [0], [0], [1], [0, 0, 1, 1], [], []>} : vector<1x96xf32>, vector<96x60xf32>, vector<1x60xf32> -> vector<1x60xf32>
    %246 = arith.addf %241, %245 : vector<1x60xf32>
    %c30 = arith.constant 30 : index
    %c0_264 = arith.constant 0 : index
    %247 = vector.load %arg12[%c30, %c0_264] : memref<176x96xf32, #tpu.memory_space<vmem>>, vector<1x96xf32>
    %c18_265 = arith.constant 18 : index
    %c0_266 = arith.constant 0 : index
    %c0_267 = arith.constant 0 : index
    %248 = vector.load %arg7[%c18_265, %c0_266, %c0_267] : memref<28x96x60xf32, #tpu.memory_space<vmem>>, vector<1x96x60xf32>
    %249 = vector.shape_cast %248 : vector<1x96x60xf32> to vector<96x60xf32>
    %cst_268 = arith.constant dense<0.000000e+00> : vector<1x60xf32>
    %250 = tpu.matmul %247, %249, %cst_268 {dimension_numbers = #tpu.dot_dimension_numbers<[1], [0], [0], [1], [0, 0, 1, 1], [], []>} : vector<1x96xf32>, vector<96x60xf32>, vector<1x60xf32> -> vector<1x60xf32>
    %251 = arith.addf %246, %250 : vector<1x60xf32>
    %c31 = arith.constant 31 : index
    %c0_269 = arith.constant 0 : index
    %252 = vector.load %arg12[%c31, %c0_269] : memref<176x96xf32, #tpu.memory_space<vmem>>, vector<1x96xf32>
    %c19_270 = arith.constant 19 : index
    %c0_271 = arith.constant 0 : index
    %c0_272 = arith.constant 0 : index
    %253 = vector.load %arg7[%c19_270, %c0_271, %c0_272] : memref<28x96x60xf32, #tpu.memory_space<vmem>>, vector<1x96x60xf32>
    %254 = vector.shape_cast %253 : vector<1x96x60xf32> to vector<96x60xf32>
    %cst_273 = arith.constant dense<0.000000e+00> : vector<1x60xf32>
    %255 = tpu.matmul %252, %254, %cst_273 {dimension_numbers = #tpu.dot_dimension_numbers<[1], [0], [0], [1], [0, 0, 1, 1], [], []>} : vector<1x96xf32>, vector<96x60xf32>, vector<1x60xf32> -> vector<1x60xf32>
    %256 = arith.addf %251, %255 : vector<1x60xf32>
    %c32 = arith.constant 32 : index
    %c0_274 = arith.constant 0 : index
    %257 = vector.load %arg12[%c32, %c0_274] : memref<176x96xf32, #tpu.memory_space<vmem>>, vector<1x96xf32>
    %c20 = arith.constant 20 : index
    %c0_275 = arith.constant 0 : index
    %c0_276 = arith.constant 0 : index
    %258 = vector.load %arg7[%c20, %c0_275, %c0_276] : memref<28x96x60xf32, #tpu.memory_space<vmem>>, vector<1x96x60xf32>
    %259 = vector.shape_cast %258 : vector<1x96x60xf32> to vector<96x60xf32>
    %cst_277 = arith.constant dense<0.000000e+00> : vector<1x60xf32>
    %260 = tpu.matmul %257, %259, %cst_277 {dimension_numbers = #tpu.dot_dimension_numbers<[1], [0], [0], [1], [0, 0, 1, 1], [], []>} : vector<1x96xf32>, vector<96x60xf32>, vector<1x60xf32> -> vector<1x60xf32>
    %261 = arith.addf %256, %260 : vector<1x60xf32>
    %c39 = arith.constant 39 : index
    %c0_278 = arith.constant 0 : index
    %262 = vector.load %arg12[%c39, %c0_278] : memref<176x96xf32, #tpu.memory_space<vmem>>, vector<1x96xf32>
    %c21 = arith.constant 21 : index
    %c0_279 = arith.constant 0 : index
    %c0_280 = arith.constant 0 : index
    %263 = vector.load %arg7[%c21, %c0_279, %c0_280] : memref<28x96x60xf32, #tpu.memory_space<vmem>>, vector<1x96x60xf32>
    %264 = vector.shape_cast %263 : vector<1x96x60xf32> to vector<96x60xf32>
    %cst_281 = arith.constant dense<0.000000e+00> : vector<1x60xf32>
    %265 = tpu.matmul %262, %264, %cst_281 {dimension_numbers = #tpu.dot_dimension_numbers<[1], [0], [0], [1], [0, 0, 1, 1], [], []>} : vector<1x96xf32>, vector<96x60xf32>, vector<1x60xf32> -> vector<1x60xf32>
    %266 = arith.addf %261, %265 : vector<1x60xf32>
    %c40 = arith.constant 40 : index
    %c0_282 = arith.constant 0 : index
    %267 = vector.load %arg12[%c40, %c0_282] : memref<176x96xf32, #tpu.memory_space<vmem>>, vector<1x96xf32>
    %c22 = arith.constant 22 : index
    %c0_283 = arith.constant 0 : index
    %c0_284 = arith.constant 0 : index
    %268 = vector.load %arg7[%c22, %c0_283, %c0_284] : memref<28x96x60xf32, #tpu.memory_space<vmem>>, vector<1x96x60xf32>
    %269 = vector.shape_cast %268 : vector<1x96x60xf32> to vector<96x60xf32>
    %cst_285 = arith.constant dense<0.000000e+00> : vector<1x60xf32>
    %270 = tpu.matmul %267, %269, %cst_285 {dimension_numbers = #tpu.dot_dimension_numbers<[1], [0], [0], [1], [0, 0, 1, 1], [], []>} : vector<1x96xf32>, vector<96x60xf32>, vector<1x60xf32> -> vector<1x60xf32>
    %271 = arith.addf %266, %270 : vector<1x60xf32>
    %c41 = arith.constant 41 : index
    %c0_286 = arith.constant 0 : index
    %272 = vector.load %arg12[%c41, %c0_286] : memref<176x96xf32, #tpu.memory_space<vmem>>, vector<1x96xf32>
    %c23 = arith.constant 23 : index
    %c0_287 = arith.constant 0 : index
    %c0_288 = arith.constant 0 : index
    %273 = vector.load %arg7[%c23, %c0_287, %c0_288] : memref<28x96x60xf32, #tpu.memory_space<vmem>>, vector<1x96x60xf32>
    %274 = vector.shape_cast %273 : vector<1x96x60xf32> to vector<96x60xf32>
    %cst_289 = arith.constant dense<0.000000e+00> : vector<1x60xf32>
    %275 = tpu.matmul %272, %274, %cst_289 {dimension_numbers = #tpu.dot_dimension_numbers<[1], [0], [0], [1], [0, 0, 1, 1], [], []>} : vector<1x96xf32>, vector<96x60xf32>, vector<1x60xf32> -> vector<1x60xf32>
    %276 = arith.addf %271, %275 : vector<1x60xf32>
    %c42 = arith.constant 42 : index
    %c0_290 = arith.constant 0 : index
    %277 = vector.load %arg12[%c42, %c0_290] : memref<176x96xf32, #tpu.memory_space<vmem>>, vector<1x96xf32>
    %c24 = arith.constant 24 : index
    %c0_291 = arith.constant 0 : index
    %c0_292 = arith.constant 0 : index
    %278 = vector.load %arg7[%c24, %c0_291, %c0_292] : memref<28x96x60xf32, #tpu.memory_space<vmem>>, vector<1x96x60xf32>
    %279 = vector.shape_cast %278 : vector<1x96x60xf32> to vector<96x60xf32>
    %cst_293 = arith.constant dense<0.000000e+00> : vector<1x60xf32>
    %280 = tpu.matmul %277, %279, %cst_293 {dimension_numbers = #tpu.dot_dimension_numbers<[1], [0], [0], [1], [0, 0, 1, 1], [], []>} : vector<1x96xf32>, vector<96x60xf32>, vector<1x60xf32> -> vector<1x60xf32>
    %281 = arith.addf %276, %280 : vector<1x60xf32>
    %c43 = arith.constant 43 : index
    %c0_294 = arith.constant 0 : index
    %282 = vector.load %arg12[%c43, %c0_294] : memref<176x96xf32, #tpu.memory_space<vmem>>, vector<1x96xf32>
    %c25 = arith.constant 25 : index
    %c0_295 = arith.constant 0 : index
    %c0_296 = arith.constant 0 : index
    %283 = vector.load %arg7[%c25, %c0_295, %c0_296] : memref<28x96x60xf32, #tpu.memory_space<vmem>>, vector<1x96x60xf32>
    %284 = vector.shape_cast %283 : vector<1x96x60xf32> to vector<96x60xf32>
    %cst_297 = arith.constant dense<0.000000e+00> : vector<1x60xf32>
    %285 = tpu.matmul %282, %284, %cst_297 {dimension_numbers = #tpu.dot_dimension_numbers<[1], [0], [0], [1], [0, 0, 1, 1], [], []>} : vector<1x96xf32>, vector<96x60xf32>, vector<1x60xf32> -> vector<1x60xf32>
    %286 = arith.addf %281, %285 : vector<1x60xf32>
    %c44 = arith.constant 44 : index
    %c0_298 = arith.constant 0 : index
    %287 = vector.load %arg12[%c44, %c0_298] : memref<176x96xf32, #tpu.memory_space<vmem>>, vector<1x96xf32>
    %c26_299 = arith.constant 26 : index
    %c0_300 = arith.constant 0 : index
    %c0_301 = arith.constant 0 : index
    %288 = vector.load %arg7[%c26_299, %c0_300, %c0_301] : memref<28x96x60xf32, #tpu.memory_space<vmem>>, vector<1x96x60xf32>
    %289 = vector.shape_cast %288 : vector<1x96x60xf32> to vector<96x60xf32>
    %cst_302 = arith.constant dense<0.000000e+00> : vector<1x60xf32>
    %290 = tpu.matmul %287, %289, %cst_302 {dimension_numbers = #tpu.dot_dimension_numbers<[1], [0], [0], [1], [0, 0, 1, 1], [], []>} : vector<1x96xf32>, vector<96x60xf32>, vector<1x60xf32> -> vector<1x60xf32>
    %291 = arith.addf %286, %290 : vector<1x60xf32>
    %c45 = arith.constant 45 : index
    %c0_303 = arith.constant 0 : index
    %292 = vector.load %arg12[%c45, %c0_303] : memref<176x96xf32, #tpu.memory_space<vmem>>, vector<1x96xf32>
    %c27_304 = arith.constant 27 : index
    %c0_305 = arith.constant 0 : index
    %c0_306 = arith.constant 0 : index
    %293 = vector.load %arg7[%c27_304, %c0_305, %c0_306] : memref<28x96x60xf32, #tpu.memory_space<vmem>>, vector<1x96x60xf32>
    %294 = vector.shape_cast %293 : vector<1x96x60xf32> to vector<96x60xf32>
    %cst_307 = arith.constant dense<0.000000e+00> : vector<1x60xf32>
    %295 = tpu.matmul %292, %294, %cst_307 {dimension_numbers = #tpu.dot_dimension_numbers<[1], [0], [0], [1], [0, 0, 1, 1], [], []>} : vector<1x96xf32>, vector<96x60xf32>, vector<1x60xf32> -> vector<1x60xf32>
    %296 = arith.addf %291, %295 : vector<1x60xf32>
    %c0_308 = arith.constant 0 : index
    %c0_309 = arith.constant 0 : index
    %297 = vector.load %arg8[%c0_308, %c0_309] : memref<1x60xf32, #tpu.memory_space<vmem>>, vector<1x60xf32>
    %298 = arith.addf %296, %297 : vector<1x60xf32>
    %c0_310 = arith.constant 0 : index
    %c0_311 = arith.constant 0 : index
    %299 = vector.load %arg9[%c0_310, %c0_311] : memref<2x60xf32, #tpu.memory_space<vmem>>, vector<1x60xf32>
    tpu.vector_store %arg9[%c0_310, %c0_311], %298 {strides = array<i32>} : memref<2x60xf32, #tpu.memory_space<vmem>>, vector<1x60xf32>,
    %cst_312 = arith.constant 0.000000e+00 : f32
    %300 = vector.broadcast %cst_312 : f32 to vector<1x60xf32>
    %c130 = arith.constant 130 : index
    %c0_313 = arith.constant 0 : index
    %301 = vector.load %arg12[%c130, %c0_313] : memref<176x96xf32, #tpu.memory_space<vmem>>, vector<1x96xf32>
    %c0_314 = arith.constant 0 : index
    %c0_315 = arith.constant 0 : index
    %c0_316 = arith.constant 0 : index
    %302 = vector.load %arg7[%c0_314, %c0_315, %c0_316] : memref<28x96x60xf32, #tpu.memory_space<vmem>>, vector<1x96x60xf32>
    %303 = vector.shape_cast %302 : vector<1x96x60xf32> to vector<96x60xf32>
    %cst_317 = arith.constant dense<0.000000e+00> : vector<1x60xf32>
    %304 = tpu.matmul %301, %303, %cst_317 {dimension_numbers = #tpu.dot_dimension_numbers<[1], [0], [0], [1], [0, 0, 1, 1], [], []>} : vector<1x96xf32>, vector<96x60xf32>, vector<1x60xf32> -> vector<1x60xf32>
    %305 = arith.addf %300, %304 : vector<1x60xf32>
    %c131 = arith.constant 131 : index
    %c0_318 = arith.constant 0 : index
    %306 = vector.load %arg12[%c131, %c0_318] : memref<176x96xf32, #tpu.memory_space<vmem>>, vector<1x96xf32>
    %c1_319 = arith.constant 1 : index
    %c0_320 = arith.constant 0 : index
    %c0_321 = arith.constant 0 : index
    %307 = vector.load %arg7[%c1_319, %c0_320, %c0_321] : memref<28x96x60xf32, #tpu.memory_space<vmem>>, vector<1x96x60xf32>
    %308 = vector.shape_cast %307 : vector<1x96x60xf32> to vector<96x60xf32>
    %cst_322 = arith.constant dense<0.000000e+00> : vector<1x60xf32>
    %309 = tpu.matmul %306, %308, %cst_322 {dimension_numbers = #tpu.dot_dimension_numbers<[1], [0], [0], [1], [0, 0, 1, 1], [], []>} : vector<1x96xf32>, vector<96x60xf32>, vector<1x60xf32> -> vector<1x60xf32>
    %310 = arith.addf %305, %309 : vector<1x60xf32>
    %c132 = arith.constant 132 : index
    %c0_323 = arith.constant 0 : index
    %311 = vector.load %arg12[%c132, %c0_323] : memref<176x96xf32, #tpu.memory_space<vmem>>, vector<1x96xf32>
    %c2_324 = arith.constant 2 : index
    %c0_325 = arith.constant 0 : index
    %c0_326 = arith.constant 0 : index
    %312 = vector.load %arg7[%c2_324, %c0_325, %c0_326] : memref<28x96x60xf32, #tpu.memory_space<vmem>>, vector<1x96x60xf32>
    %313 = vector.shape_cast %312 : vector<1x96x60xf32> to vector<96x60xf32>
    %cst_327 = arith.constant dense<0.000000e+00> : vector<1x60xf32>
    %314 = tpu.matmul %311, %313, %cst_327 {dimension_numbers = #tpu.dot_dimension_numbers<[1], [0], [0], [1], [0, 0, 1, 1], [], []>} : vector<1x96xf32>, vector<96x60xf32>, vector<1x60xf32> -> vector<1x60xf32>
    %315 = arith.addf %310, %314 : vector<1x60xf32>
    %c133 = arith.constant 133 : index
    %c0_328 = arith.constant 0 : index
    %316 = vector.load %arg12[%c133, %c0_328] : memref<176x96xf32, #tpu.memory_space<vmem>>, vector<1x96xf32>
    %c3_329 = arith.constant 3 : index
    %c0_330 = arith.constant 0 : index
    %c0_331 = arith.constant 0 : index
    %317 = vector.load %arg7[%c3_329, %c0_330, %c0_331] : memref<28x96x60xf32, #tpu.memory_space<vmem>>, vector<1x96x60xf32>
    %318 = vector.shape_cast %317 : vector<1x96x60xf32> to vector<96x60xf32>
    %cst_332 = arith.constant dense<0.000000e+00> : vector<1x60xf32>
    %319 = tpu.matmul %316, %318, %cst_332 {dimension_numbers = #tpu.dot_dimension_numbers<[1], [0], [0], [1], [0, 0, 1, 1], [], []>} : vector<1x96xf32>, vector<96x60xf32>, vector<1x60xf32> -> vector<1x60xf32>
    %320 = arith.addf %315, %319 : vector<1x60xf32>
    %c134 = arith.constant 134 : index
    %c0_333 = arith.constant 0 : index
    %321 = vector.load %arg12[%c134, %c0_333] : memref<176x96xf32, #tpu.memory_space<vmem>>, vector<1x96xf32>
    %c4_334 = arith.constant 4 : index
    %c0_335 = arith.constant 0 : index
    %c0_336 = arith.constant 0 : index
    %322 = vector.load %arg7[%c4_334, %c0_335, %c0_336] : memref<28x96x60xf32, #tpu.memory_space<vmem>>, vector<1x96x60xf32>
    %323 = vector.shape_cast %322 : vector<1x96x60xf32> to vector<96x60xf32>
    %cst_337 = arith.constant dense<0.000000e+00> : vector<1x60xf32>
    %324 = tpu.matmul %321, %323, %cst_337 {dimension_numbers = #tpu.dot_dimension_numbers<[1], [0], [0], [1], [0, 0, 1, 1], [], []>} : vector<1x96xf32>, vector<96x60xf32>, vector<1x60xf32> -> vector<1x60xf32>
    %325 = arith.addf %320, %324 : vector<1x60xf32>
    %c135 = arith.constant 135 : index
    %c0_338 = arith.constant 0 : index
    %326 = vector.load %arg12[%c135, %c0_338] : memref<176x96xf32, #tpu.memory_space<vmem>>, vector<1x96xf32>
    %c5_339 = arith.constant 5 : index
    %c0_340 = arith.constant 0 : index
    %c0_341 = arith.constant 0 : index
    %327 = vector.load %arg7[%c5_339, %c0_340, %c0_341] : memref<28x96x60xf32, #tpu.memory_space<vmem>>, vector<1x96x60xf32>
    %328 = vector.shape_cast %327 : vector<1x96x60xf32> to vector<96x60xf32>
    %cst_342 = arith.constant dense<0.000000e+00> : vector<1x60xf32>
    %329 = tpu.matmul %326, %328, %cst_342 {dimension_numbers = #tpu.dot_dimension_numbers<[1], [0], [0], [1], [0, 0, 1, 1], [], []>} : vector<1x96xf32>, vector<96x60xf32>, vector<1x60xf32> -> vector<1x60xf32>
    %330 = arith.addf %325, %329 : vector<1x60xf32>
    %c136 = arith.constant 136 : index
    %c0_343 = arith.constant 0 : index
    %331 = vector.load %arg12[%c136, %c0_343] : memref<176x96xf32, #tpu.memory_space<vmem>>, vector<1x96xf32>
    %c6_344 = arith.constant 6 : index
    %c0_345 = arith.constant 0 : index
    %c0_346 = arith.constant 0 : index
    %332 = vector.load %arg7[%c6_344, %c0_345, %c0_346] : memref<28x96x60xf32, #tpu.memory_space<vmem>>, vector<1x96x60xf32>
    %333 = vector.shape_cast %332 : vector<1x96x60xf32> to vector<96x60xf32>
    %cst_347 = arith.constant dense<0.000000e+00> : vector<1x60xf32>
    %334 = tpu.matmul %331, %333, %cst_347 {dimension_numbers = #tpu.dot_dimension_numbers<[1], [0], [0], [1], [0, 0, 1, 1], [], []>} : vector<1x96xf32>, vector<96x60xf32>, vector<1x60xf32> -> vector<1x60xf32>
    %335 = arith.addf %330, %334 : vector<1x60xf32>
    %c143 = arith.constant 143 : index
    %c0_348 = arith.constant 0 : index
    %336 = vector.load %arg12[%c143, %c0_348] : memref<176x96xf32, #tpu.memory_space<vmem>>, vector<1x96xf32>
    %c7_349 = arith.constant 7 : index
    %c0_350 = arith.constant 0 : index
    %c0_351 = arith.constant 0 : index
    %337 = vector.load %arg7[%c7_349, %c0_350, %c0_351] : memref<28x96x60xf32, #tpu.memory_space<vmem>>, vector<1x96x60xf32>
    %338 = vector.shape_cast %337 : vector<1x96x60xf32> to vector<96x60xf32>
    %cst_352 = arith.constant dense<0.000000e+00> : vector<1x60xf32>
    %339 = tpu.matmul %336, %338, %cst_352 {dimension_numbers = #tpu.dot_dimension_numbers<[1], [0], [0], [1], [0, 0, 1, 1], [], []>} : vector<1x96xf32>, vector<96x60xf32>, vector<1x60xf32> -> vector<1x60xf32>
    %340 = arith.addf %335, %339 : vector<1x60xf32>
    %c144 = arith.constant 144 : index
    %c0_353 = arith.constant 0 : index
    %341 = vector.load %arg12[%c144, %c0_353] : memref<176x96xf32, #tpu.memory_space<vmem>>, vector<1x96xf32>
    %c8_354 = arith.constant 8 : index
    %c0_355 = arith.constant 0 : index
    %c0_356 = arith.constant 0 : index
    %342 = vector.load %arg7[%c8_354, %c0_355, %c0_356] : memref<28x96x60xf32, #tpu.memory_space<vmem>>, vector<1x96x60xf32>
    %343 = vector.shape_cast %342 : vector<1x96x60xf32> to vector<96x60xf32>
    %cst_357 = arith.constant dense<0.000000e+00> : vector<1x60xf32>
    %344 = tpu.matmul %341, %343, %cst_357 {dimension_numbers = #tpu.dot_dimension_numbers<[1], [0], [0], [1], [0, 0, 1, 1], [], []>} : vector<1x96xf32>, vector<96x60xf32>, vector<1x60xf32> -> vector<1x60xf32>
    %345 = arith.addf %340, %344 : vector<1x60xf32>
    %c145 = arith.constant 145 : index
    %c0_358 = arith.constant 0 : index
    %346 = vector.load %arg12[%c145, %c0_358] : memref<176x96xf32, #tpu.memory_space<vmem>>, vector<1x96xf32>
    %c9_359 = arith.constant 9 : index
    %c0_360 = arith.constant 0 : index
    %c0_361 = arith.constant 0 : index
    %347 = vector.load %arg7[%c9_359, %c0_360, %c0_361] : memref<28x96x60xf32, #tpu.memory_space<vmem>>, vector<1x96x60xf32>
    %348 = vector.shape_cast %347 : vector<1x96x60xf32> to vector<96x60xf32>
    %cst_362 = arith.constant dense<0.000000e+00> : vector<1x60xf32>
    %349 = tpu.matmul %346, %348, %cst_362 {dimension_numbers = #tpu.dot_dimension_numbers<[1], [0], [0], [1], [0, 0, 1, 1], [], []>} : vector<1x96xf32>, vector<96x60xf32>, vector<1x60xf32> -> vector<1x60xf32>
    %350 = arith.addf %345, %349 : vector<1x60xf32>
    %c146 = arith.constant 146 : index
    %c0_363 = arith.constant 0 : index
    %351 = vector.load %arg12[%c146, %c0_363] : memref<176x96xf32, #tpu.memory_space<vmem>>, vector<1x96xf32>
    %c10_364 = arith.constant 10 : index
    %c0_365 = arith.constant 0 : index
    %c0_366 = arith.constant 0 : index
    %352 = vector.load %arg7[%c10_364, %c0_365, %c0_366] : memref<28x96x60xf32, #tpu.memory_space<vmem>>, vector<1x96x60xf32>
    %353 = vector.shape_cast %352 : vector<1x96x60xf32> to vector<96x60xf32>
    %cst_367 = arith.constant dense<0.000000e+00> : vector<1x60xf32>
    %354 = tpu.matmul %351, %353, %cst_367 {dimension_numbers = #tpu.dot_dimension_numbers<[1], [0], [0], [1], [0, 0, 1, 1], [], []>} : vector<1x96xf32>, vector<96x60xf32>, vector<1x60xf32> -> vector<1x60xf32>
    %355 = arith.addf %350, %354 : vector<1x60xf32>
    %c147 = arith.constant 147 : index
    %c0_368 = arith.constant 0 : index
    %356 = vector.load %arg12[%c147, %c0_368] : memref<176x96xf32, #tpu.memory_space<vmem>>, vector<1x96xf32>
    %c11_369 = arith.constant 11 : index
    %c0_370 = arith.constant 0 : index
    %c0_371 = arith.constant 0 : index
    %357 = vector.load %arg7[%c11_369, %c0_370, %c0_371] : memref<28x96x60xf32, #tpu.memory_space<vmem>>, vector<1x96x60xf32>
    %358 = vector.shape_cast %357 : vector<1x96x60xf32> to vector<96x60xf32>
    %cst_372 = arith.constant dense<0.000000e+00> : vector<1x60xf32>
    %359 = tpu.matmul %356, %358, %cst_372 {dimension_numbers = #tpu.dot_dimension_numbers<[1], [0], [0], [1], [0, 0, 1, 1], [], []>} : vector<1x96xf32>, vector<96x60xf32>, vector<1x60xf32> -> vector<1x60xf32>
    %360 = arith.addf %355, %359 : vector<1x60xf32>
    %c148 = arith.constant 148 : index
    %c0_373 = arith.constant 0 : index
    %361 = vector.load %arg12[%c148, %c0_373] : memref<176x96xf32, #tpu.memory_space<vmem>>, vector<1x96xf32>
    %c12_374 = arith.constant 12 : index
    %c0_375 = arith.constant 0 : index
    %c0_376 = arith.constant 0 : index
    %362 = vector.load %arg7[%c12_374, %c0_375, %c0_376] : memref<28x96x60xf32, #tpu.memory_space<vmem>>, vector<1x96x60xf32>
    %363 = vector.shape_cast %362 : vector<1x96x60xf32> to vector<96x60xf32>
    %cst_377 = arith.constant dense<0.000000e+00> : vector<1x60xf32>
    %364 = tpu.matmul %361, %363, %cst_377 {dimension_numbers = #tpu.dot_dimension_numbers<[1], [0], [0], [1], [0, 0, 1, 1], [], []>} : vector<1x96xf32>, vector<96x60xf32>, vector<1x60xf32> -> vector<1x60xf32>
    %365 = arith.addf %360, %364 : vector<1x60xf32>
    %c149 = arith.constant 149 : index
    %c0_378 = arith.constant 0 : index
    %366 = vector.load %arg12[%c149, %c0_378] : memref<176x96xf32, #tpu.memory_space<vmem>>, vector<1x96xf32>
    %c13_379 = arith.constant 13 : index
    %c0_380 = arith.constant 0 : index
    %c0_381 = arith.constant 0 : index
    %367 = vector.load %arg7[%c13_379, %c0_380, %c0_381] : memref<28x96x60xf32, #tpu.memory_space<vmem>>, vector<1x96x60xf32>
    %368 = vector.shape_cast %367 : vector<1x96x60xf32> to vector<96x60xf32>
    %cst_382 = arith.constant dense<0.000000e+00> : vector<1x60xf32>
    %369 = tpu.matmul %366, %368, %cst_382 {dimension_numbers = #tpu.dot_dimension_numbers<[1], [0], [0], [1], [0, 0, 1, 1], [], []>} : vector<1x96xf32>, vector<96x60xf32>, vector<1x60xf32> -> vector<1x60xf32>
    %370 = arith.addf %365, %369 : vector<1x60xf32>
    %c156 = arith.constant 156 : index
    %c0_383 = arith.constant 0 : index
    %371 = vector.load %arg12[%c156, %c0_383] : memref<176x96xf32, #tpu.memory_space<vmem>>, vector<1x96xf32>
    %c14_384 = arith.constant 14 : index
    %c0_385 = arith.constant 0 : index
    %c0_386 = arith.constant 0 : index
    %372 = vector.load %arg7[%c14_384, %c0_385, %c0_386] : memref<28x96x60xf32, #tpu.memory_space<vmem>>, vector<1x96x60xf32>
    %373 = vector.shape_cast %372 : vector<1x96x60xf32> to vector<96x60xf32>
    %cst_387 = arith.constant dense<0.000000e+00> : vector<1x60xf32>
    %374 = tpu.matmul %371, %373, %cst_387 {dimension_numbers = #tpu.dot_dimension_numbers<[1], [0], [0], [1], [0, 0, 1, 1], [], []>} : vector<1x96xf32>, vector<96x60xf32>, vector<1x60xf32> -> vector<1x60xf32>
    %375 = arith.addf %370, %374 : vector<1x60xf32>
    %c157 = arith.constant 157 : index
    %c0_388 = arith.constant 0 : index
    %376 = vector.load %arg12[%c157, %c0_388] : memref<176x96xf32, #tpu.memory_space<vmem>>, vector<1x96xf32>
    %c15_389 = arith.constant 15 : index
    %c0_390 = arith.constant 0 : index
    %c0_391 = arith.constant 0 : index
    %377 = vector.load %arg7[%c15_389, %c0_390, %c0_391] : memref<28x96x60xf32, #tpu.memory_space<vmem>>, vector<1x96x60xf32>
    %378 = vector.shape_cast %377 : vector<1x96x60xf32> to vector<96x60xf32>
    %cst_392 = arith.constant dense<0.000000e+00> : vector<1x60xf32>
    %379 = tpu.matmul %376, %378, %cst_392 {dimension_numbers = #tpu.dot_dimension_numbers<[1], [0], [0], [1], [0, 0, 1, 1], [], []>} : vector<1x96xf32>, vector<96x60xf32>, vector<1x60xf32> -> vector<1x60xf32>
    %380 = arith.addf %375, %379 : vector<1x60xf32>
    %c158 = arith.constant 158 : index
    %c0_393 = arith.constant 0 : index
    %381 = vector.load %arg12[%c158, %c0_393] : memref<176x96xf32, #tpu.memory_space<vmem>>, vector<1x96xf32>
    %c16_394 = arith.constant 16 : index
    %c0_395 = arith.constant 0 : index
    %c0_396 = arith.constant 0 : index
    %382 = vector.load %arg7[%c16_394, %c0_395, %c0_396] : memref<28x96x60xf32, #tpu.memory_space<vmem>>, vector<1x96x60xf32>
    %383 = vector.shape_cast %382 : vector<1x96x60xf32> to vector<96x60xf32>
    %cst_397 = arith.constant dense<0.000000e+00> : vector<1x60xf32>
    %384 = tpu.matmul %381, %383, %cst_397 {dimension_numbers = #tpu.dot_dimension_numbers<[1], [0], [0], [1], [0, 0, 1, 1], [], []>} : vector<1x96xf32>, vector<96x60xf32>, vector<1x60xf32> -> vector<1x60xf32>
    %385 = arith.addf %380, %384 : vector<1x60xf32>
    %c159 = arith.constant 159 : index
    %c0_398 = arith.constant 0 : index
    %386 = vector.load %arg12[%c159, %c0_398] : memref<176x96xf32, #tpu.memory_space<vmem>>, vector<1x96xf32>
    %c17_399 = arith.constant 17 : index
    %c0_400 = arith.constant 0 : index
    %c0_401 = arith.constant 0 : index
    %387 = vector.load %arg7[%c17_399, %c0_400, %c0_401] : memref<28x96x60xf32, #tpu.memory_space<vmem>>, vector<1x96x60xf32>
    %388 = vector.shape_cast %387 : vector<1x96x60xf32> to vector<96x60xf32>
    %cst_402 = arith.constant dense<0.000000e+00> : vector<1x60xf32>
    %389 = tpu.matmul %386, %388, %cst_402 {dimension_numbers = #tpu.dot_dimension_numbers<[1], [0], [0], [1], [0, 0, 1, 1], [], []>} : vector<1x96xf32>, vector<96x60xf32>, vector<1x60xf32> -> vector<1x60xf32>
    %390 = arith.addf %385, %389 : vector<1x60xf32>
    %c160 = arith.constant 160 : index
    %c0_403 = arith.constant 0 : index
    %391 = vector.load %arg12[%c160, %c0_403] : memref<176x96xf32, #tpu.memory_space<vmem>>, vector<1x96xf32>
    %c18_404 = arith.constant 18 : index
    %c0_405 = arith.constant 0 : index
    %c0_406 = arith.constant 0 : index
    %392 = vector.load %arg7[%c18_404, %c0_405, %c0_406] : memref<28x96x60xf32, #tpu.memory_space<vmem>>, vector<1x96x60xf32>
    %393 = vector.shape_cast %392 : vector<1x96x60xf32> to vector<96x60xf32>
    %cst_407 = arith.constant dense<0.000000e+00> : vector<1x60xf32>
    %394 = tpu.matmul %391, %393, %cst_407 {dimension_numbers = #tpu.dot_dimension_numbers<[1], [0], [0], [1], [0, 0, 1, 1], [], []>} : vector<1x96xf32>, vector<96x60xf32>, vector<1x60xf32> -> vector<1x60xf32>
    %395 = arith.addf %390, %394 : vector<1x60xf32>
    %c161 = arith.constant 161 : index
    %c0_408 = arith.constant 0 : index
    %396 = vector.load %arg12[%c161, %c0_408] : memref<176x96xf32, #tpu.memory_space<vmem>>, vector<1x96xf32>
    %c19_409 = arith.constant 19 : index
    %c0_410 = arith.constant 0 : index
    %c0_411 = arith.constant 0 : index
    %397 = vector.load %arg7[%c19_409, %c0_410, %c0_411] : memref<28x96x60xf32, #tpu.memory_space<vmem>>, vector<1x96x60xf32>
    %398 = vector.shape_cast %397 : vector<1x96x60xf32> to vector<96x60xf32>
    %cst_412 = arith.constant dense<0.000000e+00> : vector<1x60xf32>
    %399 = tpu.matmul %396, %398, %cst_412 {dimension_numbers = #tpu.dot_dimension_numbers<[1], [0], [0], [1], [0, 0, 1, 1], [], []>} : vector<1x96xf32>, vector<96x60xf32>, vector<1x60xf32> -> vector<1x60xf32>
    %400 = arith.addf %395, %399 : vector<1x60xf32>
    %c162 = arith.constant 162 : index
    %c0_413 = arith.constant 0 : index
    %401 = vector.load %arg12[%c162, %c0_413] : memref<176x96xf32, #tpu.memory_space<vmem>>, vector<1x96xf32>
    %c20_414 = arith.constant 20 : index
    %c0_415 = arith.constant 0 : index
    %c0_416 = arith.constant 0 : index
    %402 = vector.load %arg7[%c20_414, %c0_415, %c0_416] : memref<28x96x60xf32, #tpu.memory_space<vmem>>, vector<1x96x60xf32>
    %403 = vector.shape_cast %402 : vector<1x96x60xf32> to vector<96x60xf32>
    %cst_417 = arith.constant dense<0.000000e+00> : vector<1x60xf32>
    %404 = tpu.matmul %401, %403, %cst_417 {dimension_numbers = #tpu.dot_dimension_numbers<[1], [0], [0], [1], [0, 0, 1, 1], [], []>} : vector<1x96xf32>, vector<96x60xf32>, vector<1x60xf32> -> vector<1x60xf32>
    %405 = arith.addf %400, %404 : vector<1x60xf32>
    %c169 = arith.constant 169 : index
    %c0_418 = arith.constant 0 : index
    %406 = vector.load %arg12[%c169, %c0_418] : memref<176x96xf32, #tpu.memory_space<vmem>>, vector<1x96xf32>
    %c21_419 = arith.constant 21 : index
    %c0_420 = arith.constant 0 : index
    %c0_421 = arith.constant 0 : index
    %407 = vector.load %arg7[%c21_419, %c0_420, %c0_421] : memref<28x96x60xf32, #tpu.memory_space<vmem>>, vector<1x96x60xf32>
    %408 = vector.shape_cast %407 : vector<1x96x60xf32> to vector<96x60xf32>
    %cst_422 = arith.constant dense<0.000000e+00> : vector<1x60xf32>
    %409 = tpu.matmul %406, %408, %cst_422 {dimension_numbers = #tpu.dot_dimension_numbers<[1], [0], [0], [1], [0, 0, 1, 1], [], []>} : vector<1x96xf32>, vector<96x60xf32>, vector<1x60xf32> -> vector<1x60xf32>
    %410 = arith.addf %405, %409 : vector<1x60xf32>
    %c170 = arith.constant 170 : index
    %c0_423 = arith.constant 0 : index
    %411 = vector.load %arg12[%c170, %c0_423] : memref<176x96xf32, #tpu.memory_space<vmem>>, vector<1x96xf32>
    %c22_424 = arith.constant 22 : index
    %c0_425 = arith.constant 0 : index
    %c0_426 = arith.constant 0 : index
    %412 = vector.load %arg7[%c22_424, %c0_425, %c0_426] : memref<28x96x60xf32, #tpu.memory_space<vmem>>, vector<1x96x60xf32>
    %413 = vector.shape_cast %412 : vector<1x96x60xf32> to vector<96x60xf32>
    %cst_427 = arith.constant dense<0.000000e+00> : vector<1x60xf32>
    %414 = tpu.matmul %411, %413, %cst_427 {dimension_numbers = #tpu.dot_dimension_numbers<[1], [0], [0], [1], [0, 0, 1, 1], [], []>} : vector<1x96xf32>, vector<96x60xf32>, vector<1x60xf32> -> vector<1x60xf32>
    %415 = arith.addf %410, %414 : vector<1x60xf32>
    %c171 = arith.constant 171 : index
    %c0_428 = arith.constant 0 : index
    %416 = vector.load %arg12[%c171, %c0_428] : memref<176x96xf32, #tpu.memory_space<vmem>>, vector<1x96xf32>
    %c23_429 = arith.constant 23 : index
    %c0_430 = arith.constant 0 : index
    %c0_431 = arith.constant 0 : index
    %417 = vector.load %arg7[%c23_429, %c0_430, %c0_431] : memref<28x96x60xf32, #tpu.memory_space<vmem>>, vector<1x96x60xf32>
    %418 = vector.shape_cast %417 : vector<1x96x60xf32> to vector<96x60xf32>
    %cst_432 = arith.constant dense<0.000000e+00> : vector<1x60xf32>
    %419 = tpu.matmul %416, %418, %cst_432 {dimension_numbers = #tpu.dot_dimension_numbers<[1], [0], [0], [1], [0, 0, 1, 1], [], []>} : vector<1x96xf32>, vector<96x60xf32>, vector<1x60xf32> -> vector<1x60xf32>
    %420 = arith.addf %415, %419 : vector<1x60xf32>
    %c172 = arith.constant 172 : index
    %c0_433 = arith.constant 0 : index
    %421 = vector.load %arg12[%c172, %c0_433] : memref<176x96xf32, #tpu.memory_space<vmem>>, vector<1x96xf32>
    %c24_434 = arith.constant 24 : index
    %c0_435 = arith.constant 0 : index
    %c0_436 = arith.constant 0 : index
    %422 = vector.load %arg7[%c24_434, %c0_435, %c0_436] : memref<28x96x60xf32, #tpu.memory_space<vmem>>, vector<1x96x60xf32>
    %423 = vector.shape_cast %422 : vector<1x96x60xf32> to vector<96x60xf32>
    %cst_437 = arith.constant dense<0.000000e+00> : vector<1x60xf32>
    %424 = tpu.matmul %421, %423, %cst_437 {dimension_numbers = #tpu.dot_dimension_numbers<[1], [0], [0], [1], [0, 0, 1, 1], [], []>} : vector<1x96xf32>, vector<96x60xf32>, vector<1x60xf32> -> vector<1x60xf32>
    %425 = arith.addf %420, %424 : vector<1x60xf32>
    %c173 = arith.constant 173 : index
    %c0_438 = arith.constant 0 : index
    %426 = vector.load %arg12[%c173, %c0_438] : memref<176x96xf32, #tpu.memory_space<vmem>>, vector<1x96xf32>
    %c25_439 = arith.constant 25 : index
    %c0_440 = arith.constant 0 : index
    %c0_441 = arith.constant 0 : index
    %427 = vector.load %arg7[%c25_439, %c0_440, %c0_441] : memref<28x96x60xf32, #tpu.memory_space<vmem>>, vector<1x96x60xf32>
    %428 = vector.shape_cast %427 : vector<1x96x60xf32> to vector<96x60xf32>
    %cst_442 = arith.constant dense<0.000000e+00> : vector<1x60xf32>
    %429 = tpu.matmul %426, %428, %cst_442 {dimension_numbers = #tpu.dot_dimension_numbers<[1], [0], [0], [1], [0, 0, 1, 1], [], []>} : vector<1x96xf32>, vector<96x60xf32>, vector<1x60xf32> -> vector<1x60xf32>
    %430 = arith.addf %425, %429 : vector<1x60xf32>
    %c174 = arith.constant 174 : index
    %c0_443 = arith.constant 0 : index
    %431 = vector.load %arg12[%c174, %c0_443] : memref<176x96xf32, #tpu.memory_space<vmem>>, vector<1x96xf32>
    %c26_444 = arith.constant 26 : index
    %c0_445 = arith.constant 0 : index
    %c0_446 = arith.constant 0 : index
    %432 = vector.load %arg7[%c26_444, %c0_445, %c0_446] : memref<28x96x60xf32, #tpu.memory_space<vmem>>, vector<1x96x60xf32>
    %433 = vector.shape_cast %432 : vector<1x96x60xf32> to vector<96x60xf32>
    %cst_447 = arith.constant dense<0.000000e+00> : vector<1x60xf32>
    %434 = tpu.matmul %431, %433, %cst_447 {dimension_numbers = #tpu.dot_dimension_numbers<[1], [0], [0], [1], [0, 0, 1, 1], [], []>} : vector<1x96xf32>, vector<96x60xf32>, vector<1x60xf32> -> vector<1x60xf32>
    %435 = arith.addf %430, %434 : vector<1x60xf32>
    %c175 = arith.constant 175 : index
    %c0_448 = arith.constant 0 : index
    %436 = vector.load %arg12[%c175, %c0_448] : memref<176x96xf32, #tpu.memory_space<vmem>>, vector<1x96xf32>
    %c27_449 = arith.constant 27 : index
    %c0_450 = arith.constant 0 : index
    %c0_451 = arith.constant 0 : index
    %437 = vector.load %arg7[%c27_449, %c0_450, %c0_451] : memref<28x96x60xf32, #tpu.memory_space<vmem>>, vector<1x96x60xf32>
    %438 = vector.shape_cast %437 : vector<1x96x60xf32> to vector<96x60xf32>
    %cst_452 = arith.constant dense<0.000000e+00> : vector<1x60xf32>
    %439 = tpu.matmul %436, %438, %cst_452 {dimension_numbers = #tpu.dot_dimension_numbers<[1], [0], [0], [1], [0, 0, 1, 1], [], []>} : vector<1x96xf32>, vector<96x60xf32>, vector<1x60xf32> -> vector<1x60xf32>
    %440 = arith.addf %435, %439 : vector<1x60xf32>
    %c0_453 = arith.constant 0 : index
    %c0_454 = arith.constant 0 : index
    %441 = vector.load %arg8[%c0_453, %c0_454] : memref<1x60xf32, #tpu.memory_space<vmem>>, vector<1x60xf32>
    %442 = arith.addf %440, %441 : vector<1x60xf32>
    %c1_455 = arith.constant 1 : index
    %c0_456 = arith.constant 0 : index
    %443 = vector.load %arg9[%c1_455, %c0_456] : memref<2x60xf32, #tpu.memory_space<vmem>>, vector<1x60xf32>
    tpu.vector_store %arg9[%c1_455, %c0_456], %442 {strides = array<i32>} : memref<2x60xf32, #tpu.memory_space<vmem>>, vector<1x60xf32>,
    return
  }
}

</mosaic_0001>

<bundles_post_ra>
// kernel: rnn_forward.1
= control target key start
LH: loop header
LB: loop body
LE: loop exit
PB: predicated region body
PF: predicated region fallthrough
CT: control target
= control target key end

     0   :  { %vm182_vm0 = vcmask 1042432   ;;  %v27017_v2 = vmov 0.0   ;;  %vm20160_vm1 = vmmov 0   ;;  %vm94_vm2 = vcmask 23552   ;;  %s27007_s0 = inlined_call_operand.vmem [shape: f32[260,3], index: 0, kind: input, shape index: {}]   ;;  %s27008_s1 = inlined_call_operand.vmem [shape: f32[9,3,32], index: 1, kind: input, shape index: {}]   ;;  %s27009_s2 = inlined_call_operand.vmem [shape: f32[1,32], index: 2, kind: input, shape index: {}]   ;;  %s27010_s3 = inlined_call_operand.vmem [shape: f32[9,32,64], index: 3, kind: input, shape index: {}]   ;;  %s27011_s4 = inlined_call_operand.vmem [shape: f32[1,64], index: 4, kind: input, shape index: {}]   ;;  %s27012_s5 = inlined_call_operand.vmem [shape: f32[9,64,96], index: 5, kind: input, shape index: {}]   ;;  %s27013_s6 = inlined_call_operand.vmem [shape: f32[1,96], index: 6, kind: input, shape index: {}]   ;;  %s27014_s7 = inlined_call_operand.vmem [shape: f32[28,96,60], index: 7, kind: input, shape index: {}]   ;;  %s27015_s8 = inlined_call_operand.vmem [shape: f32[1,60], index: 8, kind: input, shape index: {}]   ;;  %s27016_s9 = inlined_call_operand.hbm [shape: f32[2,60], index: 9, kind: output, shape index: {}]  }
   0x1   :  { %v13906_v0 = vld [vmem:[%s27008_s1 + $0x4] sm:$0x7]  ;;  %16957 = vmatprep.subr.mxu0 %v27017_v2  ;;  %16959 = vmatprep.mubr.msk.f32.mxu0 %vm20160_vm1, %v27017_v2  ;;  %v62_v3 = vld [vmem:[%s27008_s1] sm:$0x7]  ;;  %v13967_v5 = vld [vmem:[%s27008_s1 + $0x8] sm:$0x7] }
   0x2   :  { %v63_v1 = vld [vmem:[%s27007_s0 + $0x1] sm:$0xff]  ;;  %16958 = vmatpush3.msk.msra.mxu0 %vm182_vm0, %v13906_v0  ;;  %17046 = vmatprep.subr.mxu1 %v27017_v2  ;;  %v64_v6 = vld [vmem:[%s27007_s0 + $0x9] sm:$0xff]  ;;  %v65_v8 = vld [vmem:[%s27007_s0 + $0x11] sm:$0xff] }
   0x3   :  { %v33_v4 = vld [vmem:[%s27007_s0] sm:$0xff]  ;;  %16960 = vmatmul.mubr.msk.f32.vlgmr.msra.gmra.mxu0 %vm94_vm2, %v63_v1  ;;  %17047 = vmatpush3.msk.msra.mxu1 %vm182_vm0, %v62_v3  ;;  %v34_v7 = vld [vmem:[%s27007_s0 + $0x8] sm:$0xff]  ;;  %v35_v9 = vld [vmem:[%s27007_s0 + $0x10] sm:$0xff] }
   0x4   :  { %17048 = vmatprep.mubr.msk.f32.mxu1 %vm20160_vm1, %v27017_v2  ;;  %17135 = vmatprep.subr.mxu0 %v27017_v2  ;;  %v66_v10 = vld [vmem:[%s27007_s0 + $0x19] sm:$0xff]  ;;  %v67_v12 = vld [vmem:[%s27007_s0 + $0x21] sm:$0xff]  ;;  %v68_v14 = vld [vmem:[%s27007_s0 + $0x29] sm:$0xff] }
   0x5   :  { %17049 = vmatmul.mubr.msk.f32.vlgmr.msra.gmra.mxu1 %vm94_vm2, %v33_v4  ;;  %17136 = vmatpush3.msk.msra.mxu0 %vm182_vm0, %v13967_v5  ;;  %v36_v11 = vld [vmem:[%s27007_s0 + $0x18] sm:$0xff]  ;;  %v37_v13 = vld [vmem:[%s27007_s0 + $0x20] sm:$0xff]  ;;  %v13998_v15 = vld [vmem:[%s27008_s1 + $0xc] sm:$0x7] }
   0x6   :  { %16962 = vmatprep.mubr.msk.f32.mxu0 %vm20160_vm1, %v27017_v2  ;;  %17051 = vmatprep.mubr.msk.f32.mxu1 %vm20160_vm1, %v27017_v2  ;;  %v38_v16 = vld [vmem:[%s27007_s0 + $0x28] sm:$0xff]  ;;  %v69_v17 = vld [vmem:[%s27007_s0 + $0x31] sm:$0xff]  ;;  %v70_v19 = vld [vmem:[%s27007_s0 + $0x39] sm:$0xff] }
   0x7   :  { %16963 = vmatmul.mubr.msk.f32.gmra.mxu0 %vm94_vm2, %v64_v6  ;;  %17224 = vmatprep.subr.mxu1 %v27017_v2  ;;  %v39_v18 = vld [vmem:[%s27007_s0 + $0x30] sm:$0xff] }
   0x8   :  { %16965 = vmatprep.mubr.msk.f32.mxu0 %vm20160_vm1, %v27017_v2  ;;  %17313 = vmatprep.subr.mxu0 %v27017_v2 }
   0x9   :  { %17052 = vmatmul.mubr.msk.f32.gmra.mxu1 %vm94_vm2, %v34_v7 }
   0xa   :  { %17054 = vmatprep.mubr.msk.f32.mxu1 %vm20160_vm1, %v27017_v2  ;;  %17225 = vmatpush3.msk.msra.mxu1 %vm182_vm0, %v13998_v15 }
   0xb   :  { %16966 = vmatmul.mubr.msk.f32.gmra.mxu0 %vm94_vm2, %v65_v8  ;;  %17402 = vmatprep.subr.mxu1 %v27017_v2 }
   0xc   :  { %16968 = vmatprep.mubr.msk.f32.mxu0 %vm20160_vm1, %v27017_v2 }
   0xd   :  { %17055 = vmatmul.mubr.msk.f32.gmra.mxu1 %vm94_vm2, %v35_v9 }
   0xe   :  { %17057 = vmatprep.mubr.msk.f32.mxu1 %vm20160_vm1, %v27017_v2 }
   0xf   :  { %16969 = vmatmul.mubr.msk.f32.gmra.mxu0 %vm94_vm2, %v66_v10 }
  0x10   :  { %16971 = vmatprep.mubr.msk.f32.mxu0 %vm20160_vm1, %v27017_v2 }
  0x11   :  { %17058 = vmatmul.mubr.msk.f32.gmra.mxu1 %vm94_vm2, %v36_v11 }
  0x12   :  { %17060 = vmatprep.mubr.msk.f32.mxu1 %vm20160_vm1, %v27017_v2 }
  0x13   :  { %16972 = vmatmul.mubr.msk.f32.gmra.mxu0 %vm94_vm2, %v67_v12 }
  0x14   :  { %16974 = vmatprep.mubr.msk.f32.mxu0 %vm20160_vm1, %v27017_v2 }
  0x15   :  { %17061 = vmatmul.mubr.msk.f32.gmra.mxu1 %vm94_vm2, %v37_v13 }
  0x16   :  { %17063 = vmatprep.mubr.msk.f32.mxu1 %vm20160_vm1, %v27017_v2 }
  0x17   :  { %16975 = vmatmul.mubr.msk.f32.gmra.mxu0 %vm94_vm2, %v68_v14 }
  0x18   :  { %16977 = vmatprep.mubr.msk.f32.mxu0 %vm20160_vm1, %v27017_v2 }
  0x19   :  { %17064 = vmatmul.mubr.msk.f32.gmra.mxu1 %vm94_vm2, %v38_v16 }
  0x1a   :  { %17066 = vmatprep.mubr.msk.f32.mxu1 %vm20160_vm1, %v27017_v2 }
  0x1b   :  { %16978 = vmatmul.mubr.msk.f32.gmra.mxu0 %vm94_vm2, %v69_v17 }
  0x1c   :  { %16980 = vmatprep.mubr.msk.f32.mxu0 %vm20160_vm1, %v27017_v2 }
  0x1d   :  { %14 = vsyncpa [#allocation6], 0  ;;  %17067 = vmatmul.mubr.msk.f32.gmra.mxu1 %vm94_vm2, %v39_v18  ;;  %v40_v20 = vld [vmem:[%s27007_s0 + $0x38] sm:$0xff]  ;;  %v71_v21 = vld [vmem:[%s27007_s0 + $0x41] sm:$0xff]  ;;  %vm3281_vm3 = vcmask 261120   ;;  %vm6287_vm4 = vcmask 523264  }
  0x1e   :  { %17069 = vmatprep.mubr.msk.f32.mxu1 %vm20160_vm1, %v27017_v2  ;;  %v41_v22 = vld [vmem:[%s27007_s0 + $0x40] sm:$0xff]  ;;  %v72_v23 = vld [vmem:[%s27007_s0 + $0x49] sm:$0xff]  ;;  %v73_v25 = vld [vmem:[%s27007_s0 + $0x51] sm:$0xff]  ;;  %vm6313_vm5 = vcmask 519168   ;;  %vm8967_vm6 = vcmask 785408   ;;  %vm11453_vm7 = vcmask 483328  }
  0x1f   :  { %16981 = vmatmul.mubr.msk.f32.gmra.mxu0 %vm94_vm2, %v70_v19  ;;  %v42_v24 = vld [vmem:[%s27007_s0 + $0x48] sm:$0xff]  ;;  %v43_v26 = vld [vmem:[%s27007_s0 + $0x50] sm:$0xff]  ;;  %v74_v27 = vld [vmem:[%s27007_s0 + $0x59] sm:$0xff] }
  0x20   :  { %16983 = vmatprep.mubr.msk.f32.mxu0 %vm20160_vm1, %v27017_v2  ;;  %v44_v28 = vld [vmem:[%s27007_s0 + $0x58] sm:$0xff]  ;;  %v75_v29 = vld [vmem:[%s27007_s0 + $0x61] sm:$0xff]  ;;  %v76_v31 = vld [vmem:[%s27007_s0 + $0x69] sm:$0xff] }
  0x21   :  { %17070 = vmatmul.mubr.msk.f32.gmra.mxu1 %vm94_vm2, %v40_v20  ;;  %v45_v30 = vld [vmem:[%s27007_s0 + $0x60] sm:$0xff]  ;;  %v46_v32 = vld [vmem:[%s27007_s0 + $0x68] sm:$0xff]  ;;  %v77_v33 = vld [vmem:[%s27007_s0 + $0x71] sm:$0xff] }
  0x22   :  { %17072 = vmatprep.mubr.msk.f32.mxu1 %vm20160_vm1, %v27017_v2  ;;  %v47_v34 = vld [vmem:[%s27007_s0 + $0x70] sm:$0xff]  ;;  %v78_v35 = vld [vmem:[%s27007_s0 + $0x79] sm:$0xff]  ;;  %v79_v37 = vld [vmem:[%s27007_s0 + $0x81] sm:$0xff] }
  0x23   :  { %16984 = vmatmul.mubr.msk.f32.gmra.mxu0 %vm94_vm2, %v71_v21  ;;  %v48_v36 = vld [vmem:[%s27007_s0 + $0x78] sm:$0xff]  ;;  %v49_v38 = vld [vmem:[%s27007_s0 + $0x80] sm:$0xff]  ;;  %v80_v39 = vld [vmem:[%s27007_s0 + $0x89] sm:$0xff] }
  0x24   :  { %16986 = vmatprep.mubr.msk.f32.mxu0 %vm20160_vm1, %v27017_v2  ;;  %v50_v40 = vld [vmem:[%s27007_s0 + $0x88] sm:$0xff]  ;;  %v81_v41 = vld [vmem:[%s27007_s0 + $0x91] sm:$0xff]  ;;  %v82_v43 = vld [vmem:[%s27007_s0 + $0x99] sm:$0xff] }
  0x25   :  { %17073 = vmatmul.mubr.msk.f32.gmra.mxu1 %vm94_vm2, %v41_v22  ;;  %v51_v42 = vld [vmem:[%s27007_s0 + $0x90] sm:$0xff]  ;;  %v52_v44 = vld [vmem:[%s27007_s0 + $0x98] sm:$0xff]  ;;  %v83_v45 = vld [vmem:[%s27007_s0 + $0xa1] sm:$0xff] }
  0x26   :  { %17075 = vmatprep.mubr.msk.f32.mxu1 %vm20160_vm1, %v27017_v2  ;;  %v53_v46 = vld [vmem:[%s27007_s0 + $0xa0] sm:$0xff]  ;;  %v84_v47 = vld [vmem:[%s27007_s0 + $0xa9] sm:$0xff]  ;;  %v85_v49 = vld [vmem:[%s27007_s0 + $0xb1] sm:$0xff] }
  0x27   :  { %16987 = vmatmul.mubr.msk.f32.gmra.mxu0 %vm94_vm2, %v72_v23  ;;  %v54_v48 = vld [vmem:[%s27007_s0 + $0xa8] sm:$0xff]  ;;  %v55_v50 = vld [vmem:[%s27007_s0 + $0xb0] sm:$0xff]  ;;  %v86_v51 = vld [vmem:[%s27007_s0 + $0xb9] sm:$0xff] }
  0x28   :  { %16989 = vmatprep.mubr.msk.f32.mxu0 %vm20160_vm1, %v27017_v2  ;;  %v56_v52 = vld [vmem:[%s27007_s0 + $0xb8] sm:$0xff]  ;;  %v87_v53 = vld [vmem:[%s27007_s0 + $0xc1] sm:$0xff]  ;;  %v88_v55 = vld [vmem:[%s27007_s0 + $0xc9] sm:$0xff] }
  0x29   :  { %17076 = vmatmul.mubr.msk.f32.gmra.mxu1 %vm94_vm2, %v42_v24  ;;  %v57_v54 = vld [vmem:[%s27007_s0 + $0xc0] sm:$0xff]  ;;  %v58_v56 = vld [vmem:[%s27007_s0 + $0xc8] sm:$0xff]  ;;  %v89_v57 = vld [vmem:[%s27007_s0 + $0xd1] sm:$0xff] }
  0x2a   :  { %17078 = vmatprep.mubr.msk.f32.mxu1 %vm20160_vm1, %v27017_v2  ;;  %v59_v58 = vld [vmem:[%s27007_s0 + $0xd0] sm:$0xff]  ;;  %v90_v59 = vld [vmem:[%s27007_s0 + $0xd9] sm:$0xff]  ;;  %v91_v61 = vld [vmem:[%s27007_s0 + $0xe1] sm:$0xff] }
  0x2b   :  { %16990 = vmatmul.mubr.msk.f32.gmra.mxu0 %vm94_vm2, %v73_v25  ;;  %v60_v60 = vld [vmem:[%s27007_s0 + $0xd8] sm:$0xff]  ;;  %v61_v62 = vld [vmem:[%s27007_s0 + $0xe0] sm:$0xff]  ;;  %v14029_v0 = vld [vmem:[%s27008_s1 + $0x10] sm:$0x7] }
  0x2c   :  { %16992 = vmatprep.mubr.msk.f32.mxu0 %vm20160_vm1, %v27017_v2  ;;  %v696_v63 = vld [vmem:[%s27007_s0 + $0x2] sm:$0xff]  ;;  %v1056_v1 = vld [vmem:[%s27007_s0 + $0xd] sm:$0xff]  ;;  %v1057_v5 = vld [vmem:[%s27007_s0 + $0x15] sm:$0xff] }
  0x2d   :  { %17079 = vmatmul.mubr.msk.f32.gmra.mxu1 %vm94_vm2, %v43_v26  ;;  %v14060_v3 = vld [vmem:[%s27008_s1 + $0x14] sm:$0x7]  ;;  %v697_v4 = vld [vmem:[%s27007_s0 + $0xa] sm:$0xff]  ;;  %v1058_v7 = vld [vmem:[%s27007_s0 + $0x1d] sm:$0xff] }
  0x2e   :  { %17081 = vmatprep.mubr.msk.f32.mxu1 %vm20160_vm1, %v27017_v2  ;;  %v698_v6 = vld [vmem:[%s27007_s0 + $0x12] sm:$0xff]  ;;  %v699_v8 = vld [vmem:[%s27007_s0 + $0x1a] sm:$0xff]  ;;  %v1059_v9 = vld [vmem:[%s27007_s0 + $0x25] sm:$0xff] }
  0x2f   :  { %16993 = vmatmul.mubr.msk.f32.gmra.mxu0 %vm94_vm2, %v74_v27  ;;  %v700_v10 = vld [vmem:[%s27007_s0 + $0x22] sm:$0xff]  ;;  %v1060_v11 = vld [vmem:[%s27007_s0 + $0x2d] sm:$0xff]  ;;  %v1061_v13 = vld [vmem:[%s27007_s0 + $0x35] sm:$0xff] }
  0x30   :  { %16995 = vmatprep.mubr.msk.f32.mxu0 %vm20160_vm1, %v27017_v2  ;;  %v701_v12 = vld [vmem:[%s27007_s0 + $0x2a] sm:$0xff]  ;;  %v702_v14 = vld [vmem:[%s27007_s0 + $0x32] sm:$0xff]  ;;  %v1062_v15 = vld [vmem:[%s27007_s0 + $0x3d] sm:$0xff] }
  0x31   :  { %17082 = vmatmul.mubr.msk.f32.gmra.mxu1 %vm94_vm2, %v44_v28  ;;  %v703_v16 = vld [vmem:[%s27007_s0 + $0x3a] sm:$0xff]  ;;  %v1063_v17 = vld [vmem:[%s27007_s0 + $0x45] sm:$0xff]  ;;  %v1064_v19 = vld [vmem:[%s27007_s0 + $0x4d] sm:$0xff] }
  0x32   :  { %17084 = vmatprep.mubr.msk.f32.mxu1 %vm20160_vm1, %v27017_v2  ;;  %v704_v18 = vld [vmem:[%s27007_s0 + $0x42] sm:$0xff]  ;;  %v705_v20 = vld [vmem:[%s27007_s0 + $0x4a] sm:$0xff]  ;;  %v1065_v21 = vld [vmem:[%s27007_s0 + $0x55] sm:$0xff] }
  0x33   :  { %16996 = vmatmul.mubr.msk.f32.gmra.mxu0 %vm94_vm2, %v75_v29  ;;  %v706_v22 = vld [vmem:[%s27007_s0 + $0x52] sm:$0xff]  ;;  %v1066_v23 = vld [vmem:[%s27007_s0 + $0x5d] sm:$0xff]  ;;  %v1067_v25 = vld [vmem:[%s27007_s0 + $0x65] sm:$0xff] }
  0x34   :  { %16998 = vmatprep.mubr.msk.f32.mxu0 %vm20160_vm1, %v27017_v2  ;;  %v707_v24 = vld [vmem:[%s27007_s0 + $0x5a] sm:$0xff]  ;;  %v708_v26 = vld [vmem:[%s27007_s0 + $0x62] sm:$0xff]  ;;  %v1068_v27 = vld [vmem:[%s27007_s0 + $0x6d] sm:$0xff] }
  0x35   :  { %17085 = vmatmul.mubr.msk.f32.gmra.mxu1 %vm94_vm2, %v45_v30  ;;  %v709_v28 = vld [vmem:[%s27007_s0 + $0x6a] sm:$0xff]  ;;  %v1069_v29 = vld [vmem:[%s27007_s0 + $0x75] sm:$0xff] }
  0x36   :  { %17087 = vmatprep.mubr.msk.f32.mxu1 %vm20160_vm1, %v27017_v2  ;;  %v710_v30 = vld [vmem:[%s27007_s0 + $0x72] sm:$0xff] }
  0x37   :  { %16999 = vmatmul.mubr.msk.f32.gmra.mxu0 %vm94_vm2, %v76_v31  ;;  %v1070_v31 = vld [vmem:[%s27007_s0 + $0x7d] sm:$0xff] }
  0x38   :  { %17001 = vmatprep.mubr.msk.f32.mxu0 %vm20160_vm1, %v27017_v2 }
  0x39   :  { %17088 = vmatmul.mubr.msk.f32.gmra.mxu1 %vm94_vm2, %v46_v32  ;;  %v711_v32 = vld [vmem:[%s27007_s0 + $0x7a] sm:$0xff] }
  0x3a   :  { %17090 = vmatprep.mubr.msk.f32.mxu1 %vm20160_vm1, %v27017_v2 }
  0x3b   :  { %17002 = vmatmul.mubr.msk.f32.gmra.mxu0 %vm94_vm2, %v77_v33  ;;  %v1071_v33 = vld [vmem:[%s27007_s0 + $0x85] sm:$0xff] }
  0x3c   :  { %17004 = vmatprep.mubr.msk.f32.mxu0 %vm20160_vm1, %v27017_v2 }
  0x3d   :  { %17091 = vmatmul.mubr.msk.f32.gmra.mxu1 %vm94_vm2, %v47_v34  ;;  %v712_v34 = vld [vmem:[%s27007_s0 + $0x82] sm:$0xff] }
  0x3e   :  { %17093 = vmatprep.mubr.msk.f32.mxu1 %vm20160_vm1, %v27017_v2 }
  0x3f   :  { %17005 = vmatmul.mubr.msk.f32.gmra.mxu0 %vm94_vm2, %v78_v35  ;;  %v1072_v35 = vld [vmem:[%s27007_s0 + $0x8d] sm:$0xff] }
  0x40   :  { %17007 = vmatprep.mubr.msk.f32.mxu0 %vm20160_vm1, %v27017_v2 }
  0x41   :  { %17094 = vmatmul.mubr.msk.f32.gmra.mxu1 %vm94_vm2, %v48_v36  ;;  %v713_v36 = vld [vmem:[%s27007_s0 + $0x8a] sm:$0xff] }
  0x42   :  { %17096 = vmatprep.mubr.msk.f32.mxu1 %vm20160_vm1, %v27017_v2 }
  0x43   :  { %17008 = vmatmul.mubr.msk.f32.gmra.mxu0 %vm94_vm2, %v79_v37  ;;  %v1073_v37 = vld [vmem:[%s27007_s0 + $0x95] sm:$0xff] }
  0x44   :  { %17010 = vmatprep.mubr.msk.f32.mxu0 %vm20160_vm1, %v27017_v2 }
  0x45   :  { %17097 = vmatmul.mubr.msk.f32.gmra.mxu1 %vm94_vm2, %v49_v38  ;;  %v714_v38 = vld [vmem:[%s27007_s0 + $0x92] sm:$0xff] }
  0x46   :  { %17099 = vmatprep.mubr.msk.f32.mxu1 %vm20160_vm1, %v27017_v2 }
  0x47   :  { %17011 = vmatmul.mubr.msk.f32.gmra.mxu0 %vm94_vm2, %v80_v39  ;;  %v1074_v39 = vld [vmem:[%s27007_s0 + $0x9d] sm:$0xff] }
  0x48   :  { %17013 = vmatprep.mubr.msk.f32.mxu0 %vm20160_vm1, %v27017_v2 }
  0x49   :  { %17100 = vmatmul.mubr.msk.f32.gmra.mxu1 %vm94_vm2, %v50_v40  ;;  %v715_v40 = vld [vmem:[%s27007_s0 + $0x9a] sm:$0xff] }
  0x4a   :  { %17102 = vmatprep.mubr.msk.f32.mxu1 %vm20160_vm1, %v27017_v2 }
  0x4b   :  { %17014 = vmatmul.mubr.msk.f32.gmra.mxu0 %vm94_vm2, %v81_v41  ;;  %v1075_v41 = vld [vmem:[%s27007_s0 + $0xa5] sm:$0xff] }
  0x4c   :  { %17016 = vmatprep.mubr.msk.f32.mxu0 %vm20160_vm1, %v27017_v2 }
  0x4d   :  { %17103 = vmatmul.mubr.msk.f32.gmra.mxu1 %vm94_vm2, %v51_v42 }
  0x4e   :  { %17105 = vmatprep.mubr.msk.f32.mxu1 %vm20160_vm1, %v27017_v2 }
  0x4f   :  { %17017 = vmatmul.mubr.msk.f32.gmra.mxu0 %vm94_vm2, %v82_v43  ;;  %v716_v43 = vld [vmem:[%s27007_s0 + $0xa2] sm:$0xff] }
  0x50   :  { %17019 = vmatprep.mubr.msk.f32.mxu0 %vm20160_vm1, %v27017_v2 }
  0x51   :  { %17106 = vmatmul.mubr.msk.f32.gmra.mxu1 %vm94_vm2, %v52_v44 }
  0x52   :  { %17108 = vmatprep.mubr.msk.f32.mxu1 %vm20160_vm1, %v27017_v2 }
  0x53   :  { %17020 = vmatmul.mubr.msk.f32.gmra.mxu0 %vm94_vm2, %v83_v45 }
  0x54   :  { %17022 = vmatprep.mubr.msk.f32.mxu0 %vm20160_vm1, %v27017_v2 }
  0x55   :  { %17109 = vmatmul.mubr.msk.f32.gmra.mxu1 %vm94_vm2, %v53_v46 }
  0x56   :  { %17111 = vmatprep.mubr.msk.f32.mxu1 %vm20160_vm1, %v27017_v2 }
  0x57   :  { %17023 = vmatmul.mubr.msk.f32.gmra.mxu0 %vm94_vm2, %v84_v47  ;;  %v1076_v47 = vld [vmem:[%s27007_s0 + $0xad] sm:$0xff] }
  0x58   :  { %17025 = vmatprep.mubr.msk.f32.mxu0 %vm20160_vm1, %v27017_v2 }
  0x59   :  { %17112 = vmatmul.mubr.msk.f32.gmra.mxu1 %vm94_vm2, %v54_v48 }
  0x5a   :  { %17114 = vmatprep.mubr.msk.f32.mxu1 %vm20160_vm1, %v27017_v2 }
  0x5b   :  { %17026 = vmatmul.mubr.msk.f32.gmra.mxu0 %vm94_vm2, %v85_v49 }
  0x5c   :  { %17028 = vmatprep.mubr.msk.f32.mxu0 %vm20160_vm1, %v27017_v2 }
  0x5d   :  { %17115 = vmatmul.mubr.msk.f32.gmra.mxu1 %vm94_vm2, %v55_v50  ;;  %v717_v50 = vld [vmem:[%s27007_s0 + $0xaa] sm:$0xff] }
  0x5e   :  { %17117 = vmatprep.mubr.msk.f32.mxu1 %vm20160_vm1, %v27017_v2 }
  0x5f   :  { %17029 = vmatmul.mubr.msk.f32.gmra.mxu0 %vm94_vm2, %v86_v51 }
  0x60   :  { %17031 = vmatprep.mubr.msk.f32.mxu0 %vm20160_vm1, %v27017_v2 }
  0x61   :  { %17118 = vmatmul.mubr.msk.f32.gmra.mxu1 %vm94_vm2, %v56_v52 }
  0x62   :  { %17120 = vmatprep.mubr.msk.f32.mxu1 %vm20160_vm1, %v27017_v2 }
  0x63   :  { %17032 = vmatmul.mubr.msk.f32.gmra.mxu0 %vm94_vm2, %v87_v53 }
  0x64   :  { %17034 = vmatprep.mubr.msk.f32.mxu0 %vm20160_vm1, %v27017_v2 }
  0x65   :  { %17121 = vmatmul.mubr.msk.f32.gmra.mxu1 %vm94_vm2, %v57_v54  ;;  %v1077_v54 = vld [vmem:[%s27007_s0 + $0xb5] sm:$0xff] }
  0x66   :  { %17123 = vmatprep.mubr.msk.f32.mxu1 %vm20160_vm1, %v27017_v2 }
  0x67   :  { %17035 = vmatmul.mubr.msk.f32.gmra.mxu0 %vm94_vm2, %v88_v55 }
  0x68   :  { %17037 = vmatprep.mubr.msk.f32.mxu0 %vm20160_vm1, %v27017_v2 }
  0x69   :  { %17124 = vmatmul.mubr.msk.f32.gmra.mxu1 %vm94_vm2, %v58_v56 }
  0x6a   :  { %17126 = vmatprep.mubr.msk.f32.mxu1 %vm20160_vm1, %v27017_v2 }
  0x6b   :  { %17038 = vmatmul.mubr.msk.f32.gmra.mxu0 %vm94_vm2, %v89_v57  ;;  %v718_v57 = vld [vmem:[%s27007_s0 + $0xb2] sm:$0xff] }
  0x6c   :  { %17040 = vmatprep.mubr.msk.f32.mxu0 %vm20160_vm1, %v27017_v2 }
  0x6d   :  { %17127 = vmatmul.mubr.msk.f32.gmra.mxu1 %vm94_vm2, %v59_v58 }
  0x6e   :  { %17129 = vmatprep.mubr.msk.f32.mxu1 %vm20160_vm1, %v27017_v2 }
  0x6f   :  { %17041 = vmatmul.mubr.msk.f32.gmra.mxu0 %vm94_vm2, %v90_v59 }
  0x70   :  { %17043 = vmatprep.mubr.msk.f32.mxu0 %vm20160_vm1, %v27017_v2 }
  0x71   :  { %17130 = vmatmul.mubr.msk.f32.gmra.mxu1 %vm94_vm2, %v60_v60 }
  0x72   :  { %17132 = vmatprep.mubr.msk.f32.mxu1 %vm20160_vm1, %v27017_v2 }
  0x73   :  { %17044 = vmatmul.mubr.msk.f32.gmra.mxu0 %vm94_vm2, %v91_v61  ;;  %v1078_v61 = vld [vmem:[%s27007_s0 + $0xbd] sm:$0xff] }
  0x74   :  { %17137 = vmatprep.mubr.msk.f32.mxu0 %vm20160_vm1, %v27017_v2 }
  0x75   :  { %17133 = vmatmul.mubr.msk.f32.gmra.mxu1 %vm94_vm2, %v61_v62 }
  0x76   :  { %17226 = vmatprep.mubr.msk.f32.mxu1 %vm20160_vm1, %v27017_v2 }
  0x77   :  { %17138 = vmatmul.mubr.msk.f32.vlgmr.msra.gmra.mxu0 %vm94_vm2, %v696_v63 }
  0x78   :  { %17314 = vmatpush3.msk.msra.mxu0 %vm182_vm0, %v14029_v0  ;;  %17140 = vmatprep.mubr.msk.f32.mxu0 %vm20160_vm1, %v27017_v2  ;;  %v719_v0 = vld [vmem:[%s27007_s0 + $0xba] sm:$0xff] }
  0x79   :  { %17227 = vmatmul.mubr.msk.f32.vlgmr.msra.gmra.mxu1 %vm94_vm2, %v1056_v1  ;;  %17491 = vmatprep.subr.mxu0 %v27017_v2 }
  0x7a   :  { %17229 = vmatprep.mubr.msk.f32.mxu1 %vm20160_vm1, %v27017_v2  ;;  %17403 = vmatpush3.msk.msra.mxu1 %vm182_vm0, %v14060_v3 }
  0x7b   :  { %17141 = vmatmul.mubr.msk.f32.gmra.mxu0 %vm94_vm2, %v697_v4  ;;  %17580 = vmatprep.subr.mxu1 %v27017_v2 }
  0x7c   :  { %17143 = vmatprep.mubr.msk.f32.mxu0 %vm20160_vm1, %v27017_v2 }
  0x7d   :  { %17230 = vmatmul.mubr.msk.f32.gmra.mxu1 %vm94_vm2, %v1057_v5  ;;  %v1079_v5 = vld [vmem:[%s27007_s0 + $0xc5] sm:$0xff] }
  0x7e   :  { %17232 = vmatprep.mubr.msk.f32.mxu1 %vm20160_vm1, %v27017_v2 }
  0x7f   :  { %17144 = vmatmul.mubr.msk.f32.gmra.mxu0 %vm94_vm2, %v698_v6 }
  0x80   :  { %17146 = vmatprep.mubr.msk.f32.mxu0 %vm20160_vm1, %v27017_v2 }
  0x81   :  { %17233 = vmatmul.mubr.msk.f32.gmra.mxu1 %vm94_vm2, %v1058_v7 }
  0x82   :  { %17235 = vmatprep.mubr.msk.f32.mxu1 %vm20160_vm1, %v27017_v2 }
  0x83   :  { %17147 = vmatmul.mubr.msk.f32.gmra.mxu0 %vm94_vm2, %v699_v8  ;;  %v720_v8 = vld [vmem:[%s27007_s0 + $0xc2] sm:$0xff] }
  0x84   :  { %17149 = vmatprep.mubr.msk.f32.mxu0 %vm20160_vm1, %v27017_v2 }
  0x85   :  { %17236 = vmatmul.mubr.msk.f32.gmra.mxu1 %vm94_vm2, %v1059_v9 }
  0x86   :  { %17238 = vmatprep.mubr.msk.f32.mxu1 %vm20160_vm1, %v27017_v2 }
  0x87   :  { %17150 = vmatmul.mubr.msk.f32.gmra.mxu0 %vm94_vm2, %v700_v10 }
  0x88   :  { %17152 = vmatprep.mubr.msk.f32.mxu0 %vm20160_vm1, %v27017_v2 }
  0x89   :  { %17239 = vmatmul.mubr.msk.f32.gmra.mxu1 %vm94_vm2, %v1060_v11 }
  0x8a   :  { %17241 = vmatprep.mubr.msk.f32.mxu1 %vm20160_vm1, %v27017_v2 }
  0x8b   :  { %17153 = vmatmul.mubr.msk.f32.gmra.mxu0 %vm94_vm2, %v701_v12  ;;  %v1080_v12 = vld [vmem:[%s27007_s0 + $0xcd] sm:$0xff] }
  0x8c   :  { %17155 = vmatprep.mubr.msk.f32.mxu0 %vm20160_vm1, %v27017_v2 }
  0x8d   :  { %17242 = vmatmul.mubr.msk.f32.gmra.mxu1 %vm94_vm2, %v1061_v13 }
  0x8e   :  { %17244 = vmatprep.mubr.msk.f32.mxu1 %vm20160_vm1, %v27017_v2 }
  0x8f   :  { %17156 = vmatmul.mubr.msk.f32.gmra.mxu0 %vm94_vm2, %v702_v14 }
  0x90   :  { %17158 = vmatprep.mubr.msk.f32.mxu0 %vm20160_vm1, %v27017_v2 }
  0x91   :  { %17245 = vmatmul.mubr.msk.f32.gmra.mxu1 %vm94_vm2, %v1062_v15  ;;  %v721_v15 = vld [vmem:[%s27007_s0 + $0xca] sm:$0xff] }
  0x92   :  { %17247 = vmatprep.mubr.msk.f32.mxu1 %vm20160_vm1, %v27017_v2 }
  0x93   :  { %17159 = vmatmul.mubr.msk.f32.gmra.mxu0 %vm94_vm2, %v703_v16 }
  0x94   :  { %17161 = vmatprep.mubr.msk.f32.mxu0 %vm20160_vm1, %v27017_v2 }
  0x95   :  { %17248 = vmatmul.mubr.msk.f32.gmra.mxu1 %vm94_vm2, %v1063_v17 }
  0x96   :  { %17250 = vmatprep.mubr.msk.f32.mxu1 %vm20160_vm1, %v27017_v2 }
  0x97   :  { %17162 = vmatmul.mubr.msk.f32.gmra.mxu0 %vm94_vm2, %v704_v18 }
  0x98   :  { %17164 = vmatprep.mubr.msk.f32.mxu0 %vm20160_vm1, %v27017_v2 }
  0x99   :  { %17251 = vmatmul.mubr.msk.f32.gmra.mxu1 %vm94_vm2, %v1064_v19  ;;  %v1081_v19 = vld [vmem:[%s27007_s0 + $0xd5] sm:$0xff] }
  0x9a   :  { %17253 = vmatprep.mubr.msk.f32.mxu1 %vm20160_vm1, %v27017_v2 }
  0x9b   :  { %17165 = vmatmul.mubr.msk.f32.gmra.mxu0 %vm94_vm2, %v705_v20 }
  0x9c   :  { %17167 = vmatprep.mubr.msk.f32.mxu0 %vm20160_vm1, %v27017_v2 }
  0x9d   :  { %17254 = vmatmul.mubr.msk.f32.gmra.mxu1 %vm94_vm2, %v1065_v21 }
  0x9e   :  { %17256 = vmatprep.mubr.msk.f32.mxu1 %vm20160_vm1, %v27017_v2 }
  0x9f   :  { %17168 = vmatmul.mubr.msk.f32.gmra.mxu0 %vm94_vm2, %v706_v22  ;;  %v722_v22 = vld [vmem:[%s27007_s0 + $0xd2] sm:$0xff] }
  0xa0   :  { %17170 = vmatprep.mubr.msk.f32.mxu0 %vm20160_vm1, %v27017_v2 }
  0xa1   :  { %17257 = vmatmul.mubr.msk.f32.gmra.mxu1 %vm94_vm2, %v1066_v23 }
  0xa2   :  { %17259 = vmatprep.mubr.msk.f32.mxu1 %vm20160_vm1, %v27017_v2 }
  0xa3   :  { %17171 = vmatmul.mubr.msk.f32.gmra.mxu0 %vm94_vm2, %v707_v24 }
  0xa4   :  { %17173 = vmatprep.mubr.msk.f32.mxu0 %vm20160_vm1, %v27017_v2 }
  0xa5   :  { %17260 = vmatmul.mubr.msk.f32.gmra.mxu1 %vm94_vm2, %v1067_v25 }
  0xa6   :  { %17262 = vmatprep.mubr.msk.f32.mxu1 %vm20160_vm1, %v27017_v2 }
  0xa7   :  { %17174 = vmatmul.mubr.msk.f32.gmra.mxu0 %vm94_vm2, %v708_v26  ;;  %v1082_v26 = vld [vmem:[%s27007_s0 + $0xdd] sm:$0xff] }
  0xa8   :  { %17176 = vmatprep.mubr.msk.f32.mxu0 %vm20160_vm1, %v27017_v2 }
  0xa9   :  { %17263 = vmatmul.mubr.msk.f32.gmra.mxu1 %vm94_vm2, %v1068_v27 }
  0xaa   :  { %17265 = vmatprep.mubr.msk.f32.mxu1 %vm20160_vm1, %v27017_v2 }
  0xab   :  { %17177 = vmatmul.mubr.msk.f32.gmra.mxu0 %vm94_vm2, %v709_v28 }
  0xac   :  { %17179 = vmatprep.mubr.msk.f32.mxu0 %vm20160_vm1, %v27017_v2 }
  0xad   :  { %17266 = vmatmul.mubr.msk.f32.gmra.mxu1 %vm94_vm2, %v1069_v29  ;;  %v723_v29 = vld [vmem:[%s27007_s0 + $0xda] sm:$0xff] }
  0xae   :  { %17268 = vmatprep.mubr.msk.f32.mxu1 %vm20160_vm1, %v27017_v2 }
  0xaf   :  { %17180 = vmatmul.mubr.msk.f32.gmra.mxu0 %vm94_vm2, %v710_v30 }
  0xb0   :  { %17182 = vmatprep.mubr.msk.f32.mxu0 %vm20160_vm1, %v27017_v2 }
  0xb1   :  { %17269 = vmatmul.mubr.msk.f32.gmra.mxu1 %vm94_vm2, %v1070_v31 }
  0xb2   :  { %17271 = vmatprep.mubr.msk.f32.mxu1 %vm20160_vm1, %v27017_v2 }
  0xb3   :  { %17183 = vmatmul.mubr.msk.f32.gmra.mxu0 %vm94_vm2, %v711_v32 }
  0xb4   :  { %17185 = vmatprep.mubr.msk.f32.mxu0 %vm20160_vm1, %v27017_v2 }
  0xb5   :  { %17272 = vmatmul.mubr.msk.f32.gmra.mxu1 %vm94_vm2, %v1071_v33  ;;  %v1083_v33 = vld [vmem:[%s27007_s0 + $0xe5] sm:$0xff] }
  0xb6   :  { %17274 = vmatprep.mubr.msk.f32.mxu1 %vm20160_vm1, %v27017_v2 }
  0xb7   :  { %17186 = vmatmul.mubr.msk.f32.gmra.mxu0 %vm94_vm2, %v712_v34 }
  0xb8   :  { %17188 = vmatprep.mubr.msk.f32.mxu0 %vm20160_vm1, %v27017_v2 }
  0xb9   :  { %17275 = vmatmul.mubr.msk.f32.gmra.mxu1 %vm94_vm2, %v1072_v35 }
  0xba   :  { %17277 = vmatprep.mubr.msk.f32.mxu1 %vm20160_vm1, %v27017_v2 }
  0xbb   :  { %17189 = vmatmul.mubr.msk.f32.gmra.mxu0 %vm94_vm2, %v713_v36  ;;  %v724_v36 = vld [vmem:[%s27007_s0 + $0xe2] sm:$0xff] }
  0xbc   :  { %17191 = vmatprep.mubr.msk.f32.mxu0 %vm20160_vm1, %v27017_v2 }
  0xbd   :  { %17278 = vmatmul.mubr.msk.f32.gmra.mxu1 %vm94_vm2, %v1073_v37 }
  0xbe   :  { %17280 = vmatprep.mubr.msk.f32.mxu1 %vm20160_vm1, %v27017_v2 }
  0xbf   :  { %17192 = vmatmul.mubr.msk.f32.gmra.mxu0 %vm94_vm2, %v714_v38 }
  0xc0   :  { %17194 = vmatprep.mubr.msk.f32.mxu0 %vm20160_vm1, %v27017_v2 }
  0xc1   :  { %17281 = vmatmul.mubr.msk.f32.gmra.mxu1 %vm94_vm2, %v1074_v39 }
  0xc2   :  { %17283 = vmatprep.mubr.msk.f32.mxu1 %vm20160_vm1, %v27017_v2 }
  0xc3   :  { %v252_v42 = vpop.f32.mrf.mxu0  ;;  %17195 = vmatmul.mubr.msk.f32.gmra.mxu0 %vm94_vm2, %v715_v40  ;;  %v1084_v40 = vld [vmem:[%s27007_s0 + $0xed] sm:$0xff] }
  0xc4   :  { %17197 = vmatprep.mubr.msk.f32.mxu0 %vm20160_vm1, %v27017_v2 }
  0xc5   :  { %v552_v44 = vpop.f32.mrf.mxu1  ;;  %v16961_v45 = vpop.f32.mrf.mxu0  ;;  %17284 = vmatmul.mubr.msk.f32.gmra.mxu1 %vm94_vm2, %v1075_v41 }
  0xc6   :  { %v20837_v46 = vadd.f32 %v552_v44, %v252_v42  ;;  %17286 = vmatprep.mubr.msk.f32.mxu1 %vm20160_vm1, %v27017_v2 }
  0xc7   :  { %v17050_v48 = vpop.f32.mrf.mxu1  ;;  %v257_v49 = vpop.f32.mrf.mxu0  ;;  %17198 = vmatmul.mubr.msk.f32.gmra.mxu0 %vm94_vm2, %v716_v43  ;;  %v1416_v43 = vld [vmem:[%s27007_s0 + $0xe] sm:$0xff] }
  0xc8   :  { %17200 = vmatprep.mubr.msk.f32.mxu0 %vm20160_vm1, %v27017_v2 }
  0xc9   :  { %v557_v51 = vpop.f32.mrf.mxu1  ;;  %v16964_v52 = vpop.f32.mrf.mxu0  ;;  %17287 = vmatmul.mubr.msk.f32.gmra.mxu1 %vm94_vm2, %v1076_v47  ;;  %v14091_v47 = vld [vmem:[%s27008_s1 + $0x18] sm:$0x7] }
  0xca   :  { %v20851_v53 = vadd.f32 %v557_v51, %v257_v49  ;;  %17289 = vmatprep.mubr.msk.f32.mxu1 %vm20160_vm1, %v27017_v2  ;;  %v1776_v49 = vld [vmem:[%s27007_s0 + $0xf] sm:$0xff]  ;;  %v14122_v52 = vld [vmem:[%s27008_s1 + $0x1c] sm:$0x7] }
  0xcb   :  { %v17053_v55 = vpop.f32.mrf.mxu1  ;;  %v262_v56 = vpop.f32.mrf.mxu0  ;;  %17201 = vmatmul.mubr.msk.f32.gmra.mxu0 %vm94_vm2, %v717_v50 }
  0xcc   :  { %17203 = vmatprep.mubr.msk.f32.mxu0 %vm20160_vm1, %v27017_v2 }
  0xcd   :  { %v562_v58 = vpop.f32.mrf.mxu1  ;;  %v16967_v59 = vpop.f32.mrf.mxu0  ;;  %17290 = vmatmul.mubr.msk.f32.gmra.mxu1 %vm94_vm2, %v1077_v54  ;;  %v1417_v54 = vld [vmem:[%s27007_s0 + $0x16] sm:$0xff] }
  0xce   :  { %v20865_v60 = vadd.f32 %v562_v58, %v262_v56  ;;  %17292 = vmatprep.mubr.msk.f32.mxu1 %vm20160_vm1, %v27017_v2  ;;  %v1777_v58 = vld [vmem:[%s27007_s0 + $0x17] sm:$0xff] }
  0xcf   :  { %v17056_v62 = vpop.f32.mrf.mxu1  ;;  %v267_v63 = vpop.f32.mrf.mxu0  ;;  %17204 = vmatmul.mubr.msk.f32.gmra.mxu0 %vm94_vm2, %v718_v57 }
  0xd0   :  { %17206 = vmatprep.mubr.msk.f32.mxu0 %vm20160_vm1, %v27017_v2  ;;  %v1418_v62 = vld [vmem:[%s27007_s0 + $0x1e] sm:$0xff] }
  0xd1   :  { %v567_v1 = vpop.f32.mrf.mxu1  ;;  %v16970_v3 = vpop.f32.mrf.mxu0  ;;  %17293 = vmatmul.mubr.msk.f32.gmra.mxu1 %vm94_vm2, %v1078_v61 }
  0xd2   :  { %v20879_v4 = vadd.f32 %v567_v1, %v267_v63  ;;  %17295 = vmatprep.mubr.msk.f32.mxu1 %vm20160_vm1, %v27017_v2  ;;  %v1778_v3 = vld [vmem:[%s27007_s0 + $0x1f] sm:$0xff] }
  0xd3   :  { %v17059_v6 = vpop.f32.mrf.mxu1  ;;  %v272_v7 = vpop.f32.mrf.mxu0  ;;  %17207 = vmatmul.mubr.msk.f32.gmra.mxu0 %vm94_vm2, %v719_v0 }
  0xd4   :  { %17209 = vmatprep.mubr.msk.f32.mxu0 %vm20160_vm1, %v27017_v2 }
  0xd5   :  { %v572_v9 = vpop.f32.mrf.mxu1  ;;  %v16973_v10 = vpop.f32.mrf.mxu0  ;;  %17296 = vmatmul.mubr.msk.f32.gmra.mxu1 %vm94_vm2, %v1079_v5 }
  0xd6   :  { %v20893_v11 = vadd.f32 %v572_v9, %v272_v7  ;;  %17298 = vmatprep.mubr.msk.f32.mxu1 %vm20160_vm1, %v27017_v2  ;;  %v1419_v7 = vld [vmem:[%s27007_s0 + $0x26] sm:$0xff] }
  0xd7   :  { %v17062_v13 = vpop.f32.mrf.mxu1  ;;  %v277_v14 = vpop.f32.mrf.mxu0  ;;  %17210 = vmatmul.mubr.msk.f32.gmra.mxu0 %vm94_vm2, %v720_v8 }
  0xd8   :  { %17212 = vmatprep.mubr.msk.f32.mxu0 %vm20160_vm1, %v27017_v2 }
  0xd9   :  { %v577_v16 = vpop.f32.mrf.mxu1  ;;  %v16976_v17 = vpop.f32.mrf.mxu0  ;;  %17299 = vmatmul.mubr.msk.f32.gmra.mxu1 %vm94_vm2, %v1080_v12  ;;  %v1779_v12 = vld [vmem:[%s27007_s0 + $0x27] sm:$0xff] }
  0xda   :  { %v20907_v18 = vadd.f32 %v577_v16, %v277_v14  ;;  %17301 = vmatprep.mubr.msk.f32.mxu1 %vm20160_vm1, %v27017_v2 }
  0xdb   :  { %v17065_v20 = vpop.f32.mrf.mxu1  ;;  %v282_v21 = vpop.f32.mrf.mxu0  ;;  %17213 = vmatmul.mubr.msk.f32.gmra.mxu0 %vm94_vm2, %v721_v15  ;;  %v1420_v15 = vld [vmem:[%s27007_s0 + $0x2e] sm:$0xff] }
  0xdc   :  { %17215 = vmatprep.mubr.msk.f32.mxu0 %vm20160_vm1, %v27017_v2  ;;  %v1780_v20 = vld [vmem:[%s27007_s0 + $0x2f] sm:$0xff] }
  0xdd   :  { %v582_v23 = vpop.f32.mrf.mxu1  ;;  %v16979_v24 = vpop.f32.mrf.mxu0  ;;  %17302 = vmatmul.mubr.msk.f32.gmra.mxu1 %vm94_vm2, %v1081_v19 }
  0xde   :  { %v20921_v25 = vadd.f32 %v582_v23, %v282_v21  ;;  %17304 = vmatprep.mubr.msk.f32.mxu1 %vm20160_vm1, %v27017_v2  ;;  %v1421_v23 = vld [vmem:[%s27007_s0 + $0x36] sm:$0xff] }
  0xdf   :  { %v17068_v27 = vpop.f32.mrf.mxu1  ;;  %v287_v28 = vpop.f32.mrf.mxu0  ;;  %17216 = vmatmul.mubr.msk.f32.gmra.mxu0 %vm94_vm2, %v722_v22 }
  0xe0   :  { %17218 = vmatprep.mubr.msk.f32.mxu0 %vm20160_vm1, %v27017_v2 }
  0xe1   :  { %v587_v30 = vpop.f32.mrf.mxu1  ;;  %v16982_v31 = vpop.f32.mrf.mxu0  ;;  %17305 = vmatmul.mubr.msk.f32.gmra.mxu1 %vm94_vm2, %v1082_v26 }
  0xe2   :  { %v20935_v32 = vadd.f32 %v587_v30, %v287_v28  ;;  %17307 = vmatprep.mubr.msk.f32.mxu1 %vm20160_vm1, %v27017_v2  ;;  %v1781_v28 = vld [vmem:[%s27007_s0 + $0x37] sm:$0xff] }
  0xe3   :  { %v17071_v34 = vpop.f32.mrf.mxu1  ;;  %v292_v35 = vpop.f32.mrf.mxu0  ;;  %17219 = vmatmul.mubr.msk.f32.gmra.mxu0 %vm94_vm2, %v723_v29  ;;  %v1422_v31 = vld [vmem:[%s27007_s0 + $0x3e] sm:$0xff] }
  0xe4   :  { %17221 = vmatprep.mubr.msk.f32.mxu0 %vm20160_vm1, %v27017_v2 }
  0xe5   :  { %v592_v37 = vpop.f32.mrf.mxu1  ;;  %v16985_v38 = vpop.f32.mrf.mxu0  ;;  %17308 = vmatmul.mubr.msk.f32.gmra.mxu1 %vm94_vm2, %v1083_v33 }
  0xe6   :  { %v20949_v39 = vadd.f32 %v592_v37, %v292_v35  ;;  %17310 = vmatprep.mubr.msk.f32.mxu1 %vm20160_vm1, %v27017_v2 }
  0xe7   :  { %v17074_v41 = vpop.f32.mrf.mxu1  ;;  %v297_v42 = vpop.f32.mrf.mxu0  ;;  %17222 = vmatmul.mubr.msk.f32.gmra.mxu0 %vm94_vm2, %v724_v36  ;;  %v1782_v36 = vld [vmem:[%s27007_s0 + $0x3f] sm:$0xff] }
  0xe8   :  { %17315 = vmatprep.mubr.msk.f32.mxu0 %vm20160_vm1, %v27017_v2 }
  0xe9   :  { %v597_v44 = vpop.f32.mrf.mxu1  ;;  %v16988_v45 = vpop.f32.mrf.mxu0  ;;  %17311 = vmatmul.mubr.msk.f32.gmra.mxu1 %vm94_vm2, %v1084_v40  ;;  %v1423_v40 = vld [vmem:[%s27007_s0 + $0x46] sm:$0xff] }
  0xea   :  { %v20966_v48 = vadd.f32 %v597_v44, %v297_v42  ;;  %17404 = vmatprep.mubr.msk.f32.mxu1 %vm20160_vm1, %v27017_v2  ;;  %v1783_v44 = vld [vmem:[%s27007_s0 + $0x47] sm:$0xff] }
  0xeb   :  { %v17077_v50 = vpop.f32.mrf.mxu1  ;;  %v302_v51 = vpop.f32.mrf.mxu0  ;;  %17316 = vmatmul.mubr.msk.f32.vlgmr.msra.gmra.mxu0 %vm94_vm2, %v1416_v43 }
  0xec   :  { %17492 = vmatpush3.msk.msra.mxu0 %vm182_vm0, %v14091_v47  ;;  %17318 = vmatprep.mubr.msk.f32.mxu0 %vm20160_vm1, %v27017_v2 }
  0xed   :  { %v602_v55 = vpop.f32.mrf.mxu1  ;;  %v16991_v56 = vpop.f32.mrf.mxu0  ;;  %17405 = vmatmul.mubr.msk.f32.vlgmr.msra.gmra.mxu1 %vm94_vm2, %v1776_v49  ;;  %17669 = vmatprep.subr.mxu0 %v27017_v2  ;;  %v1424_v49 = vld [vmem:[%s27007_s0 + $0x4e] sm:$0xff] }
  0xee   :  { %v20985_v57 = vadd.f32 %v602_v55, %v302_v51  ;;  %17407 = vmatprep.mubr.msk.f32.mxu1 %vm20160_vm1, %v27017_v2  ;;  %17581 = vmatpush3.msk.msra.mxu1 %vm182_vm0, %v14122_v52 }
  0xef   :  { %v17080_v59 = vpop.f32.mrf.mxu1  ;;  %v307_v61 = vpop.f32.mrf.mxu0  ;;  %17319 = vmatmul.mubr.msk.f32.gmra.mxu0 %vm94_vm2, %v1417_v54  ;;  %v1784_v54 = vld [vmem:[%s27007_s0 + $0x4f] sm:$0xff] }
  0xf0   :  { %17321 = vmatprep.mubr.msk.f32.mxu0 %vm20160_vm1, %v27017_v2 }
  0xf1   :  { %v607_v63 = vpop.f32.mrf.mxu1  ;;  %v16994_v0 = vpop.f32.mrf.mxu0  ;;  %17408 = vmatmul.mubr.msk.f32.gmra.mxu1 %vm94_vm2, %v1777_v58  ;;  %v1425_v58 = vld [vmem:[%s27007_s0 + $0x56] sm:$0xff] }
  0xf2   :  { %v21000_v1 = vadd.f32 %v607_v63, %v307_v61  ;;  %17410 = vmatprep.mubr.msk.f32.mxu1 %vm20160_vm1, %v27017_v2  ;;  %v1785_v63 = vld [vmem:[%s27007_s0 + $0x57] sm:$0xff] }
  0xf3   :  { %v17083_v5 = vpop.f32.mrf.mxu1  ;;  %v312_v6 = vpop.f32.mrf.mxu0  ;;  %17322 = vmatmul.mubr.msk.f32.gmra.mxu0 %vm94_vm2, %v1418_v62 }
  0xf4   :  { %17324 = vmatprep.mubr.msk.f32.mxu0 %vm20160_vm1, %v27017_v2  ;;  %v1426_v5 = vld [vmem:[%s27007_s0 + $0x5e] sm:$0xff] }
  0xf5   :  { %v612_v8 = vpop.f32.mrf.mxu1  ;;  %v16997_v9 = vpop.f32.mrf.mxu0  ;;  %17411 = vmatmul.mubr.msk.f32.gmra.mxu1 %vm94_vm2, %v1778_v3 }
  0xf6   :  { %v21014_v10 = vadd.f32 %v612_v8, %v312_v6  ;;  %17413 = vmatprep.mubr.msk.f32.mxu1 %vm20160_vm1, %v27017_v2  ;;  %v1786_v9 = vld [vmem:[%s27007_s0 + $0x5f] sm:$0xff] }
  0xf7   :  { %v17086_v13 = vpop.f32.mrf.mxu1  ;;  %v317_v14 = vpop.f32.mrf.mxu0  ;;  %17325 = vmatmul.mubr.msk.f32.gmra.mxu0 %vm94_vm2, %v1419_v7 }
  0xf8   :  { %17327 = vmatprep.mubr.msk.f32.mxu0 %vm20160_vm1, %v27017_v2 }
  0xf9   :  { %v617_v16 = vpop.f32.mrf.mxu1  ;;  %v17000_v17 = vpop.f32.mrf.mxu0  ;;  %17414 = vmatmul.mubr.msk.f32.gmra.mxu1 %vm94_vm2, %v1779_v12 }
  0xfa   :  { %v21028_v19 = vadd.f32 %v617_v16, %v317_v14  ;;  %17416 = vmatprep.mubr.msk.f32.mxu1 %vm20160_vm1, %v27017_v2  ;;  %v1427_v14 = vld [vmem:[%s27007_s0 + $0x66] sm:$0xff] }
  0xfb   :  { %v17089_v21 = vpop.f32.mrf.mxu1  ;;  %v322_v22 = vpop.f32.mrf.mxu0  ;;  %17328 = vmatmul.mubr.msk.f32.gmra.mxu0 %vm94_vm2, %v1420_v15 }
  0xfc   :  { %17330 = vmatprep.mubr.msk.f32.mxu0 %vm20160_vm1, %v27017_v2 }
  0xfd   :  { %v622_v24 = vpop.f32.mrf.mxu1  ;;  %v17003_v26 = vpop.f32.mrf.mxu0  ;;  %17417 = vmatmul.mubr.msk.f32.gmra.mxu1 %vm94_vm2, %v1780_v20  ;;  %v1787_v20 = vld [vmem:[%s27007_s0 + $0x67] sm:$0xff] }
  0xfe   :  { %v21042_v27 = vadd.f32 %v622_v24, %v322_v22  ;;  %17419 = vmatprep.mubr.msk.f32.mxu1 %vm20160_vm1, %v27017_v2 }
  0xff   :  { %v17092_v29 = vpop.f32.mrf.mxu1  ;;  %v327_v30 = vpop.f32.mrf.mxu0  ;;  %17331 = vmatmul.mubr.msk.f32.gmra.mxu0 %vm94_vm2, %v1421_v23  ;;  %v1428_v23 = vld [vmem:[%s27007_s0 + $0x6e] sm:$0xff] }
 0x100   :  { %17333 = vmatprep.mubr.msk.f32.mxu0 %vm20160_vm1, %v27017_v2  ;;  %v1788_v29 = vld [vmem:[%s27007_s0 + $0x6f] sm:$0xff] }
 0x101   :  { %v627_v33 = vpop.f32.mrf.mxu1  ;;  %v17006_v34 = vpop.f32.mrf.mxu0  ;;  %17420 = vmatmul.mubr.msk.f32.gmra.mxu1 %vm94_vm2, %v1781_v28 }
 0x102   :  { %v21056_v35 = vadd.f32 %v627_v33, %v327_v30  ;;  %17422 = vmatprep.mubr.msk.f32.mxu1 %vm20160_vm1, %v27017_v2  ;;  %v1429_v33 = vld [vmem:[%s27007_s0 + $0x76] sm:$0xff] }
 0x103   :  { %v17095_v37 = vpop.f32.mrf.mxu1  ;;  %v332_v38 = vpop.f32.mrf.mxu0  ;;  %17334 = vmatmul.mubr.msk.f32.gmra.mxu0 %vm94_vm2, %v1422_v31 }
 0x104   :  { %17336 = vmatprep.mubr.msk.f32.mxu0 %vm20160_vm1, %v27017_v2 }
 0x105   :  { %v632_v41 = vpop.f32.mrf.mxu1  ;;  %v17009_v42 = vpop.f32.mrf.mxu0  ;;  %17423 = vmatmul.mubr.msk.f32.gmra.mxu1 %vm94_vm2, %v1782_v36 }
 0x106   :  { %v21070_v43 = vadd.f32 %v632_v41, %v332_v38  ;;  %17425 = vmatprep.mubr.msk.f32.mxu1 %vm20160_vm1, %v27017_v2  ;;  %v1789_v38 = vld [vmem:[%s27007_s0 + $0x77] sm:$0xff] }
 0x107   :  { %v17098_v45 = vpop.f32.mrf.mxu1  ;;  %v337_v47 = vpop.f32.mrf.mxu0  ;;  %17337 = vmatmul.mubr.msk.f32.gmra.mxu0 %vm94_vm2, %v1423_v40  ;;  %v1430_v42 = vld [vmem:[%s27007_s0 + $0x7e] sm:$0xff] }
 0x108   :  { %17339 = vmatprep.mubr.msk.f32.mxu0 %vm20160_vm1, %v27017_v2 }
 0x109   :  { %v637_v50 = vpop.f32.mrf.mxu1  ;;  %v17012_v51 = vpop.f32.mrf.mxu0  ;;  %17426 = vmatmul.mubr.msk.f32.gmra.mxu1 %vm94_vm2, %v1783_v44 }
 0x10a   :  { %v21084_v52 = vadd.f32 %v637_v50, %v337_v47  ;;  %17428 = vmatprep.mubr.msk.f32.mxu1 %vm20160_vm1, %v27017_v2 }
 0x10b   :  { %v17101_v55 = vpop.f32.mrf.mxu1  ;;  %v342_v56 = vpop.f32.mrf.mxu0  ;;  %17340 = vmatmul.mubr.msk.f32.gmra.mxu0 %vm94_vm2, %v1424_v49  ;;  %v1790_v49 = vld [vmem:[%s27007_s0 + $0x7f] sm:$0xff] }
 0x10c   :  { %17342 = vmatprep.mubr.msk.f32.mxu0 %vm20160_vm1, %v27017_v2 }
 0x10d   :  { %v642_v59 = vpop.f32.mrf.mxu1  ;;  %v17015_v61 = vpop.f32.mrf.mxu0  ;;  %17429 = vmatmul.mubr.msk.f32.gmra.mxu1 %vm94_vm2, %v1784_v54  ;;  %v1431_v54 = vld [vmem:[%s27007_s0 + $0x86] sm:$0xff] }
 0x10e   :  { %v21098_v62 = vadd.f32 %v642_v59, %v342_v56  ;;  %17431 = vmatprep.mubr.msk.f32.mxu1 %vm20160_vm1, %v27017_v2  ;;  %v1791_v59 = vld [vmem:[%s27007_s0 + $0x87] sm:$0xff] }
 0x10f   :  { %v17104_v0 = vpop.f32.mrf.mxu1  ;;  %v347_v3 = vpop.f32.mrf.mxu0  ;;  %17343 = vmatmul.mubr.msk.f32.gmra.mxu0 %vm94_vm2, %v1425_v58 }
 0x110   :  { %17345 = vmatprep.mubr.msk.f32.mxu0 %vm20160_vm1, %v27017_v2  ;;  %v1432_v0 = vld [vmem:[%s27007_s0 + $0x8e] sm:$0xff] }
 0x111   :  { %v647_v6 = vpop.f32.mrf.mxu1  ;;  %v17018_v7 = vpop.f32.mrf.mxu0  ;;  %17432 = vmatmul.mubr.msk.f32.gmra.mxu1 %vm94_vm2, %v1785_v63 }
 0x112   :  { %v21112_v8 = vadd.f32 %v647_v6, %v347_v3  ;;  %17434 = vmatprep.mubr.msk.f32.mxu1 %vm20160_vm1, %v27017_v2  ;;  %v1792_v7 = vld [vmem:[%s27007_s0 + $0x8f] sm:$0xff] }
 0x113   :  { %v17107_v12 = vpop.f32.mrf.mxu1  ;;  %v352_v13 = vpop.f32.mrf.mxu0  ;;  %17346 = vmatmul.mubr.msk.f32.gmra.mxu0 %vm94_vm2, %v1426_v5 }
 0x114   :  { %17348 = vmatprep.mubr.msk.f32.mxu0 %vm20160_vm1, %v27017_v2 }
 0x115   :  { %v652_v15 = vpop.f32.mrf.mxu1  ;;  %v17021_v16 = vpop.f32.mrf.mxu0  ;;  %17435 = vmatmul.mubr.msk.f32.gmra.mxu1 %vm94_vm2, %v1786_v9 }
 0x116   :  { %v21126_v17 = vadd.f32 %v652_v15, %v352_v13  ;;  %17437 = vmatprep.mubr.msk.f32.mxu1 %vm20160_vm1, %v27017_v2  ;;  %v1433_v13 = vld [vmem:[%s27007_s0 + $0x96] sm:$0xff] }
 0x117   :  { %v17110_v21 = vpop.f32.mrf.mxu1  ;;  %v357_v22 = vpop.f32.mrf.mxu0  ;;  %17349 = vmatmul.mubr.msk.f32.gmra.mxu0 %vm94_vm2, %v1427_v14 }
 0x118   :  { %17351 = vmatprep.mubr.msk.f32.mxu0 %vm20160_vm1, %v27017_v2 }
 0x119   :  { %v657_v24 = vpop.f32.mrf.mxu1  ;;  %v17024_v26 = vpop.f32.mrf.mxu0  ;;  %17438 = vmatmul.mubr.msk.f32.gmra.mxu1 %vm94_vm2, %v1787_v20  ;;  %v1793_v20 = vld [vmem:[%s27007_s0 + $0x97] sm:$0xff] }
 0x11a   :  { %v21140_v28 = vadd.f32 %v657_v24, %v357_v22  ;;  %17440 = vmatprep.mubr.msk.f32.mxu1 %vm20160_vm1, %v27017_v2 }
 0x11b   :  { %v17113_v30 = vpop.f32.mrf.mxu1  ;;  %v362_v31 = vpop.f32.mrf.mxu0  ;;  %17352 = vmatmul.mubr.msk.f32.gmra.mxu0 %vm94_vm2, %v1428_v23  ;;  %v1434_v23 = vld [vmem:[%s27007_s0 + $0x9e] sm:$0xff] }
 0x11c   :  { %17354 = vmatprep.mubr.msk.f32.mxu0 %vm20160_vm1, %v27017_v2  ;;  %v1794_v30 = vld [vmem:[%s27007_s0 + $0x9f] sm:$0xff] }
 0x11d   :  { %v662_v34 = vpop.f32.mrf.mxu1  ;;  %v17027_v36 = vpop.f32.mrf.mxu0  ;;  %17441 = vmatmul.mubr.msk.f32.gmra.mxu1 %vm94_vm2, %v1788_v29 }
 0x11e   :  { %v21154_v37 = vadd.f32 %v662_v34, %v362_v31  ;;  %17443 = vmatprep.mubr.msk.f32.mxu1 %vm20160_vm1, %v27017_v2  ;;  %v1435_v34 = vld [vmem:[%s27007_s0 + $0xa6] sm:$0xff] }
 0x11f   :  { %v17116_v40 = vpop.f32.mrf.mxu1  ;;  %v367_v41 = vpop.f32.mrf.mxu0  ;;  %17355 = vmatmul.mubr.msk.f32.gmra.mxu0 %vm94_vm2, %v1429_v33 }
 0x120   :  { %17357 = vmatprep.mubr.msk.f32.mxu0 %vm20160_vm1, %v27017_v2 }
 0x121   :  { %v667_v44 = vpop.f32.mrf.mxu1  ;;  %v17030_v45 = vpop.f32.mrf.mxu0  ;;  %17444 = vmatmul.mubr.msk.f32.gmra.mxu1 %vm94_vm2, %v1789_v38 }
 0x122   :  { %v21168_v47 = vadd.f32 %v667_v44, %v367_v41  ;;  %17446 = vmatprep.mubr.msk.f32.mxu1 %vm20160_vm1, %v27017_v2  ;;  %v1795_v41 = vld [vmem:[%s27007_s0 + $0xa7] sm:$0xff] }
 0x123   :  { %v17119_v50 = vpop.f32.mrf.mxu1  ;;  %v372_v51 = vpop.f32.mrf.mxu0  ;;  %17358 = vmatmul.mubr.msk.f32.gmra.mxu0 %vm94_vm2, %v1430_v42 }
 0x124   :  { %17360 = vmatprep.mubr.msk.f32.mxu0 %vm20160_vm1, %v27017_v2 }
 0x125   :  { %v672_v55 = vpop.f32.mrf.mxu1  ;;  %v17033_v56 = vpop.f32.mrf.mxu0  ;;  %17447 = vmatmul.mubr.msk.f32.gmra.mxu1 %vm94_vm2, %v1790_v49  ;;  %v1436_v49 = vld [vmem:[%s27007_s0 + $0xae] sm:$0xff] }
 0x126   :  { %v21182_v58 = vadd.f32 %v672_v55, %v372_v51  ;;  %17449 = vmatprep.mubr.msk.f32.mxu1 %vm20160_vm1, %v27017_v2 }
 0x127   :  { %v17122_v61 = vpop.f32.mrf.mxu1  ;;  %v377_v63 = vpop.f32.mrf.mxu0  ;;  %17361 = vmatmul.mubr.msk.f32.gmra.mxu0 %vm94_vm2, %v1431_v54 }
 0x128   :  { %17363 = vmatprep.mubr.msk.f32.mxu0 %vm20160_vm1, %v27017_v2  ;;  %v1437_v61 = vld [vmem:[%s27007_s0 + $0xb6] sm:$0xff] }
 0x129   :  { %v677_v3 = vpop.f32.mrf.mxu1  ;;  %v17036_v5 = vpop.f32.mrf.mxu0  ;;  %17450 = vmatmul.mubr.msk.f32.gmra.mxu1 %vm94_vm2, %v1791_v59 }
 0x12a   :  { %v21196_v6 = vadd.f32 %v677_v3, %v377_v63  ;;  %17452 = vmatprep.mubr.msk.f32.mxu1 %vm20160_vm1, %v27017_v2 }
 0x12b   :  { %v17125_v9 = vpop.f32.mrf.mxu1  ;;  %v382_v12 = vpop.f32.mrf.mxu0  ;;  %17364 = vmatmul.mubr.msk.f32.gmra.mxu0 %vm94_vm2, %v1432_v0 }
 0x12c   :  { %17366 = vmatprep.mubr.msk.f32.mxu0 %vm20160_vm1, %v27017_v2 }
 0x12d   :  { %v682_v14 = vpop.f32.mrf.mxu1  ;;  %v17039_v15 = vpop.f32.mrf.mxu0  ;;  %17453 = vmatmul.mubr.msk.f32.gmra.mxu1 %vm94_vm2, %v1792_v7 }
 0x12e   :  { %v21210_v16 = vadd.f32 %v682_v14, %v382_v12  ;;  %17455 = vmatprep.mubr.msk.f32.mxu1 %vm20160_vm1, %v27017_v2  ;;  %v1438_v12 = vld [vmem:[%s27007_s0 + $0xbe] sm:$0xff] }
 0x12f   :  { %v17128_v21 = vpop.f32.mrf.mxu1  ;;  %v387_v22 = vpop.f32.mrf.mxu0  ;;  %17367 = vmatmul.mubr.msk.f32.gmra.mxu0 %vm94_vm2, %v1433_v13 }
 0x130   :  { %17369 = vmatprep.mubr.msk.f32.mxu0 %vm20160_vm1, %v27017_v2 }
 0x131   :  { %v687_v24 = vpop.f32.mrf.mxu1  ;;  %v17042_v26 = vpop.f32.mrf.mxu0  ;;  %17456 = vmatmul.mubr.msk.f32.gmra.mxu1 %vm94_vm2, %v1793_v20 }
 0x132   :  { %v21224_v29 = vadd.f32 %v687_v24, %v387_v22  ;;  %17458 = vmatprep.mubr.msk.f32.mxu1 %vm20160_vm1, %v27017_v2 }
 0x133   :  { %v17131_v31 = vpop.f32.mrf.mxu1  ;;  %v392_v33 = vpop.f32.mrf.mxu0  ;;  %17370 = vmatmul.mubr.msk.f32.gmra.mxu0 %vm94_vm2, %v1434_v23  ;;  %v1439_v23 = vld [vmem:[%s27007_s0 + $0xc6] sm:$0xff] }
 0x134   :  { %17372 = vmatprep.mubr.msk.f32.mxu0 %vm20160_vm1, %v27017_v2 }
 0x135   :  { %v692_v36 = vpop.f32.mrf.mxu1  ;;  %v17045_v38 = vpop.f32.mrf.mxu0  ;;  %17459 = vmatmul.mubr.msk.f32.gmra.mxu1 %vm94_vm2, %v1794_v30 }
 0x136   :  { %v21238_v40 = vadd.f32 %v692_v36, %v392_v33  ;;  %17461 = vmatprep.mubr.msk.f32.mxu1 %vm20160_vm1, %v27017_v2  ;;  %v1440_v36 = vld [vmem:[%s27007_s0 + $0xce] sm:$0xff] }
 0x137   :  { %v17134_v42 = vpop.f32.mrf.mxu1  ;;  %v883_v44 = vpop.f32.mrf.mxu0  ;;  %17373 = vmatmul.mubr.msk.f32.gmra.mxu0 %vm94_vm2, %v1435_v34 }
 0x138   :  { %v1027_v45 = vadd.f32 %v883_v44, %v20837_v46  ;;  %17375 = vmatprep.mubr.msk.f32.mxu0 %vm20160_vm1, %v27017_v2  ;;  %v1796_v46 = vld [vmem:[%s27007_s0 + $0xaf] sm:$0xff] }
 0x139   :  { %v17139_v50 = vpop.f32.mrf.mxu0  ;;  %v1243_v51 = vpop.f32.mrf.mxu1  ;;  %17462 = vmatmul.mubr.msk.f32.gmra.mxu1 %vm94_vm2, %v1795_v41 }
 0x13a   :  { %v21253_v54 = vadd.f32 %v1243_v51, %v1027_v45  ;;  %17464 = vmatprep.mubr.msk.f32.mxu1 %vm20160_vm1, %v27017_v2  ;;  %v1441_v50 = vld [vmem:[%s27007_s0 + $0xd6] sm:$0xff] }
 0x13b   :  { %v888_v55 = vpop.f32.mrf.mxu0  ;;  %v17228_v56 = vpop.f32.mrf.mxu1  ;;  %17376 = vmatmul.mubr.msk.f32.gmra.mxu0 %vm94_vm2, %v1436_v49 }
 0x13c   :  { %v1028_v59 = vadd.f32 %v888_v55, %v20851_v53  ;;  %17378 = vmatprep.mubr.msk.f32.mxu0 %vm20160_vm1, %v27017_v2  ;;  %v1797_v53 = vld [vmem:[%s27007_s0 + $0xb7] sm:$0xff] }
 0x13d   :  { %v17142_v63 = vpop.f32.mrf.mxu0  ;;  %v1248_v0 = vpop.f32.mrf.mxu1  ;;  %17465 = vmatmul.mubr.msk.f32.gmra.mxu1 %vm94_vm2, %v1796_v46 }
 0x13e   :  { %v21268_v3 = vadd.f32 %v1248_v0, %v1028_v59  ;;  %17467 = vmatprep.mubr.msk.f32.mxu1 %vm20160_vm1, %v27017_v2  ;;  %v1442_v63 = vld [vmem:[%s27007_s0 + $0xde] sm:$0xff] }
 0x13f   :  { %v893_v5 = vpop.f32.mrf.mxu0  ;;  %v17231_v7 = vpop.f32.mrf.mxu1  ;;  %17379 = vmatmul.mubr.msk.f32.gmra.mxu0 %vm94_vm2, %v1437_v61 }
 0x140   :  { %v1029_v9 = vadd.f32 %v893_v5, %v20865_v60  ;;  %17381 = vmatprep.mubr.msk.f32.mxu0 %vm20160_vm1, %v27017_v2  ;;  %v1798_v60 = vld [vmem:[%s27007_s0 + $0xbf] sm:$0xff] }
 0x141   :  { %v17145_v13 = vpop.f32.mrf.mxu0  ;;  %v1253_v14 = vpop.f32.mrf.mxu1  ;;  %17468 = vmatmul.mubr.msk.f32.gmra.mxu1 %vm94_vm2, %v1797_v53 }
 0x142   :  { %v21283_v15 = vadd.f32 %v1253_v14, %v1029_v9  ;;  %17470 = vmatprep.mubr.msk.f32.mxu1 %vm20160_vm1, %v27017_v2  ;;  %v1443_v13 = vld [vmem:[%s27007_s0 + $0xe6] sm:$0xff] }
 0x143   :  { %v898_v20 = vpop.f32.mrf.mxu0  ;;  %v17234_v21 = vpop.f32.mrf.mxu1  ;;  %17382 = vmatmul.mubr.msk.f32.gmra.mxu0 %vm94_vm2, %v1438_v12 }
 0x144   :  { %v1030_v22 = vadd.f32 %v898_v20, %v20879_v4  ;;  %17384 = vmatprep.mubr.msk.f32.mxu0 %vm20160_vm1, %v27017_v2  ;;  %v1799_v4 = vld [vmem:[%s27007_s0 + $0xc7] sm:$0xff] }
 0x145   :  { %v17148_v24 = vpop.f32.mrf.mxu0  ;;  %v1258_v26 = vpop.f32.mrf.mxu1  ;;  %17471 = vmatmul.mubr.msk.f32.gmra.mxu1 %vm94_vm2, %v1798_v60 }
 0x146   :  { %v21298_v30 = vadd.f32 %v1258_v26, %v1030_v22  ;;  %17473 = vmatprep.mubr.msk.f32.mxu1 %vm20160_vm1, %v27017_v2  ;;  %v1444_v24 = vld [vmem:[%s27007_s0 + $0xee] sm:$0xff] }
 0x147   :  { %v903_v31 = vpop.f32.mrf.mxu0  ;;  %v17237_v33 = vpop.f32.mrf.mxu1  ;;  %17385 = vmatmul.mubr.msk.f32.gmra.mxu0 %vm94_vm2, %v1439_v23 }
 0x148   :  { %v1031_v34 = vadd.f32 %v903_v31, %v20893_v11  ;;  %17387 = vmatprep.mubr.msk.f32.mxu0 %vm20160_vm1, %v27017_v2  ;;  %v1800_v11 = vld [vmem:[%s27007_s0 + $0xcf] sm:$0xff] }
 0x149   :  { %v17151_v38 = vpop.f32.mrf.mxu0  ;;  %v1263_v41 = vpop.f32.mrf.mxu1  ;;  %17474 = vmatmul.mubr.msk.f32.gmra.mxu1 %vm94_vm2, %v1799_v4 }
 0x14a   :  { %v21313_v42 = vadd.f32 %v1263_v41, %v1031_v34  ;;  %17476 = vmatprep.mubr.msk.f32.mxu1 %vm20160_vm1, %v27017_v2  ;;  %v2136_v38 = vld [vmem:[%s27007_s0 + $0x1a] sm:$0xff] }
 0x14b   :  { %v908_v44 = vpop.f32.mrf.mxu0  ;;  %v17240_v45 = vpop.f32.mrf.mxu1  ;;  %17388 = vmatmul.mubr.msk.f32.gmra.mxu0 %vm94_vm2, %v1440_v36 }
 0x14c   :  { %v1032_v49 = vadd.f32 %v908_v44, %v20907_v18  ;;  %17390 = vmatprep.mubr.msk.f32.mxu0 %vm20160_vm1, %v27017_v2  ;;  %v1801_v18 = vld [vmem:[%s27007_s0 + $0xd7] sm:$0xff]  ;;  %v14153_v44 = vld [vmem:[%s27008_s1 + $0x20] sm:$0x7] }
 0x14d   :  { %v17154_v51 = vpop.f32.mrf.mxu0  ;;  %v1268_v46 = vpop.f32.mrf.mxu1  ;;  %17477 = vmatmul.mubr.msk.f32.gmra.mxu1 %vm94_vm2, %v1800_v11 }
 0x14e   :  { %v21328_v55 = vadd.f32 %v1268_v46, %v1032_v49  ;;  %17479 = vmatprep.mubr.msk.f32.mxu1 %vm20160_vm1, %v27017_v2  ;;  %v2137_v46 = vld [vmem:[%s27007_s0 + $0x22] sm:$0xff] }
 0x14f   :  { %v913_v56 = vpop.f32.mrf.mxu0  ;;  %v17243_v59 = vpop.f32.mrf.mxu1  ;;  %17391 = vmatmul.mubr.msk.f32.gmra.mxu0 %vm94_vm2, %v1441_v50 }
 0x150   :  { %v1033_v61 = vadd.f32 %v913_v56, %v20921_v25  ;;  %17393 = vmatprep.mubr.msk.f32.mxu0 %vm20160_vm1, %v27017_v2  ;;  %v1802_v25 = vld [vmem:[%s27007_s0 + $0xdf] sm:$0xff] }
 0x151   :  { %v17157_v0 = vpop.f32.mrf.mxu0  ;;  %v1273_v53 = vpop.f32.mrf.mxu1  ;;  %17480 = vmatmul.mubr.msk.f32.gmra.mxu1 %vm94_vm2, %v1801_v18 }
 0x152   :  { %v21343_v5 = vadd.f32 %v1273_v53, %v1033_v61  ;;  %17482 = vmatprep.mubr.msk.f32.mxu1 %vm20160_vm1, %v27017_v2  ;;  %v2138_v53 = vld [vmem:[%s27007_s0 + $0x2a] sm:$0xff] }
 0x153   :  { %v918_v7 = vpop.f32.mrf.mxu0  ;;  %v17246_v9 = vpop.f32.mrf.mxu1  ;;  %17394 = vmatmul.mubr.msk.f32.gmra.mxu0 %vm94_vm2, %v1442_v63 }
 0x154   :  { %v1034_v12 = vadd.f32 %v918_v7, %v20935_v32  ;;  %17396 = vmatprep.mubr.msk.f32.mxu0 %vm20160_vm1, %v27017_v2  ;;  %v1803_v32 = vld [vmem:[%s27007_s0 + $0xe7] sm:$0xff] }
 0x155   :  { %v17160_v14 = vpop.f32.mrf.mxu0  ;;  %v1278_v60 = vpop.f32.mrf.mxu1  ;;  %17483 = vmatmul.mubr.msk.f32.gmra.mxu1 %vm94_vm2, %v1802_v25 }
 0x156   :  { %v21358_v20 = vadd.f32 %v1278_v60, %v1034_v12  ;;  %17485 = vmatprep.mubr.msk.f32.mxu1 %vm20160_vm1, %v27017_v2  ;;  %v2139_v60 = vld [vmem:[%s27007_s0 + $0x32] sm:$0xff] }
 0x157   :  { %v923_v21 = vpop.f32.mrf.mxu0  ;;  %v17249_v22 = vpop.f32.mrf.mxu1  ;;  %17397 = vmatmul.mubr.msk.f32.gmra.mxu0 %vm94_vm2, %v1443_v13 }
 0x158   :  { %v1035_v23 = vadd.f32 %v923_v21, %v20949_v39  ;;  %17399 = vmatprep.mubr.msk.f32.mxu0 %vm20160_vm1, %v27017_v2  ;;  %v1804_v39 = vld [vmem:[%s27007_s0 + $0xef] sm:$0xff] }
 0x159   :  { %v17163_v26 = vpop.f32.mrf.mxu0  ;;  %v1283_v4 = vpop.f32.mrf.mxu1  ;;  %17486 = vmatmul.mubr.msk.f32.gmra.mxu1 %vm94_vm2, %v1803_v32 }
 0x15a   :  { %v21373_v31 = vadd.f32 %v1283_v4, %v1035_v23  ;;  %17488 = vmatprep.mubr.msk.f32.mxu1 %vm20160_vm1, %v27017_v2  ;;  %v2140_v4 = vld [vmem:[%s27007_s0 + $0x3a] sm:$0xff] }
 0x15b   :  { %v928_v33 = vpop.f32.mrf.mxu0  ;;  %v17252_v34 = vpop.f32.mrf.mxu1  ;;  %17400 = vmatmul.mubr.msk.f32.gmra.mxu0 %vm94_vm2, %v1444_v24 }
 0x15c   :  { %v1036_v36 = vadd.f32 %v928_v33, %v20966_v48  ;;  %17493 = vmatprep.mubr.msk.f32.mxu0 %vm20160_vm1, %v27017_v2  ;;  %v2496_v48 = vld [vmem:[%s27007_s0 + $0x1b] sm:$0xff] }
 0x15d   :  { %v17166_v41 = vpop.f32.mrf.mxu0  ;;  %v1288_v11 = vpop.f32.mrf.mxu1  ;;  %17489 = vmatmul.mubr.msk.f32.gmra.mxu1 %vm94_vm2, %v1804_v39 }
 0x15e   :  { %v21391_v45 = vadd.f32 %v1288_v11, %v1036_v36  ;;  %17582 = vmatprep.mubr.msk.f32.mxu1 %vm20160_vm1, %v27017_v2  ;;  %v2141_v11 = vld [vmem:[%s27007_s0 + $0x42] sm:$0xff] }
 0x15f   :  { %v933_v49 = vpop.f32.mrf.mxu0  ;;  %v17255_v50 = vpop.f32.mrf.mxu1  ;;  %17494 = vmatmul.mubr.msk.f32.vlgmr.msra.gmra.mxu0 %vm94_vm2, %v2136_v38 }
 0x160   :  { %v1037_v51 = vadd.f32 %v933_v49, %v20985_v57  ;;  %17670 = vmatpush3.msk.msra.mxu0 %vm182_vm0, %v14153_v44  ;;  %17496 = vmatprep.mubr.msk.f32.mxu0 %vm20160_vm1, %v27017_v2  ;;  %v2497_v57 = vld [vmem:[%s27007_s0 + $0x23] sm:$0xff] }
 0x161   :  { %v17169_v18 = vpop.f32.mrf.mxu0  ;;  %v1293_v56 = vpop.f32.mrf.mxu1  ;;  %17583 = vmatmul.mubr.msk.f32.vlgmr.msra.gmra.mxu1 %vm94_vm2, %v2496_v48 }
 0x162   :  { %v21407_v59 = vadd.f32 %v1293_v56, %v1037_v51  ;;  %17585 = vmatprep.mubr.msk.f32.mxu1 %vm20160_vm1, %v27017_v2  ;;  %v2142_v18 = vld [vmem:[%s27007_s0 + $0x4a] sm:$0xff] }
 0x163   :  { %v938_v61 = vpop.f32.mrf.mxu0  ;;  %v17258_v63 = vpop.f32.mrf.mxu1  ;;  %17497 = vmatmul.mubr.msk.f32.gmra.mxu0 %vm94_vm2, %v2137_v46 }
 0x164   :  { %v1038_v0 = vadd.f32 %v938_v61, %v21000_v1  ;;  %17499 = vmatprep.mubr.msk.f32.mxu0 %vm20160_vm1, %v27017_v2  ;;  %v2498_v1 = vld [vmem:[%s27007_s0 + $0x2b] sm:$0xff] }
 0x165   :  { %v17172_v25 = vpop.f32.mrf.mxu0  ;;  %v1298_v7 = vpop.f32.mrf.mxu1  ;;  %17586 = vmatmul.mubr.msk.f32.gmra.mxu1 %vm94_vm2, %v2497_v57 }
 0x166   :  { %v21422_v9 = vadd.f32 %v1298_v7, %v1038_v0  ;;  %17588 = vmatprep.mubr.msk.f32.mxu1 %vm20160_vm1, %v27017_v2  ;;  %v2143_v25 = vld [vmem:[%s27007_s0 + $0x52] sm:$0xff] }
 0x167   :  { %v943_v12 = vpop.f32.mrf.mxu0  ;;  %v17261_v13 = vpop.f32.mrf.mxu1  ;;  %17500 = vmatmul.mubr.msk.f32.gmra.mxu0 %vm94_vm2, %v2138_v53 }
 0x168   :  { %v1039_v14 = vadd.f32 %v943_v12, %v21014_v10  ;;  %17502 = vmatprep.mubr.msk.f32.mxu0 %vm20160_vm1, %v27017_v2  ;;  %v2499_v10 = vld [vmem:[%s27007_s0 + $0x33] sm:$0xff] }
 0x169   :  { %v17175_v32 = vpop.f32.mrf.mxu0  ;;  %v1303_v21 = vpop.f32.mrf.mxu1  ;;  %17589 = vmatmul.mubr.msk.f32.gmra.mxu1 %vm94_vm2, %v2498_v1 }
 0x16a   :  { %v21437_v22 = vadd.f32 %v1303_v21, %v1039_v14  ;;  %17591 = vmatprep.mubr.msk.f32.mxu1 %vm20160_vm1, %v27017_v2  ;;  %v2144_v32 = vld [vmem:[%s27007_s0 + $0x5a] sm:$0xff] }
 0x16b   :  { %v948_v23 = vpop.f32.mrf.mxu0  ;;  %v17264_v24 = vpop.f32.mrf.mxu1  ;;  %17503 = vmatmul.mubr.msk.f32.gmra.mxu0 %vm94_vm2, %v2139_v60 }
 0x16c   :  { %v1040_v26 = vadd.f32 %v948_v23, %v21028_v19  ;;  %17505 = vmatprep.mubr.msk.f32.mxu0 %vm20160_vm1, %v27017_v2  ;;  %v2500_v19 = vld [vmem:[%s27007_s0 + $0x3b] sm:$0xff] }
 0x16d   :  { %v17178_v39 = vpop.f32.mrf.mxu0  ;;  %v1308_v33 = vpop.f32.mrf.mxu1  ;;  %17592 = vmatmul.mubr.msk.f32.gmra.mxu1 %vm94_vm2, %v2499_v10 }
 0x16e   :  { %v21452_v34 = vadd.f32 %v1308_v33, %v1040_v26  ;;  %17594 = vmatprep.mubr.msk.f32.mxu1 %vm20160_vm1, %v27017_v2  ;;  %v2145_v39 = vld [vmem:[%s27007_s0 + $0x62] sm:$0xff] }
 0x16f   :  { %v953_v36 = vpop.f32.mrf.mxu0  ;;  %v17267_v38 = vpop.f32.mrf.mxu1  ;;  %17506 = vmatmul.mubr.msk.f32.gmra.mxu0 %vm94_vm2, %v2140_v4 }
 0x170   :  { %v1041_v41 = vadd.f32 %v953_v36, %v21042_v27  ;;  %17508 = vmatprep.mubr.msk.f32.mxu0 %vm20160_vm1, %v27017_v2  ;;  %v2501_v27 = vld [vmem:[%s27007_s0 + $0x43] sm:$0xff] }
 0x171   :  { %v17181_v44 = vpop.f32.mrf.mxu0  ;;  %v1313_v48 = vpop.f32.mrf.mxu1  ;;  %17595 = vmatmul.mubr.msk.f32.gmra.mxu1 %vm94_vm2, %v2500_v19 }
 0x172   :  { %v21467_v49 = vadd.f32 %v1313_v48, %v1041_v41  ;;  %17597 = vmatprep.mubr.msk.f32.mxu1 %vm20160_vm1, %v27017_v2  ;;  %v2146_v44 = vld [vmem:[%s27007_s0 + $0x6a] sm:$0xff] }
 0x173   :  { %v958_v50 = vpop.f32.mrf.mxu0  ;;  %v17270_v51 = vpop.f32.mrf.mxu1  ;;  %17509 = vmatmul.mubr.msk.f32.gmra.mxu0 %vm94_vm2, %v2141_v11 }
 0x174   :  { %v1042_v46 = vadd.f32 %v958_v50, %v21056_v35  ;;  %17511 = vmatprep.mubr.msk.f32.mxu0 %vm20160_vm1, %v27017_v2  ;;  %v2502_v35 = vld [vmem:[%s27007_s0 + $0x4b] sm:$0xff] }
 0x175   :  { %v17184_v56 = vpop.f32.mrf.mxu0  ;;  %v1318_v57 = vpop.f32.mrf.mxu1  ;;  %17598 = vmatmul.mubr.msk.f32.gmra.mxu1 %vm94_vm2, %v2501_v27 }
 0x176   :  { %v21482_v61 = vadd.f32 %v1318_v57, %v1042_v46  ;;  %17600 = vmatprep.mubr.msk.f32.mxu1 %vm20160_vm1, %v27017_v2  ;;  %v2147_v56 = vld [vmem:[%s27007_s0 + $0x72] sm:$0xff] }
 0x177   :  { %v963_v63 = vpop.f32.mrf.mxu0  ;;  %v17273_v0 = vpop.f32.mrf.mxu1  ;;  %17512 = vmatmul.mubr.msk.f32.gmra.mxu0 %vm94_vm2, %v2142_v18 }
 0x178   :  { %v1043_v53 = vadd.f32 %v963_v63, %v21070_v43  ;;  %17514 = vmatprep.mubr.msk.f32.mxu0 %vm20160_vm1, %v27017_v2  ;;  %v2503_v43 = vld [vmem:[%s27007_s0 + $0x53] sm:$0xff] }
 0x179   :  { %v17187_v7 = vpop.f32.mrf.mxu0  ;;  %v1323_v1 = vpop.f32.mrf.mxu1  ;;  %17601 = vmatmul.mubr.msk.f32.gmra.mxu1 %vm94_vm2, %v2502_v35 }
 0x17a   :  { %v21497_v12 = vadd.f32 %v1323_v1, %v1043_v53  ;;  %17603 = vmatprep.mubr.msk.f32.mxu1 %vm20160_vm1, %v27017_v2  ;;  %v2148_v7 = vld [vmem:[%s27007_s0 + $0x7a] sm:$0xff] }
 0x17b   :  { %v968_v13 = vpop.f32.mrf.mxu0  ;;  %v17276_v14 = vpop.f32.mrf.mxu1  ;;  %17515 = vmatmul.mubr.msk.f32.gmra.mxu0 %vm94_vm2, %v2143_v25 }
 0x17c   :  { %v1044_v60 = vadd.f32 %v968_v13, %v21084_v52  ;;  %17517 = vmatprep.mubr.msk.f32.mxu0 %vm20160_vm1, %v27017_v2  ;;  %v2504_v52 = vld [vmem:[%s27007_s0 + $0x5b] sm:$0xff] }
 0x17d   :  { %v17190_v21 = vpop.f32.mrf.mxu0  ;;  %v1328_v10 = vpop.f32.mrf.mxu1  ;;  %17604 = vmatmul.mubr.msk.f32.gmra.mxu1 %vm94_vm2, %v2503_v43 }
 0x17e   :  { %v21512_v23 = vadd.f32 %v1328_v10, %v1044_v60  ;;  %17606 = vmatprep.mubr.msk.f32.mxu1 %vm20160_vm1, %v27017_v2  ;;  %v2149_v21 = vld [vmem:[%s27007_s0 + $0x82] sm:$0xff] }
 0x17f   :  { %v973_v24 = vpop.f32.mrf.mxu0  ;;  %v17279_v26 = vpop.f32.mrf.mxu1  ;;  %17518 = vmatmul.mubr.msk.f32.gmra.mxu0 %vm94_vm2, %v2144_v32 }
 0x180   :  { %v1045_v4 = vadd.f32 %v973_v24, %v21098_v62  ;;  %17520 = vmatprep.mubr.msk.f32.mxu0 %vm20160_vm1, %v27017_v2  ;;  %v2505_v62 = vld [vmem:[%s27007_s0 + $0x63] sm:$0xff] }
 0x181   :  { %v17193_v33 = vpop.f32.mrf.mxu0  ;;  %v1333_v19 = vpop.f32.mrf.mxu1  ;;  %17607 = vmatmul.mubr.msk.f32.gmra.mxu1 %vm94_vm2, %v2504_v52 }
 0x182   :  { %v21527_v36 = vadd.f32 %v1333_v19, %v1045_v4  ;;  %17609 = vmatprep.mubr.msk.f32.mxu1 %vm20160_vm1, %v27017_v2  ;;  %v2150_v33 = vld [vmem:[%s27007_s0 + $0x8a] sm:$0xff] }
 0x183   :  { %v978_v38 = vpop.f32.mrf.mxu0  ;;  %v17282_v41 = vpop.f32.mrf.mxu1  ;;  %17521 = vmatmul.mubr.msk.f32.gmra.mxu0 %vm94_vm2, %v2145_v39 }
 0x184   :  { %v1046_v11 = vadd.f32 %v978_v38, %v21112_v8  ;;  %17523 = vmatprep.mubr.msk.f32.mxu0 %vm20160_vm1, %v27017_v2  ;;  %v2506_v8 = vld [vmem:[%s27007_s0 + $0x6b] sm:$0xff] }
 0x185   :  { %v17196_v48 = vpop.f32.mrf.mxu0  ;;  %v1338_v27 = vpop.f32.mrf.mxu1  ;;  %17610 = vmatmul.mubr.msk.f32.gmra.mxu1 %vm94_vm2, %v2505_v62 }
 0x186   :  { %v21542_v50 = vadd.f32 %v1338_v27, %v1046_v11  ;;  %17612 = vmatprep.mubr.msk.f32.mxu1 %vm20160_vm1, %v27017_v2  ;;  %v2151_v48 = vld [vmem:[%s27007_s0 + $0x92] sm:$0xff] }
 0x187   :  { %v983_v51 = vpop.f32.mrf.mxu0  ;;  %v17285_v46 = vpop.f32.mrf.mxu1  ;;  %17524 = vmatmul.mubr.msk.f32.gmra.mxu0 %vm94_vm2, %v2146_v44 }
 0x188   :  { %v1047_v18 = vadd.f32 %v983_v51, %v21126_v17  ;;  %17526 = vmatprep.mubr.msk.f32.mxu0 %vm20160_vm1, %v27017_v2  ;;  %v2507_v17 = vld [vmem:[%s27007_s0 + $0x73] sm:$0xff] }
 0x189   :  { %v17199_v57 = vpop.f32.mrf.mxu0  ;;  %v1343_v35 = vpop.f32.mrf.mxu1  ;;  %17613 = vmatmul.mubr.msk.f32.gmra.mxu1 %vm94_vm2, %v2506_v8 }
 0x18a   :  { %v21557_v63 = vadd.f32 %v1343_v35, %v1047_v18  ;;  %17615 = vmatprep.mubr.msk.f32.mxu1 %vm20160_vm1, %v27017_v2  ;;  %v2152_v57 = vld [vmem:[%s27007_s0 + $0x9a] sm:$0xff] }
 0x18b   :  { %v988_v0 = vpop.f32.mrf.mxu0  ;;  %v17288_v53 = vpop.f32.mrf.mxu1  ;;  %17527 = vmatmul.mubr.msk.f32.gmra.mxu0 %vm94_vm2, %v2147_v56 }
 0x18c   :  { %v1048_v25 = vadd.f32 %v988_v0, %v21140_v28  ;;  %17529 = vmatprep.mubr.msk.f32.mxu0 %vm20160_vm1, %v27017_v2  ;;  %v2508_v28 = vld [vmem:[%s27007_s0 + $0x7b] sm:$0xff] }
 0x18d   :  { %v17202_v1 = vpop.f32.mrf.mxu0  ;;  %v1348_v43 = vpop.f32.mrf.mxu1  ;;  %17616 = vmatmul.mubr.msk.f32.gmra.mxu1 %vm94_vm2, %v2507_v17 }
 0x18e   :  { %v21572_v13 = vadd.f32 %v1348_v43, %v1048_v25  ;;  %17618 = vmatprep.mubr.msk.f32.mxu1 %vm20160_vm1, %v27017_v2  ;;  %v2153_v1 = vld [vmem:[%s27007_s0 + $0xa2] sm:$0xff] }
 0x18f   :  { %v993_v14 = vpop.f32.mrf.mxu0  ;;  %v17291_v60 = vpop.f32.mrf.mxu1  ;;  %17530 = vmatmul.mubr.msk.f32.gmra.mxu0 %vm94_vm2, %v2148_v7 }
 0x190   :  { %v1049_v32 = vadd.f32 %v993_v14, %v21154_v37  ;;  %17532 = vmatprep.mubr.msk.f32.mxu0 %vm20160_vm1, %v27017_v2  ;;  %v2509_v37 = vld [vmem:[%s27007_s0 + $0x83] sm:$0xff] }
 0x191   :  { %v17205_v10 = vpop.f32.mrf.mxu0  ;;  %v1353_v52 = vpop.f32.mrf.mxu1  ;;  %17619 = vmatmul.mubr.msk.f32.gmra.mxu1 %vm94_vm2, %v2508_v28 }
 0x192   :  { %v21587_v24 = vadd.f32 %v1353_v52, %v1049_v32  ;;  %17621 = vmatprep.mubr.msk.f32.mxu1 %vm20160_vm1, %v27017_v2  ;;  %v2154_v10 = vld [vmem:[%s27007_s0 + $0xaa] sm:$0xff] }
 0x193   :  { %v998_v26 = vpop.f32.mrf.mxu0  ;;  %v17294_v4 = vpop.f32.mrf.mxu1  ;;  %17533 = vmatmul.mubr.msk.f32.gmra.mxu0 %vm94_vm2, %v2149_v21 }
 0x194   :  { %v1050_v39 = vadd.f32 %v998_v26, %v21168_v47  ;;  %17535 = vmatprep.mubr.msk.f32.mxu0 %vm20160_vm1, %v27017_v2  ;;  %v2510_v47 = vld [vmem:[%s27007_s0 + $0x8b] sm:$0xff] }
 0x195   :  { %v17208_v19 = vpop.f32.mrf.mxu0  ;;  %v1358_v62 = vpop.f32.mrf.mxu1  ;;  %17622 = vmatmul.mubr.msk.f32.gmra.mxu1 %vm94_vm2, %v2509_v37 }
 0x196   :  { %v21602_v38 = vadd.f32 %v1358_v62, %v1050_v39  ;;  %17624 = vmatprep.mubr.msk.f32.mxu1 %vm20160_vm1, %v27017_v2  ;;  %v2155_v19 = vld [vmem:[%s27007_s0 + $0xb2] sm:$0xff] }
 0x197   :  { %v1003_v41 = vpop.f32.mrf.mxu0  ;;  %v17297_v11 = vpop.f32.mrf.mxu1  ;;  %17536 = vmatmul.mubr.msk.f32.gmra.mxu0 %vm94_vm2, %v2150_v33 }
 0x198   :  { %v1051_v44 = vadd.f32 %v1003_v41, %v21182_v58  ;;  %17538 = vmatprep.mubr.msk.f32.mxu0 %vm20160_vm1, %v27017_v2  ;;  %v2511_v58 = vld [vmem:[%s27007_s0 + $0x93] sm:$0xff] }
 0x199   :  { %v17211_v27 = vpop.f32.mrf.mxu0  ;;  %v1363_v8 = vpop.f32.mrf.mxu1  ;;  %17625 = vmatmul.mubr.msk.f32.gmra.mxu1 %vm94_vm2, %v2510_v47 }
 0x19a   :  { %v21617_v51 = vadd.f32 %v1363_v8, %v1051_v44  ;;  %17627 = vmatprep.mubr.msk.f32.mxu1 %vm20160_vm1, %v27017_v2  ;;  %v2156_v27 = vld [vmem:[%s27007_s0 + $0xba] sm:$0xff] }
 0x19b   :  { %v1008_v46 = vpop.f32.mrf.mxu0  ;;  %v17300_v18 = vpop.f32.mrf.mxu1  ;;  %17539 = vmatmul.mubr.msk.f32.gmra.mxu0 %vm94_vm2, %v2151_v48 }
 0x19c   :  { %v1052_v56 = vadd.f32 %v1008_v46, %v21196_v6  ;;  %17541 = vmatprep.mubr.msk.f32.mxu0 %vm20160_vm1, %v27017_v2  ;;  %v2512_v6 = vld [vmem:[%s27007_s0 + $0x9b] sm:$0xff] }
 0x19d   :  { %v17214_v35 = vpop.f32.mrf.mxu0  ;;  %v1368_v17 = vpop.f32.mrf.mxu1  ;;  %17628 = vmatmul.mubr.msk.f32.gmra.mxu1 %vm94_vm2, %v2511_v58 }
 0x19e   :  { %v21632_v0 = vadd.f32 %v1368_v17, %v1052_v56  ;;  %17630 = vmatprep.mubr.msk.f32.mxu1 %vm20160_vm1, %v27017_v2  ;;  %v2157_v35 = vld [vmem:[%s27007_s0 + $0xc2] sm:$0xff] }
 0x19f   :  { %v1013_v53 = vpop.f32.mrf.mxu0  ;;  %v17303_v25 = vpop.f32.mrf.mxu1  ;;  %17542 = vmatmul.mubr.msk.f32.gmra.mxu0 %vm94_vm2, %v2152_v57 }
 0x1a0   :  { %v1053_v7 = vadd.f32 %v1013_v53, %v21210_v16  ;;  %17544 = vmatprep.mubr.msk.f32.mxu0 %vm20160_vm1, %v27017_v2  ;;  %v2513_v16 = vld [vmem:[%s27007_s0 + $0xa3] sm:$0xff] }
 0x1a1   :  { %v17217_v43 = vpop.f32.mrf.mxu0  ;;  %v1373_v28 = vpop.f32.mrf.mxu1  ;;  %17631 = vmatmul.mubr.msk.f32.gmra.mxu1 %vm94_vm2, %v2512_v6 }
 0x1a2   :  { %v21647_v14 = vadd.f32 %v1373_v28, %v1053_v7  ;;  %17633 = vmatprep.mubr.msk.f32.mxu1 %vm20160_vm1, %v27017_v2  ;;  %v2158_v43 = vld [vmem:[%s27007_s0 + $0xca] sm:$0xff] }
 0x1a3   :  { %v1018_v60 = vpop.f32.mrf.mxu0  ;;  %v17306_v32 = vpop.f32.mrf.mxu1  ;;  %17545 = vmatmul.mubr.msk.f32.gmra.mxu0 %vm94_vm2, %v2153_v1 }
 0x1a4   :  { %v1054_v21 = vadd.f32 %v1018_v60, %v21224_v29  ;;  %17547 = vmatprep.mubr.msk.f32.mxu0 %vm20160_vm1, %v27017_v2  ;;  %v2514_v29 = vld [vmem:[%s27007_s0 + $0xab] sm:$0xff] }
 0x1a5   :  { %v17220_v52 = vpop.f32.mrf.mxu0  ;;  %v1378_v37 = vpop.f32.mrf.mxu1  ;;  %17634 = vmatmul.mubr.msk.f32.gmra.mxu1 %vm94_vm2, %v2513_v16 }
 0x1a6   :  { %v21662_v26 = vadd.f32 %v1378_v37, %v1054_v21  ;;  %17636 = vmatprep.mubr.msk.f32.mxu1 %vm20160_vm1, %v27017_v2  ;;  %v2159_v52 = vld [vmem:[%s27007_s0 + $0xd2] sm:$0xff] }
 0x1a7   :  { %v1023_v4 = vpop.f32.mrf.mxu0  ;;  %v17309_v39 = vpop.f32.mrf.mxu1  ;;  %17548 = vmatmul.mubr.msk.f32.gmra.mxu0 %vm94_vm2, %v2154_v10 }
 0x1a8   :  { %v1055_v33 = vadd.f32 %v1023_v4, %v21238_v40  ;;  %17550 = vmatprep.mubr.msk.f32.mxu0 %vm20160_vm1, %v27017_v2  ;;  %v2515_v40 = vld [vmem:[%s27007_s0 + $0xb3] sm:$0xff] }
 0x1a9   :  { %v17223_v62 = vpop.f32.mrf.mxu0  ;;  %v1383_v47 = vpop.f32.mrf.mxu1  ;;  %17637 = vmatmul.mubr.msk.f32.gmra.mxu1 %vm94_vm2, %v2514_v29 }
 0x1aa   :  { %v21677_v41 = vadd.f32 %v1383_v47, %v1055_v33  ;;  %17639 = vmatprep.mubr.msk.f32.mxu1 %vm20160_vm1, %v27017_v2  ;;  %v2160_v62 = vld [vmem:[%s27007_s0 + $0xda] sm:$0xff] }
 0x1ab   :  { %v17312_v11 = vpop.f32.mrf.mxu1  ;;  %v1603_v44 = vpop.f32.mrf.mxu0  ;;  %17551 = vmatmul.mubr.msk.f32.gmra.mxu0 %vm94_vm2, %v2155_v19 }
 0x1ac   :  { %v1747_v48 = vadd.f32 %v1603_v44, %v21253_v54  ;;  %17553 = vmatprep.mubr.msk.f32.mxu0 %vm20160_vm1, %v27017_v2  ;;  %v2516_v54 = vld [vmem:[%s27007_s0 + $0xbb] sm:$0xff] }
 0x1ad   :  { %v17317_v8 = vpop.f32.mrf.mxu0  ;;  %v1963_v58 = vpop.f32.mrf.mxu1  ;;  %17640 = vmatmul.mubr.msk.f32.gmra.mxu1 %vm94_vm2, %v2515_v40 }
 0x1ae   :  { %v21692_v46 = vadd.f32 %v1963_v58, %v1747_v48  ;;  %17642 = vmatprep.mubr.msk.f32.mxu1 %vm20160_vm1, %v27017_v2  ;;  %v2161_v8 = vld [vmem:[%s27007_s0 + $0xe2] sm:$0xff] }
 0x1af   :  { %v1608_v18 = vpop.f32.mrf.mxu0  ;;  %v17406_v56 = vpop.f32.mrf.mxu1  ;;  %17554 = vmatmul.mubr.msk.f32.gmra.mxu0 %vm94_vm2, %v2156_v27 }
 0x1b0   :  { %v1748_v57 = vadd.f32 %v1608_v18, %v21268_v3  ;;  %17556 = vmatprep.mubr.msk.f32.mxu0 %vm20160_vm1, %v27017_v2  ;;  %v2517_v3 = vld [vmem:[%s27007_s0 + $0xc3] sm:$0xff] }
 0x1b1   :  { %v17320_v17 = vpop.f32.mrf.mxu0  ;;  %v1968_v6 = vpop.f32.mrf.mxu1  ;;  %17643 = vmatmul.mubr.msk.f32.gmra.mxu1 %vm94_vm2, %v2516_v54 }
 0x1b2   :  { %v21707_v53 = vadd.f32 %v1968_v6, %v1748_v57  ;;  %17645 = vmatprep.mubr.msk.f32.mxu1 %vm20160_vm1, %v27017_v2  ;;  %v2162_v17 = vld [vmem:[%s27007_s0 + $0xea] sm:$0xff] }
 0x1b3   :  { %v1613_v25 = vpop.f32.mrf.mxu0  ;;  %v17409_v7 = vpop.f32.mrf.mxu1  ;;  %17557 = vmatmul.mubr.msk.f32.gmra.mxu0 %vm94_vm2, %v2157_v35 }
 0x1b4   :  { %v1749_v1 = vadd.f32 %v1613_v25, %v21283_v15  ;;  %17559 = vmatprep.mubr.msk.f32.mxu0 %vm20160_vm1, %v27017_v2  ;;  %v2518_v15 = vld [vmem:[%s27007_s0 + $0xcb] sm:$0xff] }
 0x1b5   :  { %v17323_v28 = vpop.f32.mrf.mxu0  ;;  %v1973_v16 = vpop.f32.mrf.mxu1  ;;  %17646 = vmatmul.mubr.msk.f32.gmra.mxu1 %vm94_vm2, %v2517_v3 }
 0x1b6   :  { %v21722_v60 = vadd.f32 %v1973_v16, %v1749_v1  ;;  %17648 = vmatprep.mubr.msk.f32.mxu1 %vm20160_vm1, %v27017_v2  ;;  %v2163_v28 = vld [vmem:[%s27007_s0 + $0xf2] sm:$0xff] }
 0x1b7   :  { %v1618_v32 = vpop.f32.mrf.mxu0  ;;  %v17412_v21 = vpop.f32.mrf.mxu1  ;;  %17560 = vmatmul.mubr.msk.f32.gmra.mxu0 %vm94_vm2, %v2158_v43 }
 0x1b8   :  { %v1750_v10 = vadd.f32 %v1618_v32, %v21298_v30  ;;  %17562 = vmatprep.mubr.msk.f32.mxu0 %vm20160_vm1, %v27017_v2  ;;  %v2519_v30 = vld [vmem:[%s27007_s0 + $0xd3] sm:$0xff] }
 0x1b9   :  { %v17326_v37 = vpop.f32.mrf.mxu0  ;;  %v1978_v29 = vpop.f32.mrf.mxu1  ;;  %17649 = vmatmul.mubr.msk.f32.gmra.mxu1 %vm94_vm2, %v2518_v15 }
 0x1ba   :  { %v21737_v4 = vadd.f32 %v1978_v29, %v1750_v10  ;;  %17651 = vmatprep.mubr.msk.f32.mxu1 %vm20160_vm1, %v27017_v2  ;;  %v2164_v37 = vld [vmem:[%s27007_s0 + $0xfa] sm:$0xff] }
 0x1bb   :  { %v1623_v39 = vpop.f32.mrf.mxu0  ;;  %v17415_v33 = vpop.f32.mrf.mxu1  ;;  %17563 = vmatmul.mubr.msk.f32.gmra.mxu0 %vm94_vm2, %v2159_v52 }
 0x1bc   :  { %v1751_v19 = vadd.f32 %v1623_v39, %v21313_v42  ;;  %17565 = vmatprep.mubr.msk.f32.mxu0 %vm20160_vm1, %v27017_v2  ;;  %v2520_v42 = vld [vmem:[%s27007_s0 + $0xdb] sm:$0xff] }
 0x1bd   :  { %v17329_v47 = vpop.f32.mrf.mxu0  ;;  %v1983_v40 = vpop.f32.mrf.mxu1  ;;  %17652 = vmatmul.mubr.msk.f32.gmra.mxu1 %vm94_vm2, %v2519_v30 }
 0x1be   :  { %v21752_v11 = vadd.f32 %v1983_v40, %v1751_v19  ;;  %17654 = vmatprep.mubr.msk.f32.mxu1 %vm20160_vm1, %v27017_v2  ;;  %v2856_v47 = vld [vmem:[%s27007_s0 + $0x1c] sm:$0xff] }
 0x1bf   :  { %v1628_v44 = vpop.f32.mrf.mxu0  ;;  %v17418_v48 = vpop.f32.mrf.mxu1  ;;  %17566 = vmatmul.mubr.msk.f32.gmra.mxu0 %vm94_vm2, %v2160_v62 }
 0x1c0   :  { %v1752_v27 = vadd.f32 %v1628_v44, %v21328_v55  ;;  %17568 = vmatprep.mubr.msk.f32.mxu0 %vm20160_vm1, %v27017_v2  ;;  %v2521_v55 = vld [vmem:[%s27007_s0 + $0xe3] sm:$0xff] }
 0x1c1   :  { %v17332_v58 = vpop.f32.mrf.mxu0  ;;  %v1988_v54 = vpop.f32.mrf.mxu1  ;;  %17655 = vmatmul.mubr.msk.f32.gmra.mxu1 %vm94_vm2, %v2520_v42 }
 0x1c2   :  { %v21767_v18 = vadd.f32 %v1988_v54, %v1752_v27  ;;  %17657 = vmatprep.mubr.msk.f32.mxu1 %vm20160_vm1, %v27017_v2 }
 0x1c3   :  { %v1633_v56 = vpop.f32.mrf.mxu0  ;;  %v17421_v57 = vpop.f32.mrf.mxu1  ;;  %17569 = vmatmul.mubr.msk.f32.gmra.mxu0 %vm94_vm2, %v2161_v8 }
 0x1c4   :  { %v1753_v35 = vadd.f32 %v1633_v56, %v21343_v5  ;;  %17571 = vmatprep.mubr.msk.f32.mxu0 %vm20160_vm1, %v27017_v2  ;;  %v2522_v5 = vld [vmem:[%s27007_s0 + $0xeb] sm:$0xff] }
 0x1c5   :  { %v17335_v6 = vpop.f32.mrf.mxu0  ;;  %v1993_v3 = vpop.f32.mrf.mxu1  ;;  %17658 = vmatmul.mubr.msk.f32.gmra.mxu1 %vm94_vm2, %v2521_v55 }
 0x1c6   :  { %v21782_v25 = vadd.f32 %v1993_v3, %v1753_v35  ;;  %17660 = vmatprep.mubr.msk.f32.mxu1 %vm20160_vm1, %v27017_v2 }
 0x1c7   :  { %v1638_v7 = vpop.f32.mrf.mxu0  ;;  %v17424_v1 = vpop.f32.mrf.mxu1  ;;  %17572 = vmatmul.mubr.msk.f32.gmra.mxu0 %vm94_vm2, %v2162_v17 }
 0x1c8   :  { %v1754_v43 = vadd.f32 %v1638_v7, %v21358_v20  ;;  %17574 = vmatprep.mubr.msk.f32.mxu0 %vm20160_vm1, %v27017_v2  ;;  %v2523_v20 = vld [vmem:[%s27007_s0 + $0xf3] sm:$0xff] }
 0x1c9   :  { %v17338_v16 = vpop.f32.mrf.mxu0  ;;  %v1998_v15 = vpop.f32.mrf.mxu1  ;;  %17661 = vmatmul.mubr.msk.f32.gmra.mxu1 %vm94_vm2, %v2522_v5 }
 0x1ca   :  { %v21797_v32 = vadd.f32 %v1998_v15, %v1754_v43  ;;  %17663 = vmatprep.mubr.msk.f32.mxu1 %vm20160_vm1, %v27017_v2 }
 0x1cb   :  { %v1643_v21 = vpop.f32.mrf.mxu0  ;;  %v17427_v10 = vpop.f32.mrf.mxu1  ;;  %17575 = vmatmul.mubr.msk.f32.gmra.mxu0 %vm94_vm2, %v2163_v28 }
 0x1cc   :  { %v1755_v52 = vadd.f32 %v1643_v21, %v21373_v31  ;;  %17577 = vmatprep.mubr.msk.f32.mxu0 %vm20160_vm1, %v27017_v2  ;;  %v2524_v31 = vld [vmem:[%s27007_s0 + $0xfb] sm:$0xff] }
 0x1cd   :  { %v17341_v29 = vpop.f32.mrf.mxu0  ;;  %v2003_v30 = vpop.f32.mrf.mxu1  ;;  %17664 = vmatmul.mubr.msk.f32.gmra.mxu1 %vm94_vm2, %v2523_v20 }
 0x1ce   :  { %v21812_v39 = vadd.f32 %v2003_v30, %v1755_v52  ;;  %17666 = vmatprep.mubr.msk.f32.mxu1 %vm20160_vm1, %v27017_v2 }
 0x1cf   :  { %v1648_v33 = vpop.f32.mrf.mxu0  ;;  %v17430_v19 = vpop.f32.mrf.mxu1  ;;  %17578 = vmatmul.mubr.msk.f32.gmra.mxu0 %vm94_vm2, %v2164_v37 }
 0x1d0   :  { %v1756_v62 = vadd.f32 %v1648_v33, %v21391_v45  ;;  %17671 = vmatprep.mubr.msk.f32.mxu0 %vm20160_vm1, %v27017_v2  ;;  %v2857_v45 = vld [vmem:[%s27007_s0 + $0x24] sm:$0xff]  ;;  %v14188_v33 = vld [vmem:[%s27010_s3 + $0x38] sm:$0xff] }
 0x1d1   :  { %v17344_v40 = vpop.f32.mrf.mxu0  ;;  %v2008_v42 = vpop.f32.mrf.mxu1  ;;  %17667 = vmatmul.mubr.msk.f32.gmra.mxu1 %vm94_vm2, %v2524_v31  ;;  %17758 = vmatprep.subr.mxu1 %v14188_v33 }
 0x1d2   :  { %v21827_v44 = vadd.f32 %v2008_v42, %v1756_v62  ;;  %17759 = vmatpush3.msra.mxu1 %v14188_v33 }
 0x1d3   :  { %v1653_v48 = vpop.f32.mrf.mxu0  ;;  %v17433_v27 = vpop.f32.mrf.mxu1  ;;  %17672 = vmatmul.mubr.msk.f32.vlgmr.msra.gmra.mxu0 %vm94_vm2, %v2856_v47 }
 0x1d4   :  { %v1757_v8 = vadd.f32 %v1653_v48, %v21407_v59  ;;  %17674 = vmatprep.mubr.msk.f32.mxu0 %vm20160_vm1, %v27017_v2  ;;  %v2858_v59 = vld [vmem:[%s27007_s0 + $0x2c] sm:$0xff] }
 0x1d5   :  { %v17347_v58 = vpop.f32.mrf.mxu0  ;;  %v2013_v54 = vpop.f32.mrf.mxu1  ;;  %v2862_v48 = vld [vmem:[%s27007_s0 + $0x4c] sm:$0xff] }
 0x1d6   :  { %v21836_v55 = vadd.f32 %v2013_v54, %v1757_v8 }
 0x1d7   :  { %v1658_v56 = vpop.f32.mrf.mxu0  ;;  %v17436_v57 = vpop.f32.mrf.mxu1  ;;  %17675 = vmatmul.mubr.msk.f32.gmra.mxu0 %vm94_vm2, %v2857_v45 }
 0x1d8   :  { %v1758_v35 = vadd.f32 %v1658_v56, %v21422_v9  ;;  %17677 = vmatprep.mubr.msk.f32.mxu0 %vm20160_vm1, %v27017_v2  ;;  %v2859_v9 = vld [vmem:[%s27007_s0 + $0x34] sm:$0xff] }
 0x1d9   :  { %v17350_v17 = vpop.f32.mrf.mxu0  ;;  %v2018_v6 = vpop.f32.mrf.mxu1 }
 0x1da   :  { %v21845_v3 = vadd.f32 %v2018_v6, %v1758_v35 }
 0x1db   :  { %v1663_v5 = vpop.f32.mrf.mxu0  ;;  %v17439_v7 = vpop.f32.mrf.mxu1  ;;  %17678 = vmatmul.mubr.msk.f32.gmra.mxu0 %vm94_vm2, %v2858_v59 }
 0x1dc   :  { %v1759_v1 = vadd.f32 %v1663_v5, %v21437_v22  ;;  %17680 = vmatprep.mubr.msk.f32.mxu0 %vm20160_vm1, %v27017_v2  ;;  %v2860_v22 = vld [vmem:[%s27007_s0 + $0x3c] sm:$0xff] }
 0x1dd   :  { %v17353_v43 = vpop.f32.mrf.mxu0  ;;  %v2023_v28 = vpop.f32.mrf.mxu1 }
 0x1de   :  { %v21854_v16 = vadd.f32 %v2023_v28, %v1759_v1 }
 0x1df   :  { %v1668_v15 = vpop.f32.mrf.mxu0  ;;  %v17442_v20 = vpop.f32.mrf.mxu1  ;;  %17681 = vmatmul.mubr.msk.f32.gmra.mxu0 %vm94_vm2, %v2859_v9 }
 0x1e0   :  { %v1760_v21 = vadd.f32 %v1668_v15, %v21452_v34  ;;  %17683 = vmatprep.mubr.msk.f32.mxu0 %vm20160_vm1, %v27017_v2  ;;  %v2861_v34 = vld [vmem:[%s27007_s0 + $0x44] sm:$0xff] }
 0x1e1   :  { %v17356_v10 = vpop.f32.mrf.mxu0  ;;  %v2028_v52 = vpop.f32.mrf.mxu1 }
 0x1e2   :  { %v21863_v37 = vadd.f32 %v2028_v52, %v1760_v21 }
 0x1e3   :  { %v1673_v29 = vpop.f32.mrf.mxu0  ;;  %v17445_v30 = vpop.f32.mrf.mxu1  ;;  %17684 = vmatmul.mubr.msk.f32.gmra.mxu0 %vm94_vm2, %v2860_v22 }
 0x1e4   :  { %v1761_v31 = vadd.f32 %v1673_v29, %v21467_v49  ;;  %17686 = vmatprep.mubr.msk.f32.mxu0 %vm20160_vm1, %v27017_v2 }
 0x1e5   :  { %v17359_v19 = vpop.f32.mrf.mxu0  ;;  %v2033_v62 = vpop.f32.mrf.mxu1 }
 0x1e6   :  { %v21875_v47 = vadd.f32 %v2033_v62, %v1761_v31 }
 0x1e7   :  { %v1678_v40 = vpop.f32.mrf.mxu0  ;;  %v17448_v42 = vpop.f32.mrf.mxu1  ;;  %17687 = vmatmul.mubr.msk.f32.gmra.mxu0 %vm94_vm2, %v2861_v34 }
 0x1e8   :  { %v1762_v49 = vadd.f32 %v1678_v40, %v21482_v61  ;;  %17689 = vmatprep.mubr.msk.f32.mxu0 %vm20160_vm1, %v27017_v2  ;;  %v2863_v61 = vld [vmem:[%s27007_s0 + $0x54] sm:$0xff] }
 0x1e9   :  { %v17362_v27 = vpop.f32.mrf.mxu0  ;;  %v2038_v8 = vpop.f32.mrf.mxu1 }
 0x1ea   :  { %v21884_v45 = vadd.f32 %v2038_v8, %v1762_v49 }
 0x1eb   :  { %v1683_v58 = vpop.f32.mrf.mxu0  ;;  %v17451_v54 = vpop.f32.mrf.mxu1  ;;  %17690 = vmatmul.mubr.msk.f32.gmra.mxu0 %vm94_vm2, %v2862_v48 }
 0x1ec   :  { %v1763_v56 = vadd.f32 %v1683_v58, %v21497_v12  ;;  %17692 = vmatprep.mubr.msk.f32.mxu0 %vm20160_vm1, %v27017_v2  ;;  %v2864_v12 = vld [vmem:[%s27007_s0 + $0x5c] sm:$0xff]  ;;  %v14187_v58 = vld [vmem:[%s27010_s3 + $0x30] sm:$0xff] }
 0x1ed   :  { %v17365_v57 = vpop.f32.mrf.mxu0  ;;  %v2043_v35 = vpop.f32.mrf.mxu1  ;;  %17760 = vmatprep.subr.mxu1 %v14187_v58 }
 0x1ee   :  { %v21893_v59 = vadd.f32 %v2043_v35, %v1763_v56  ;;  %17761 = vmatpush3.msra.mxu1 %v14187_v58 }
 0x1ef   :  { %v1688_v17 = vpop.f32.mrf.mxu0  ;;  %v17454_v6 = vpop.f32.mrf.mxu1  ;;  %17693 = vmatmul.mubr.msk.f32.gmra.mxu0 %vm94_vm2, %v2863_v61 }
 0x1f0   :  { %v1764_v5 = vadd.f32 %v1688_v17, %v21512_v23  ;;  %17695 = vmatprep.mubr.msk.f32.mxu0 %vm20160_vm1, %v27017_v2  ;;  %v2865_v23 = vld [vmem:[%s27007_s0 + $0x64] sm:$0xff] }
 0x1f1   :  { %v17368_v7 = vpop.f32.mrf.mxu0  ;;  %v2048_v1 = vpop.f32.mrf.mxu1  ;;  %v2869_v17 = vld [vmem:[%s27007_s0 + $0x84] sm:$0xff] }
 0x1f2   :  { %v21902_v9 = vadd.f32 %v2048_v1, %v1764_v5 }
 0x1f3   :  { %v1693_v43 = vpop.f32.mrf.mxu0  ;;  %v17457_v28 = vpop.f32.mrf.mxu1  ;;  %17696 = vmatmul.mubr.msk.f32.gmra.mxu0 %vm94_vm2, %v2864_v12 }
 0x1f4   :  { %v1765_v15 = vadd.f32 %v1693_v43, %v21527_v36  ;;  %17698 = vmatprep.mubr.msk.f32.mxu0 %vm20160_vm1, %v27017_v2  ;;  %v2866_v36 = vld [vmem:[%s27007_s0 + $0x6c] sm:$0xff] }
 0x1f5   :  { %v17371_v20 = vpop.f32.mrf.mxu0  ;;  %v2053_v21 = vpop.f32.mrf.mxu1 }
 0x1f6   :  { %v21911_v22 = vadd.f32 %v2053_v21, %v1765_v15 }
 0x1f7   :  { %v1698_v10 = vpop.f32.mrf.mxu0  ;;  %v17460_v52 = vpop.f32.mrf.mxu1  ;;  %17699 = vmatmul.mubr.msk.f32.gmra.mxu0 %vm94_vm2, %v2865_v23 }
 0x1f8   :  { %v1766_v29 = vadd.f32 %v1698_v10, %v21542_v50  ;;  %17701 = vmatprep.mubr.msk.f32.mxu0 %vm20160_vm1, %v27017_v2  ;;  %v2867_v50 = vld [vmem:[%s27007_s0 + $0x74] sm:$0xff] }
 0x1f9   :  { %v17374_v30 = vpop.f32.mrf.mxu0  ;;  %v2058_v31 = vpop.f32.mrf.mxu1 }
 0x1fa   :  { %v21920_v34 = vadd.f32 %v2058_v31, %v1766_v29 }
 0x1fb   :  { %v1703_v33 = vpop.f32.mrf.mxu0  ;;  %v17463_v19 = vpop.f32.mrf.mxu1  ;;  %17702 = vmatmul.mubr.msk.f32.gmra.mxu0 %vm94_vm2, %v2866_v36 }
 0x1fc   :  { %v1767_v62 = vadd.f32 %v1703_v33, %v21557_v63  ;;  %17704 = vmatprep.mubr.msk.f32.mxu0 %vm20160_vm1, %v27017_v2  ;;  %v2868_v63 = vld [vmem:[%s27007_s0 + $0x7c] sm:$0xff] }
 0x1fd   :  { %v17377_v40 = vpop.f32.mrf.mxu0  ;;  %v2063_v42 = vpop.f32.mrf.mxu1 }
 0x1fe   :  { %v21929_v49 = vadd.f32 %v2063_v42, %v1767_v62 }
 0x1ff   :  { %v1708_v48 = vpop.f32.mrf.mxu0  ;;  %v17466_v27 = vpop.f32.mrf.mxu1  ;;  %17705 = vmatmul.mubr.msk.f32.gmra.mxu0 %vm94_vm2, %v2867_v50 }
 0x200   :  { %v1768_v8 = vadd.f32 %v1708_v48, %v21572_v13  ;;  %17707 = vmatprep.mubr.msk.f32.mxu0 %vm20160_vm1, %v27017_v2 }
 0x201   :  { %v17380_v54 = vpop.f32.mrf.mxu0  ;;  %v2068_v56 = vpop.f32.mrf.mxu1 }
 0x202   :  { %v21941_v61 = vadd.f32 %v2068_v56, %v1768_v8 }
 0x203   :  { %v1713_v57 = vpop.f32.mrf.mxu0  ;;  %v17469_v35 = vpop.f32.mrf.mxu1  ;;  %17708 = vmatmul.mubr.msk.f32.gmra.mxu0 %vm94_vm2, %v2868_v63 }
 0x204   :  { %v1769_v13 = vadd.f32 %v1713_v57, %v21587_v24  ;;  %17710 = vmatprep.mubr.msk.f32.mxu0 %vm20160_vm1, %v27017_v2  ;;  %v2870_v24 = vld [vmem:[%s27007_s0 + $0x8c] sm:$0xff] }
 0x205   :  { %v17383_v6 = vpop.f32.mrf.mxu0  ;;  %v2073_v5 = vpop.f32.mrf.mxu1 }
 0x206   :  { %v21950_v12 = vadd.f32 %v2073_v5, %v1769_v13 }
 0x207   :  { %v1718_v7 = vpop.f32.mrf.mxu0  ;;  %v17472_v1 = vpop.f32.mrf.mxu1  ;;  %17711 = vmatmul.mubr.msk.f32.gmra.mxu0 %vm94_vm2, %v2869_v17 }
 0x208   :  { %v1770_v43 = vadd.f32 %v1718_v7, %v21602_v38  ;;  %17713 = vmatprep.mubr.msk.f32.mxu0 %vm20160_vm1, %v27017_v2  ;;  %v2871_v38 = vld [vmem:[%s27007_s0 + $0x94] sm:$0xff] }
 0x209   :  { %v17386_v28 = vpop.f32.mrf.mxu0  ;;  %v2078_v15 = vpop.f32.mrf.mxu1 }
 0x20a   :  { %v21959_v23 = vadd.f32 %v2078_v15, %v1770_v43 }
 0x20b   :  { %v1723_v20 = vpop.f32.mrf.mxu0  ;;  %v17475_v21 = vpop.f32.mrf.mxu1  ;;  %17714 = vmatmul.mubr.msk.f32.gmra.mxu0 %vm94_vm2, %v2870_v24 }
 0x20c   :  { %v1771_v10 = vadd.f32 %v1723_v20, %v21617_v51  ;;  %17716 = vmatprep.mubr.msk.f32.mxu0 %vm20160_vm1, %v27017_v2  ;;  %v2872_v51 = vld [vmem:[%s27007_s0 + $0x9c] sm:$0xff] }
 0x20d   :  { %v17389_v52 = vpop.f32.mrf.mxu0  ;;  %v2083_v29 = vpop.f32.mrf.mxu1 }
 0x20e   :  { %v21968_v36 = vadd.f32 %v2083_v29, %v1771_v10 }
 0x20f   :  { %v1728_v30 = vpop.f32.mrf.mxu0  ;;  %v17478_v31 = vpop.f32.mrf.mxu1  ;;  %17717 = vmatmul.mubr.msk.f32.gmra.mxu0 %vm94_vm2, %v2871_v38  ;;  %v14186_v38 = vld [vmem:[%s27010_s3 + $0x28] sm:$0xff] }
 0x210   :  { %v1772_v33 = vadd.f32 %v1728_v30, %v21632_v0  ;;  %17719 = vmatprep.mubr.msk.f32.mxu0 %vm20160_vm1, %v27017_v2  ;;  %v2873_v0 = vld [vmem:[%s27007_s0 + $0xa4] sm:$0xff]  ;;  %17762 = vmatprep.subr.mxu1 %v14186_v38 }
 0x211   :  { %v17392_v19 = vpop.f32.mrf.mxu0  ;;  %v2088_v62 = vpop.f32.mrf.mxu1  ;;  %v2877_v30 = vld [vmem:[%s27007_s0 + $0xc4] sm:$0xff]  ;;  %17763 = vmatpush3.msra.mxu1 %v14186_v38 }
 0x212   :  { %v21977_v50 = vadd.f32 %v2088_v62, %v1772_v33 }
 0x213   :  { %v1733_v40 = vpop.f32.mrf.mxu0  ;;  %v17481_v42 = vpop.f32.mrf.mxu1  ;;  %17720 = vmatmul.mubr.msk.f32.gmra.mxu0 %vm94_vm2, %v2872_v51 }
 0x214   :  { %v1773_v48 = vadd.f32 %v1733_v40, %v21647_v14  ;;  %17722 = vmatprep.mubr.msk.f32.mxu0 %vm20160_vm1, %v27017_v2  ;;  %v2874_v14 = vld [vmem:[%s27007_s0 + $0xac] sm:$0xff] }
 0x215   :  { %v17395_v27 = vpop.f32.mrf.mxu0  ;;  %v2093_v8 = vpop.f32.mrf.mxu1  ;;  %v2878_v42 = vld [vmem:[%s27007_s0 + $0xcc] sm:$0xff] }
 0x216   :  { %v21986_v63 = vadd.f32 %v2093_v8, %v1773_v48  ;;  %v14185_v27 = vld [vmem:[%s27010_s3 + $0x20] sm:$0xff]  ;;  %v14273_v8 = vld [vmem:[%s27010_s3 + $0x70] sm:$0xff] }
 0x217   :  { %v1738_v58 = vpop.f32.mrf.mxu0  ;;  %v17484_v54 = vpop.f32.mrf.mxu1  ;;  %17723 = vmatmul.mubr.msk.f32.gmra.mxu0 %vm94_vm2, %v2873_v0  ;;  %17764 = vmatprep.subr.mxu1 %v14185_v27 }
 0x218   :  { %v1774_v56 = vadd.f32 %v1738_v58, %v21662_v26  ;;  %17725 = vmatprep.mubr.msk.f32.mxu0 %vm20160_vm1, %v27017_v2  ;;  %v2875_v26 = vld [vmem:[%s27007_s0 + $0xb4] sm:$0xff]  ;;  %17765 = vmatpush3.msra.mxu1 %v14185_v27 }
 0x219   :  { %v17398_v57 = vpop.f32.mrf.mxu0  ;;  %v2098_v35 = vpop.f32.mrf.mxu1 }
 0x21a   :  { %v21995_v13 = vadd.f32 %v2098_v35, %v1774_v56  ;;  %v14272_v56 = vld [vmem:[%s27010_s3 + $0x68] sm:$0xff]  ;;  %v2879_v57 = vld [vmem:[%s27007_s0 + $0xd4] sm:$0xff] }
 0x21b   :  { %v1743_v17 = vpop.f32.mrf.mxu0  ;;  %v17487_v6 = vpop.f32.mrf.mxu1  ;;  %17726 = vmatmul.mubr.msk.f32.gmra.mxu0 %vm94_vm2, %v2874_v14 }
 0x21c   :  { %v1775_v5 = vadd.f32 %v1743_v17, %v21677_v41  ;;  %17728 = vmatprep.mubr.msk.f32.mxu0 %vm20160_vm1, %v27017_v2  ;;  %v2876_v41 = vld [vmem:[%s27007_s0 + $0xbc] sm:$0xff] }
 0x21d   :  { %v17401_v7 = vpop.f32.mrf.mxu0  ;;  %v2103_v1 = vpop.f32.mrf.mxu1  ;;  %v14271_v6 = vld [vmem:[%s27010_s3 + $0x60] sm:$0xff] }
 0x21e   :  { %v22004_v43 = vadd.f32 %v2103_v1, %v1775_v5  ;;  %v2880_v1 = vld [vmem:[%s27007_s0 + $0xdc] sm:$0xff] }
 0x21f   :  { %v17490_v24 = vpop.f32.mrf.mxu1  ;;  %v2323_v28 = vpop.f32.mrf.mxu0  ;;  %17729 = vmatmul.mubr.msk.f32.gmra.mxu0 %vm94_vm2, %v2875_v26 }
 0x220   :  { %v2467_v15 = vadd.f32 %v2323_v28, %v21692_v46  ;;  %17731 = vmatprep.mubr.msk.f32.mxu0 %vm20160_vm1, %v27017_v2 }
 0x221   :  { %v17495_v20 = vpop.f32.mrf.mxu0  ;;  %v2683_v21 = vpop.f32.mrf.mxu1 }
 0x222   :  { %v22013_v10 = vadd.f32 %v2683_v21, %v2467_v15 }
 0x223   :  { %v2328_v52 = vpop.f32.mrf.mxu0  ;;  %v17584_v29 = vpop.f32.mrf.mxu1  ;;  %17732 = vmatmul.mubr.msk.f32.gmra.mxu0 %vm94_vm2, %v2876_v41 }
 0x224   :  { %v2468_v46 = vadd.f32 %v2328_v52, %v21707_v53  ;;  %17734 = vmatprep.mubr.msk.f32.mxu0 %vm20160_vm1, %v27017_v2  ;;  %v14274_v53 = vld [vmem:[%s27010_s3 + $0x78] sm:$0xff] }
 0x225   :  { %v17498_v31 = vpop.f32.mrf.mxu0  ;;  %v2688_v33 = vpop.f32.mrf.mxu1  ;;  %17899 = vmatprep.subr.mxu0 %v14274_v53 }
 0x226   :  { %v22025_v51 = vadd.f32 %v2688_v33, %v2468_v46  ;;  %17900 = vmatpush3.msra.mxu0 %v14274_v53 }
 0x227   :  { %v2333_v19 = vpop.f32.mrf.mxu0  ;;  %v17587_v62 = vpop.f32.mrf.mxu1  ;;  %17735 = vmatmul.mubr.msk.f32.gmra.mxu0 %vm94_vm2, %v2877_v30  ;;  %17901 = vmatprep.subr.mxu0 %v14273_v8 }
 0x228   :  { %v2469_v40 = vadd.f32 %v2333_v19, %v21722_v60  ;;  %17737 = vmatprep.mubr.msk.f32.mxu0 %vm20160_vm1, %v27017_v2  ;;  %17902 = vmatpush3.msra.mxu0 %v14273_v8 }
 0x229   :  { %v17501_v48 = vpop.f32.mrf.mxu0  ;;  %v2693_v0 = vpop.f32.mrf.mxu1  ;;  %17903 = vmatprep.subr.mxu0 %v14272_v56 }
 0x22a   :  { %v22043_v60 = vadd.f32 %v2693_v0, %v2469_v40  ;;  %17904 = vmatpush3.msra.mxu0 %v14272_v56 }
 0x22b   :  { %v2338_v58 = vpop.f32.mrf.mxu0  ;;  %v17590_v54 = vpop.f32.mrf.mxu1  ;;  %17738 = vmatmul.mubr.msk.f32.gmra.mxu0 %vm94_vm2, %v2878_v42  ;;  %17905 = vmatprep.subr.mxu0 %v14271_v6 }
 0x22c   :  { %v2470_v14 = vadd.f32 %v2338_v58, %v21737_v4  ;;  %17740 = vmatprep.mubr.msk.f32.mxu0 %vm20160_vm1, %v27017_v2  ;;  %17906 = vmatpush3.msra.mxu0 %v14271_v6 }
 0x22d   :  { %v17504_v35 = vpop.f32.mrf.mxu0  ;;  %v2698_v17 = vpop.f32.mrf.mxu1 }
 0x22e   :  { %v22058_v5 = vadd.f32 %v2698_v17, %v2470_v14 }
 0x22f   :  { %v2343_v26 = vpop.f32.mrf.mxu0  ;;  %v17593_v4 = vpop.f32.mrf.mxu1  ;;  %17741 = vmatmul.mubr.msk.f32.gmra.mxu0 %vm94_vm2, %v2879_v57 }
 0x230   :  { %v2471_v7 = vadd.f32 %v2343_v26, %v21752_v11  ;;  %17743 = vmatprep.mubr.msk.f32.mxu0 %vm20160_vm1, %v27017_v2  ;;  %v2881_v11 = vld [vmem:[%s27007_s0 + $0xe4] sm:$0xff] }
 0x231   :  { %v17507_v24 = vpop.f32.mrf.mxu0  ;;  %v2703_v28 = vpop.f32.mrf.mxu1 }
 0x232   :  { %v22067_v15 = vadd.f32 %v2703_v28, %v2471_v7 }
 0x233   :  { %v2348_v41 = vpop.f32.mrf.mxu0  ;;  %v17596_v20 = vpop.f32.mrf.mxu1  ;;  %17744 = vmatmul.mubr.msk.f32.gmra.mxu0 %vm94_vm2, %v2880_v1 }
 0x234   :  { %v2472_v21 = vadd.f32 %v2348_v41, %v21767_v18  ;;  %17746 = vmatprep.mubr.msk.f32.mxu0 %vm20160_vm1, %v27017_v2  ;;  %v2882_v18 = vld [vmem:[%s27007_s0 + $0xec] sm:$0xff] }
 0x235   :  { %v17510_v38 = vpop.f32.mrf.mxu0  ;;  %v2708_v52 = vpop.f32.mrf.mxu1 }
 0x236   :  { %v22076_v29 = vadd.f32 %v2708_v52, %v2472_v21 }
 0x237   :  { %v2353_v46 = vpop.f32.mrf.mxu0  ;;  %v17599_v30 = vpop.f32.mrf.mxu1  ;;  %17747 = vmatmul.mubr.msk.f32.gmra.mxu0 %vm94_vm2, %v2881_v11 }
 0x238   :  { %v2473_v31 = vadd.f32 %v2353_v46, %v21782_v25  ;;  %17749 = vmatprep.mubr.msk.f32.mxu0 %vm20160_vm1, %v27017_v2  ;;  %v2883_v25 = vld [vmem:[%s27007_s0 + $0xf4] sm:$0xff] }
 0x239   :  { %v17513_v33 = vpop.f32.mrf.mxu0  ;;  %v2713_v19 = vpop.f32.mrf.mxu1 }
 0x23a   :  { %v22085_v62 = vadd.f32 %v2713_v19, %v2473_v31 }
 0x23b   :  { %v2358_v53 = vpop.f32.mrf.mxu0  ;;  %v17602_v40 = vpop.f32.mrf.mxu1  ;;  %17750 = vmatmul.mubr.msk.f32.gmra.mxu0 %vm94_vm2, %v2882_v18 }
 0x23c   :  { %v2474_v42 = vadd.f32 %v2358_v53, %v21797_v32  ;;  %17752 = vmatprep.mubr.msk.f32.mxu0 %vm20160_vm1, %v27017_v2  ;;  %v2884_v32 = vld [vmem:[%s27007_s0 + $0xfc] sm:$0xff] }
 0x23d   :  { %v17516_v48 = vpop.f32.mrf.mxu0  ;;  %v2718_v0 = vpop.f32.mrf.mxu1 }
 0x23e   :  { %v22094_v27 = vadd.f32 %v2718_v0, %v2474_v42 }
 0x23f   :  { %v2363_v8 = vpop.f32.mrf.mxu0  ;;  %v17605_v58 = vpop.f32.mrf.mxu1  ;;  %17753 = vmatmul.mubr.msk.f32.gmra.mxu0 %vm94_vm2, %v2883_v25 }
 0x240   :  { %v2475_v54 = vadd.f32 %v2363_v8, %v21812_v39  ;;  %17755 = vmatprep.mubr.msk.f32.mxu0 %vm20160_vm1, %v27017_v2 }
 0x241   :  { %v17519_v56 = vpop.f32.mrf.mxu0  ;;  %v2723_v14 = vpop.f32.mrf.mxu1 }
 0x242   :  { %v22103_v57 = vadd.f32 %v2723_v14, %v2475_v54 }
 0x243   :  { %v2368_v35 = vpop.f32.mrf.mxu0  ;;  %v17608_v17 = vpop.f32.mrf.mxu1  ;;  %17756 = vmatmul.mubr.msk.f32.gmra.mxu0 %vm94_vm2, %v2884_v32 }
 0x244   :  { %v2476_v6 = vadd.f32 %v2368_v35, %v21827_v44 }
 0x245   :  { %v17522_v26 = vpop.f32.mrf.mxu0  ;;  %v2728_v4 = vpop.f32.mrf.mxu1 }
 0x246   :  { %v22107_v39 = vadd.f32 %v2728_v4, %v2476_v6 }
 0x247   :  { %v2373_v7 = vpop.f32.mrf.mxu0  ;;  %v17611_v1 = vpop.f32.mrf.mxu1 }
 0x248   :  { %v2477_v24 = vadd.f32 %v2373_v7, %v21836_v55 }
 0x249   :  { %v17525_v28 = vpop.f32.mrf.mxu0  ;;  %v2733_v41 = vpop.f32.mrf.mxu1 }
 0x24a   :  { %v22110_v20 = vadd.f32 %v2733_v41, %v2477_v24 }
 0x24b   :  { %v2378_v21 = vpop.f32.mrf.mxu0  ;;  %v17614_v11 = vpop.f32.mrf.mxu1 }
 0x24c   :  { %v2478_v38 = vadd.f32 %v2378_v21, %v21845_v3 }
 0x24d   :  { %v17528_v52 = vpop.f32.mrf.mxu0  ;;  %v2738_v46 = vpop.f32.mrf.mxu1 }
 0x24e   :  { %v22113_v30 = vadd.f32 %v2738_v46, %v2478_v38 }
 0x24f   :  { %v2383_v44 = vpop.f32.mrf.mxu0  ;;  %v17617_v31 = vpop.f32.mrf.mxu1 }
 0x250   :  { %v2479_v18 = vadd.f32 %v2383_v44, %v21854_v16 }
 0x251   :  { %v17531_v33 = vpop.f32.mrf.mxu0  ;;  %v2743_v19 = vpop.f32.mrf.mxu1 }
 0x252   :  { %v22116_v53 = vadd.f32 %v2743_v19, %v2479_v18 }
 0x253   :  { %v2388_v55 = vpop.f32.mrf.mxu0  ;;  %v17620_v40 = vpop.f32.mrf.mxu1 }
 0x254   :  { %v2480_v42 = vadd.f32 %v2388_v55, %v21863_v37  ;;  %v22130_v37 = vld [vmem:[%s27010_s3 + $0x18] sm:$0xff] }
 0x255   :  { %v17534_v25 = vpop.f32.mrf.mxu0  ;;  %v2748_v48 = vpop.f32.mrf.mxu1  ;;  %17805 = vmatprep.subr.mxu1 %v22130_v37 }
 0x256   :  { %v22119_v0 = vadd.f32 %v2748_v48, %v2480_v42 }
 0x257   :  { %v2393_v3 = vpop.f32.mrf.mxu0  ;;  %v17623_v8 = vpop.f32.mrf.mxu1 }
 0x258   :  { %v2481_v58 = vadd.f32 %v2393_v3, %v21875_v47 }
 0x259   :  { %v17537_v54 = vpop.f32.mrf.mxu0  ;;  %v2753_v32 = vpop.f32.mrf.mxu1 }
 0x25a   :  { %v22122_v56 = vadd.f32 %v2753_v32, %v2481_v58 }
 0x25b   :  { %v2398_v16 = vpop.f32.mrf.mxu0  ;;  %v17626_v14 = vpop.f32.mrf.mxu1 }
 0x25c   :  { %v2482_v35 = vadd.f32 %v2398_v16, %v21884_v45 }
 0x25d   :  { %v17540_v17 = vpop.f32.mrf.mxu0  ;;  %v2758_v6 = vpop.f32.mrf.mxu1 }
 0x25e   :  { %v22125_v26 = vadd.f32 %v2758_v6, %v2482_v35 }
 0x25f   :  { %v2403_v4 = vpop.f32.mrf.mxu0  ;;  %v17629_v7 = vpop.f32.mrf.mxu1 }
 0x260   :  { %v2483_v47 = vadd.f32 %v2403_v4, %v21893_v59 }
 0x261   :  { %v17543_v1 = vpop.f32.mrf.mxu0  ;;  %v2763_v24 = vpop.f32.mrf.mxu1 }
 0x262   :  { %v22134_v28 = vadd.f32 %v2763_v24, %v2483_v47 }
 0x263   :  { %v2408_v45 = vpop.f32.mrf.mxu0  ;;  %v17632_v41 = vpop.f32.mrf.mxu1 }
 0x264   :  { %v2484_v21 = vadd.f32 %v2408_v45, %v21902_v9 }
 0x265   :  { %v17546_v11 = vpop.f32.mrf.mxu0  ;;  %v2768_v38 = vpop.f32.mrf.mxu1 }
 0x266   :  { %v22137_v52 = vadd.f32 %v2768_v38, %v2484_v21 }
 0x267   :  { %v2413_v46 = vpop.f32.mrf.mxu0  ;;  %v17635_v44 = vpop.f32.mrf.mxu1 }
 0x268   :  { %v2485_v31 = vadd.f32 %v2413_v46, %v21911_v22 }
 0x269   :  { %v17549_v18 = vpop.f32.mrf.mxu0  ;;  %v2773_v33 = vpop.f32.mrf.mxu1 }
 0x26a   :  { %v22140_v19 = vadd.f32 %v2773_v33, %v2485_v31 }
 0x26b   :  { %v2418_v59 = vpop.f32.mrf.mxu0  ;;  %v17638_v55 = vpop.f32.mrf.mxu1 }
 0x26c   :  { %v2486_v40 = vadd.f32 %v2418_v59, %v21920_v34 }
 0x26d   :  { %v17552_v42 = vpop.f32.mrf.mxu0  ;;  %v2778_v25 = vpop.f32.mrf.mxu1 }
 0x26e   :  { %v22143_v48 = vadd.f32 %v2778_v25, %v2486_v40 }
 0x26f   :  { %v2423_v9 = vpop.f32.mrf.mxu0  ;;  %v17641_v3 = vpop.f32.mrf.mxu1 }
 0x270   :  { %v2487_v8 = vadd.f32 %v2423_v9, %v21929_v49 }
 0x271   :  { %v17555_v58 = vpop.f32.mrf.mxu0  ;;  %v2783_v54 = vpop.f32.mrf.mxu1 }
 0x272   :  { %v22146_v32 = vadd.f32 %v2783_v54, %v2487_v8 }
 0x273   :  { %v2428_v22 = vpop.f32.mrf.mxu0  ;;  %v17644_v16 = vpop.f32.mrf.mxu1 }
 0x274   :  { %v2488_v14 = vadd.f32 %v2428_v22, %v21941_v61 }
 0x275   :  { %v17558_v35 = vpop.f32.mrf.mxu0  ;;  %v2788_v17 = vpop.f32.mrf.mxu1 }
 0x276   :  { %v22149_v6 = vadd.f32 %v2788_v17, %v2488_v14 }
 0x277   :  { %v2433_v34 = vpop.f32.mrf.mxu0  ;;  %v17647_v4 = vpop.f32.mrf.mxu1 }
 0x278   :  { %v2489_v7 = vadd.f32 %v2433_v34, %v21950_v12 }
 0x279   :  { %v17561_v47 = vpop.f32.mrf.mxu0  ;;  %v2793_v1 = vpop.f32.mrf.mxu1 }
 0x27a   :  { %v22152_v24 = vadd.f32 %v2793_v1, %v2489_v7 }
 0x27b   :  { %v2438_v49 = vpop.f32.mrf.mxu0  ;;  %v17650_v45 = vpop.f32.mrf.mxu1 }
 0x27c   :  { %v2490_v41 = vadd.f32 %v2438_v49, %v21959_v23  ;;  %v22181_v45 = vld [vmem:[%s27009_s2] ss:$0 sm:$0xff]  ;;  %s20161_s2 = smov [#allocation5]  }
 0x27d   :  { %v17564_v21 = vpop.f32.mrf.mxu0  ;;  %v2798_v11 = vpop.f32.mrf.mxu1  ;;  %s13898_s15 = sshll.u32 %s20161_s2, 4  ;;  %s13899_s15 = int_to_ptr.vmem [resolvable:$true] %s13898_s15 }
 0x27e   :  { %v22155_v38 = vadd.f32 %v2798_v11, %v2490_v41  ;;  %s20137_s16 = scalar_lea.vmem %s13899_s15, 32  ;;  %p20142_p1 = scmp.lt.s32.totalorder %s13899_s15, %s13899_s15 }
 0x27f   :  { %v2443_v61 = vpop.f32.mrf.mxu0  ;;  %v17653_v46 = vpop.f32.mrf.mxu1  ;;  %p20138_p0 = scmp.ne.s32.totalorder %s13899_s15, %s20137_s16  ;;  %p20143_p2 = scmp.lt.s32.totalorder %s20137_s16, %s20137_s16 }
 0x280   :  { %v2491_v44 = vadd.f32 %v2443_v61, %v21968_v36  ;;  %v22169_v36 = vld [vmem:[%s27010_s3 + $0xb8] sm:$0xff] }
 0x281   :  { %v17567_v31 = vpop.f32.mrf.mxu0  ;;  %v2803_v18 = vpop.f32.mrf.mxu1  ;;  %17993 = vmatprep.subr.mxu0 %v22169_v36  ;;  %p20144_p3 = por %p20143_p2, %p20142_p1 }
 0x282   :  { %v22158_v33 = vadd.f32 %v2803_v18, %v2491_v44 }
 0x283   :  { %v2448_v12 = vpop.f32.mrf.mxu0  ;;  %v17656_v59 = vpop.f32.mrf.mxu1  ;;  %p20145_p4 = pnand %p20144_p3, %p20138_p0 }
 0x284   :  { %v2492_v55 = vadd.f32 %v2448_v12, %v21977_v50 }
 0x285   :  { %v17570_v40 = vpop.f32.mrf.mxu0  ;;  %v2808_v42 = vpop.f32.mrf.mxu1 }
 0x286   :  { %v22161_v25 = vadd.f32 %v2808_v42, %v2492_v55 }
 0x287   :  { %v2453_v23 = vpop.f32.mrf.mxu0  ;;  %v17659_v9 = vpop.f32.mrf.mxu1 }
 0x288   :  { %v2493_v3 = vadd.f32 %v2453_v23, %v21986_v63 }
 0x289   :  { %v17573_v8 = vpop.f32.mrf.mxu0  ;;  %v2813_v58 = vpop.f32.mrf.mxu1 }
 0x28a   :  { %v22164_v54 = vadd.f32 %v2813_v58, %v2493_v3 }
 0x28b   :  { %v2458_v22 = vpop.f32.mrf.mxu0  ;;  %v17662_v16 = vpop.f32.mrf.mxu1 }
 0x28c   :  { %v2494_v50 = vadd.f32 %v2458_v22, %v21995_v13 }
 0x28d   :  { %v17576_v14 = vpop.f32.mrf.mxu0  ;;  %v2818_v35 = vpop.f32.mrf.mxu1 }
 0x28e   :  { %v22173_v17 = vadd.f32 %v2818_v35, %v2494_v50 }
 0x28f   :  { %v2463_v63 = vpop.f32.mrf.mxu0  ;;  %v17665_v34 = vpop.f32.mrf.mxu1 }
 0x290   :  { %v2495_v4 = vadd.f32 %v2463_v63, %v22004_v43 }
 0x291   :  { %v17579_v7 = vpop.f32.mrf.mxu0  ;;  %v2823_v47 = vpop.f32.mrf.mxu1 }
 0x292   :  { %v22176_v1 = vadd.f32 %v2823_v47, %v2495_v4  ;;  %v3339_v4 = vld [vmem:[%s27010_s3 + $0x10] sm:$0xff] }
 0x293   :  { %v3043_v49 = vpop.f32.mrf.mxu0  ;;  %v17668_v41 = vpop.f32.mrf.mxu1 }
 0x294   :  { %v3187_v13 = vadd.f32 %v3043_v49, %v22013_v10  ;;  %v3338_v49 = vld [vmem:[%s27010_s3 + $0x8] sm:$0xff] }
 0x295   :  { %v17673_v21 = vpop.f32.mrf.mxu0 }
 0x296   :  { %v3223_v11 = vadd.f32 %v22181_v45, %v3187_v13 }
 0x297   :  { %v3048_v61 = vpop.f32.mrf.mxu0 }
 0x298   :  { %v3252_v46 = vmax.f32 %v3223_v11, 0.0  ;;  %v3188_v43 = vadd.f32 %v3048_v61, %v22025_v51  ;;  %v14333_v11 = vld [vmem:[%s27010_s3 + $0xb0] sm:$0xff] }
 0x299   :  { %v17676_v44 = vpop.f32.mrf.mxu0 }
 0x29a   :  { %3282 = vst.msk [vmem:[#allocation2] sm:$0xff] %vm3281_vm3, %v3252_v46  ;;  %v3224_v31 = vadd.f32 %v22181_v45, %v3188_v43  ;;  %v14332_v44 = vld [vmem:[%s27010_s3 + $0xa8] sm:$0xff] }
 0x29b   :  { %v3053_v18 = vpop.f32.mrf.mxu0 }
 0x29c   :  { %v3253_v12 = vmax.f32 %v3224_v31, 0.0  ;;  %v3189_v59 = vadd.f32 %v3053_v18, %v22043_v60 }
 0x29d   :  { %v17679_v55 = vpop.f32.mrf.mxu0 }
 0x29e   :  { %3283 = vst.msk [vmem:[#allocation2 + $0x8] sm:$0xff] %vm3281_vm3, %v3253_v12  ;;  %v3225_v10 = vadd.f32 %v22181_v45, %v3189_v59  ;;  %v22229_v59 = vld [vmem:[%s27010_s3 + $0x58] sm:$0xff] }
 0x29f   :  { %v3058_v40 = vpop.f32.mrf.mxu0 }
 0x2a0   :  { %v3254_v42 = vmax.f32 %v3225_v10, 0.0  ;;  %v3190_v23 = vadd.f32 %v3058_v40, %v22058_v5 }
 0x2a1   :  { %v17682_v9 = vpop.f32.mrf.mxu0 }
 0x2a2   :  { %3284 = vst.msk [vmem:[#allocation2 + $0x10] sm:$0xff] %vm3281_vm3, %v3254_v42  ;;  %v3226_v51 = vadd.f32 %v22181_v45, %v3190_v23 }
 0x2a3   :  { %v3063_v3 = vpop.f32.mrf.mxu0 }
 0x2a4   :  { %v3255_v8 = vmax.f32 %v3226_v51, 0.0  ;;  %v3191_v58 = vadd.f32 %v3063_v3, %v22067_v15 }
 0x2a5   :  { %v17685_v22 = vpop.f32.mrf.mxu0  ;;  %v3341_v60 = vld [vmem:[#allocation2 + $0x1] sm:$0xff] }
 0x2a6   :  { %3285 = vst.msk [vmem:[#allocation2 + $0x18] sm:$0xff] %vm3281_vm3, %v3255_v8  ;;  %v3227_v16 = vadd.f32 %v22181_v45, %v3191_v58  ;;  %17766 = vmatprep.mubr.msk.f32.mxu1 %vm3281_vm3, %v3341_v60 }
 0x2a7   :  { %v3068_v50 = vpop.f32.mrf.mxu0 }
 0x2a8   :  { %v3256_v14 = vmax.f32 %v3227_v16, 0.0  ;;  %v3192_v5 = vadd.f32 %v3068_v50, %v22076_v29 }
 0x2a9   :  { %v17688_v35 = vpop.f32.mrf.mxu0  ;;  %v3342_v63 = vld [vmem:[#allocation2 + $0x9] sm:$0xff] }
 0x2aa   :  { %v4248_v34 = vld [vmem:[#allocation2 + $0xd] sm:$0xff]  ;;  %3286 = vst.msk [vmem:[#allocation2 + $0x20] sm:$0xff] %vm3281_vm3, %v3256_v14  ;;  %v3228_v15 = vadd.f32 %v22181_v45, %v3192_v5  ;;  %17767 = vmatmul.mubr.msk.f32.vlgmr.msra.gmra.mxu1 %vm3281_vm3, %v3342_v63 }
 0x2ab   :  { %17907 = vmatprep.mubr.msk.f32.mxu0 %vm3281_vm3, %v4248_v34  ;;  %v3073_v7 = vpop.f32.mrf.mxu0  ;;  %17806 = vmatpush3.msra.mxu1 %v22130_v37 }
 0x2ac   :  { %v3257_v47 = vmax.f32 %v3228_v15, 0.0  ;;  %v3193_v29 = vadd.f32 %v3073_v7, %v22085_v62  ;;  %17807 = vmatprep.subr.mxu1 %v3339_v4  ;;  %v3337_v62 = vld [vmem:[%s27010_s3] sm:$0xff] }
 0x2ad   :  { %v17691_v41 = vpop.f32.mrf.mxu0  ;;  %v3343_v13 = vld [vmem:[#allocation2 + $0x11] sm:$0xff]  ;;  %17808 = vmatpush3.msra.mxu1 %v3339_v4 }
 0x2ae   :  { %v4249_v21 = vld [vmem:[#allocation2 + $0x15] sm:$0xff]  ;;  %3287 = vst.msk [vmem:[#allocation2 + $0x28] sm:$0xff] %vm3281_vm3, %v3257_v47  ;;  %v3229_v37 = vadd.f32 %v22181_v45, %v3193_v29  ;;  %17769 = vmatprep.mubr.msk.f32.mxu1 %vm3281_vm3, %v3343_v13  ;;  %17809 = vmatprep.subr.mxu1 %v3338_v49 }
 0x2af   :  { %17908 = vmatmul.mubr.msk.f32.vlgmr.msra.gmra.mxu0 %vm3281_vm3, %v4249_v21  ;;  %v3078_v61 = vpop.f32.mrf.mxu0  ;;  %17810 = vmatpush3.msra.mxu1 %v3338_v49  ;;  %v22257_v4 = vld [vmem:[%s27010_s3 + $0xf8] sm:$0xff] }
 0x2b0   :  { %17994 = vmatpush3.msra.mxu0 %v22169_v36  ;;  %v3258_v46 = vmax.f32 %v3229_v37, 0.0  ;;  %v3194_v43 = vadd.f32 %v3078_v61, %v22094_v27  ;;  %17811 = vmatprep.subr.mxu1 %v3337_v62  ;;  %v14331_v36 = vld [vmem:[%s27010_s3 + $0xa0] sm:$0xff] }
 0x2b1   :  { %17995 = vmatprep.subr.mxu0 %v14333_v11  ;;  %v17694_v31 = vpop.f32.mrf.mxu0  ;;  %v3344_v18 = vld [vmem:[#allocation2 + $0x19] sm:$0xff]  ;;  %17812 = vmatpush3.msra.mxu1 %v3337_v62 }
 0x2b2   :  { %v4250_v12 = vld [vmem:[#allocation2 + $0x1d] sm:$0xff]  ;;  %17996 = vmatpush3.msra.mxu0 %v14333_v11  ;;  %3288 = vst.msk [vmem:[#allocation2 + $0x30] sm:$0xff] %vm3281_vm3, %v3258_v46  ;;  %v3230_v27 = vadd.f32 %v22181_v45, %v3194_v43  ;;  %17770 = vmatmul.mubr.msk.f32.gmra.mxu1 %vm3281_vm3, %v3344_v18 }
 0x2b3   :  { %17910 = vmatprep.mubr.msk.f32.mxu0 %vm3281_vm3, %v4250_v12  ;;  %v3083_v55 = vpop.f32.mrf.mxu0  ;;  %17997 = vmatprep.subr.mxu0 %v14332_v44 }
 0x2b4   :  { %v3259_v10 = vmax.f32 %v3230_v27, 0.0  ;;  %v3195_v40 = vadd.f32 %v3083_v55, %v22103_v57  ;;  %17852 = vmatprep.subr.mxu1 %v22229_v59  ;;  %17998 = vmatpush3.msra.mxu0 %v14332_v44 }
 0x2b5   :  { %v17697_v42 = vpop.f32.mrf.mxu0  ;;  %v3345_v23 = vld [vmem:[#allocation2 + $0x21] sm:$0xff]  ;;  %17999 = vmatprep.subr.mxu0 %v14331_v36 }
 0x2b6   :  { %v4251_v9 = vld [vmem:[#allocation2 + $0x25] sm:$0xff]  ;;  %3289 = vst.msk [vmem:[#allocation2 + $0x38] sm:$0xff] %vm3281_vm3, %v3259_v10  ;;  %v3231_v51 = vadd.f32 %v22181_v45, %v3195_v40  ;;  %17772 = vmatprep.mubr.msk.f32.mxu1 %vm3281_vm3, %v3345_v23  ;;  %18000 = vmatpush3.msra.mxu0 %v14331_v36 }
 0x2b7   :  { %17911 = vmatmul.mubr.msk.f32.gmra.mxu0 %vm3281_vm3, %v4251_v9  ;;  %v3088_v3 = vpop.f32.mrf.mxu0  ;;  %18087 = vmatprep.subr.mxu0 %v22257_v4 }
 0x2b8   :  { %v3260_v8 = vmax.f32 %v3231_v51, 0.0  ;;  %v3196_v57 = vadd.f32 %v3088_v3, %v22107_v39 }
 0x2b9   :  { %v17700_v58 = vpop.f32.mrf.mxu0  ;;  %v3346_v22 = vld [vmem:[#allocation2 + $0x29] sm:$0xff] }
 0x2ba   :  { %v4252_v60 = vld [vmem:[#allocation2 + $0x2d] sm:$0xff]  ;;  %3290 = vst.msk [vmem:[#allocation2 + $0x40] sm:$0xff] %vm3281_vm3, %v3260_v8  ;;  %v3232_v16 = vadd.f32 %v22181_v45, %v3196_v57  ;;  %17773 = vmatmul.mubr.msk.f32.gmra.mxu1 %vm3281_vm3, %v3346_v22 }
 0x2bb   :  { %17913 = vmatprep.mubr.msk.f32.mxu0 %vm3281_vm3, %v4252_v60  ;;  %v3093_v50 = vpop.f32.mrf.mxu0 }
 0x2bc   :  { %v3261_v14 = vmax.f32 %v3232_v16, 0.0  ;;  %v3197_v5 = vadd.f32 %v3093_v50, %v22110_v20 }
 0x2bd   :  { %v17703_v35 = vpop.f32.mrf.mxu0  ;;  %v3347_v63 = vld [vmem:[#allocation2 + $0x31] sm:$0xff] }
 0x2be   :  { %v4253_v34 = vld [vmem:[#allocation2 + $0x35] sm:$0xff]  ;;  %3291 = vst.msk [vmem:[#allocation2 + $0x48] sm:$0xff] %vm3281_vm3, %v3261_v14  ;;  %v3233_v39 = vadd.f32 %v22181_v45, %v3197_v5  ;;  %17775 = vmatprep.mubr.msk.f32.mxu1 %vm3281_vm3, %v3347_v63 }
 0x2bf   :  { %17914 = vmatmul.mubr.msk.f32.gmra.mxu0 %vm3281_vm3, %v4253_v34  ;;  %v3098_v15 = vpop.f32.mrf.mxu0 }
 0x2c0   :  { %v3262_v20 = vmax.f32 %v3233_v39, 0.0  ;;  %v3198_v7 = vadd.f32 %v3098_v15, %v22113_v30 }
 0x2c1   :  { %v17706_v47 = vpop.f32.mrf.mxu0  ;;  %v3348_v29 = vld [vmem:[#allocation2 + $0x39] sm:$0xff] }
 0x2c2   :  { %v4254_v49 = vld [vmem:[#allocation2 + $0x3d] sm:$0xff]  ;;  %3292 = vst.msk [vmem:[#allocation2 + $0x50] sm:$0xff] %vm3281_vm3, %v3262_v20  ;;  %v3234_v41 = vadd.f32 %v22181_v45, %v3198_v7  ;;  %17776 = vmatmul.mubr.msk.f32.gmra.mxu1 %vm3281_vm3, %v3348_v29 }
 0x2c3   :  { %17916 = vmatprep.mubr.msk.f32.mxu0 %vm3281_vm3, %v4254_v49  ;;  %v3103_v13 = vpop.f32.mrf.mxu0 }
 0x2c4   :  { %v3263_v21 = vmax.f32 %v3234_v41, 0.0  ;;  %v3199_v11 = vadd.f32 %v3103_v13, %v22116_v53 }
 0x2c5   :  { %v17709_v37 = vpop.f32.mrf.mxu0  ;;  %v3349_v62 = vld [vmem:[#allocation2 + $0x41] sm:$0xff] }
 0x2c6   :  { %v4255_v61 = vld [vmem:[#allocation2 + $0x45] sm:$0xff]  ;;  %3293 = vst.msk [vmem:[#allocation2 + $0x58] sm:$0xff] %vm3281_vm3, %v3263_v21  ;;  %v3235_v30 = vadd.f32 %v22181_v45, %v3199_v11  ;;  %17778 = vmatprep.mubr.msk.f32.mxu1 %vm3281_vm3, %v3349_v62 }
 0x2c7   :  { %17917 = vmatmul.mubr.msk.f32.gmra.mxu0 %vm3281_vm3, %v4255_v61  ;;  %v3108_v46 = vpop.f32.mrf.mxu0 }
 0x2c8   :  { %v3264_v43 = vmax.f32 %v3235_v30, 0.0  ;;  %v3200_v44 = vadd.f32 %v3108_v46, %v22119_v0 }
 0x2c9   :  { %v17712_v31 = vpop.f32.mrf.mxu0  ;;  %v3350_v18 = vld [vmem:[#allocation2 + $0x49] sm:$0xff] }
 0x2ca   :  { %v4256_v12 = vld [vmem:[#allocation2 + $0x4d] sm:$0xff]  ;;  %3294 = vst.msk [vmem:[#allocation2 + $0x60] sm:$0xff] %vm3281_vm3, %v3264_v43  ;;  %v3236_v53 = vadd.f32 %v22181_v45, %v3200_v44  ;;  %17779 = vmatmul.mubr.msk.f32.gmra.mxu1 %vm3281_vm3, %v3350_v18 }
 0x2cb   :  { %17919 = vmatprep.mubr.msk.f32.mxu0 %vm3281_vm3, %v4256_v12  ;;  %v3113_v27 = vpop.f32.mrf.mxu0 }
 0x2cc   :  { %v3265_v36 = vmax.f32 %v3236_v53, 0.0  ;;  %v3201_v55 = vadd.f32 %v3113_v27, %v22122_v56 }
 0x2cd   :  { %v17715_v10 = vpop.f32.mrf.mxu0  ;;  %v3351_v40 = vld [vmem:[#allocation2 + $0x51] sm:$0xff] }
 0x2ce   :  { %v4257_v42 = vld [vmem:[#allocation2 + $0x55] sm:$0xff]  ;;  %3295 = vst.msk [vmem:[#allocation2 + $0x68] sm:$0xff] %vm3281_vm3, %v3265_v36  ;;  %v3237_v0 = vadd.f32 %v22181_v45, %v3201_v55  ;;  %17781 = vmatprep.mubr.msk.f32.mxu1 %vm3281_vm3, %v3351_v40 }
 0x2cf   :  { %17920 = vmatmul.mubr.msk.f32.gmra.mxu0 %vm3281_vm3, %v4257_v42  ;;  %v3118_v23 = vpop.f32.mrf.mxu0 }
 0x2d0   :  { %v3266_v9 = vmax.f32 %v3237_v0, 0.0  ;;  %v3202_v51 = vadd.f32 %v3118_v23, %v22125_v26 }
 0x2d1   :  { %v17718_v3 = vpop.f32.mrf.mxu0  ;;  %v3352_v8 = vld [vmem:[#allocation2 + $0x59] sm:$0xff] }
 0x2d2   :  { %v4258_v57 = vld [vmem:[#allocation2 + $0x5d] sm:$0xff]  ;;  %3296 = vst.msk [vmem:[#allocation2 + $0x70] sm:$0xff] %vm3281_vm3, %v3266_v9  ;;  %v3238_v56 = vadd.f32 %v22181_v45, %v3202_v51  ;;  %17782 = vmatmul.mubr.msk.f32.gmra.mxu1 %vm3281_vm3, %v3352_v8 }
 0x2d3   :  { %17922 = vmatprep.mubr.msk.f32.mxu0 %vm3281_vm3, %v4258_v57  ;;  %v3123_v58 = vpop.f32.mrf.mxu0 }
 0x2d4   :  { %v3267_v22 = vmax.f32 %v3238_v56, 0.0  ;;  %v3203_v60 = vadd.f32 %v3123_v58, %v22134_v28 }
 0x2d5   :  { %v17721_v16 = vpop.f32.mrf.mxu0  ;;  %v3353_v50 = vld [vmem:[#allocation2 + $0x61] sm:$0xff] }
 0x2d6   :  { %v4259_v14 = vld [vmem:[#allocation2 + $0x65] sm:$0xff]  ;;  %3297 = vst.msk [vmem:[#allocation2 + $0x78] sm:$0xff] %vm3281_vm3, %v3267_v22  ;;  %v3239_v26 = vadd.f32 %v22181_v45, %v3203_v60  ;;  %17784 = vmatprep.mubr.msk.f32.mxu1 %vm3281_vm3, %v3353_v50 }
 0x2d7   :  { %17923 = vmatmul.mubr.msk.f32.gmra.mxu0 %vm3281_vm3, %v4259_v14  ;;  %v3128_v5 = vpop.f32.mrf.mxu0 }
 0x2d8   :  { %v3268_v35 = vmax.f32 %v3239_v26, 0.0  ;;  %v3204_v63 = vadd.f32 %v3128_v5, %v22137_v52 }
 0x2d9   :  { %v17724_v34 = vpop.f32.mrf.mxu0  ;;  %v3354_v39 = vld [vmem:[#allocation2 + $0x69] sm:$0xff] }
 0x2da   :  { %v4260_v15 = vld [vmem:[#allocation2 + $0x6d] sm:$0xff]  ;;  %3298 = vst.msk [vmem:[#allocation2 + $0x80] sm:$0xff] %vm3281_vm3, %v3268_v35  ;;  %v3240_v28 = vadd.f32 %v22181_v45, %v3204_v63  ;;  %17785 = vmatmul.mubr.msk.f32.gmra.mxu1 %vm3281_vm3, %v3354_v39 }
 0x2db   :  { %17925 = vmatprep.mubr.msk.f32.mxu0 %vm3281_vm3, %v4260_v15  ;;  %v3133_v20 = vpop.f32.mrf.mxu0 }
 0x2dc   :  { %v3269_v7 = vmax.f32 %v3240_v28, 0.0  ;;  %v3205_v47 = vadd.f32 %v3133_v20, %v22140_v19 }
 0x2dd   :  { %v17727_v29 = vpop.f32.mrf.mxu0  ;;  %v3355_v49 = vld [vmem:[#allocation2 + $0x71] sm:$0xff] }
 0x2de   :  { %v4261_v41 = vld [vmem:[#allocation2 + $0x75] sm:$0xff]  ;;  %3299 = vst.msk [vmem:[#allocation2 + $0x88] sm:$0xff] %vm3281_vm3, %v3269_v7  ;;  %v3241_v52 = vadd.f32 %v22181_v45, %v3205_v47  ;;  %17787 = vmatprep.mubr.msk.f32.mxu1 %vm3281_vm3, %v3355_v49 }
 0x2df   :  { %17926 = vmatmul.mubr.msk.f32.gmra.mxu0 %vm3281_vm3, %v4261_v41  ;;  %v3138_v13 = vpop.f32.mrf.mxu0 }
 0x2e0   :  { %v3270_v21 = vmax.f32 %v3241_v52, 0.0  ;;  %v3206_v11 = vadd.f32 %v3138_v13, %v22143_v48 }
 0x2e1   :  { %v17730_v37 = vpop.f32.mrf.mxu0  ;;  %v3356_v62 = vld [vmem:[#allocation2 + $0x79] sm:$0xff] }
 0x2e2   :  { %v4262_v61 = vld [vmem:[#allocation2 + $0x7d] sm:$0xff]  ;;  %3300 = vst.msk [vmem:[#allocation2 + $0x90] sm:$0xff] %vm3281_vm3, %v3270_v21  ;;  %v3242_v19 = vadd.f32 %v22181_v45, %v3206_v11  ;;  %17788 = vmatmul.mubr.msk.f32.gmra.mxu1 %vm3281_vm3, %v3356_v62 }
 0x2e3   :  { %17928 = vmatprep.mubr.msk.f32.mxu0 %vm3281_vm3, %v4262_v61  ;;  %v3143_v30 = vpop.f32.mrf.mxu0 }
 0x2e4   :  { %v3271_v46 = vmax.f32 %v3242_v19, 0.0  ;;  %v3207_v43 = vadd.f32 %v3143_v30, %v22146_v32 }
 0x2e5   :  { %v17733_v44 = vpop.f32.mrf.mxu0  ;;  %v3357_v31 = vld [vmem:[#allocation2 + $0x81] sm:$0xff] }
 0x2e6   :  { %v4263_v18 = vld [vmem:[#allocation2 + $0x85] sm:$0xff]  ;;  %3301 = vst.msk [vmem:[#allocation2 + $0x98] sm:$0xff] %vm3281_vm3, %v3271_v46  ;;  %v3243_v48 = vadd.f32 %v22181_v45, %v3207_v43  ;;  %17790 = vmatprep.mubr.msk.f32.mxu1 %vm3281_vm3, %v3357_v31 }
 0x2e7   :  { %17929 = vmatmul.mubr.msk.f32.gmra.mxu0 %vm3281_vm3, %v4263_v18  ;;  %v3148_v12 = vpop.f32.mrf.mxu0  ;;  %v3311_v18 = vld [vmem:[#allocation2] sm:$0xff] }
 0x2e8   :  { %v3272_v53 = vmax.f32 %v3243_v48, 0.0  ;;  %v3208_v27 = vadd.f32 %v3148_v12, %v22149_v6 }
 0x2e9   :  { %v17736_v36 = vpop.f32.mrf.mxu0  ;;  %v3358_v55 = vld [vmem:[#allocation2 + $0x89] sm:$0xff] }
 0x2ea   :  { %v4264_v10 = vld [vmem:[#allocation2 + $0x8d] sm:$0xff]  ;;  %3302 = vst.msk [vmem:[#allocation2 + $0xa0] sm:$0xff] %vm3281_vm3, %v3272_v53  ;;  %v3244_v32 = vadd.f32 %v22181_v45, %v3208_v27  ;;  %17791 = vmatmul.mubr.msk.f32.gmra.mxu1 %vm3281_vm3, %v3358_v55  ;;  %v3314_v55 = vld [vmem:[#allocation2 + $0x18] sm:$0xff] }
 0x2eb   :  { %17931 = vmatprep.mubr.msk.f32.mxu0 %vm3281_vm3, %v4264_v10  ;;  %v3153_v40 = vpop.f32.mrf.mxu0  ;;  %v3313_v53 = vld [vmem:[#allocation2 + $0x10] sm:$0xff]  ;;  %v14242_v36 = vld [vmem:[%s27010_s3 + $0x48] sm:$0xff] }
 0x2ec   :  { %v3273_v42 = vmax.f32 %v3244_v32, 0.0  ;;  %v3209_v0 = vadd.f32 %v3153_v40, %v22152_v24  ;;  %v4908_v10 = vld [vmem:[#allocation2 + $0xf] sm:$0xff]  ;;  %v3315_v32 = vld [vmem:[#allocation2 + $0x20] sm:$0xff]  ;;  %v4909_v40 = vld [vmem:[#allocation2 + $0x17] sm:$0xff] }
 0x2ed   :  { %v17739_v23 = vpop.f32.mrf.mxu0  ;;  %v3359_v9 = vld [vmem:[#allocation2 + $0x91] sm:$0xff] }
 0x2ee   :  { %v4265_v51 = vld [vmem:[#allocation2 + $0x95] sm:$0xff]  ;;  %3303 = vst.msk [vmem:[#allocation2 + $0xa8] sm:$0xff] %vm3281_vm3, %v3273_v42  ;;  %v3245_v6 = vadd.f32 %v22181_v45, %v3209_v0  ;;  %17793 = vmatprep.mubr.msk.f32.mxu1 %vm3281_vm3, %v3359_v9  ;;  %v3316_v42 = vld [vmem:[#allocation2 + $0x28] sm:$0xff]  ;;  %v4910_v0 = vld [vmem:[#allocation2 + $0x1f] sm:$0xff] }
 0x2ef   :  { %17932 = vmatmul.mubr.msk.f32.gmra.mxu0 %vm3281_vm3, %v4265_v51  ;;  %v3158_v3 = vpop.f32.mrf.mxu0  ;;  %v22374_v23 = vld [vmem:[%s27010_s3 + $0x98] sm:$0xff]  ;;  %v3317_v9 = vld [vmem:[#allocation2 + $0x30] sm:$0xff] }
 0x2f0   :  { %v3274_v8 = vmax.f32 %v3245_v6, 0.0  ;;  %v3210_v57 = vadd.f32 %v3158_v3, %v22155_v38  ;;  %v14393_v51 = vld [vmem:[%s27010_s3 + $0xf0] sm:$0xff]  ;;  %v4911_v6 = vld [vmem:[#allocation2 + $0x27] sm:$0xff]  ;;  %v3318_v3 = vld [vmem:[#allocation2 + $0x38] sm:$0xff] }
 0x2f1   :  { %v17742_v56 = vpop.f32.mrf.mxu0  ;;  %v3360_v58 = vld [vmem:[#allocation2 + $0x99] sm:$0xff] }
 0x2f2   :  { %v4266_v22 = vld [vmem:[#allocation2 + $0x9d] sm:$0xff]  ;;  %3304 = vst.msk [vmem:[#allocation2 + $0xb0] sm:$0xff] %vm3281_vm3, %v3274_v8  ;;  %v3246_v24 = vadd.f32 %v22181_v45, %v3210_v57  ;;  %17794 = vmatmul.mubr.msk.f32.gmra.mxu1 %vm3281_vm3, %v3360_v58  ;;  %v4912_v8 = vld [vmem:[#allocation2 + $0x2f] sm:$0xff] }
 0x2f3   :  { %17934 = vmatprep.mubr.msk.f32.mxu0 %vm3281_vm3, %v4266_v22  ;;  %v3163_v60 = vpop.f32.mrf.mxu0  ;;  %v14392_v57 = vld [vmem:[%s27010_s3 + $0xe8] sm:$0xff]  ;;  %v3319_v56 = vld [vmem:[#allocation2 + $0x40] sm:$0xff]  ;;  %v4913_v58 = vld [vmem:[#allocation2 + $0x37] sm:$0xff] }
 0x2f4   :  { %v3275_v16 = vmax.f32 %v3246_v24, 0.0  ;;  %v3211_v50 = vadd.f32 %v3163_v60, %v22158_v33  ;;  %v4914_v22 = vld [vmem:[#allocation2 + $0x3f] sm:$0xff]  ;;  %v3321_v60 = vld [vmem:[#allocation2 + $0x50] sm:$0xff] }
 0x2f5   :  { %v17745_v14 = vpop.f32.mrf.mxu0  ;;  %v3361_v26 = vld [vmem:[#allocation2 + $0xa1] sm:$0xff] }
 0x2f6   :  { %v4267_v5 = vld [vmem:[#allocation2 + $0xa5] sm:$0xff]  ;;  %3305 = vst.msk [vmem:[#allocation2 + $0xb8] sm:$0xff] %vm3281_vm3, %v3275_v16  ;;  %v3247_v38 = vadd.f32 %v22181_v45, %v3211_v50  ;;  %17796 = vmatprep.mubr.msk.f32.mxu1 %vm3281_vm3, %v3361_v26  ;;  %v3322_v50 = vld [vmem:[#allocation2 + $0x58] sm:$0xff]  ;;  %v4916_v14 = vld [vmem:[#allocation2 + $0x4f] sm:$0xff] }
 0x2f7   :  { %17935 = vmatmul.mubr.msk.f32.gmra.mxu0 %vm3281_vm3, %v4267_v5  ;;  %v3168_v35 = vpop.f32.mrf.mxu0  ;;  %v14391_v24 = vld [vmem:[%s27010_s3 + $0xe0] sm:$0xff]  ;;  %v4917_v5 = vld [vmem:[#allocation2 + $0x57] sm:$0xff] }
 0x2f8   :  { %v3276_v63 = vmax.f32 %v3247_v38, 0.0  ;;  %v3212_v34 = vadd.f32 %v3168_v35, %v22161_v25  ;;  %v4915_v16 = vld [vmem:[#allocation2 + $0x47] sm:$0xff]  ;;  %v4918_v35 = vld [vmem:[#allocation2 + $0x5f] sm:$0xff] }
 0x2f9   :  { %v17748_v39 = vpop.f32.mrf.mxu0  ;;  %v3362_v15 = vld [vmem:[#allocation2 + $0xa9] sm:$0xff]  ;;  %v3323_v26 = vld [vmem:[#allocation2 + $0x60] sm:$0xff] }
 0x2fa   :  { %v4268_v28 = vld [vmem:[#allocation2 + $0xad] sm:$0xff]  ;;  %3306 = vst.msk [vmem:[#allocation2 + $0xc0] sm:$0xff] %vm3281_vm3, %v3276_v63  ;;  %v3248_v33 = vadd.f32 %v22181_v45, %v3212_v34  ;;  %17797 = vmatmul.mubr.msk.f32.gmra.mxu1 %vm3281_vm3, %v3362_v15  ;;  %v3326_v39 = vld [vmem:[#allocation2 + $0x78] sm:$0xff] }
 0x2fb   :  { %17937 = vmatprep.mubr.msk.f32.mxu0 %vm3281_vm3, %v4268_v28  ;;  %v3173_v20 = vpop.f32.mrf.mxu0  ;;  %v3324_v38 = vld [vmem:[#allocation2 + $0x68] sm:$0xff]  ;;  %v3325_v63 = vld [vmem:[#allocation2 + $0x70] sm:$0xff]  ;;  %v3327_v28 = vld [vmem:[#allocation2 + $0x80] sm:$0xff] }
 0x2fc   :  { %v3277_v7 = vmax.f32 %v3248_v33, 0.0  ;;  %v3213_v47 = vadd.f32 %v3173_v20, %v22164_v54  ;;  %v4919_v34 = vld [vmem:[#allocation2 + $0x67] sm:$0xff]  ;;  %v4920_v15 = vld [vmem:[#allocation2 + $0x6f] sm:$0xff]  ;;  %v4921_v33 = vld [vmem:[#allocation2 + $0x77] sm:$0xff] }
 0x2fd   :  { %v17751_v29 = vpop.f32.mrf.mxu0  ;;  %v3363_v49 = vld [vmem:[#allocation2 + $0xb1] sm:$0xff]  ;;  %v3328_v20 = vld [vmem:[#allocation2 + $0x88] sm:$0xff] }
 0x2fe   :  { %v4269_v41 = vld [vmem:[#allocation2 + $0xb5] sm:$0xff]  ;;  %3307 = vst.msk [vmem:[#allocation2 + $0xc8] sm:$0xff] %vm3281_vm3, %v3277_v7  ;;  %v3249_v25 = vadd.f32 %v22181_v45, %v3213_v47  ;;  %17799 = vmatprep.mubr.msk.f32.mxu1 %vm3281_vm3, %v3363_v49  ;;  %v4922_v7 = vld [vmem:[#allocation2 + $0x7f] sm:$0xff]  ;;  %v4923_v29 = vld [vmem:[#allocation2 + $0x87] sm:$0xff] }
 0x2ff   :  { %17938 = vmatmul.mubr.msk.f32.gmra.mxu0 %vm3281_vm3, %v4269_v41  ;;  %v3178_v52 = vpop.f32.mrf.mxu0  ;;  %v3329_v47 = vld [vmem:[#allocation2 + $0x90] sm:$0xff]  ;;  %v3330_v49 = vld [vmem:[#allocation2 + $0x98] sm:$0xff] }
 0x300   :  { %v3278_v13 = vmax.f32 %v3249_v25, 0.0  ;;  %v3214_v21 = vadd.f32 %v3178_v52, %v22173_v17  ;;  %v4924_v41 = vld [vmem:[#allocation2 + $0x8f] sm:$0xff]  ;;  %v3331_v25 = vld [vmem:[#allocation2 + $0xa0] sm:$0xff]  ;;  %v4925_v52 = vld [vmem:[#allocation2 + $0x97] sm:$0xff] }
 0x301   :  { %v17754_v11 = vpop.f32.mrf.mxu0  ;;  %v3364_v37 = vld [vmem:[#allocation2 + $0xb9] sm:$0xff] }
 0x302   :  { %v4270_v62 = vld [vmem:[#allocation2 + $0xbd] sm:$0xff]  ;;  %3308 = vst.msk [vmem:[#allocation2 + $0xd0] sm:$0xff] %vm3281_vm3, %v3278_v13  ;;  %v3250_v54 = vadd.f32 %v22181_v45, %v3214_v21  ;;  %17800 = vmatmul.mubr.msk.f32.gmra.mxu1 %vm3281_vm3, %v3364_v37  ;;  %v3332_v13 = vld [vmem:[#allocation2 + $0xa8] sm:$0xff]  ;;  %v3333_v11 = vld [vmem:[#allocation2 + $0xb0] sm:$0xff] }
 0x303   :  { %17940 = vmatprep.mubr.msk.f32.mxu0 %vm3281_vm3, %v4270_v62  ;;  %v3183_v61 = vpop.f32.mrf.mxu0  ;;  %v4926_v21 = vld [vmem:[#allocation2 + $0x9f] sm:$0xff]  ;;  %v4927_v37 = vld [vmem:[#allocation2 + $0xa7] sm:$0xff] }
 0x304   :  { %v3279_v19 = vmax.f32 %v3250_v54, 0.0  ;;  %v3215_v30 = vadd.f32 %v3183_v61, %v22176_v1  ;;  %v3312_v1 = vld [vmem:[#allocation2 + $0x8] sm:$0xff]  ;;  %v3334_v62 = vld [vmem:[#allocation2 + $0xb8] sm:$0xff]  ;;  %v3335_v61 = vld [vmem:[#allocation2 + $0xc0] sm:$0xff] }
 0x305   :  { %v3365_v46 = vld [vmem:[#allocation2 + $0xc1] sm:$0xff]  ;;  %v3366_v44 = vld [vmem:[#allocation2 + $0xc9] sm:$0xf]  ;;  %v17757_v31 = vpop.f32.mrf.mxu0  ;;  %v4928_v54 = vld [vmem:[#allocation2 + $0xaf] sm:$0xff] }
 0x306   :  { %v4271_v43 = vld [vmem:[#allocation2 + $0xc5] sm:$0xff]  ;;  %3309 = vst.msk [vmem:[#allocation2 + $0xd8] sm:$0xff] %vm3281_vm3, %v3279_v19  ;;  %v3251_v17 = vadd.f32 %v22181_v45, %v3215_v30  ;;  %17802 = vmatprep.mubr.msk.f32.mxu1 %vm3281_vm3, %v3365_v46  ;;  %v14243_v45 = vld [vmem:[%s27010_s3 + $0x50] sm:$0xff] }
 0x307   :  { %17941 = vmatmul.mubr.msk.f32.gmra.mxu0 %vm3281_vm3, %v4271_v43  ;;  %17803 = vmatmul.mubr.msk.f32.gmra.mxu1 %vm3281_vm3, %v3366_v44  ;;  %v4929_v19 = vld [vmem:[#allocation2 + $0xb7] sm:$0xff]  ;;  %v3336_v30 = vld [vmem:[#allocation2 + $0xc8] sm:$0xf]  ;;  %v4930_v46 = vld [vmem:[#allocation2 + $0xbf] sm:$0xff] }
 0x308   :  { %v3280_v48 = vmax.f32 %v3251_v17, 0.0  ;;  %17813 = vmatprep.mubr.msk.f32.mxu1 %vm3281_vm3, %v3311_v18  ;;  %v3918_v43 = vld [vmem:[#allocation2 + $0x2] sm:$0xff]  ;;  %v3919_v31 = vld [vmem:[#allocation2 + $0xa] sm:$0xff] }
 0x309   :  { %v4272_v12 = vld [vmem:[#allocation2 + $0xcd] sm:$0xff] }
 0x30a   :  { %3310 = vst.msk [vmem:[#allocation2 + $0xe0] sm:$0xff] %vm3281_vm3, %v3280_v48  ;;  %17943 = vmatprep.mubr.msk.f32.mxu0 %vm3281_vm3, %v4272_v12  ;;  %v4931_v44 = vld [vmem:[#allocation2 + $0xc7] sm:$0xff]  ;;  %v4932_v17 = vld [vmem:[#allocation2 + $0xcf] sm:$0xff] }
 0x30b   :  { %17814 = vmatmul.mubr.msk.f32.vlgmr.msra.gmra.mxu1 %vm3281_vm3, %v3312_v1  ;;  %v14303_v18 = vld [vmem:[%s27010_s3 + $0x90] sm:$0xff]  ;;  %v14302_v1 = vld [vmem:[%s27010_s3 + $0x88] sm:$0xff] }
 0x30c   :  { %17816 = vmatprep.mubr.msk.f32.mxu1 %vm3281_vm3, %v3313_v53  ;;  %17853 = vmatpush3.msra.mxu1 %v22229_v59  ;;  %v14241_v59 = vld [vmem:[%s27010_s3 + $0x40] sm:$0xff]  ;;  %v3920_v48 = vld [vmem:[#allocation2 + $0x12] sm:$0xff] }
 0x30d   :  { %v4273_v27 = vld [vmem:[#allocation2 + $0xd5] sm:$0xf]  ;;  %17854 = vmatprep.subr.mxu1 %v14243_v45  ;;  %v5568_v53 = vld [vmem:[#allocation2 + $0x1b] sm:$0xff] }
 0x30e   :  { %17944 = vmatmul.mubr.msk.f32.gmra.mxu0 %vm3281_vm3, %v4273_v27  ;;  %17855 = vmatpush3.msra.mxu1 %v14243_v45  ;;  %v4933_v12 = vld [vmem:[#allocation2 + $0xd7] sm:$0xf]  ;;  %v22447_v27 = vld [vmem:[#allocation2 + $0x22] sm:$0xff] }
 0x30f   :  { %17817 = vmatmul.mubr.msk.f32.gmra.mxu1 %vm3281_vm3, %v3314_v55  ;;  %18001 = vmatprep.mubr.msk.f32.mxu0 %vm3281_vm3, %v4908_v10  ;;  %v22442_v45 = vld [vmem:[#allocation2 + $0x1a] sm:$0xff]  ;;  %v5569_v55 = vld [vmem:[#allocation2 + $0x23] sm:$0xff] }
 0x310   :  { %17819 = vmatprep.mubr.msk.f32.mxu1 %vm3281_vm3, %v3315_v32  ;;  %17856 = vmatprep.subr.mxu1 %v14242_v36  ;;  %v22455_v10 = vld [vmem:[#allocation2 + $0x2a] sm:$0xff] }
 0x311   :  { %17857 = vmatpush3.msra.mxu1 %v14242_v36  ;;  %v14301_v36 = vld [vmem:[%s27010_s3 + $0x80] sm:$0xff]  ;;  %v5570_v32 = vld [vmem:[#allocation2 + $0x2b] sm:$0xff] }
 0x312   :  { %18002 = vmatmul.mubr.msk.f32.vlgmr.msra.gmra.mxu0 %vm3281_vm3, %v4909_v40  ;;  %17858 = vmatprep.subr.mxu1 %v14241_v59  ;;  %v22465_v40 = vld [vmem:[#allocation2 + $0x32] sm:$0xff] }
 0x313   :  { %17820 = vmatmul.mubr.msk.f32.gmra.mxu1 %vm3281_vm3, %v3316_v42  ;;  %18004 = vmatprep.mubr.msk.f32.mxu0 %vm3281_vm3, %v4910_v0  ;;  %v5571_v42 = vld [vmem:[#allocation2 + $0x33] sm:$0xff] }
 0x314   :  { %17822 = vmatprep.mubr.msk.f32.mxu1 %vm3281_vm3, %v3317_v9  ;;  %17859 = vmatpush3.msra.mxu1 %v14241_v59  ;;  %v22460_v59 = vld [vmem:[%s27010_s3 + $0xd8] sm:$0xff]  ;;  %v22476_v9 = vld [vmem:[#allocation2 + $0x42] sm:$0xff] }
 0x315   :  { %17946 = vmatprep.subr.mxu1 %v22374_v23  ;;  %18088 = vmatpush3.msra.mxu0 %v22257_v4  ;;  %v3320_v4 = vld [vmem:[#allocation2 + $0x48] sm:$0xff]  ;;  %v22471_v0 = vld [vmem:[#allocation2 + $0x3a] sm:$0xff] }
 0x316   :  { %18005 = vmatmul.mubr.msk.f32.gmra.mxu0 %vm3281_vm3, %v4911_v6  ;;  %18089 = vmatprep.subr.mxu0 %v14393_v51  ;;  %v22481_v6 = vld [vmem:[#allocation2 + $0x4a] sm:$0xff] }
 0x317   :  { %17823 = vmatmul.mubr.msk.f32.gmra.mxu1 %vm3281_vm3, %v3318_v3  ;;  %18007 = vmatprep.mubr.msk.f32.mxu0 %vm3281_vm3, %v4912_v8  ;;  %v5574_v3 = vld [vmem:[#allocation2 + $0x4b] sm:$0xff] }
 0x318   :  { %17825 = vmatprep.mubr.msk.f32.mxu1 %vm3281_vm3, %v3319_v56  ;;  %18090 = vmatpush3.msra.mxu0 %v14393_v51  ;;  %v5573_v51 = vld [vmem:[#allocation2 + $0x43] sm:$0xff]  ;;  %v22486_v8 = vld [vmem:[#allocation2 + $0x52] sm:$0xff]  ;;  %v22491_v56 = vld [vmem:[#allocation2 + $0x5a] sm:$0xff] }
 0x319   :  { %18091 = vmatprep.subr.mxu0 %v14392_v57 }
 0x31a   :  { %18008 = vmatmul.mubr.msk.f32.gmra.mxu0 %vm3281_vm3, %v4913_v58  ;;  %v5576_v58 = vld [vmem:[#allocation2 + $0x5b] sm:$0xff] }
 0x31b   :  { %17826 = vmatmul.mubr.msk.f32.gmra.mxu1 %vm3281_vm3, %v3320_v4  ;;  %18010 = vmatprep.mubr.msk.f32.mxu0 %vm3281_vm3, %v4914_v22  ;;  %v22496_v4 = vld [vmem:[#allocation2 + $0x62] sm:$0xff] }
 0x31c   :  { %17828 = vmatprep.mubr.msk.f32.mxu1 %vm3281_vm3, %v3321_v60  ;;  %18092 = vmatpush3.msra.mxu0 %v14392_v57  ;;  %v5575_v57 = vld [vmem:[#allocation2 + $0x53] sm:$0xff]  ;;  %v5577_v22 = vld [vmem:[#allocation2 + $0x63] sm:$0xff]  ;;  %v5578_v60 = vld [vmem:[#allocation2 + $0x6b] sm:$0xff] }
 0x31d   :  { %18093 = vmatprep.subr.mxu0 %v14391_v24 }
 0x31e   :  { %18011 = vmatmul.mubr.msk.f32.gmra.mxu0 %vm3281_vm3, %v4915_v16  ;;  %v22506_v16 = vld [vmem:[#allocation2 + $0x72] sm:$0xff] }
 0x31f   :  { %17829 = vmatmul.mubr.msk.f32.gmra.mxu1 %vm3281_vm3, %v3322_v50  ;;  %18013 = vmatprep.mubr.msk.f32.mxu0 %vm3281_vm3, %v4916_v14  ;;  %v5579_v50 = vld [vmem:[#allocation2 + $0x73] sm:$0xff] }
 0x320   :  { %17831 = vmatprep.mubr.msk.f32.mxu1 %vm3281_vm3, %v3323_v26  ;;  %18094 = vmatpush3.msra.mxu0 %v14391_v24  ;;  %v22501_v24 = vld [vmem:[#allocation2 + $0x6a] sm:$0xff]  ;;  %v22511_v14 = vld [vmem:[#allocation2 + $0x7a] sm:$0xff] }
 0x321   :  { %v5580_v26 = vld [vmem:[#allocation2 + $0x7b] sm:$0xff] }
 0x322   :  { %18014 = vmatmul.mubr.msk.f32.gmra.mxu0 %vm3281_vm3, %v4917_v5  ;;  %v22516_v5 = vld [vmem:[#allocation2 + $0x82] sm:$0xff] }
 0x323   :  { %17832 = vmatmul.mubr.msk.f32.gmra.mxu1 %vm3281_vm3, %v3324_v38  ;;  %18016 = vmatprep.mubr.msk.f32.mxu0 %vm3281_vm3, %v4918_v35  ;;  %v5581_v38 = vld [vmem:[#allocation2 + $0x83] sm:$0xff] }
 0x324   :  { %17834 = vmatprep.mubr.msk.f32.mxu1 %vm3281_vm3, %v3325_v63  ;;  %v22521_v35 = vld [vmem:[#allocation2 + $0x8a] sm:$0xff] }
 0x325   :  { %v5582_v63 = vld [vmem:[#allocation2 + $0x8b] sm:$0xff] }
 0x326   :  { %18017 = vmatmul.mubr.msk.f32.gmra.mxu0 %vm3281_vm3, %v4919_v34  ;;  %v22526_v34 = vld [vmem:[#allocation2 + $0x92] sm:$0xff] }
 0x327   :  { %17835 = vmatmul.mubr.msk.f32.gmra.mxu1 %vm3281_vm3, %v3326_v39  ;;  %18019 = vmatprep.mubr.msk.f32.mxu0 %vm3281_vm3, %v4920_v15  ;;  %v5583_v39 = vld [vmem:[#allocation2 + $0x93] sm:$0xff] }
 0x328   :  { %17837 = vmatprep.mubr.msk.f32.mxu1 %vm3281_vm3, %v3327_v28  ;;  %v22531_v15 = vld [vmem:[#allocation2 + $0x9a] sm:$0xff] }
 0x329   :  { %v5584_v28 = vld [vmem:[#allocation2 + $0x9b] sm:$0xff] }
 0x32a   :  { %18020 = vmatmul.mubr.msk.f32.gmra.mxu0 %vm3281_vm3, %v4921_v33  ;;  %v22536_v33 = vld [vmem:[#allocation2 + $0xa2] sm:$0xff] }
 0x32b   :  { %17838 = vmatmul.mubr.msk.f32.gmra.mxu1 %vm3281_vm3, %v3328_v20  ;;  %18022 = vmatprep.mubr.msk.f32.mxu0 %vm3281_vm3, %v4922_v7  ;;  %v5585_v20 = vld [vmem:[#allocation2 + $0xa3] sm:$0xff] }
 0x32c   :  { %17840 = vmatprep.mubr.msk.f32.mxu1 %vm3281_vm3, %v3329_v47  ;;  %v22541_v7 = vld [vmem:[#allocation2 + $0xaa] sm:$0xff] }
 0x32d   :  { %v5586_v47 = vld [vmem:[#allocation2 + $0xab] sm:$0xff] }
 0x32e   :  { %18023 = vmatmul.mubr.msk.f32.gmra.mxu0 %vm3281_vm3, %v4923_v29  ;;  %v22546_v29 = vld [vmem:[#allocation2 + $0xb2] sm:$0xff] }
 0x32f   :  { %17841 = vmatmul.mubr.msk.f32.gmra.mxu1 %vm3281_vm3, %v3330_v49  ;;  %18025 = vmatprep.mubr.msk.f32.mxu0 %vm3281_vm3, %v4924_v41  ;;  %v5587_v49 = vld [vmem:[#allocation2 + $0xb3] sm:$0xff] }
 0x330   :  { %17843 = vmatprep.mubr.msk.f32.mxu1 %vm3281_vm3, %v3331_v25  ;;  %v22551_v41 = vld [vmem:[#allocation2 + $0xba] sm:$0xff] }
 0x331   :  { %v5588_v25 = vld [vmem:[#allocation2 + $0xbb] sm:$0xff] }
 0x332   :  { %18026 = vmatmul.mubr.msk.f32.gmra.mxu0 %vm3281_vm3, %v4925_v52  ;;  %v22556_v52 = vld [vmem:[#allocation2 + $0xc2] sm:$0xff] }
 0x333   :  { %17844 = vmatmul.mubr.msk.f32.gmra.mxu1 %vm3281_vm3, %v3332_v13  ;;  %18028 = vmatprep.mubr.msk.f32.mxu0 %vm3281_vm3, %v4926_v21  ;;  %v5589_v13 = vld [vmem:[#allocation2 + $0xc3] sm:$0xff] }
 0x334   :  { %17846 = vmatprep.mubr.msk.f32.mxu1 %vm3281_vm3, %v3333_v11  ;;  %v3943_v21 = vld [vmem:[#allocation2 + $0xca] sm:$0xf] }
 0x335   :  { %v5590_v11 = vld [vmem:[#allocation2 + $0xcb] sm:$0xff] }
 0x336   :  { %18029 = vmatmul.mubr.msk.f32.gmra.mxu0 %vm3281_vm3, %v4927_v37  ;;  %v4578_v37 = vld [vmem:[#allocation2 + $0xe] sm:$0xff] }
 0x337   :  { %17847 = vmatmul.mubr.msk.f32.gmra.mxu1 %vm3281_vm3, %v3334_v62  ;;  %18031 = vmatprep.mubr.msk.f32.mxu0 %vm3281_vm3, %v4928_v54  ;;  %v5591_v62 = vld [vmem:[#allocation2 + $0xd3] sm:$0xff] }
 0x338   :  { %17849 = vmatprep.mubr.msk.f32.mxu1 %vm3281_vm3, %v3335_v61  ;;  %v4579_v54 = vld [vmem:[#allocation2 + $0x16] sm:$0xff] }
 0x339   :  { %v5592_v61 = vld [vmem:[#allocation2 + $0xdb] sm:$0xff] }
 0x33a   :  { %18032 = vmatmul.mubr.msk.f32.gmra.mxu0 %vm3281_vm3, %v4929_v19  ;;  %v14363_v19 = vld [vmem:[%s27010_s3 + $0xd0] sm:$0xff] }
 0x33b   :  { %17850 = vmatmul.mubr.msk.f32.gmra.mxu1 %vm3281_vm3, %v3336_v30  ;;  %18034 = vmatprep.mubr.msk.f32.mxu0 %vm3281_vm3, %v4930_v46  ;;  %v4580_v30 = vld [vmem:[#allocation2 + $0x1e] sm:$0xff]  ;;  %v14362_v46 = vld [vmem:[%s27010_s3 + $0xc8] sm:$0xff] }
 0x33c   :  { %17860 = vmatprep.mubr.msk.f32.mxu1 %vm3281_vm3, %v3918_v43  ;;  %v5593_v43 = vld [vmem:[#allocation2 + $0xe3] sm:$0xf] }
 0x33e   :  { %18035 = vmatmul.mubr.msk.f32.gmra.mxu0 %vm3281_vm3, %v4931_v44  ;;  %v4581_v44 = vld [vmem:[#allocation2 + $0x26] sm:$0xff] }
 0x33f   :  { %17861 = vmatmul.mubr.msk.f32.vlgmr.msra.gmra.mxu1 %vm3281_vm3, %v3919_v31  ;;  %18037 = vmatprep.mubr.msk.f32.mxu0 %vm3281_vm3, %v4932_v17  ;;  %v14361_v31 = vld [vmem:[%s27010_s3 + $0xc0] sm:$0xff]  ;;  %v4582_v17 = vld [vmem:[#allocation2 + $0x2e] sm:$0xff] }
 0x340   :  { %17863 = vmatprep.mubr.msk.f32.mxu1 %vm3281_vm3, %v3920_v48  ;;  %17947 = vmatpush3.msra.mxu1 %v22374_v23  ;;  %v5572_v23 = vld [vmem:[#allocation2 + $0x3b] sm:$0xff] }
 0x341   :  { %17948 = vmatprep.subr.mxu1 %v14303_v18  ;;  %v4583_v48 = vld [vmem:[#allocation2 + $0x36] sm:$0xff] }
 0x342   :  { %18038 = vmatmul.mubr.msk.f32.gmra.mxu0 %vm3281_vm3, %v4933_v12  ;;  %17949 = vmatpush3.msra.mxu1 %v14303_v18  ;;  %v22584_v18 = vld [vmem:[%s27010_s3 + $0x118] sm:$0xff] }
 0x343   :  { %17864 = vmatmul.mubr.msk.f32.gmra.mxu1 %vm3281_vm3, %v22442_v45  ;;  %18095 = vmatprep.mubr.msk.f32.mxu0 %vm3281_vm3, %v5568_v53  ;;  %v4584_v12 = vld [vmem:[#allocation2 + $0x3e] sm:$0xff]  ;;  %v4586_v53 = vld [vmem:[#allocation2 + $0x4e] sm:$0xff] }
 0x344   :  { %17866 = vmatprep.mubr.msk.f32.mxu1 %vm3281_vm3, %v22447_v27  ;;  %17950 = vmatprep.subr.mxu1 %v14302_v1 }
 0x345   :  { %17951 = vmatpush3.msra.mxu1 %v14302_v1  ;;  %v4585_v1 = vld [vmem:[#allocation2 + $0x46] sm:$0xff] }
 0x346   :  { %18096 = vmatmul.mubr.msk.f32.vlgmr.msra.gmra.mxu0 %vm3281_vm3, %v5569_v55  ;;  %17952 = vmatprep.subr.mxu1 %v14301_v36  ;;  %v4587_v55 = vld [vmem:[#allocation2 + $0x56] sm:$0xff] }
 0x347   :  { %17867 = vmatmul.mubr.msk.f32.gmra.mxu1 %vm3281_vm3, %v22455_v10  ;;  %18098 = vmatprep.mubr.msk.f32.mxu0 %vm3281_vm3, %v5570_v32  ;;  %v4588_v32 = vld [vmem:[#allocation2 + $0x5e] sm:$0xff] }
 0x348   :  { %17869 = vmatprep.mubr.msk.f32.mxu1 %vm3281_vm3, %v22465_v40  ;;  %17953 = vmatpush3.msra.mxu1 %v14301_v36 }
 0x349   :  { %18040 = vmatprep.subr.mxu1 %v22460_v59 }
 0x34a   :  { %18099 = vmatmul.mubr.msk.f32.gmra.mxu0 %vm3281_vm3, %v5571_v42 }
 0x34b   :  { %17870 = vmatmul.mubr.msk.f32.gmra.mxu1 %vm3281_vm3, %v22471_v0  ;;  %18101 = vmatprep.mubr.msk.f32.mxu0 %vm3281_vm3, %v5572_v23  ;;  %v4589_v23 = vld [vmem:[#allocation2 + $0x66] sm:$0xff] }
 0x34c   :  { %17872 = vmatprep.mubr.msk.f32.mxu1 %vm3281_vm3, %v22476_v9 }
 0x34e   :  { %18102 = vmatmul.mubr.msk.f32.gmra.mxu0 %vm3281_vm3, %v5573_v51  ;;  %v4590_v51 = vld [vmem:[#allocation2 + $0x6e] sm:$0xff] }
 0x34f   :  { %17873 = vmatmul.mubr.msk.f32.gmra.mxu1 %vm3281_vm3, %v22481_v6  ;;  %18104 = vmatprep.mubr.msk.f32.mxu0 %vm3281_vm3, %v5574_v3 }
 0x350   :  { %17875 = vmatprep.mubr.msk.f32.mxu1 %vm3281_vm3, %v22486_v8 }
 0x352   :  { %18105 = vmatmul.mubr.msk.f32.gmra.mxu0 %vm3281_vm3, %v5575_v57  ;;  %v4591_v57 = vld [vmem:[#allocation2 + $0x76] sm:$0xff] }
 0x353   :  { %17876 = vmatmul.mubr.msk.f32.gmra.mxu1 %vm3281_vm3, %v22491_v56  ;;  %18107 = vmatprep.mubr.msk.f32.mxu0 %vm3281_vm3, %v5576_v58  ;;  %v4592_v58 = vld [vmem:[#allocation2 + $0x7e] sm:$0xff] }
 0x354   :  { %17878 = vmatprep.mubr.msk.f32.mxu1 %vm3281_vm3, %v22496_v4 }
 0x356   :  { %18108 = vmatmul.mubr.msk.f32.gmra.mxu0 %vm3281_vm3, %v5577_v22 }
 0x357   :  { %17879 = vmatmul.mubr.msk.f32.gmra.mxu1 %vm3281_vm3, %v22501_v24  ;;  %18110 = vmatprep.mubr.msk.f32.mxu0 %vm3281_vm3, %v5578_v60  ;;  %v4593_v60 = vld [vmem:[#allocation2 + $0x86] sm:$0xff] }
 0x358   :  { %17881 = vmatprep.mubr.msk.f32.mxu1 %vm3281_vm3, %v22506_v16 }
 0x35a   :  { %18111 = vmatmul.mubr.msk.f32.gmra.mxu0 %vm3281_vm3, %v5579_v50  ;;  %v4594_v50 = vld [vmem:[#allocation2 + $0x8e] sm:$0xff] }
 0x35b   :  { %17882 = vmatmul.mubr.msk.f32.gmra.mxu1 %vm3281_vm3, %v22511_v14  ;;  %18113 = vmatprep.mubr.msk.f32.mxu0 %vm3281_vm3, %v5580_v26 }
 0x35c   :  { %17884 = vmatprep.mubr.msk.f32.mxu1 %vm3281_vm3, %v22516_v5 }
 0x35e   :  { %18114 = vmatmul.mubr.msk.f32.gmra.mxu0 %vm3281_vm3, %v5581_v38 }
 0x35f   :  { %17885 = vmatmul.mubr.msk.f32.gmra.mxu1 %vm3281_vm3, %v22521_v35  ;;  %18116 = vmatprep.mubr.msk.f32.mxu0 %vm3281_vm3, %v5582_v63  ;;  %v4595_v63 = vld [vmem:[#allocation2 + $0x96] sm:$0xff] }
 0x360   :  { %17887 = vmatprep.mubr.msk.f32.mxu1 %vm3281_vm3, %v22526_v34 }
 0x362   :  { %18117 = vmatmul.mubr.msk.f32.gmra.mxu0 %vm3281_vm3, %v5583_v39  ;;  %v4596_v39 = vld [vmem:[#allocation2 + $0x9e] sm:$0xff] }
 0x363   :  { %17888 = vmatmul.mubr.msk.f32.gmra.mxu1 %vm3281_vm3, %v22531_v15  ;;  %18119 = vmatprep.mubr.msk.f32.mxu0 %vm3281_vm3, %v5584_v28 }
 0x364   :  { %17890 = vmatprep.mubr.msk.f32.mxu1 %vm3281_vm3, %v22536_v33 }
 0x366   :  { %18120 = vmatmul.mubr.msk.f32.gmra.mxu0 %vm3281_vm3, %v5585_v20  ;;  %v4597_v20 = vld [vmem:[#allocation2 + $0xa6] sm:$0xff] }
 0x367   :  { %17891 = vmatmul.mubr.msk.f32.gmra.mxu1 %vm3281_vm3, %v22541_v7  ;;  %18122 = vmatprep.mubr.msk.f32.mxu0 %vm3281_vm3, %v5586_v47  ;;  %v4598_v47 = vld [vmem:[#allocation2 + $0xae] sm:$0xff] }
 0x368   :  { %17893 = vmatprep.mubr.msk.f32.mxu1 %vm3281_vm3, %v22546_v29 }
 0x36a   :  { %18123 = vmatmul.mubr.msk.f32.gmra.mxu0 %vm3281_vm3, %v5587_v49  ;;  %v22590_v36 = vpop.f32.mrf.mxu1 }
 0x36b   :  { %17894 = vmatmul.mubr.msk.f32.gmra.mxu1 %vm3281_vm3, %v22551_v41  ;;  %18125 = vmatprep.mubr.msk.f32.mxu0 %vm3281_vm3, %v5588_v25  ;;  %v4599_v25 = vld [vmem:[#allocation2 + $0xb6] sm:$0xff] }
 0x36c   :  { %17896 = vmatprep.mubr.msk.f32.mxu1 %vm3281_vm3, %v22556_v52 }
 0x36e   :  { %18126 = vmatmul.mubr.msk.f32.gmra.mxu0 %vm3281_vm3, %v5589_v13  ;;  %v4600_v13 = vld [vmem:[#allocation2 + $0xbe] sm:$0xff] }
 0x36f   :  { %17897 = vmatmul.mubr.msk.f32.gmra.mxu1 %vm3281_vm3, %v3943_v21  ;;  %18128 = vmatprep.mubr.msk.f32.mxu0 %vm3281_vm3, %v5590_v11 }
 0x370   :  { %17954 = vmatprep.mubr.msk.f32.mxu1 %vm3281_vm3, %v4578_v37  ;;  %v4601_v37 = vld [vmem:[#allocation2 + $0xc6] sm:$0xff] }
 0x372   :  { %18129 = vmatmul.mubr.msk.f32.gmra.mxu0 %vm3281_vm3, %v5591_v62  ;;  %v4602_v62 = vld [vmem:[#allocation2 + $0xce] sm:$0xff] }
 0x373   :  { %17955 = vmatmul.mubr.msk.f32.vlgmr.msra.gmra.mxu1 %vm3281_vm3, %v4579_v54  ;;  %18131 = vmatprep.mubr.msk.f32.mxu0 %vm3281_vm3, %v5592_v61  ;;  %v4603_v61 = vld [vmem:[#allocation2 + $0xd6] sm:$0xf] }
 0x374   :  { %17957 = vmatprep.mubr.msk.f32.mxu1 %vm3281_vm3, %v4580_v30  ;;  %18041 = vmatpush3.msra.mxu1 %v22460_v59  ;;  %v22594_v59 = vpop.f32.mrf.mxu1  ;;  %v14423_v30 = vld [vmem:[%s27010_s3 + $0x110] sm:$0xff] }
 0x375   :  { %18042 = vmatprep.subr.mxu1 %v14363_v19 }
 0x376   :  { %18132 = vmatmul.mubr.msk.f32.gmra.mxu0 %vm3281_vm3, %v5593_v43  ;;  %18043 = vmatpush3.msra.mxu1 %v14363_v19  ;;  %v22597_v42 = vpop.f32.mrf.mxu1  ;;  %v14422_v43 = vld [vmem:[%s27010_s3 + $0x108] sm:$0xff] }
 0x377   :  { %17958 = vmatmul.mubr.msk.f32.gmra.mxu1 %vm3281_vm3, %v4581_v44  ;;  %18044 = vmatprep.subr.mxu1 %v14362_v46  ;;  %v14421_v44 = vld [vmem:[%s27010_s3 + $0x100] sm:$0xff] }
 0x378   :  { %17960 = vmatprep.mubr.msk.f32.mxu1 %vm3281_vm3, %v4582_v17  ;;  %18045 = vmatpush3.msra.mxu1 %v14362_v46  ;;  %v22601_v3 = vpop.f32.mrf.mxu1 }
 0x379   :  { %18046 = vmatprep.subr.mxu1 %v14361_v31 }
 0x37a   :  { %18047 = vmatpush3.msra.mxu1 %v14361_v31  ;;  %v22604_v22 = vpop.f32.mrf.mxu1 }
 0x37b   :  { %17961 = vmatmul.mubr.msk.f32.gmra.mxu1 %vm3281_vm3, %v4583_v48  ;;  %18134 = vmatprep.subr.mxu1 %v22584_v18 }
 0x37c   :  { %17963 = vmatprep.mubr.msk.f32.mxu1 %vm3281_vm3, %v4584_v12  ;;  %v22608_v26 = vpop.f32.mrf.mxu1 }
 0x37f   :  { %17964 = vmatmul.mubr.msk.f32.gmra.mxu1 %vm3281_vm3, %v4585_v1 }
 0x380   :  { %17966 = vmatprep.mubr.msk.f32.mxu1 %vm3281_vm3, %v4586_v53 }
 0x382   :  { %v22611_v38 = vpop.f32.mrf.mxu1 }
 0x383   :  { %17967 = vmatmul.mubr.msk.f32.gmra.mxu1 %vm3281_vm3, %v4587_v55 }
 0x384   :  { %17969 = vmatprep.mubr.msk.f32.mxu1 %vm3281_vm3, %v4588_v32  ;;  %v22615_v28 = vpop.f32.mrf.mxu1 }
 0x387   :  { %17970 = vmatmul.mubr.msk.f32.gmra.mxu1 %vm3281_vm3, %v4589_v23 }
 0x388   :  { %17972 = vmatprep.mubr.msk.f32.mxu1 %vm3281_vm3, %v4590_v51 }
 0x38a   :  { %v22618_v49 = vpop.f32.mrf.mxu1 }
 0x38b   :  { %17973 = vmatmul.mubr.msk.f32.gmra.mxu1 %vm3281_vm3, %v4591_v57  ;;  %v5262_v57 = vld [vmem:[#allocation2 + $0xda] sm:$0xff] }
 0x38c   :  { %17975 = vmatprep.mubr.msk.f32.mxu1 %vm3281_vm3, %v4592_v58  ;;  %v22622_v21 = vpop.f32.mrf.mxu1 }
 0x38f   :  { %17976 = vmatmul.mubr.msk.f32.gmra.mxu1 %vm3281_vm3, %v4593_v60 }
 0x390   :  { %17978 = vmatprep.mubr.msk.f32.mxu1 %vm3281_vm3, %v4594_v50 }
 0x392   :  { %v22625_v11 = vpop.f32.mrf.mxu1 }
 0x393   :  { %17979 = vmatmul.mubr.msk.f32.gmra.mxu1 %vm3281_vm3, %v4595_v63  ;;  %v5898_v63 = vld [vmem:[#allocation2 + $0x1c] sm:$0xff] }
 0x394   :  { %17981 = vmatprep.mubr.msk.f32.mxu1 %vm3281_vm3, %v4596_v39  ;;  %v22629_v54 = vpop.f32.mrf.mxu1 }
 0x397   :  { %17982 = vmatmul.mubr.msk.f32.gmra.mxu1 %vm3281_vm3, %v4597_v20 }
 0x398   :  { %17984 = vmatprep.mubr.msk.f32.mxu1 %vm3281_vm3, %v4598_v47  ;;  %v5899_v47 = vld [vmem:[#allocation2 + $0x24] sm:$0xff] }
 0x39a   :  { %v22632_v19 = vpop.f32.mrf.mxu1 }
 0x39b   :  { %17985 = vmatmul.mubr.msk.f32.gmra.mxu1 %vm3281_vm3, %v4599_v25 }
 0x39c   :  { %17987 = vmatprep.mubr.msk.f32.mxu1 %vm3281_vm3, %v4600_v13  ;;  %v22641_v46 = vpop.f32.mrf.mxu1  ;;  %v5900_v13 = vld [vmem:[#allocation2 + $0x2c] sm:$0xff] }
 0x39f   :  { %17988 = vmatmul.mubr.msk.f32.gmra.mxu1 %vm3281_vm3, %v4601_v37 }
 0x3a0   :  { %17990 = vmatprep.mubr.msk.f32.mxu1 %vm3281_vm3, %v4602_v62 }
 0x3a3   :  { %17991 = vmatmul.mubr.msk.f32.gmra.mxu1 %vm3281_vm3, %v4603_v61  ;;  %v5901_v61 = vld [vmem:[#allocation2 + $0x34] sm:$0xff] }
 0x3a4   :  { %18048 = vmatprep.mubr.msk.f32.mxu1 %vm3281_vm3, %v22442_v45  ;;  %v22649_v45 = vpop.f32.mrf.mxu1 }
 0x3a7   :  { %18049 = vmatmul.mubr.msk.f32.vlgmr.msra.gmra.mxu1 %vm3281_vm3, %v22447_v27  ;;  %v22658_v27 = vpop.f32.mrf.mxu1 }
 0x3a8   :  { %18051 = vmatprep.mubr.msk.f32.mxu1 %vm3281_vm3, %v22455_v10  ;;  %18135 = vmatpush3.msra.mxu1 %v22584_v18  ;;  %v22660_v10 = vpop.f32.mrf.mxu0 }
 0x3a9   :  { %18136 = vmatprep.subr.mxu1 %v14423_v30 }
 0x3aa   :  { %18137 = vmatpush3.msra.mxu1 %v14423_v30  ;;  %v22664_v31 = vpop.f32.mrf.mxu1 }
 0x3ab   :  { %18052 = vmatmul.mubr.msk.f32.gmra.mxu1 %vm3281_vm3, %v22465_v40  ;;  %18138 = vmatprep.subr.mxu1 %v14422_v43  ;;  %v22668_v40 = vpop.f32.mrf.mxu0 }
 0x3ac   :  { %18054 = vmatprep.mubr.msk.f32.mxu1 %vm3281_vm3, %v22471_v0  ;;  %18139 = vmatpush3.msra.mxu1 %v14422_v43  ;;  %v22672_v0 = vpop.f32.mrf.mxu1 }
 0x3ad   :  { %18140 = vmatprep.subr.mxu1 %v14421_v44  ;;  %v22676_v17 = vpop.f32.mrf.mxu0 }
 0x3ae   :  { %18141 = vmatpush3.msra.mxu1 %v14421_v44  ;;  %v5902_v44 = vld [vmem:[#allocation2 + $0x3c] sm:$0xff] }
 0x3af   :  { %18055 = vmatmul.mubr.msk.f32.gmra.mxu1 %vm3281_vm3, %v22476_v9  ;;  %v22684_v9 = vpop.f32.mrf.mxu0 }
 0x3b0   :  { %18057 = vmatprep.mubr.msk.f32.mxu1 %vm3281_vm3, %v22481_v6 }
 0x3b2   :  { %v22678_v18 = vpop.f32.mrf.mxu1 }
 0x3b3   :  { %18058 = vmatmul.mubr.msk.f32.gmra.mxu1 %vm3281_vm3, %v22486_v8  ;;  %v22688_v8 = vpop.f32.mrf.mxu0 }
 0x3b4   :  { %18060 = vmatprep.mubr.msk.f32.mxu1 %vm3281_vm3, %v22491_v56  ;;  %v22686_v6 = vpop.f32.mrf.mxu1 }
 0x3b5   :  { %27021 = vst [vmem:[#allocation8_spill] sm:$0xff] %v22686_v6  ;;  %v22696_v48 = vpop.f32.mrf.mxu0  ;;  %v14456_v6 = vld [vmem:[%s27012_s5 + $0x60] sm:$0xff] }
 0x3b7   :  { %18061 = vmatmul.mubr.msk.f32.gmra.mxu1 %vm3281_vm3, %v22496_v4 }
 0x3b8   :  { %18063 = vmatprep.mubr.msk.f32.mxu1 %vm3281_vm3, %v22501_v24  ;;  %v22704_v24 = vpop.f32.mrf.mxu0 }
 0x3ba   :  { %v22692_v56 = vpop.f32.mrf.mxu1 }
 0x3bb   :  { %18064 = vmatmul.mubr.msk.f32.gmra.mxu1 %vm3281_vm3, %v22506_v16 }
 0x3bc   :  { %18066 = vmatprep.mubr.msk.f32.mxu1 %vm3281_vm3, %v22511_v14  ;;  %v22700_v4 = vpop.f32.mrf.mxu1  ;;  %v22714_v14 = vpop.f32.mrf.mxu0 }
 0x3bd   :  { %27022 = vst [vmem:[#allocation9_spill] sm:$0xff] %v22700_v4  ;;  %27024 = vst [vmem:[#allocation11_spill] sm:$0xff] %v22714_v14 }
 0x3bf   :  { %18067 = vmatmul.mubr.msk.f32.gmra.mxu1 %vm3281_vm3, %v22516_v5  ;;  %v22716_v5 = vpop.f32.mrf.mxu0 }
 0x3c0   :  { %18069 = vmatprep.mubr.msk.f32.mxu1 %vm3281_vm3, %v22521_v35 }
 0x3c2   :  { %v22706_v12 = vpop.f32.mrf.mxu1 }
 0x3c3   :  { %18070 = vmatmul.mubr.msk.f32.gmra.mxu1 %vm3281_vm3, %v22526_v34  ;;  %v22726_v34 = vpop.f32.mrf.mxu0 }
 0x3c4   :  { %v22710_v16 = vpop.f32.mrf.mxu1  ;;  %18072 = vmatprep.mubr.msk.f32.mxu1 %vm3281_vm3, %v22531_v15  ;;  %27026 = vst [vmem:[#allocation13_spill] sm:$0xff] %v22726_v34 }
 0x3c5   :  { %27023 = vst [vmem:[#allocation10_spill] sm:$0xff] %v22710_v16  ;;  %v22734_v15 = vpop.f32.mrf.mxu0 }
 0x3c7   :  { %v22718_v1 = vpop.f32.mrf.mxu1  ;;  %18073 = vmatmul.mubr.msk.f32.gmra.mxu1 %vm3281_vm3, %v22536_v33  ;;  %v22743_v32 = vpop.f32.mrf.mxu0 }
 0x3c8   :  { %18075 = vmatprep.mubr.msk.f32.mxu1 %vm3281_vm3, %v22541_v7  ;;  %v5260_v7 = vld [vmem:[#allocation2 + $0xca] sm:$0xff]  ;;  %27027 = vst [vmem:[#allocation14_spill] sm:$0xff] %v22743_v32 }
 0x3c9   :  { %v22724_v35 = vpop.f32.mrf.mxu1  ;;  %v22747_v51 = vpop.f32.mrf.mxu0  ;;  %v5908_v32 = vld [vmem:[#allocation2 + $0x6c] sm:$0xff] }
 0x3ca   :  { %27025 = vst [vmem:[#allocation12_spill] sm:$0xff] %v22724_v35 }
 0x3cb   :  { %v22728_v53 = vpop.f32.mrf.mxu1  ;;  %18076 = vmatmul.mubr.msk.f32.gmra.mxu1 %vm3281_vm3, %v22546_v29  ;;  %v5261_v29 = vld [vmem:[#allocation2 + $0xd2] sm:$0xff]  ;;  %v22755_v60 = vpop.f32.mrf.mxu0 }
 0x3cc   :  { %18078 = vmatprep.mubr.msk.f32.mxu1 %vm3281_vm3, %v22551_v41  ;;  %27028 = vst [vmem:[#allocation15_spill] sm:$0xff] %v22755_v60  ;;  %v5907_v60 = vld [vmem:[#allocation2 + $0x64] sm:$0xff] }
 0x3cd   :  { %v22736_v55 = vpop.f32.mrf.mxu1  ;;  %v22761_v39 = vpop.f32.mrf.mxu0 }
 0x3cf   :  { %v22738_v33 = vpop.f32.mrf.mxu1  ;;  %18079 = vmatmul.mubr.msk.f32.gmra.mxu1 %vm3281_vm3, %v22556_v52  ;;  %v5263_v52 = vld [vmem:[#allocation2 + $0xe2] sm:$0xf]  ;;  %v22769_v37 = vpop.f32.mrf.mxu0 }
 0x3d0   :  { %18081 = vmatprep.mubr.msk.f32.mxu1 %vm3281_vm3, %v5260_v7  ;;  %27029 = vst [vmem:[#allocation16_spill] sm:$0xff] %v22769_v37 }
 0x3d1   :  { %v22745_v23 = vpop.f32.mrf.mxu1  ;;  %v22773_v30 = vpop.f32.mrf.mxu0 }
 0x3d3   :  { %v22749_v41 = vpop.f32.mrf.mxu1  ;;  %18082 = vmatmul.mubr.msk.f32.gmra.mxu1 %vm3281_vm3, %v5261_v29  ;;  %v5903_v29 = vld [vmem:[#allocation2 + $0x44] sm:$0xff] }
 0x3d4   :  { %18084 = vmatprep.mubr.msk.f32.mxu1 %vm3281_vm3, %v5262_v57  ;;  %v22781_v57 = vpop.f32.mrf.mxu0 }
 0x3d5   :  { %v22753_v58 = vpop.f32.mrf.mxu1  ;;  %27030 = vst [vmem:[#allocation17_spill] sm:$0xff] %v22781_v57 }
 0x3d7   :  { %v22757_v50 = vpop.f32.mrf.mxu1  ;;  %18085 = vmatmul.mubr.msk.f32.gmra.mxu1 %vm3281_vm3, %v5263_v52 }
 0x3d8   :  { %18142 = vmatprep.mubr.msk.f32.mxu1 %vm3281_vm3, %v5898_v63  ;;  %v5904_v63 = vld [vmem:[#allocation2 + $0x4c] sm:$0xff] }
 0x3d9   :  { %v22763_v20 = vpop.f32.mrf.mxu1 }
 0x3db   :  { %v22765_v25 = vpop.f32.mrf.mxu1  ;;  %18143 = vmatmul.mubr.msk.f32.vlgmr.msra.gmra.mxu1 %vm3281_vm3, %v5899_v47  ;;  %v22787_v47 = vpop.f32.mrf.mxu0 }
 0x3dc   :  { %18145 = vmatprep.mubr.msk.f32.mxu1 %vm3281_vm3, %v5900_v13 }
 0x3dd   :  { %v22771_v62 = vpop.f32.mrf.mxu1  ;;  %v22795_v57 = vpop.f32.mrf.mxu0 }
 0x3de   :  { %27032 = vst [vmem:[#allocation19_spill] sm:$0xff] %v22795_v57  ;;  %v5909_v57 = vld [vmem:[#allocation2 + $0x74] sm:$0xff] }
 0x3df   :  { %v22775_v43 = vpop.f32.mrf.mxu1  ;;  %18146 = vmatmul.mubr.msk.f32.gmra.mxu1 %vm3281_vm3, %v5901_v61  ;;  %v5905_v61 = vld [vmem:[#allocation2 + $0x54] sm:$0xff] }
 0x3e0   :  { %18148 = vmatprep.mubr.msk.f32.mxu1 %vm3281_vm3, %v5902_v44  ;;  %v5906_v44 = vld [vmem:[#allocation2 + $0x5c] sm:$0xff] }
 0x3e1   :  { %v22779_v7 = vpop.f32.mrf.mxu1 }
 0x3e3   :  { %v22783_v52 = vpop.f32.mrf.mxu1  ;;  %18149 = vmatmul.mubr.msk.f32.gmra.mxu1 %vm3281_vm3, %v5903_v29 }
 0x3e4   :  { %18151 = vmatprep.mubr.msk.f32.mxu1 %vm3281_vm3, %v5904_v63  ;;  %v22800_v63 = vpop.f32.mrf.mxu0 }
 0x3e5   :  { %v22789_v13 = vpop.f32.mrf.mxu1 }
 0x3e6   :  { %27031 = vst [vmem:[#allocation18_spill] sm:$0xff] %v22789_v13  ;;  %v22810_v16 = vpop.f32.mrf.mxu0 }
 0x3e7   :  { %v22791_v2 = vpop.f32.mrf.mxu1  ;;  %18152 = vmatmul.mubr.msk.f32.gmra.mxu1 %vm3281_vm3, %v5905_v61  ;;  %27035 = vst [vmem:[#allocation22_spill] sm:$0xff] %v22810_v16 }
 0x3e8   :  { %18154 = vmatprep.mubr.msk.f32.mxu1 %vm3281_vm3, %v5906_v44 }
 0x3e9   :  { %v3859_v37 = vpop.f32.mrf.mxu1 }
 0x3ea   :  { %v22798_v29 = vadd.f32 %v3859_v37, %v22658_v27  ;;  %v5910_v37 = vld [vmem:[#allocation2 + $0x7c] sm:$0xff] }
 0x3eb   :  { %v17839_v35 = vpop.f32.mrf.mxu1  ;;  %18155 = vmatmul.mubr.msk.f32.gmra.mxu1 %vm3281_vm3, %v5907_v60 }
 0x3ec   :  { %27033 = vst [vmem:[#allocation20_spill] sm:$0xff] %v22798_v29  ;;  %v22804_v34 = vadd.f32 %v17839_v35, %v22664_v31  ;;  %18157 = vmatprep.mubr.msk.f32.mxu1 %vm3281_vm3, %v5908_v32  ;;  %v22817_v31 = vpop.f32.mrf.mxu0  ;;  %v5911_v32 = vld [vmem:[#allocation2 + $0x84] sm:$0xff] }
 0x3ed   :  { %v3869_v61 = vpop.f32.mrf.mxu1 }
 0x3ee   :  { %v22808_v44 = vadd.f32 %v3869_v61, %v22672_v0  ;;  %v5912_v0 = vld [vmem:[#allocation2 + $0x8c] sm:$0xff] }
 0x3ef   :  { %v17842_v27 = vpop.f32.mrf.mxu1  ;;  %18158 = vmatmul.mubr.msk.f32.gmra.mxu1 %vm3281_vm3, %v5909_v57  ;;  %v22826_v57 = vpop.f32.mrf.mxu0 }
 0x3f0   :  { %27034 = vst [vmem:[#allocation21_spill] sm:$0xff] %v22808_v44  ;;  %v22814_v29 = vadd.f32 %v17842_v27, %v22678_v18  ;;  %18160 = vmatprep.mubr.msk.f32.mxu1 %vm3281_vm3, %v5910_v37  ;;  %27037 = vst [vmem:[#allocation24_spill] sm:$0xff] %v22826_v57  ;;  %v5913_v27 = vld [vmem:[#allocation2 + $0x94] sm:$0xff]  ;;  %v5914_v44 = vld [vmem:[#allocation2 + $0x9c] sm:$0xff] }
 0x3f1   :  { %v22819_v35 = vpop.f32.mrf.mxu1  ;;  %v22830_v37 = vpop.f32.mrf.mxu0  ;;  %v5916_v57 = vld [vmem:[#allocation2 + $0xac] sm:$0xff] }
 0x3f2   :  { %27036 = vst [vmem:[#allocation23_spill] sm:$0xff] %v22819_v35  ;;  %v5923_v35 = vld [vmem:[#allocation2 + $0xe4] sm:$0xf] }
 0x3f3   :  { %v17845_v60 = vpop.f32.mrf.mxu1  ;;  %18161 = vmatmul.mubr.msk.f32.gmra.mxu1 %vm3281_vm3, %v5911_v32  ;;  %v5915_v32 = vld [vmem:[#allocation2 + $0xa4] sm:$0xff] }
 0x3f4   :  { %v22823_v61 = vadd.f32 %v17845_v60, %v22692_v56  ;;  %18163 = vmatprep.mubr.msk.f32.mxu1 %vm3281_vm3, %v5912_v0  ;;  %v22839_v60 = vpop.f32.mrf.mxu0 }
 0x3f5   :  { %v22828_v18 = vpop.f32.mrf.mxu1  ;;  %27040 = vst [vmem:[#allocation27_spill] sm:$0xff] %v22839_v60 }
 0x3f6   :  { %27038 = vst [vmem:[#allocation25_spill] sm:$0xff] %v22828_v18  ;;  %v22853_v60 = vpop.f32.mrf.mxu0 }
 0x3f7   :  { %v17848_v16 = vpop.f32.mrf.mxu1  ;;  %18164 = vmatmul.mubr.msk.f32.gmra.mxu1 %vm3281_vm3, %v5913_v27  ;;  %v5917_v27 = vld [vmem:[#allocation2 + $0xb4] sm:$0xff] }
 0x3f8   :  { %v22834_v4 = vadd.f32 %v17848_v16, %v22706_v12  ;;  %18166 = vmatprep.mubr.msk.f32.mxu1 %vm3281_vm3, %v5914_v44  ;;  %v14459_v12 = vld [vmem:[%s27012_s5 + $0x78] sm:$0xff]  ;;  %v3795_v44 = vadd.f32 %v22728_v53, %v22590_v36  ;;  %v22863_v14 = vpop.f32.mrf.mxu0  ;;  %v5920_v53 = vld [vmem:[#allocation2 + $0xcc] sm:$0xff] }
 0x3f9   :  { %v22837_v56 = vpop.f32.mrf.mxu1  ;;  %18181 = vmatprep.subr.mxu0 %v14459_v12 }
 0x3fa   :  { %27039 = vst [vmem:[#allocation26_spill] sm:$0xff] %v22837_v56  ;;  %18182 = vmatpush3.msra.mxu0 %v14459_v12  ;;  %v5919_v56 = vld [vmem:[#allocation2 + $0xc4] sm:$0xff] }
 0x3fb   :  { %v17851_v0 = vpop.f32.mrf.mxu1  ;;  %18167 = vmatmul.mubr.msk.f32.gmra.mxu1 %vm3281_vm3, %v5915_v32 }
 0x3fc   :  { %v22843_v18 = vadd.f32 %v17851_v0, %v22718_v1  ;;  %18169 = vmatprep.mubr.msk.f32.mxu1 %vm3281_vm3, %v5916_v57  ;;  %v5918_v1 = vld [vmem:[#allocation2 + $0xbc] sm:$0xff] }
 0x3fd   :  { %v22849_v16 = vpop.f32.mrf.mxu1 }
 0x3fe   :  { %27041 = vst [vmem:[#allocation28_spill] sm:$0xff] %v22849_v16  ;;  %v3805_v16 = vadd.f32 %v22738_v33, %v22597_v42  ;;  %v3815_v42 = vadd.f32 %v22749_v41, %v22604_v22  ;;  %v5921_v33 = vld [vmem:[#allocation2 + $0xd4] sm:$0xff]  ;;  %v14457_v22 = vld [vmem:[%s27012_s5 + $0x68] sm:$0xff] }
 0x3ff   :  { %v17862_v32 = vpop.f32.mrf.mxu1  ;;  %18170 = vmatmul.mubr.msk.f32.gmra.mxu1 %vm3281_vm3, %v5917_v27 }
 0x400   :  { %v22856_v0 = vadd.f32 %v17862_v32, %v3795_v44  ;;  %18172 = vmatprep.mubr.msk.f32.mxu1 %vm3281_vm3, %v5918_v1  ;;  %v14458_v44 = vld [vmem:[%s27012_s5 + $0x70] sm:$0xff]  ;;  %v22876_v32 = vpop.f32.mrf.mxu0 }
 0x401   :  { %v22859_v57 = vpop.f32.mrf.mxu1  ;;  %18183 = vmatprep.subr.mxu0 %v14458_v44 }
 0x402   :  { %18184 = vmatpush3.msra.mxu0 %v14458_v44  ;;  %v22889_v41 = vpop.f32.mrf.mxu0 }
 0x403   :  { %v17865_v36 = vpop.f32.mrf.mxu1  ;;  %18173 = vmatmul.mubr.msk.f32.gmra.mxu1 %vm3281_vm3, %v5919_v56  ;;  %18185 = vmatprep.subr.mxu0 %v14457_v22 }
 0x404   :  { %v22866_v12 = vadd.f32 %v17865_v36, %v3805_v16  ;;  %18175 = vmatprep.mubr.msk.f32.mxu1 %vm3281_vm3, %v5920_v53  ;;  %v5922_v16 = vld [vmem:[#allocation2 + $0xdc] sm:$0xff]  ;;  %v3825_v53 = vadd.f32 %v22757_v50, %v22611_v38  ;;  %18186 = vmatpush3.msra.mxu0 %v14457_v22  ;;  %v22898_v38 = vpop.f32.mrf.mxu0 }
 0x405   :  { %v22872_v27 = vpop.f32.mrf.mxu1  ;;  %27042 = vst [vmem:[#allocation29_spill] sm:$0xff] %v22898_v38  ;;  %18187 = vmatprep.subr.mxu0 %v14456_v6 }
 0x406   :  { %18188 = vmatpush3.msra.mxu0 %v14456_v6 }
 0x407   :  { %v17868_v56 = vpop.f32.mrf.mxu1  ;;  %18176 = vmatmul.mubr.msk.f32.gmra.mxu1 %vm3281_vm3, %v5921_v33 }
 0x408   :  { %v22879_v1 = vadd.f32 %v17868_v56, %v3815_v42  ;;  %18178 = vmatprep.mubr.msk.f32.mxu1 %vm3281_vm3, %v5922_v16  ;;  %v3835_v56 = vadd.f32 %v22765_v25, %v22618_v49 }
 0x409   :  { %v22882_v36 = vpop.f32.mrf.mxu1 }
 0x40b   :  { %v17871_v44 = vpop.f32.mrf.mxu1  ;;  %18179 = vmatmul.mubr.msk.f32.gmra.mxu1 %vm3281_vm3, %v5923_v35  ;;  %v3845_v35 = vadd.f32 %v22775_v43, %v22625_v11  ;;  %v3865_v43 = vadd.f32 %v22791_v2, %v22649_v45  ;;  %v6343_v2 = vld [vmem:[%s27012_s5 + $0x30] sm:$0xff] }
 0x40c   :  { %v22892_v42 = vadd.f32 %v17871_v44, %v3825_v53  ;;  %v22909_v53 = vpop.f32.mrf.mxu0  ;;  %v3855_v44 = vadd.f32 %v22783_v52, %v22632_v19 }
 0x40d   :  { %v22894_v33 = vpop.f32.mrf.mxu1  ;;  %27043 = vst [vmem:[#allocation30_spill] sm:$0xff] %v22909_v53 }
 0x40f   :  { %v17874_v50 = vpop.f32.mrf.mxu1 }
 0x410   :  { %v22900_v16 = vadd.f32 %v17874_v50, %v3835_v56  ;;  %v14455_v56 = vld [vmem:[%s27012_s5 + $0x58] sm:$0xff]  ;;  %v22920_v50 = vpop.f32.mrf.mxu0 }
 0x411   :  { %v22905_v13 = vpop.f32.mrf.mxu1  ;;  %27044 = vst [vmem:[#allocation31_spill] sm:$0xff] %v22920_v50  ;;  %18189 = vmatprep.subr.mxu0 %v14455_v56 }
 0x412   :  { %18190 = vmatpush3.msra.mxu0 %v14455_v56 }
 0x413   :  { %v17877_v22 = vpop.f32.mrf.mxu1 }
 0x414   :  { %v22911_v49 = vadd.f32 %v17877_v22, %v3845_v35  ;;  %v22928_v35 = vpop.f32.mrf.mxu0 }
 0x415   :  { %v22913_v25 = vpop.f32.mrf.mxu1 }
 0x416   :  { %v22934_v53 = vpop.f32.mrf.mxu0 }
 0x417   :  { %v17880_v38 = vpop.f32.mrf.mxu1  ;;  %27046 = vst [vmem:[#allocation33_spill] sm:$0xff] %v22934_v53 }
 0x418   :  { %v22922_v11 = vadd.f32 %v17880_v38, %v3855_v44  ;;  %v6344_v38 = vld [vmem:[%s27012_s5 + $0x38] sm:$0xff]  ;;  %v22947_v45 = vpop.f32.mrf.mxu0 }
 0x419   :  { %v22924_v6 = vpop.f32.mrf.mxu1  ;;  %18230 = vmatprep.subr.mxu1 %v6344_v38  ;;  %27048 = vst [vmem:[#allocation35_spill] sm:$0xff] %v22947_v45 }
 0x41a   :  { %18231 = vmatpush3.msra.mxu1 %v6344_v38 }
 0x41b   :  { %v17883_v22 = vpop.f32.mrf.mxu1  ;;  %18232 = vmatprep.subr.mxu1 %v6343_v2 }
 0x41c   :  { %v22930_v19 = vadd.f32 %v17883_v22, %v3865_v43  ;;  %18233 = vmatpush3.msra.mxu1 %v6343_v2  ;;  %v6342_v22 = vld [vmem:[%s27012_s5 + $0x28] sm:$0xff]  ;;  %v6341_v2 = vld [vmem:[%s27012_s5 + $0x20] sm:$0xff] }
 0x41d   :  { %v22932_v52 = vpop.f32.mrf.mxu1  ;;  %18234 = vmatprep.subr.mxu1 %v6342_v22 }
 0x41e   :  { %27045 = vst [vmem:[#allocation32_spill] sm:$0xff] %v22932_v52  ;;  %18235 = vmatpush3.msra.mxu1 %v6342_v22  ;;  %v6339_v22 = vld [vmem:[%s27012_s5 + $0x10] sm:$0xff] }
 0x41f   :  { %v17886_v50 = vpop.f32.mrf.mxu1  ;;  %18236 = vmatprep.subr.mxu1 %v6341_v2 }
 0x420   :  { %v22940_v44 = vadd.f32 %v17886_v50, %v22804_v34  ;;  %v14454_v50 = vld [vmem:[%s27012_s5 + $0x50] sm:$0xff]  ;;  %18237 = vmatpush3.msra.mxu1 %v6341_v2 }
 0x421   :  { %v22942_v56 = vpop.f32.mrf.mxu1  ;;  %18191 = vmatprep.subr.mxu0 %v14454_v50 }
 0x422   :  { %27047 = vst [vmem:[#allocation34_spill] sm:$0xff] %v22942_v56  ;;  %18192 = vmatpush3.msra.mxu0 %v14454_v50  ;;  %v22963_v56 = vpop.f32.mrf.mxu0  ;;  %v14453_v50 = vld [vmem:[%s27012_s5 + $0x48] sm:$0xff] }
 0x423   :  { %v17889_v43 = vpop.f32.mrf.mxu1  ;;  %27050 = vst [vmem:[#allocation37_spill] sm:$0xff] %v22963_v56  ;;  %18193 = vmatprep.subr.mxu0 %v14453_v50 }
 0x424   :  { %v22953_v34 = vadd.f32 %v17889_v43, %v22814_v29  ;;  %v6340_v29 = vld [vmem:[%s27012_s5 + $0x18] sm:$0xff]  ;;  %v22979_v2 = vpop.f32.mrf.mxu0  ;;  %18194 = vmatpush3.msra.mxu0 %v14453_v50  ;;  %v4553_v50 = vadd.f32 %v22660_v10, %v22856_v0 }
 0x425   :  { %v22958_v38 = vpop.f32.mrf.mxu1  ;;  %18238 = vmatprep.subr.mxu1 %v6340_v29  ;;  %27052 = vst [vmem:[#allocation39_spill] sm:$0xff] %v22979_v2 }
 0x426   :  { %27049 = vst [vmem:[#allocation36_spill] sm:$0xff] %v22958_v38  ;;  %18239 = vmatpush3.msra.mxu1 %v6340_v29  ;;  %v22992_v2 = vpop.f32.mrf.mxu0 }
 0x427   :  { %v17892_v45 = vpop.f32.mrf.mxu1  ;;  %18240 = vmatprep.subr.mxu1 %v6339_v22  ;;  %27054 = vst [vmem:[#allocation41_spill] sm:$0xff] %v22992_v2 }
 0x428   :  { %v22969_v43 = vadd.f32 %v17892_v45, %v22823_v61  ;;  %18241 = vmatpush3.msra.mxu1 %v6339_v22  ;;  %v6338_v61 = vld [vmem:[%s27012_s5 + $0x8] sm:$0xff] }
 0x429   :  { %v22971_v38 = vpop.f32.mrf.mxu1  ;;  %18242 = vmatprep.subr.mxu1 %v6338_v61 }
 0x42a   :  { %27051 = vst [vmem:[#allocation38_spill] sm:$0xff] %v22971_v38  ;;  %18243 = vmatpush3.msra.mxu1 %v6338_v61  ;;  %v6337_v38 = vld [vmem:[%s27012_s5] sm:$0xff]  ;;  %v23004_v61 = vpop.f32.mrf.mxu0 }
 0x42b   :  { %v17895_v56 = vpop.f32.mrf.mxu1  ;;  %18244 = vmatprep.subr.mxu1 %v6337_v38  ;;  %27056 = vst [vmem:[#allocation43_spill] sm:$0xff] %v23004_v61 }
 0x42c   :  { %v22985_v45 = vadd.f32 %v17895_v56, %v22834_v4  ;;  %18245 = vmatpush3.msra.mxu1 %v6337_v38  ;;  %v14452_v4 = vld [vmem:[%s27012_s5 + $0x40] sm:$0xff] }
 0x42d   :  { %v22987_v29 = vpop.f32.mrf.mxu1  ;;  %18195 = vmatprep.subr.mxu0 %v14452_v4 }
 0x42e   :  { %27053 = vst [vmem:[#allocation40_spill] sm:$0xff] %v22987_v29  ;;  %18196 = vmatpush3.msra.mxu0 %v14452_v4 }
 0x42f   :  { %v17898_v22 = vpop.f32.mrf.mxu1 }
 0x430   :  { %v22995_v53 = vadd.f32 %v17898_v22, %v22843_v18  ;;  %v4555_v18 = vadd.f32 %v22676_v17, %v22866_v12  ;;  %v23015_v22 = vld [vmem:[%s27012_s5 + $0xb8] sm:$0xff] }
 0x431   :  { %v23000_v56 = vpop.f32.mrf.mxu1  ;;  %27057 = vst [vmem:[#allocation44_spill] sm:$0xff] %v23015_v22  ;;  %18279 = vmatprep.subr.mxu0 %v23015_v22 }
 0x432   :  { %27055 = vst [vmem:[#allocation42_spill] sm:$0xff] %v23000_v56  ;;  %v23017_v56 = vpop.f32.mrf.mxu0 }
 0x433   :  { %v17956_v29 = vpop.f32.mrf.mxu1  ;;  %27058 = vst [vmem:[#allocation45_spill] sm:$0xff] %v23017_v56  ;;  %v4559_v56 = vadd.f32 %v22704_v24, %v22892_v42  ;;  %v4563_v24 = vadd.f32 %v22734_v15, %v22911_v49  ;;  %v4567_v49 = vadd.f32 %v22761_v39, %v22930_v19  ;;  %v4571_v39 = vadd.f32 %v22787_v47, %v22953_v34 }
 0x434   :  { %v23006_v2 = vadd.f32 %v17956_v29, %v4553_v50  ;;  %v4557_v29 = vadd.f32 %v22688_v8, %v22879_v1  ;;  %v23026_v4 = vpop.f32.mrf.mxu0  ;;  %v4561_v8 = vadd.f32 %v22716_v5, %v22900_v16  ;;  %v4565_v5 = vadd.f32 %v22747_v51, %v22922_v11 }
 0x435   :  { %v23008_v38 = vpop.f32.mrf.mxu1  ;;  %27059 = vst [vmem:[#allocation46_spill] sm:$0xff] %v23026_v4  ;;  %v4575_v47 = vadd.f32 %v22817_v31, %v22985_v45 }
 0x436   :  { %v23034_v61 = vpop.f32.mrf.mxu0 }
 0x437   :  { %v17959_v52 = vpop.f32.mrf.mxu1  ;;  %27060 = vst [vmem:[#allocation47_spill] sm:$0xff] %v23034_v61 }
 0x438   :  { %v23020_v10 = vadd.f32 %v17959_v52, %v4555_v18  ;;  %v23042_v1 = vpop.f32.mrf.mxu0 }
 0x439   :  { %v23022_v0 = vpop.f32.mrf.mxu1  ;;  %27061 = vst [vmem:[#allocation48_spill] sm:$0xff] %v23042_v1 }
 0x43a   :  { %v23050_v42 = vpop.f32.mrf.mxu0 }
 0x43b   :  { %v17962_v17 = vpop.f32.mrf.mxu1  ;;  %27062 = vst [vmem:[#allocation49_spill] sm:$0xff] %v23050_v42 }
 0x43c   :  { %v23028_v12 = vadd.f32 %v17962_v17, %v4557_v29  ;;  %v23058_v16 = vpop.f32.mrf.mxu0 }
 0x43d   :  { %v23030_v50 = vpop.f32.mrf.mxu1  ;;  %27064 = vst [vmem:[#allocation51_spill] sm:$0xff] %v23058_v16  ;;  %v4569_v16 = vadd.f32 %v22773_v30, %v22940_v44  ;;  %v4573_v30 = vadd.f32 %v22800_v63, %v22969_v43  ;;  %v4577_v63 = vadd.f32 %v22830_v37, %v22995_v53 }
 0x43f   :  { %v17965_v22 = vpop.f32.mrf.mxu1 }
 0x440   :  { %v23036_v52 = vadd.f32 %v17965_v22, %v4559_v56 }
 0x441   :  { %v23038_v18 = vpop.f32.mrf.mxu1 }
 0x443   :  { %v17968_v4 = vpop.f32.mrf.mxu1 }
 0x444   :  { %v23044_v29 = vadd.f32 %v17968_v4, %v4561_v8  ;;  %v23063_v4 = vld [vmem:[%s27012_s5 + $0xf8] sm:$0xff] }
 0x445   :  { %v23046_v17 = vpop.f32.mrf.mxu1  ;;  %27065 = vst [vmem:[#allocation52_spill] sm:$0xff] %v23063_v4  ;;  %18328 = vmatprep.subr.mxu1 %v23063_v4 }
 0x447   :  { %v17971_v61 = vpop.f32.mrf.mxu1 }
 0x448   :  { %v23052_v56 = vadd.f32 %v17971_v61, %v4563_v24  ;;  %v23072_v61 = vpop.f32.mrf.mxu0 }
 0x449   :  { %v23054_v22 = vpop.f32.mrf.mxu1  ;;  %27068 = vst [vmem:[#allocation55_spill] sm:$0xff] %v23072_v61 }
 0x44a   :  { %27063 = vst [vmem:[#allocation50_spill] sm:$0xff] %v23052_v56  ;;  %v23080_v42 = vpop.f32.mrf.mxu0 }
 0x44b   :  { %v17974_v1 = vpop.f32.mrf.mxu1  ;;  %27071 = vst [vmem:[#allocation58_spill] sm:$0xff] %v23080_v42 }
 0x44c   :  { %v23065_v8 = vadd.f32 %v17974_v1, %v4565_v5  ;;  %v23088_v19 = vpop.f32.mrf.mxu0 }
 0x44d   :  { %v23068_v15 = vpop.f32.mrf.mxu1  ;;  %27074 = vst [vmem:[#allocation61_spill] sm:$0xff] %v23088_v19 }
 0x44e   :  { %27066 = vst [vmem:[#allocation53_spill] sm:$0xff] %v23065_v8  ;;  %27067 = vst [vmem:[#allocation54_spill] sm:$0xff] %v23068_v15  ;;  %v23096_v44 = vpop.f32.mrf.mxu0 }
 0x44f   :  { %v17977_v51 = vpop.f32.mrf.mxu1  ;;  %27077 = vst [vmem:[#allocation64_spill] sm:$0xff] %v23096_v44 }
 0x450   :  { %v23074_v11 = vadd.f32 %v17977_v51, %v4567_v49  ;;  %v23104_v34 = vpop.f32.mrf.mxu0 }
 0x451   :  { %v23076_v24 = vpop.f32.mrf.mxu1  ;;  %27080 = vst [vmem:[#allocation67_spill] sm:$0xff] %v23104_v34 }
 0x452   :  { %27069 = vst [vmem:[#allocation56_spill] sm:$0xff] %v23074_v11  ;;  %27070 = vst [vmem:[#allocation57_spill] sm:$0xff] %v23076_v24  ;;  %v23112_v43 = vpop.f32.mrf.mxu0 }
 0x453   :  { %v17980_v1 = vpop.f32.mrf.mxu1  ;;  %27083 = vst [vmem:[#allocation70_spill] sm:$0xff] %v23112_v43 }
 0x454   :  { %v23082_v5 = vadd.f32 %v17980_v1, %v4569_v16 }
 0x455   :  { %v23084_v4 = vpop.f32.mrf.mxu1 }
 0x456   :  { %27072 = vst [vmem:[#allocation59_spill] sm:$0xff] %v23082_v5  ;;  %27073 = vst [vmem:[#allocation60_spill] sm:$0xff] %v23084_v4 }
 0x457   :  { %v17983_v61 = vpop.f32.mrf.mxu1 }
 0x458   :  { %v23090_v49 = vadd.f32 %v17983_v61, %v4571_v39 }
 0x459   :  { %v23092_v51 = vpop.f32.mrf.mxu1 }
 0x45a   :  { %27075 = vst [vmem:[#allocation62_spill] sm:$0xff] %v23090_v49  ;;  %27076 = vst [vmem:[#allocation63_spill] sm:$0xff] %v23092_v51 }
 0x45b   :  { %v17986_v42 = vpop.f32.mrf.mxu1 }
 0x45c   :  { %v23098_v16 = vadd.f32 %v17986_v42, %v4573_v30 }
 0x45d   :  { %v23100_v1 = vpop.f32.mrf.mxu1 }
 0x45e   :  { %27078 = vst [vmem:[#allocation65_spill] sm:$0xff] %v23098_v16  ;;  %27079 = vst [vmem:[#allocation66_spill] sm:$0xff] %v23100_v1  ;;  %v23118_v16 = vpop.f32.mrf.mxu0 }
 0x45f   :  { %v17989_v19 = vpop.f32.mrf.mxu1 }
 0x460   :  { %v23106_v61 = vadd.f32 %v17989_v19, %v4575_v47  ;;  %v23120_v34 = vpop.f32.mrf.mxu0 }
 0x461   :  { %v23108_v39 = vpop.f32.mrf.mxu1 }
 0x462   :  { %27081 = vst [vmem:[#allocation68_spill] sm:$0xff] %v23106_v61  ;;  %27082 = vst [vmem:[#allocation69_spill] sm:$0xff] %v23108_v39  ;;  %v23124_v61 = vpop.f32.mrf.mxu0 }
 0x463   :  { %v17992_v44 = vpop.f32.mrf.mxu1 }
 0x464   :  { %v23114_v42 = vadd.f32 %v17992_v44, %v4577_v63  ;;  %v23130_v53 = vpop.f32.mrf.mxu0 }
 0x465   :  { %v23116_v30 = vpop.f32.mrf.mxu1 }
 0x466   :  { %27084 = vst [vmem:[#allocation71_spill] sm:$0xff] %v23114_v42  ;;  %27085 = vst [vmem:[#allocation72_spill] sm:$0xff] %v23116_v30  ;;  %v23136_v43 = vpop.f32.mrf.mxu0 }
 0x467   :  { %v18050_v31 = vpop.f32.mrf.mxu1 }
 0x468   :  { %v23142_v1 = vpop.f32.mrf.mxu0 }
 0x469   :  { %v5413_v45 = vpop.f32.mrf.mxu1 }
 0x46a   :  { %v23148_v5 = vpop.f32.mrf.mxu0 }
 0x46b   :  { %v18053_v19 = vpop.f32.mrf.mxu1 }
 0x46c   :  { %v23154_v24 = vpop.f32.mrf.mxu0 }
 0x46d   :  { %v23122_v47 = vpop.f32.mrf.mxu1  ;;  %27092 = vst [vmem:[#allocation79_spill] sm:$0xff] %v23154_v24 }
 0x46e   :  { %v23160_v56 = vpop.f32.mrf.mxu0 }
 0x46f   :  { %v23126_v39 = vpop.f32.mrf.mxu1  ;;  %27095 = vst [vmem:[#allocation82_spill] sm:$0xff] %v23160_v56 }
 0x471   :  { %v23128_v37 = vpop.f32.mrf.mxu1 }
 0x473   :  { %v23132_v44 = vpop.f32.mrf.mxu1 }
 0x475   :  { %v23134_v63 = vpop.f32.mrf.mxu1 }
 0x477   :  { %v23138_v42 = vpop.f32.mrf.mxu1 }
 0x478   :  { %27086 = vst [vmem:[#allocation73_spill] sm:$0xff] %v23138_v42 }
 0x479   :  { %v23140_v30 = vpop.f32.mrf.mxu1 }
 0x47a   :  { %27087 = vst [vmem:[#allocation74_spill] sm:$0xff] %v23140_v30 }
 0x47b   :  { %v23144_v49 = vpop.f32.mrf.mxu1 }
 0x47c   :  { %27088 = vst [vmem:[#allocation75_spill] sm:$0xff] %v23144_v49  ;;  %v23168_v49 = vpop.f32.mrf.mxu0 }
 0x47d   :  { %v23146_v51 = vpop.f32.mrf.mxu1 }
 0x47e   :  { %27089 = vst [vmem:[#allocation76_spill] sm:$0xff] %v23146_v51  ;;  %v3790_v51 = vadd.f32 %v22736_v55, %v22594_v59  ;;  %v23178_v56 = vpop.f32.mrf.mxu0  ;;  %v3810_v59 = vadd.f32 %v22753_v58, %v22608_v26 }
 0x47f   :  { %v23150_v4 = vpop.f32.mrf.mxu1 }
 0x480   :  { %27090 = vst [vmem:[#allocation77_spill] sm:$0xff] %v23150_v4 }
 0x481   :  { %v23152_v11 = vpop.f32.mrf.mxu1 }
 0x482   :  { %27091 = vst [vmem:[#allocation78_spill] sm:$0xff] %v23152_v11  ;;  %v4222_v11 = vadd.f32 %v22859_v57, %v3790_v51  ;;  %v4226_v51 = vadd.f32 %v22882_v36, %v3810_v59 }
 0x483   :  { %v23156_v8 = vpop.f32.mrf.mxu1 }
 0x484   :  { %27093 = vst [vmem:[#allocation80_spill] sm:$0xff] %v23156_v8  ;;  %v3800_v8 = vadd.f32 %v22745_v23, %v22601_v3  ;;  %v23189_v3 = vpop.f32.mrf.mxu0 }
 0x485   :  { %v23158_v15 = vpop.f32.mrf.mxu1 }
 0x486   :  { %27094 = vst [vmem:[#allocation81_spill] sm:$0xff] %v23158_v15  ;;  %v4224_v15 = vadd.f32 %v22872_v27, %v3800_v8  ;;  %v5213_v8 = vadd.f32 %v22853_v60, %v23006_v2  ;;  %v5215_v60 = vadd.f32 %v22876_v32, %v23020_v10  ;;  %v27100_v32 = vld [vmem:[#allocation23_spill] sm:$0xff] }
 0x487   :  { %v23162_v30 = vpop.f32.mrf.mxu1 }
 0x488   :  { %27096 = vst [vmem:[#allocation83_spill] sm:$0xff] %v23162_v30  ;;  %v4554_v23 = vadd.f32 %v22684_v9, %v4224_v15  ;;  %v4556_v9 = vadd.f32 %v22696_v48, %v4226_v51  ;;  %v27098_v48 = vld [vmem:[#allocation18_spill] sm:$0xff] }
 0x489   :  { %v23164_v42 = vpop.f32.mrf.mxu1 }
 0x48a   :  { %27097 = vst [vmem:[#allocation84_spill] sm:$0xff] %v23164_v42  ;;  %v4552_v42 = vadd.f32 %v22668_v40, %v4222_v11  ;;  %v3820_v40 = vadd.f32 %v22763_v20, %v22615_v28  ;;  %v4884_v26 = vadd.f32 %v23022_v0, %v4554_v23  ;;  %v5543_v11 = vadd.f32 %v18050_v31, %v5213_v8 }
 0x48b   :  { %v23170_v4 = vpop.f32.mrf.mxu1  ;;  %v3830_v28 = vadd.f32 %v22771_v62, %v22622_v21  ;;  %v4886_v20 = vadd.f32 %v23030_v50, %v4556_v9  ;;  %v3850_v0 = vadd.f32 %v27098_v48, %v22641_v46  ;;  %v5545_v31 = vadd.f32 %v18053_v19, %v5215_v60  ;;  %v27102_v46 = vld [vmem:[#allocation9_spill] sm:$0xff]  ;;  %v27107_v9 = vld [vmem:[#allocation30_spill] sm:$0xff] }
 0x48c   :  { %v4882_v57 = vadd.f32 %v23008_v38, %v4552_v42  ;;  %v4228_v36 = vadd.f32 %v22894_v33, %v3820_v40  ;;  %v23203_v42 = vpop.f32.mrf.mxu0  ;;  %v5214_v2 = vadd.f32 %v22889_v41, %v4884_v26  ;;  %v3840_v33 = vadd.f32 %v22779_v7, %v22629_v54  ;;  %v27101_v41 = vld [vmem:[#allocation11_spill] sm:$0xff]  ;;  %v23233_v54 = vld [vmem:[%s27011_s4] ss:$0 sm:$0xff]  ;;  %v27103_v7 = vld [vmem:[#allocation25_spill] sm:$0xff] }
 0x48d   :  { %v23175_v24 = vpop.f32.mrf.mxu1  ;;  %v4230_v21 = vadd.f32 %v22905_v13, %v3830_v28  ;;  %v27104_v19 = vld [vmem:[#allocation29_spill] sm:$0xff]  ;;  %v27105_v26 = vld [vmem:[#allocation10_spill] sm:$0xff]  ;;  %v5216_v60 = vadd.f32 %v27107_v9, %v4886_v20 }
 0x48e   :  { %v5212_v38 = vadd.f32 %v22863_v14, %v4882_v57  ;;  %v27099_v57 = vld [vmem:[#allocation8_spill] sm:$0xff]  ;;  %v23226_v62 = vpop.f32.mrf.mxu0  ;;  %v4558_v50 = vadd.f32 %v27101_v41, %v4228_v36  ;;  %v5544_v51 = vadd.f32 %v23122_v47, %v5214_v2  ;;  %v5217_v8 = vadd.f32 %v27104_v19, %v23028_v12 }
 0x48f   :  { %v23180_v30 = vpop.f32.mrf.mxu1  ;;  %v23223_v10 = vadd.f32 %v27100_v32, %v27099_v57  ;;  %v4232_v47 = vadd.f32 %v22913_v25, %v3840_v33  ;;  %v5875_v12 = vadd.f32 %v23124_v61, %v5545_v31  ;;  %v27109_v32 = vld [vmem:[#allocation31_spill] sm:$0xff]  ;;  %v5546_v20 = vadd.f32 %v23128_v37, %v5216_v60  ;;  %v27110_v61 = vld [vmem:[#allocation14_spill] sm:$0xff] }
 0x490   :  { %v5542_v59 = vadd.f32 %v5413_v45, %v5212_v38  ;;  %v5873_v45 = vadd.f32 %v23118_v16, %v5543_v11  ;;  %v23237_v16 = vadd.f32 %v27103_v7, %v27102_v46  ;;  %v27106_v11 = vld [vmem:[#allocation26_spill] sm:$0xff]  ;;  %v4888_v36 = vadd.f32 %v23038_v18, %v4558_v50 }
 0x491   :  { %v23185_v55 = vpop.f32.mrf.mxu1  ;;  %v23244_v38 = vadd.f32 %v27106_v11, %v27105_v26  ;;  %v5547_v2 = vadd.f32 %v23126_v39, %v5217_v8  ;;  %v5219_v41 = vadd.f32 %v27109_v32, %v23036_v52  ;;  %v5874_v18 = vadd.f32 %v23130_v53, %v5544_v51  ;;  %v27111_v8 = vld [vmem:[#allocation20_spill] sm:$0xff] }
 0x492   :  { %v5872_v40 = vadd.f32 %v23120_v34, %v5542_v59  ;;  %v27108_v34 = vld [vmem:[#allocation13_spill] sm:$0xff]  ;;  %v4562_v31 = vadd.f32 %v27110_v61, %v4232_v47  ;;  %v4234_v19 = vadd.f32 %v22924_v6, %v3850_v0  ;;  %v27114_v6 = vld [vmem:[#allocation12_spill] sm:$0xff]  ;;  %v27123_v61 = vld [vmem:[#allocation74_spill] sm:$0xff] }
 0x493   :  { %v23192_v27 = vpop.f32.mrf.mxu1  ;;  %v4560_v59 = vadd.f32 %v27108_v34, %v4230_v21  ;;  %v5549_v46 = vadd.f32 %v23132_v44, %v5219_v41  ;;  %v5218_v21 = vadd.f32 %v22928_v35, %v4888_v36  ;;  %v5877_v37 = vadd.f32 %v23136_v43, %v5547_v2  ;;  %v27113_v35 = vld [vmem:[#allocation33_spill] sm:$0xff]  ;;  %v27115_v0 = vld [vmem:[#allocation28_spill] sm:$0xff]  ;;  %v27116_v2 = vld [vmem:[#allocation35_spill] sm:$0xff] }
 0x494   :  { %v5221_v26 = vadd.f32 %v27113_v35, %v23044_v29  ;;  %v5876_v43 = vadd.f32 %v23142_v1, %v5546_v20  ;;  %v23280_v60 = vadd.f32 %v27115_v0, %v27114_v6  ;;  %v27118_v41 = vld [vmem:[#allocation15_spill] sm:$0xff] }
 0x495   :  { %v23199_v58 = vpop.f32.mrf.mxu1  ;;  %v5548_v44 = vadd.f32 %v23134_v63, %v5218_v21  ;;  %v5879_v29 = vadd.f32 %v23148_v5, %v5549_v46 }
 0x497   :  { %v23206_v15 = vpop.f32.mrf.mxu1 }
 0x499   :  { %v23214_v14 = vpop.f32.mrf.mxu1 }
 0x49b   :  { %v18144_v23 = vpop.f32.mrf.mxu1 }
 0x49c   :  { %v6203_v13 = vadd.f32 %v18144_v23, %v5873_v45  ;;  %v23252_v45 = vpop.f32.mrf.mxu0  ;;  %v4890_v23 = vadd.f32 %v23046_v17, %v4560_v59 }
 0x49d   :  { %v6073_v28 = vpop.f32.mrf.mxu1 }
 0x49e   :  { %v6236_v48 = vadd.f32 %v23233_v54, %v6203_v13  ;;  %v6202_v57 = vadd.f32 %v6073_v28, %v5872_v40  ;;  %v27112_v13 = vld [vmem:[#allocation32_spill] sm:$0xff]  ;;  %v23270_v40 = vpop.f32.mrf.mxu0  ;;  %v4892_v28 = vadd.f32 %v23054_v22, %v4562_v31  ;;  %v5220_v63 = vadd.f32 %v27116_v2, %v4890_v23  ;;  %v27120_v22 = vld [vmem:[#allocation50_spill] sm:$0xff]  ;;  %v27122_v23 = vld [vmem:[#allocation79_spill] sm:$0xff] }
 0x49f   :  { %v18147_v25 = vpop.f32.mrf.mxu1  ;;  %v4236_v17 = vadd.f32 %v27112_v13, %v27111_v8  ;;  %v5878_v5 = vadd.f32 %v27122_v23, %v5548_v44  ;;  %v27127_v8 = vld [vmem:[#allocation75_spill] sm:$0xff]  ;;  %v27131_v2 = vld [vmem:[#allocation38_spill] sm:$0xff] }
 0x4a0   :  { %v6262_v33 = vmax.f32 %v6236_v48, 0.0  ;;  %v6235_v39 = vadd.f32 %v23233_v54, %v6202_v57  ;;  %v6205_v50 = vadd.f32 %v18147_v25, %v5875_v12  ;;  %v27117_v57 = vld [vmem:[#allocation73_spill] sm:$0xff]  ;;  %v23288_v1 = vpop.f32.mrf.mxu0  ;;  %v4564_v25 = vadd.f32 %v27118_v41, %v4234_v19 }
 0x4a1   :  { %v6083_v7 = vpop.f32.mrf.mxu1  ;;  %v5551_v12 = vadd.f32 %v27117_v57, %v5221_v26  ;;  %v5550_v31 = vadd.f32 %v27123_v61, %v5220_v63  ;;  %v4242_v63 = vadd.f32 %v27131_v2, %v23237_v16  ;;  %v27134_v57 = vld [vmem:[#allocation41_spill] sm:$0xff] }
 0x4a2   :  { %6289 = vst.msk [vmem:[#allocation3 + $0x8] sm:$0xff] %vm6287_vm4, %v6262_v33  ;;  %v6261_v52 = vmax.f32 %v6235_v39, 0.0  ;;  %v6238_v53 = vadd.f32 %v23233_v54, %v6205_v50  ;;  %v6204_v51 = vadd.f32 %v6083_v7, %v5874_v18  ;;  %v27119_v18 = vld [vmem:[#allocation16_spill] sm:$0xff]  ;;  %v27121_v33 = vld [vmem:[#allocation37_spill] sm:$0xff]  ;;  %v23308_v0 = vpop.f32.mrf.mxu0 }
 0x4a3   :  { %v18150_v11 = vpop.f32.mrf.mxu1  ;;  %v4566_v20 = vadd.f32 %v27119_v18, %v4236_v17  ;;  %v5223_v39 = vadd.f32 %v27121_v33, %v27120_v22  ;;  %v27128_v17 = vld [vmem:[#allocation39_spill] sm:$0xff]  ;;  %v14540_v22 = vld [vmem:[%s27012_s5 + $0xf0] sm:$0xff] }
 0x4a4   :  { %6288 = vst.msk [vmem:[#allocation3] sm:$0xff] %vm6287_vm4, %v6261_v52  ;;  %v6264_v47 = vmax.f32 %v6238_v53, 0.0  ;;  %v6237_v36 = vadd.f32 %v23233_v54, %v6204_v51  ;;  %v6207_v9 = vadd.f32 %v18150_v11, %v5877_v37  ;;  %v27124_v52 = vld [vmem:[#allocation21_spill] sm:$0xff]  ;;  %v27125_v53 = vld [vmem:[#allocation34_spill] sm:$0xff]  ;;  %v5222_v35 = vadd.f32 %v27128_v17, %v4892_v28 }
 0x4a5   :  { %v6093_v48 = vpop.f32.mrf.mxu1  ;;  %v4238_v51 = vadd.f32 %v27125_v53, %v27124_v52  ;;  %v27126_v37 = vld [vmem:[#allocation54_spill] sm:$0xff]  ;;  %v5553_v13 = vadd.f32 %v27127_v8, %v5223_v39  ;;  %v27133_v28 = vld [vmem:[#allocation53_spill] sm:$0xff] }
 0x4a6   :  { %6291 = vst.msk [vmem:[#allocation3 + $0x18] sm:$0xff] %vm6287_vm4, %v6264_v47  ;;  %v6263_v34 = vmax.f32 %v6237_v36, 0.0  ;;  %v6240_v59 = vadd.f32 %v23233_v54, %v6207_v9  ;;  %v6206_v32 = vadd.f32 %v6093_v48, %v5876_v43  ;;  %v4894_v19 = vadd.f32 %v27126_v37, %v4564_v25  ;;  %v27129_v36 = vld [vmem:[#allocation82_spill] sm:$0xff]  ;;  %v27130_v43 = vld [vmem:[#allocation36_spill] sm:$0xff]  ;;  %v27135_v33 = vld [vmem:[#allocation57_spill] sm:$0xff] }
 0x4a7   :  { %v18153_v50 = vpop.f32.mrf.mxu1  ;;  %v5881_v9 = vadd.f32 %v27129_v36, %v5551_v12  ;;  %v4240_v6 = vadd.f32 %v27130_v43, %v23223_v10  ;;  %v27132_v48 = vld [vmem:[#allocation76_spill] sm:$0xff]  ;;  %v5880_v10 = vadd.f32 %v23168_v49, %v5550_v31  ;;  %v4896_v39 = vadd.f32 %v27135_v33, %v4566_v20  ;;  %v23332_v20 = vpop.f32.mrf.mxu0 }
 0x4a8   :  { %6290 = vst.msk [vmem:[#allocation3 + $0x10] sm:$0xff] %vm6287_vm4, %v6263_v34  ;;  %v6266_v46 = vmax.f32 %v6240_v59, 0.0  ;;  %v6239_v21 = vadd.f32 %v23233_v54, %v6206_v32  ;;  %v6209_v7 = vadd.f32 %v18153_v50, %v5879_v29  ;;  %v5552_v29 = vadd.f32 %v27132_v48, %v5222_v35  ;;  %v27136_v50 = vld [vmem:[#allocation17_spill] sm:$0xff]  ;;  %v27139_v37 = vld [vmem:[#allocation52_spill] sm:$0xff] }
 0x4a9   :  { %v6103_v26 = vpop.f32.mrf.mxu1  ;;  %v5225_v34 = vadd.f32 %v27134_v57, %v27133_v28  ;;  %v6316_v16 = vld [vmem:[#allocation3 + $0x8] sm:$0xff]  ;;  %v4568_v23 = vadd.f32 %v27136_v50, %v4238_v51  ;;  %v27140_v51 = vld [vmem:[#allocation19_spill] sm:$0xff]  ;;  %v23361_v50 = vpop.f32.mrf.mxu0 }
 0x4aa   :  { %6293 = vst.msk [vmem:[#allocation3 + $0x28] sm:$0xff] %vm6287_vm4, %v6266_v46  ;;  %v6265_v44 = vmax.f32 %v6239_v21, 0.0  ;;  %v6242_v11 = vadd.f32 %v23233_v54, %v6209_v7  ;;  %v6208_v47 = vadd.f32 %v6103_v26, %v5878_v5  ;;  %v27137_v5 = vld [vmem:[#allocation43_spill] sm:$0xff]  ;;  %v5883_v21 = vadd.f32 %v23178_v56, %v5553_v13  ;;  %v27138_v7 = vld [vmem:[#allocation77_spill] sm:$0xff]  ;;  %v27142_v35 = vld [vmem:[#allocation56_spill] sm:$0xff] }
 0x4ab   :  { %v18156_v59 = vpop.f32.mrf.mxu1  ;;  %v6345_v32 = vld [vmem:[#allocation3 + $0x1] sm:$0xff]  ;;  %v5224_v61 = vadd.f32 %v27137_v5, %v4894_v19  ;;  %v5555_v52 = vadd.f32 %v27138_v7, %v5225_v34  ;;  %v4570_v8 = vadd.f32 %v27140_v51, %v4240_v6  ;;  %v27141_v19 = vld [vmem:[#allocation22_spill] sm:$0xff]  ;;  %v27143_v26 = vld [vmem:[#allocation45_spill] sm:$0xff] }
 0x4ac   :  { %v6315_v41 = vld [vmem:[#allocation3] sm:$0xff]  ;;  %6292 = vst.msk [vmem:[#allocation3 + $0x20] sm:$0xff] %vm6287_vm4, %v6265_v44  ;;  %v6268_v25 = vmax.f32 %v6242_v11, 0.0  ;;  %v6241_v12 = vadd.f32 %v23233_v54, %v6208_v47  ;;  %v6211_v18 = vadd.f32 %v18156_v59, %v5881_v9  ;;  %18197 = vmatprep.mubr.msk.f32.mxu0 %vm6287_vm4, %v6345_v32  ;;  %v23336_v17 = vadd.f32 %v27141_v19, %v4242_v63  ;;  %v27144_v9 = vld [vmem:[#allocation78_spill] sm:$0xff]  ;;  %v14510_v28 = vld [vmem:[%s27012_s5 + $0xb0] sm:$0xff] }
 0x4ad   :  { %18246 = vmatprep.mubr.msk.f32.mxu1 %vm6287_vm4, %v6315_v41  ;;  %v6113_v46 = vpop.f32.mrf.mxu1  ;;  %v5227_v56 = vadd.f32 %v27143_v26, %v27142_v35  ;;  %v5882_v47 = vadd.f32 %v23189_v3, %v5552_v29  ;;  %v5554_v43 = vadd.f32 %v27144_v9, %v5224_v61  ;;  %v6318_v63 = vld [vmem:[#allocation3 + $0x18] sm:$0xff]  ;;  %v14539_v3 = vld [vmem:[%s27012_s5 + $0xe8] sm:$0xff]  ;;  %v5885_v33 = vadd.f32 %v23203_v42, %v5555_v52  ;;  %v27150_v5 = vld [vmem:[#allocation81_spill] sm:$0xff] }
 0x4ae   :  { %18247 = vmatmul.mubr.msk.f32.vlgmr.msra.gmra.mxu1 %vm6287_vm4, %v6316_v16  ;;  %6295 = vst.msk [vmem:[#allocation3 + $0x38] sm:$0xff] %vm6287_vm4, %v6268_v25  ;;  %v6267_v49 = vmax.f32 %v6241_v12, 0.0  ;;  %v6244_v31 = vadd.f32 %v23233_v54, %v6211_v18  ;;  %v6210_v53 = vadd.f32 %v6113_v46, %v5880_v10  ;;  %v27145_v29 = vld [vmem:[#allocation60_spill] sm:$0xff]  ;;  %v27147_v32 = vld [vmem:[#allocation46_spill] sm:$0xff]  ;;  %v27151_v46 = vld [vmem:[#allocation59_spill] sm:$0xff] }
 0x4af   :  { %18329 = vmatpush3.msra.mxu1 %v27139_v37  ;;  %v18159_v13 = vpop.f32.mrf.mxu1  ;;  %v6346_v44 = vld [vmem:[#allocation3 + $0x9] sm:$0xff]  ;;  %v6347_v36 = vld [vmem:[#allocation3 + $0x11] sm:$0xff]  ;;  %v4898_v57 = vadd.f32 %v27145_v29, %v4568_v23  ;;  %v5226_v41 = vadd.f32 %v27147_v32, %v4896_v39  ;;  %v14509_v19 = vld [vmem:[%s27012_s5 + $0xa8] sm:$0xff] }
 0x4b0   :  { %v6317_v11 = vld [vmem:[#allocation3 + $0x10] sm:$0xff]  ;;  %18330 = vmatprep.subr.mxu1 %v14540_v22  ;;  %6294 = vst.msk [vmem:[#allocation3 + $0x30] sm:$0xff] %vm6287_vm4, %v6267_v49  ;;  %v6270_v2 = vmax.f32 %v6244_v31, 0.0  ;;  %v6243_v6 = vadd.f32 %v23233_v54, %v6210_v53  ;;  %v6213_v48 = vadd.f32 %v18159_v13, %v5883_v21  ;;  %18198 = vmatmul.mubr.msk.f32.vlgmr.msra.gmra.mxu0 %vm6287_vm4, %v6346_v44  ;;  %v27146_v34 = vld [vmem:[#allocation80_spill] sm:$0xff]  ;;  %v27152_v21 = vld [vmem:[#allocation47_spill] sm:$0xff] }
 0x4b1   :  { %18249 = vmatprep.mubr.msk.f32.mxu1 %vm6287_vm4, %v6317_v11  ;;  %v5557_v59 = vadd.f32 %v27146_v34, %v5227_v56  ;;  %v6123_v25 = vpop.f32.mrf.mxu1  ;;  %18200 = vmatprep.mubr.msk.f32.mxu0 %vm6287_vm4, %v6347_v36  ;;  %v27148_v16 = vld [vmem:[#allocation44_spill] sm:$0xff]  ;;  %v5556_v61 = vadd.f32 %v27150_v5, %v5226_v41  ;;  %v5229_v7 = vadd.f32 %v27152_v21, %v27151_v46  ;;  %v14538_v35 = vld [vmem:[%s27012_s5 + $0xe0] sm:$0xff]  ;;  %v27158_v29 = vld [vmem:[#allocation49_spill] sm:$0xff] }
 0x4b2   :  { %18250 = vmatmul.mubr.msk.f32.gmra.mxu1 %vm6287_vm4, %v6318_v63  ;;  %6297 = vst.msk [vmem:[#allocation3 + $0x48] sm:$0xff] %vm6287_vm4, %v6270_v2  ;;  %v6269_v12 = vmax.f32 %v6243_v6, 0.0  ;;  %v6246_v18 = vadd.f32 %v23233_v54, %v6213_v48  ;;  %v6212_v10 = vadd.f32 %v6123_v25, %v5882_v47  ;;  %18280 = vmatpush3.msra.mxu0 %v27148_v16  ;;  %v27149_v39 = vld [vmem:[#allocation40_spill] sm:$0xff]  ;;  %v27153_v26 = vld [vmem:[#allocation63_spill] sm:$0xff]  ;;  %v27157_v63 = vld [vmem:[#allocation62_spill] sm:$0xff] }
 0x4b3   :  { %18331 = vmatpush3.msra.mxu1 %v14540_v22  ;;  %v4244_v23 = vadd.f32 %v27149_v39, %v23244_v38  ;;  %v18162_v49 = vpop.f32.mrf.mxu1  ;;  %v6348_v31 = vld [vmem:[#allocation3 + $0x19] sm:$0xff]  ;;  %v6349_v37 = vld [vmem:[#allocation3 + $0x21] sm:$0xff]  ;;  %18281 = vmatprep.subr.mxu0 %v14510_v28  ;;  %v5884_v38 = vadd.f32 %v23226_v62, %v5554_v43  ;;  %v4900_v56 = vadd.f32 %v27153_v26, %v4570_v8  ;;  %v23387_v8 = vpop.f32.mrf.mxu0  ;;  %v14537_v16 = vld [vmem:[%s27012_s5 + $0xd8] sm:$0xff] }
 0x4b4   :  { %v6319_v53 = vld [vmem:[#allocation3 + $0x20] sm:$0xff]  ;;  %18332 = vmatprep.subr.mxu1 %v14539_v3  ;;  %6296 = vst.msk [vmem:[#allocation3 + $0x40] sm:$0xff] %vm6287_vm4, %v6269_v12  ;;  %v6272_v42 = vmax.f32 %v6246_v18, 0.0  ;;  %v6245_v22 = vadd.f32 %v23233_v54, %v6212_v10  ;;  %v6215_v52 = vadd.f32 %v18162_v49, %v5885_v33  ;;  %18201 = vmatmul.mubr.msk.f32.gmra.mxu0 %vm6287_vm4, %v6348_v31  ;;  %v6320_v51 = vld [vmem:[#allocation3 + $0x28] sm:$0xff]  ;;  %v27160_v33 = vld [vmem:[#allocation66_spill] sm:$0xff] }
 0x4b5   :  { %18252 = vmatprep.mubr.msk.f32.mxu1 %vm6287_vm4, %v6319_v53  ;;  %v27154_v13 = vld [vmem:[#allocation48_spill] sm:$0xff]  ;;  %v6133_v11 = vpop.f32.mrf.mxu1  ;;  %18203 = vmatprep.mubr.msk.f32.mxu0 %vm6287_vm4, %v6349_v37  ;;  %v5887_v62 = vadd.f32 %v23252_v45, %v5557_v59  ;;  %v27155_v47 = vld [vmem:[#allocation83_spill] sm:$0xff]  ;;  %v5886_v59 = vadd.f32 %v23270_v40, %v5556_v61  ;;  %v4902_v39 = vadd.f32 %v27160_v33, %v23336_v17  ;;  %v23413_v17 = vpop.f32.mrf.mxu0 }
 0x4b6   :  { %v5228_v44 = vadd.f32 %v27154_v13, %v4898_v57  ;;  %18253 = vmatmul.mubr.msk.f32.gmra.mxu1 %vm6287_vm4, %v6320_v51  ;;  %v5559_v36 = vadd.f32 %v27155_v47, %v5229_v7  ;;  %6299 = vst.msk [vmem:[#allocation3 + $0x58] sm:$0xff] %vm6287_vm4, %v6272_v42  ;;  %v6271_v9 = vmax.f32 %v6245_v22, 0.0  ;;  %v6248_v43 = vadd.f32 %v23233_v54, %v6215_v52  ;;  %v27156_v6 = vld [vmem:[#allocation24_spill] sm:$0xff]  ;;  %v6322_v10 = vld [vmem:[#allocation3 + $0x38] sm:$0xff]  ;;  %v27163_v42 = vld [vmem:[#allocation65_spill] sm:$0xff] }
 0x4b7   :  { %v6214_v2 = vadd.f32 %v6133_v11, %v5884_v38  ;;  %18282 = vmatpush3.msra.mxu0 %v14510_v28  ;;  %18333 = vmatpush3.msra.mxu1 %v14539_v3  ;;  %v4574_v48 = vadd.f32 %v27156_v6, %v4244_v23  ;;  %v5231_v57 = vadd.f32 %v27158_v29, %v27157_v63  ;;  %v18165_v34 = vpop.f32.mrf.mxu1  ;;  %v6350_v32 = vld [vmem:[#allocation3 + $0x29] sm:$0xff]  ;;  %v6351_v41 = vld [vmem:[#allocation3 + $0x31] sm:$0xff]  ;;  %v27161_v5 = vld [vmem:[#allocation51_spill] sm:$0xff] }
 0x4b8   :  { %v6321_v45 = vld [vmem:[#allocation3 + $0x30] sm:$0xff]  ;;  %18283 = vmatprep.subr.mxu0 %v14509_v19  ;;  %18334 = vmatprep.subr.mxu1 %v14538_v35  ;;  %v27159_v25 = vld [vmem:[#allocation84_spill] sm:$0xff]  ;;  %6298 = vst.msk [vmem:[#allocation3 + $0x50] sm:$0xff] %vm6287_vm4, %v6271_v9  ;;  %v6274_v28 = vmax.f32 %v6248_v43, 0.0  ;;  %v6217_v18 = vadd.f32 %v18165_v34, %v5887_v62  ;;  %v14508_v40 = vld [vmem:[%s27012_s5 + $0xa0] sm:$0xff]  ;;  %v5230_v61 = vadd.f32 %v27161_v5, %v4900_v56 }
 0x4b9   :  { %v5558_v12 = vadd.f32 %v27159_v25, %v5228_v44  ;;  %v6247_v3 = vadd.f32 %v23233_v54, %v6214_v2  ;;  %18204 = vmatmul.mubr.msk.f32.gmra.mxu0 %vm6287_vm4, %v6350_v32  ;;  %18255 = vmatprep.mubr.msk.f32.mxu1 %vm6287_vm4, %v6321_v45  ;;  %v5561_v23 = vadd.f32 %v23170_v4, %v5231_v57  ;;  %v6143_v46 = vpop.f32.mrf.mxu1  ;;  %v27162_v4 = vld [vmem:[#allocation42_spill] sm:$0xff]  ;;  %v27164_v22 = vld [vmem:[#allocation55_spill] sm:$0xff]  ;;  %v14536_v44 = vld [vmem:[%s27012_s5 + $0xd0] sm:$0xff] }
 0x4ba   :  { %18206 = vmatprep.mubr.msk.f32.mxu0 %vm6287_vm4, %v6351_v41  ;;  %18256 = vmatmul.mubr.msk.f32.gmra.mxu1 %vm6287_vm4, %v6322_v10  ;;  %6301 = vst.msk [vmem:[#allocation3 + $0x68] sm:$0xff] %vm6287_vm4, %v6274_v28  ;;  %v6250_v7 = vadd.f32 %v23233_v54, %v6217_v18  ;;  %v6216_v49 = vadd.f32 %v6143_v46, %v5886_v59  ;;  %v14507_v13 = vld [vmem:[%s27012_s5 + $0x98] sm:$0xff]  ;;  %v27167_v29 = vld [vmem:[#allocation27_spill] sm:$0xff]  ;;  %v27168_v34 = vld [vmem:[#allocation68_spill] sm:$0xff] }
 0x4bb   :  { %v6273_v21 = vmax.f32 %v6247_v3, 0.0  ;;  %v5889_v31 = vadd.f32 %v23288_v1, %v5559_v36  ;;  %18284 = vmatpush3.msra.mxu0 %v14509_v19  ;;  %18335 = vmatpush3.msra.mxu1 %v14538_v35  ;;  %v4246_v53 = vadd.f32 %v27162_v4, %v23280_v60  ;;  %v5560_v37 = vadd.f32 %v23175_v24, %v5230_v61  ;;  %v18168_v38 = vpop.f32.mrf.mxu1  ;;  %v6352_v51 = vld [vmem:[#allocation3 + $0x39] sm:$0xff]  ;;  %v6353_v56 = vld [vmem:[#allocation3 + $0x41] sm:$0xff]  ;;  %v27165_v11 = vld [vmem:[#allocation69_spill] sm:$0xff] }
 0x4bc   :  { %v5233_v52 = vadd.f32 %v27164_v22, %v27163_v42  ;;  %v6323_v26 = vld [vmem:[#allocation3 + $0x40] sm:$0xff]  ;;  %18285 = vmatprep.subr.mxu0 %v14508_v40  ;;  %18336 = vmatprep.subr.mxu1 %v14537_v16  ;;  %v6276_v1 = vmax.f32 %v6250_v7, 0.0  ;;  %v6249_v19 = vadd.f32 %v23233_v54, %v6216_v49  ;;  %v5888_v24 = vadd.f32 %v23308_v0, %v5558_v12  ;;  %v6324_v60 = vld [vmem:[#allocation3 + $0x48] sm:$0xff]  ;;  %v27166_v47 = vld [vmem:[#allocation58_spill] sm:$0xff] }
 0x4bd   :  { %6300 = vst.msk [vmem:[#allocation3 + $0x60] sm:$0xff] %vm6287_vm4, %v6273_v21  ;;  %v6219_v35 = vadd.f32 %v18168_v38, %v5889_v31  ;;  %18207 = vmatmul.mubr.msk.f32.gmra.mxu0 %vm6287_vm4, %v6352_v51  ;;  %18258 = vmatprep.mubr.msk.f32.mxu1 %vm6287_vm4, %v6323_v26  ;;  %v4904_v62 = vadd.f32 %v27165_v11, %v4574_v48  ;;  %v6153_v9 = vpop.f32.mrf.mxu1  ;;  %v18130_v48 = vpop.f32.mrf.mxu0  ;;  %v27169_v32 = vld [vmem:[#allocation61_spill] sm:$0xff]  ;;  %v6326_v10 = vld [vmem:[#allocation3 + $0x58] sm:$0xff] }
 0x4be   :  { %v5232_v36 = vadd.f32 %v27166_v47, %v4902_v39  ;;  %18209 = vmatprep.mubr.msk.f32.mxu0 %vm6287_vm4, %v6353_v56  ;;  %18259 = vmatmul.mubr.msk.f32.gmra.mxu1 %vm6287_vm4, %v6324_v60  ;;  %v5891_v0 = vadd.f32 %v23332_v20, %v5561_v23  ;;  %v5563_v43 = vadd.f32 %v23180_v30, %v5233_v52  ;;  %v6275_v2 = vmax.f32 %v6249_v19, 0.0  ;;  %v27171_v39 = vld [vmem:[#allocation64_spill] sm:$0xff]  ;;  %v27172_v31 = vld [vmem:[#allocation71_spill] sm:$0xff]  ;;  %v27174_v19 = vld [vmem:[#allocation70_spill] sm:$0xff] }
 0x4bf   :  { %6303 = vst.msk [vmem:[#allocation3 + $0x78] sm:$0xff] %vm6287_vm4, %v6276_v1  ;;  %v6252_v6 = vadd.f32 %v23233_v54, %v6219_v35  ;;  %v6218_v63 = vadd.f32 %v6153_v9, %v5888_v24  ;;  %18286 = vmatpush3.msra.mxu0 %v14508_v40  ;;  %18337 = vmatpush3.msra.mxu1 %v14537_v16  ;;  %v18171_v59 = vpop.f32.mrf.mxu1  ;;  %v6354_v41 = vld [vmem:[#allocation3 + $0x49] sm:$0xff]  ;;  %v6355_v30 = vld [vmem:[#allocation3 + $0x51] sm:$0xff]  ;;  %v14535_v40 = vld [vmem:[%s27012_s5 + $0xc8] sm:$0xff]  ;;  %v5853_v49 = vpop.f32.mrf.mxu0 }
 0x4c0   :  { %v4576_v57 = vadd.f32 %v27167_v29, %v4246_v53  ;;  %v5235_v45 = vadd.f32 %v27169_v32, %v27168_v34  ;;  %v6325_v25 = vld [vmem:[#allocation3 + $0x50] sm:$0xff]  ;;  %v5890_v20 = vadd.f32 %v23361_v50, %v5560_v37  ;;  %18287 = vmatprep.subr.mxu0 %v14507_v13  ;;  %18338 = vmatprep.subr.mxu1 %v14536_v44  ;;  %v14506_v50 = vld [vmem:[%s27012_s5 + $0x90] sm:$0xff]  ;;  %v27173_v4 = vld [vmem:[#allocation67_spill] sm:$0xff] }
 0x4c1   :  { %v5562_v12 = vadd.f32 %v23185_v55, %v5232_v36  ;;  %6302 = vst.msk [vmem:[#allocation3 + $0x70] sm:$0xff] %vm6287_vm4, %v6275_v2  ;;  %v6278_v28 = vmax.f32 %v6252_v6, 0.0  ;;  %v6251_v3 = vadd.f32 %v23233_v54, %v6218_v63  ;;  %v6221_v18 = vadd.f32 %v18171_v59, %v5891_v0  ;;  %18210 = vmatmul.mubr.msk.f32.gmra.mxu0 %vm6287_vm4, %v6354_v41  ;;  %v27170_v55 = vld [vmem:[#allocation72_spill] sm:$0xff]  ;;  %v6163_v5 = vpop.f32.mrf.mxu1  ;;  %v14534_v1 = vld [vmem:[%s27012_s5 + $0xc0] sm:$0xff] }
 0x4c2   :  { %18261 = vmatprep.mubr.msk.f32.mxu1 %vm6287_vm4, %v6325_v25  ;;  %v4906_v16 = vadd.f32 %v27170_v55, %v4576_v57  ;;  %v5565_v33 = vadd.f32 %v23192_v27, %v5235_v45  ;;  %v5234_v23 = vadd.f32 %v27171_v39, %v4904_v62  ;;  %18212 = vmatprep.mubr.msk.f32.mxu0 %vm6287_vm4, %v6355_v30  ;;  %v6328_v26 = vld [vmem:[#allocation3 + $0x68] sm:$0xff]  ;;  %v14505_v56 = vld [vmem:[%s27012_s5 + $0x88] sm:$0xff]  ;;  %v18133_v62 = vpop.f32.mrf.mxu0  ;;  %v14504_v29 = vld [vmem:[%s27012_s5 + $0x80] sm:$0xff] }
 0x4c3   :  { %18262 = vmatmul.mubr.msk.f32.gmra.mxu1 %vm6287_vm4, %v6326_v10  ;;  %6305 = vst.msk [vmem:[#allocation3 + $0x88] sm:$0xff] %vm6287_vm4, %v6278_v28  ;;  %v6277_v61 = vmax.f32 %v6251_v3, 0.0  ;;  %v6254_v46 = vadd.f32 %v23233_v54, %v6221_v18  ;;  %v6220_v21 = vadd.f32 %v6163_v5, %v5890_v20  ;;  %v5893_v7 = vadd.f32 %v23387_v8, %v5563_v43  ;;  %v18174_v37 = vpop.f32.mrf.mxu1  ;;  %v23493_v57 = vld [vmem:[%s27012_s5 + $0x178] sm:$0xff] }
 0x4c4   :  { %18288 = vmatpush3.msra.mxu0 %v14507_v13  ;;  %18339 = vmatpush3.msra.mxu1 %v14536_v44  ;;  %v5564_v27 = vadd.f32 %v23199_v58, %v5234_v23  ;;  %v5237_v53 = vadd.f32 %v27173_v4, %v27172_v31  ;;  %v6356_v42 = vld [vmem:[#allocation3 + $0x59] sm:$0xff]  ;;  %v6357_v52 = vld [vmem:[#allocation3 + $0x61] sm:$0xff]  ;;  %v5892_v58 = vadd.f32 %v23413_v17, %v5562_v12  ;;  %v5863_v41 = vpop.f32.mrf.mxu0 }
 0x4c5   :  { %v6327_v22 = vld [vmem:[#allocation3 + $0x60] sm:$0xff]  ;;  %18289 = vmatprep.subr.mxu0 %v14506_v50  ;;  %18340 = vmatprep.subr.mxu1 %v14535_v40  ;;  %6304 = vst.msk [vmem:[#allocation3 + $0x80] sm:$0xff] %vm6287_vm4, %v6277_v61  ;;  %v6280_v38 = vmax.f32 %v6254_v46, 0.0  ;;  %v6253_v51 = vadd.f32 %v23233_v54, %v6220_v21  ;;  %v6223_v8 = vadd.f32 %v18174_v37, %v5893_v7  ;;  %v6173_v24 = vpop.f32.mrf.mxu1 }
 0x4c6   :  { %18213 = vmatmul.mubr.msk.f32.gmra.mxu0 %vm6287_vm4, %v6356_v42  ;;  %18264 = vmatprep.mubr.msk.f32.mxu1 %vm6287_vm4, %v6327_v22  ;;  %v5236_v35 = vadd.f32 %v27174_v19, %v4906_v16  ;;  %v5895_v60 = vadd.f32 %v18130_v48, %v5565_v33  ;;  %v5567_v13 = vadd.f32 %v23206_v15, %v5237_v53  ;;  %v6330_v48 = vld [vmem:[#allocation3 + $0x78] sm:$0xff]  ;;  %v7152_v53 = vld [vmem:[#allocation3 + $0xd] sm:$0xff]  ;;  %v6858_v42 = vld [vmem:[#allocation3 + $0x2] sm:$0xff] }
 0x4c7   :  { %18215 = vmatprep.mubr.msk.f32.mxu0 %vm6287_vm4, %v6357_v52  ;;  %18265 = vmatmul.mubr.msk.f32.gmra.mxu1 %vm6287_vm4, %v6328_v26  ;;  %6307 = vst.msk [vmem:[#allocation3 + $0x98] sm:$0xff] %vm6287_vm4, %v6280_v38  ;;  %v6279_v17 = vmax.f32 %v6253_v51, 0.0  ;;  %v6256_v44 = vadd.f32 %v23233_v54, %v6223_v8  ;;  %v6222_v11 = vadd.f32 %v6173_v24, %v5892_v58  ;;  %v18177_v47 = vpop.f32.mrf.mxu1  ;;  %v7153_v22 = vld [vmem:[#allocation3 + $0x15] sm:$0xff]  ;;  %v14600_v52 = vld [vmem:[%s27012_s5 + $0x170] sm:$0xff]  ;;  %v7154_v38 = vld [vmem:[#allocation3 + $0x1d] sm:$0xff] }
 0x4c8   :  { %18290 = vmatpush3.msra.mxu0 %v14506_v50  ;;  %18341 = vmatpush3.msra.mxu1 %v14535_v40  ;;  %v6358_v36 = vld [vmem:[#allocation3 + $0x69] sm:$0xff]  ;;  %v5894_v0 = vadd.f32 %v5853_v49, %v5564_v27  ;;  %v6359_v43 = vld [vmem:[#allocation3 + $0x71] sm:$0xff]  ;;  %v5566_v2 = vadd.f32 %v23214_v14, %v5236_v35  ;;  %v6225_v63 = vadd.f32 %v18177_v47, %v5895_v60  ;;  %v23541_v19 = vld [vmem:[#allocation3 + $0x1a] sm:$0xff] }
 0x4c9   :  { %v6329_v9 = vld [vmem:[#allocation3 + $0x70] sm:$0xff]  ;;  %18291 = vmatprep.subr.mxu0 %v14505_v56  ;;  %18342 = vmatprep.subr.mxu1 %v14534_v1  ;;  %6306 = vst.msk [vmem:[#allocation3 + $0x90] sm:$0xff] %vm6287_vm4, %v6279_v17  ;;  %v6282_v15 = vmax.f32 %v6256_v44, 0.0  ;;  %v6255_v6 = vadd.f32 %v23233_v54, %v6222_v11  ;;  %v6183_v14 = vpop.f32.mrf.mxu1  ;;  %v5897_v59 = vadd.f32 %v18133_v62, %v5567_v13  ;;  %v14570_v8 = vld [vmem:[%s27012_s5 + $0x130] sm:$0xff]  ;;  %v14569_v35 = vld [vmem:[%s27012_s5 + $0x128] sm:$0xff] }
 0x4ca   :  { %18216 = vmatmul.mubr.msk.f32.gmra.mxu0 %vm6287_vm4, %v6358_v36  ;;  %18267 = vmatprep.mubr.msk.f32.mxu1 %vm6287_vm4, %v6329_v9  ;;  %v6258_v32 = vadd.f32 %v23233_v54, %v6225_v63  ;;  %v6224_v45 = vadd.f32 %v6183_v14, %v5894_v0  ;;  %v5896_v10 = vadd.f32 %v5863_v41, %v5566_v2  ;;  %v6332_v50 = vld [vmem:[#allocation3 + $0x88] sm:$0xff]  ;;  %v14571_v40 = vld [vmem:[%s27012_s5 + $0x138] sm:$0xff]  ;;  %v14598_v13 = vld [vmem:[%s27012_s5 + $0x160] sm:$0xff] }
 0x4cb   :  { %18218 = vmatprep.mubr.msk.f32.mxu0 %vm6287_vm4, %v6359_v43  ;;  %18268 = vmatmul.mubr.msk.f32.gmra.mxu1 %vm6287_vm4, %v6330_v48  ;;  %6309 = vst.msk [vmem:[#allocation3 + $0xa8] sm:$0xff] %vm6287_vm4, %v6282_v15  ;;  %v6281_v34 = vmax.f32 %v6255_v6, 0.0  ;;  %v18180_v25 = vpop.f32.mrf.mxu1  ;;  %v6859_v51 = vld [vmem:[#allocation3 + $0xa] sm:$0xff]  ;;  %v6860_v58 = vld [vmem:[#allocation3 + $0x12] sm:$0xff]  ;;  %v23548_v24 = vld [vmem:[#allocation3 + $0x22] sm:$0xff] }
 0x4cc   :  { %18292 = vmatpush3.msra.mxu0 %v14505_v56  ;;  %18343 = vmatpush3.msra.mxu1 %v14534_v1  ;;  %v6360_v20 = vld [vmem:[#allocation3 + $0x79] sm:$0xff]  ;;  %v6361_v12 = vld [vmem:[#allocation3 + $0x81] sm:$0xff]  ;;  %v6284_v28 = vmax.f32 %v6258_v32, 0.0  ;;  %v6257_v3 = vadd.f32 %v23233_v54, %v6224_v45  ;;  %v6227_v18 = vadd.f32 %v18180_v25, %v5897_v59  ;;  %v7156_v1 = vld [vmem:[#allocation3 + $0x2d] sm:$0xff] }
 0x4cd   :  { %v6331_v30 = vld [vmem:[#allocation3 + $0x80] sm:$0xff]  ;;  %18293 = vmatprep.subr.mxu0 %v14504_v29  ;;  %18426 = vmatprep.subr.mxu1 %v23493_v57  ;;  %6308 = vst.msk [vmem:[#allocation3 + $0xa0] sm:$0xff] %vm6287_vm4, %v6281_v34  ;;  %v6193_v55 = vpop.f32.mrf.mxu1  ;;  %v7157_v60 = vld [vmem:[#allocation3 + $0x35] sm:$0xff]  ;;  %v23557_v44 = vld [vmem:[#allocation3 + $0x2a] sm:$0xff] }
 0x4ce   :  { %18219 = vmatmul.mubr.msk.f32.gmra.mxu0 %vm6287_vm4, %v6360_v20  ;;  %18270 = vmatprep.mubr.msk.f32.mxu1 %vm6287_vm4, %v6331_v30  ;;  %6311 = vst.msk [vmem:[#allocation3 + $0xb8] sm:$0xff] %vm6287_vm4, %v6284_v28  ;;  %v6283_v16 = vmax.f32 %v6257_v3, 0.0  ;;  %v6260_v33 = vadd.f32 %v23233_v54, %v6227_v18  ;;  %v6226_v39 = vadd.f32 %v6193_v55, %v5896_v10  ;;  %v6334_v7 = vld [vmem:[#allocation3 + $0x98] sm:$0xff]  ;;  %v7155_v26 = vld [vmem:[#allocation3 + $0x25] sm:$0xff]  ;;  %v14597_v36 = vld [vmem:[%s27012_s5 + $0x158] sm:$0xff] }
 0x4cf   :  { %18221 = vmatprep.mubr.msk.f32.mxu0 %vm6287_vm4, %v6361_v12  ;;  %18271 = vmatmul.mubr.msk.f32.gmra.mxu1 %vm6287_vm4, %v6332_v50  ;;  %v14599_v56 = vld [vmem:[%s27012_s5 + $0x168] sm:$0xff]  ;;  %v14568_v11 = vld [vmem:[%s27012_s5 + $0x120] sm:$0xff]  ;;  %v7160_v9 = vld [vmem:[#allocation3 + $0x4d] sm:$0xff] }
 0x4d0   :  { %18294 = vmatpush3.msra.mxu0 %v14504_v29  ;;  %v6362_v23 = vld [vmem:[#allocation3 + $0x89] sm:$0xff]  ;;  %v6363_v61 = vld [vmem:[#allocation3 + $0x91] sm:$0xff]  ;;  %6310 = vst.msk [vmem:[#allocation3 + $0xb0] sm:$0xff] %vm6287_vm4, %v6283_v16  ;;  %v6286_v46 = vmax.f32 %v6260_v33, 0.0  ;;  %v6259_v21 = vadd.f32 %v23233_v54, %v6226_v39  ;;  %v7158_v17 = vld [vmem:[#allocation3 + $0x3d] sm:$0xff] }
 0x4d1   :  { %v6333_v5 = vld [vmem:[#allocation3 + $0x90] sm:$0xff]  ;;  %18377 = vmatprep.subr.mxu0 %v14571_v40  ;;  %v7159_v47 = vld [vmem:[#allocation3 + $0x45] sm:$0xff]  ;;  %v23573_v0 = vld [vmem:[#allocation3 + $0x3a] sm:$0xff] }
 0x4d2   :  { %18222 = vmatmul.mubr.msk.f32.gmra.mxu0 %vm6287_vm4, %v6362_v23  ;;  %18273 = vmatprep.mubr.msk.f32.mxu1 %vm6287_vm4, %v6333_v5  ;;  %6314 = vst.msk [vmem:[#allocation3 + $0xc8] sm:$0xf] %vm6313_vm5, %v6286_v46  ;;  %v6285_v49 = vmax.f32 %v6259_v21, 0.0  ;;  %v6336_v54 = vld [vmem:[#allocation3 + $0xa8] sm:$0xff]  ;;  %v23564_v62 = vld [vmem:[#allocation3 + $0x32] sm:$0xff]  ;;  %v7162_v63 = vld [vmem:[#allocation3 + $0x5d] sm:$0xff] }
 0x4d3   :  { %18224 = vmatprep.mubr.msk.f32.mxu0 %vm6287_vm4, %v6363_v61  ;;  %18274 = vmatmul.mubr.msk.f32.gmra.mxu1 %vm6287_vm4, %v6334_v7  ;;  %v14567_v43 = vld [vmem:[%s27012_s5 + $0x118] sm:$0xff]  ;;  %v23580_v2 = vld [vmem:[#allocation3 + $0x42] sm:$0xff]  ;;  %v23605_v45 = vld [vmem:[#allocation3 + $0x5a] sm:$0xff] }
 0x4d4   :  { %v6364_v27 = vld [vmem:[#allocation3 + $0x99] sm:$0xff]  ;;  %v6365_v4 = vld [vmem:[#allocation3 + $0xa1] sm:$0xff]  ;;  %6312 = vst.msk [vmem:[#allocation3 + $0xc0] sm:$0xff] %vm6287_vm4, %v6285_v49  ;;  %v23589_v48 = vld [vmem:[#allocation3 + $0x4a] sm:$0xff] }
 0x4d5   :  { %v6335_v31 = vld [vmem:[#allocation3 + $0xa0] sm:$0xff]  ;;  %v7161_v15 = vld [vmem:[#allocation3 + $0x55] sm:$0xff]  ;;  %v14596_v6 = vld [vmem:[%s27012_s5 + $0x150] sm:$0xff] }
 0x4d6   :  { %18225 = vmatmul.mubr.msk.f32.gmra.mxu0 %vm6287_vm4, %v6364_v27  ;;  %18276 = vmatprep.mubr.msk.f32.mxu1 %vm6287_vm4, %v6335_v31  ;;  %v14566_v29 = vld [vmem:[%s27012_s5 + $0x110] sm:$0xff]  ;;  %v14595_v34 = vld [vmem:[%s27012_s5 + $0x148] sm:$0xff]  ;;  %v7165_v25 = vld [vmem:[#allocation3 + $0x75] sm:$0xff] }
 0x4d7   :  { %18227 = vmatprep.mubr.msk.f32.mxu0 %vm6287_vm4, %v6365_v4  ;;  %18277 = vmatmul.mubr.msk.f32.gmra.mxu1 %vm6287_vm4, %v6336_v54  ;;  %v6366_v37 = vld [vmem:[#allocation3 + $0xa9] sm:$0xff]  ;;  %v14565_v59 = vld [vmem:[%s27012_s5 + $0x108] sm:$0xff]  ;;  %v14594_v20 = vld [vmem:[%s27012_s5 + $0x140] sm:$0xff] }
 0x4d8   :  { %18344 = vmatprep.mubr.msk.f32.mxu1 %vm6287_vm4, %v7152_v53  ;;  %v7163_v14 = vld [vmem:[#allocation3 + $0x65] sm:$0xff]  ;;  %v7164_v32 = vld [vmem:[#allocation3 + $0x6d] sm:$0xff]  ;;  %v7166_v30 = vld [vmem:[#allocation3 + $0x7d] sm:$0xff] }
 0x4d9   :  { %v23612_v41 = vld [vmem:[#allocation3 + $0x62] sm:$0xff]  ;;  %v23621_v12 = vld [vmem:[#allocation3 + $0x6a] sm:$0xff]  ;;  %v14564_v28 = vld [vmem:[%s27012_s5 + $0x100] sm:$0xff] }
 0x4da   :  { %18228 = vmatmul.mubr.msk.f32.gmra.mxu0 %vm6287_vm4, %v6366_v37  ;;  %v23628_v3 = vld [vmem:[#allocation3 + $0x72] sm:$0xff]  ;;  %v7167_v18 = vld [vmem:[#allocation3 + $0x85] sm:$0xff]  ;;  %v7170_v39 = vld [vmem:[#allocation3 + $0x9d] sm:$0xff] }
 0x4db   :  { %18295 = vmatprep.mubr.msk.f32.mxu0 %vm6287_vm4, %v6858_v42  ;;  %18345 = vmatmul.mubr.msk.f32.vlgmr.msra.gmra.mxu1 %vm6287_vm4, %v7153_v22  ;;  %v14661_v10 = vld [vmem:[%s27012_s5 + $0x1f8] sm:$0xff]  ;;  %v23641_v55 = vld [vmem:[#allocation3 + $0x82] sm:$0xff]  ;;  %v23660_v21 = vld [vmem:[#allocation3 + $0x9a] sm:$0xff] }
 0x4dc   :  { %18347 = vmatprep.mubr.msk.f32.mxu1 %vm6287_vm4, %v7154_v38  ;;  %18427 = vmatpush3.msra.mxu1 %v23493_v57  ;;  %v23596_v57 = vld [vmem:[#allocation3 + $0x52] sm:$0xff]  ;;  %v23650_v23 = vld [vmem:[#allocation3 + $0x8a] sm:$0xff]  ;;  %v23664_v7 = vld [vmem:[#allocation3 + $0xa2] sm:$0xff] }
 0x4dd   :  { %18428 = vmatprep.subr.mxu1 %v14600_v52  ;;  %v7168_v50 = vld [vmem:[#allocation3 + $0x8d] sm:$0xff]  ;;  %v7169_v16 = vld [vmem:[#allocation3 + $0x95] sm:$0xff]  ;;  %v7171_v61 = vld [vmem:[#allocation3 + $0xa5] sm:$0xff] }
 0x4de   :  { %18296 = vmatmul.mubr.msk.f32.vlgmr.msra.gmra.mxu0 %vm6287_vm4, %v6859_v51  ;;  %18429 = vmatpush3.msra.mxu1 %v14600_v52  ;;  %v14631_v33 = vld [vmem:[%s27012_s5 + $0x1b8] sm:$0xff]  ;;  %v14660_v53 = vld [vmem:[%s27012_s5 + $0x1f0] sm:$0xff]  ;;  %v7742_v37 = vld [vmem:[#allocation3 + $0x1f] sm:$0xff] }
 0x4df   :  { %18298 = vmatprep.mubr.msk.f32.mxu0 %vm6287_vm4, %v6860_v58  ;;  %18348 = vmatmul.mubr.msk.f32.gmra.mxu1 %vm6287_vm4, %v7155_v26  ;;  %v23654_v5 = vld [vmem:[#allocation3 + $0x92] sm:$0xff]  ;;  %v23670_v31 = vld [vmem:[#allocation3 + $0xaa] sm:$0xff]  ;;  %v7448_v52 = vld [vmem:[#allocation3 + $0x1e] sm:$0xff] }
 0x4e0   :  { %18378 = vmatpush3.msra.mxu0 %v14571_v40  ;;  %18350 = vmatprep.mubr.msk.f32.mxu1 %vm6287_vm4, %v7156_v1  ;;  %v23637_v40 = vld [vmem:[#allocation3 + $0x7a] sm:$0xff]  ;;  %v7172_v46 = vld [vmem:[#allocation3 + $0xad] sm:$0xff] }
 0x4e1   :  { %18379 = vmatprep.subr.mxu0 %v14570_v8  ;;  %18430 = vmatprep.subr.mxu1 %v14599_v56  ;;  %v7173_v49 = vld [vmem:[#allocation3 + $0xb5] sm:$0xff]  ;;  %v14630_v22 = vld [vmem:[%s27012_s5 + $0x1b0] sm:$0xff]  ;;  %v14659_v51 = vld [vmem:[%s27012_s5 + $0x1e8] sm:$0xff] }
 0x4e2   :  { %18299 = vmatmul.mubr.msk.f32.gmra.mxu0 %vm6287_vm4, %v23541_v19  ;;  %18431 = vmatpush3.msra.mxu1 %v14599_v56  ;;  %v7740_v27 = vld [vmem:[#allocation3 + $0xf] sm:$0xff]  ;;  %v7741_v54 = vld [vmem:[#allocation3 + $0x17] sm:$0xff]  ;;  %v7743_v38 = vld [vmem:[#allocation3 + $0x27] sm:$0xff] }
 0x4e3   :  { %18301 = vmatprep.mubr.msk.f32.mxu0 %vm6287_vm4, %v23548_v24  ;;  %18351 = vmatmul.mubr.msk.f32.gmra.mxu1 %vm6287_vm4, %v7157_v60  ;;  %v7446_v4 = vld [vmem:[#allocation3 + $0xe] sm:$0xff]  ;;  %v7447_v42 = vld [vmem:[#allocation3 + $0x16] sm:$0xff]  ;;  %v7449_v58 = vld [vmem:[#allocation3 + $0x26] sm:$0xff] }
 0x4e4   :  { %18353 = vmatprep.mubr.msk.f32.mxu1 %vm6287_vm4, %v7158_v17  ;;  %18380 = vmatpush3.msra.mxu0 %v14570_v8  ;;  %v7744_v8 = vld [vmem:[#allocation3 + $0x2f] sm:$0xff]  ;;  %v14629_v26 = vld [vmem:[%s27012_s5 + $0x1a8] sm:$0xff]  ;;  %v7745_v1 = vld [vmem:[#allocation3 + $0x37] sm:$0xff] }
 0x4e5   :  { %18381 = vmatprep.subr.mxu0 %v14569_v35  ;;  %18432 = vmatprep.subr.mxu1 %v14598_v13  ;;  %v7450_v56 = vld [vmem:[#allocation3 + $0x2e] sm:$0xff]  ;;  %v7746_v60 = vld [vmem:[#allocation3 + $0x3f] sm:$0xff] }
 0x4e6   :  { %18302 = vmatmul.mubr.msk.f32.gmra.mxu0 %vm6287_vm4, %v23557_v44  ;;  %18433 = vmatpush3.msra.mxu1 %v14598_v13  ;;  %v7451_v13 = vld [vmem:[#allocation3 + $0x36] sm:$0xff] }
 0x4e7   :  { %18304 = vmatprep.mubr.msk.f32.mxu0 %vm6287_vm4, %v23564_v62  ;;  %18354 = vmatmul.mubr.msk.f32.gmra.mxu1 %vm6287_vm4, %v7159_v47  ;;  %v14628_v17 = vld [vmem:[%s27012_s5 + $0x1a0] sm:$0xff]  ;;  %v7747_v47 = vld [vmem:[#allocation3 + $0x47] sm:$0xff] }
 0x4e8   :  { %18356 = vmatprep.mubr.msk.f32.mxu1 %vm6287_vm4, %v7160_v9  ;;  %18382 = vmatpush3.msra.mxu0 %v14569_v35  ;;  %v14658_v35 = vld [vmem:[%s27012_s5 + $0x1e0] sm:$0xff]  ;;  %v7748_v9 = vld [vmem:[#allocation3 + $0x4f] sm:$0xff] }
 0x4e9   :  { %18383 = vmatprep.subr.mxu0 %v14568_v11  ;;  %18434 = vmatprep.subr.mxu1 %v14597_v36 }
 0x4ea   :  { %18305 = vmatmul.mubr.msk.f32.gmra.mxu0 %vm6287_vm4, %v23573_v0  ;;  %18435 = vmatpush3.msra.mxu1 %v14597_v36  ;;  %v14657_v36 = vld [vmem:[%s27012_s5 + $0x1d8] sm:$0xff] }
 0x4eb   :  { %18307 = vmatprep.mubr.msk.f32.mxu0 %vm6287_vm4, %v23580_v2  ;;  %18357 = vmatmul.mubr.msk.f32.gmra.mxu1 %vm6287_vm4, %v7161_v15  ;;  %v14627_v15 = vld [vmem:[%s27012_s5 + $0x198] sm:$0xff] }
 0x4ec   :  { %18359 = vmatprep.mubr.msk.f32.mxu1 %vm6287_vm4, %v7162_v63  ;;  %18384 = vmatpush3.msra.mxu0 %v14568_v11  ;;  %v7452_v11 = vld [vmem:[#allocation3 + $0x3e] sm:$0xff] }
 0x4ed   :  { %18385 = vmatprep.subr.mxu0 %v14567_v43  ;;  %18436 = vmatprep.subr.mxu1 %v14596_v6  ;;  %v7749_v63 = vld [vmem:[#allocation3 + $0x57] sm:$0xff] }
 0x4ee   :  { %18308 = vmatmul.mubr.msk.f32.gmra.mxu0 %vm6287_vm4, %v23589_v48  ;;  %18437 = vmatpush3.msra.mxu1 %v14596_v6  ;;  %v7454_v6 = vld [vmem:[#allocation3 + $0x4e] sm:$0xff] }
 0x4ef   :  { %18310 = vmatprep.mubr.msk.f32.mxu0 %vm6287_vm4, %v23596_v57  ;;  %18360 = vmatmul.mubr.msk.f32.gmra.mxu1 %vm6287_vm4, %v7163_v14  ;;  %v7750_v14 = vld [vmem:[#allocation3 + $0x5f] sm:$0xff] }
 0x4f0   :  { %18362 = vmatprep.mubr.msk.f32.mxu1 %vm6287_vm4, %v7164_v32  ;;  %18386 = vmatpush3.msra.mxu0 %v14567_v43  ;;  %v7453_v43 = vld [vmem:[#allocation3 + $0x46] sm:$0xff] }
 0x4f1   :  { %18387 = vmatprep.subr.mxu0 %v14566_v29  ;;  %18438 = vmatprep.subr.mxu1 %v14595_v34  ;;  %v14626_v32 = vld [vmem:[%s27012_s5 + $0x190] sm:$0xff] }
 0x4f2   :  { %18311 = vmatmul.mubr.msk.f32.gmra.mxu0 %vm6287_vm4, %v23605_v45  ;;  %18439 = vmatpush3.msra.mxu1 %v14595_v34  ;;  %v7455_v34 = vld [vmem:[#allocation3 + $0x56] sm:$0xff] }
 0x4f3   :  { %18313 = vmatprep.mubr.msk.f32.mxu0 %vm6287_vm4, %v23612_v41  ;;  %18363 = vmatmul.mubr.msk.f32.gmra.mxu1 %vm6287_vm4, %v7165_v25  ;;  %v7751_v25 = vld [vmem:[#allocation3 + $0x67] sm:$0xff] }
 0x4f4   :  { %18365 = vmatprep.mubr.msk.f32.mxu1 %vm6287_vm4, %v7166_v30  ;;  %18388 = vmatpush3.msra.mxu0 %v14566_v29  ;;  %v14656_v29 = vld [vmem:[%s27012_s5 + $0x1d0] sm:$0xff] }
 0x4f5   :  { %18389 = vmatprep.subr.mxu0 %v14565_v59  ;;  %18440 = vmatprep.subr.mxu1 %v14594_v20  ;;  %v7752_v30 = vld [vmem:[#allocation3 + $0x6f] sm:$0xff] }
 0x4f6   :  { %18314 = vmatmul.mubr.msk.f32.gmra.mxu0 %vm6287_vm4, %v23621_v12  ;;  %18441 = vmatpush3.msra.mxu1 %v14594_v20  ;;  %v14655_v20 = vld [vmem:[%s27012_s5 + $0x1c8] sm:$0xff] }
 0x4f7   :  { %18316 = vmatprep.mubr.msk.f32.mxu0 %vm6287_vm4, %v23628_v3  ;;  %18366 = vmatmul.mubr.msk.f32.gmra.mxu1 %vm6287_vm4, %v7167_v18  ;;  %v14625_v18 = vld [vmem:[%s27012_s5 + $0x188] sm:$0xff] }
 0x4f8   :  { %18368 = vmatprep.mubr.msk.f32.mxu1 %vm6287_vm4, %v7168_v50  ;;  %18390 = vmatpush3.msra.mxu0 %v14565_v59  ;;  %v7456_v59 = vld [vmem:[#allocation3 + $0x5e] sm:$0xff] }
 0x4f9   :  { %18391 = vmatprep.subr.mxu0 %v14564_v28  ;;  %18524 = vmatprep.subr.mxu1 %v14661_v10  ;;  %v7753_v50 = vld [vmem:[#allocation3 + $0x77] sm:$0xff] }
 0x4fa   :  { %18317 = vmatmul.mubr.msk.f32.gmra.mxu0 %vm6287_vm4, %v23637_v40 }
 0x4fb   :  { %18319 = vmatprep.mubr.msk.f32.mxu0 %vm6287_vm4, %v23641_v55  ;;  %18369 = vmatmul.mubr.msk.f32.gmra.mxu1 %vm6287_vm4, %v7169_v16  ;;  %v14654_v16 = vld [vmem:[%s27012_s5 + $0x1c0] sm:$0xff] }
 0x4fc   :  { %18371 = vmatprep.mubr.msk.f32.mxu1 %vm6287_vm4, %v7170_v39  ;;  %18392 = vmatpush3.msra.mxu0 %v14564_v28  ;;  %v7457_v28 = vld [vmem:[#allocation3 + $0x66] sm:$0xff]  ;;  %v7459_v39 = vld [vmem:[#allocation3 + $0x76] sm:$0xff] }
 0x4fd   :  { %18475 = vmatprep.subr.mxu0 %v14631_v33 }
 0x4fe   :  { %18320 = vmatmul.mubr.msk.f32.gmra.mxu0 %vm6287_vm4, %v23650_v23 }
 0x4ff   :  { %18322 = vmatprep.mubr.msk.f32.mxu0 %vm6287_vm4, %v23654_v5  ;;  %18372 = vmatmul.mubr.msk.f32.gmra.mxu1 %vm6287_vm4, %v7171_v61  ;;  %v7460_v61 = vld [vmem:[#allocation3 + $0x7e] sm:$0xff] }
 0x500   :  { %18374 = vmatprep.mubr.msk.f32.mxu1 %vm6287_vm4, %v7172_v46  ;;  %v7755_v46 = vld [vmem:[#allocation3 + $0x87] sm:$0xff] }
 0x502   :  { %18323 = vmatmul.mubr.msk.f32.gmra.mxu0 %vm6287_vm4, %v23660_v21 }
 0x503   :  { %18325 = vmatprep.mubr.msk.f32.mxu0 %vm6287_vm4, %v23664_v7  ;;  %18375 = vmatmul.mubr.msk.f32.gmra.mxu1 %vm6287_vm4, %v7173_v49  ;;  %v14624_v49 = vld [vmem:[%s27012_s5 + $0x180] sm:$0xff] }
 0x504   :  { %18442 = vmatprep.mubr.msk.f32.mxu1 %vm6287_vm4, %v7740_v27  ;;  %v7756_v27 = vld [vmem:[#allocation3 + $0x8f] sm:$0xff] }
 0x506   :  { %18326 = vmatmul.mubr.msk.f32.gmra.mxu0 %vm6287_vm4, %v23670_v31 }
 0x507   :  { %18393 = vmatprep.mubr.msk.f32.mxu0 %vm6287_vm4, %v7446_v4  ;;  %18443 = vmatmul.mubr.msk.f32.vlgmr.msra.gmra.mxu1 %vm6287_vm4, %v7741_v54  ;;  %v7461_v4 = vld [vmem:[#allocation3 + $0x86] sm:$0xff]  ;;  %v27175_v54 = vmov 0.0  }
 0x508   :  { %18445 = vmatprep.mubr.msk.f32.mxu1 %vm6287_vm4, %v7742_v37  ;;  %18525 = vmatpush3.msra.mxu1 %v14661_v10  ;;  %v7458_v10 = vld [vmem:[#allocation3 + $0x6e] sm:$0xff]  ;;  %v7757_v37 = vld [vmem:[#allocation3 + $0x97] sm:$0xff] }
 0x509   :  { %18526 = vmatprep.subr.mxu1 %v14660_v53 }
 0x50a   :  { %18394 = vmatmul.mubr.msk.f32.vlgmr.msra.gmra.mxu0 %vm6287_vm4, %v7447_v42  ;;  %18527 = vmatpush3.msra.mxu1 %v14660_v53  ;;  %v7462_v53 = vld [vmem:[#allocation3 + $0x8e] sm:$0xff] }
 0x50b   :  { %18396 = vmatprep.mubr.msk.f32.mxu0 %vm6287_vm4, %v7448_v52  ;;  %18446 = vmatmul.mubr.msk.f32.gmra.mxu1 %vm6287_vm4, %v7743_v38  ;;  %v14691_v42 = vld [vmem:[%s27012_s5 + $0x238] sm:$0xff]  ;;  %v7464_v38 = vld [vmem:[#allocation3 + $0x9e] sm:$0xff] }
 0x50c   :  { %18476 = vmatpush3.msra.mxu0 %v14631_v33  ;;  %18448 = vmatprep.mubr.msk.f32.mxu1 %vm6287_vm4, %v7744_v8  ;;  %v7754_v33 = vld [vmem:[#allocation3 + $0x7f] sm:$0xff]  ;;  %v7463_v52 = vld [vmem:[#allocation3 + $0x96] sm:$0xff] }
 0x50d   :  { %18477 = vmatprep.subr.mxu0 %v14630_v22  ;;  %18528 = vmatprep.subr.mxu1 %v14659_v51  ;;  %v7760_v8 = vld [vmem:[#allocation3 + $0xaf] sm:$0xff] }
 0x50e   :  { %18397 = vmatmul.mubr.msk.f32.gmra.mxu0 %vm6287_vm4, %v7449_v58  ;;  %18529 = vmatpush3.msra.mxu1 %v14659_v51  ;;  %v7759_v51 = vld [vmem:[#allocation3 + $0xa7] sm:$0xff] }
 0x50f   :  { %18399 = vmatprep.mubr.msk.f32.mxu0 %vm6287_vm4, %v7450_v56  ;;  %18449 = vmatmul.mubr.msk.f32.gmra.mxu1 %vm6287_vm4, %v7745_v1  ;;  %v7465_v58 = vld [vmem:[#allocation3 + $0xa6] sm:$0xff]  ;;  %v7761_v56 = vld [vmem:[#allocation3 + $0xb7] sm:$0xff] }
 0x510   :  { %18451 = vmatprep.mubr.msk.f32.mxu1 %vm6287_vm4, %v7746_v60  ;;  %18478 = vmatpush3.msra.mxu0 %v14630_v22  ;;  %v7758_v22 = vld [vmem:[#allocation3 + $0x9f] sm:$0xff] }
 0x511   :  { %18479 = vmatprep.subr.mxu0 %v14629_v26  ;;  %18530 = vmatprep.subr.mxu1 %v14658_v35  ;;  %v8328_v1 = vld [vmem:[#allocation3 + $0x1b] sm:$0xff]  ;;  %v8329_v60 = vld [vmem:[#allocation3 + $0x23] sm:$0xff] }
 0x512   :  { %18400 = vmatmul.mubr.msk.f32.gmra.mxu0 %vm6287_vm4, %v7451_v13  ;;  %18531 = vmatpush3.msra.mxu1 %v14658_v35  ;;  %v7467_v35 = vld [vmem:[#allocation3 + $0xb6] sm:$0xff]  ;;  %v8330_v13 = vld [vmem:[#allocation3 + $0x2b] sm:$0xff] }
 0x513   :  { %18402 = vmatprep.mubr.msk.f32.mxu0 %vm6287_vm4, %v7452_v11  ;;  %18452 = vmatmul.mubr.msk.f32.gmra.mxu1 %vm6287_vm4, %v7747_v47  ;;  %v14690_v11 = vld [vmem:[%s27012_s5 + $0x230] sm:$0xff]  ;;  %v8332_v47 = vld [vmem:[#allocation3 + $0x3b] sm:$0xff] }
 0x514   :  { %18454 = vmatprep.mubr.msk.f32.mxu1 %vm6287_vm4, %v7748_v9  ;;  %18480 = vmatpush3.msra.mxu0 %v14629_v26  ;;  %v7466_v26 = vld [vmem:[#allocation3 + $0xae] sm:$0xff]  ;;  %v8337_v9 = vld [vmem:[#allocation3 + $0x63] sm:$0xff] }
 0x515   :  { %18481 = vmatprep.subr.mxu0 %v14628_v17  ;;  %18532 = vmatprep.subr.mxu1 %v14657_v36 }
 0x516   :  { %18403 = vmatmul.mubr.msk.f32.gmra.mxu0 %vm6287_vm4, %v7453_v43  ;;  %18533 = vmatpush3.msra.mxu1 %v14657_v36  ;;  %v8335_v36 = vld [vmem:[#allocation3 + $0x53] sm:$0xff] }
 0x517   :  { %18405 = vmatprep.mubr.msk.f32.mxu0 %vm6287_vm4, %v7454_v6  ;;  %18455 = vmatmul.mubr.msk.f32.gmra.mxu1 %vm6287_vm4, %v7749_v63  ;;  %v8339_v43 = vld [vmem:[#allocation3 + $0x73] sm:$0xff]  ;;  %v8345_v63 = vld [vmem:[#allocation3 + $0xa3] sm:$0xff] }
 0x518   :  { %18457 = vmatprep.mubr.msk.f32.mxu1 %vm6287_vm4, %v7750_v14  ;;  %18482 = vmatpush3.msra.mxu0 %v14628_v17  ;;  %v8331_v17 = vld [vmem:[#allocation3 + $0x33] sm:$0xff]  ;;  %v8349_v14 = vld [vmem:[#allocation3 + $0xc3] sm:$0xff] }
 0x519   :  { %18483 = vmatprep.subr.mxu0 %v14627_v15  ;;  %18534 = vmatprep.subr.mxu1 %v14656_v29  ;;  %v8343_v6 = vld [vmem:[#allocation3 + $0x93] sm:$0xff] }
 0x51a   :  { %18406 = vmatmul.mubr.msk.f32.gmra.mxu0 %vm6287_vm4, %v7455_v34  ;;  %18535 = vmatpush3.msra.mxu1 %v14656_v29  ;;  %v8054_v29 = vld [vmem:[#allocation3 + $0xba] sm:$0xff]  ;;  %v8623_v34 = vld [vmem:[#allocation3 + $0x24] sm:$0xff] }
 0x51b   :  { %18408 = vmatprep.mubr.msk.f32.mxu0 %vm6287_vm4, %v7456_v59  ;;  %18458 = vmatmul.mubr.msk.f32.gmra.mxu1 %vm6287_vm4, %v7751_v25  ;;  %v8625_v59 = vld [vmem:[#allocation3 + $0x34] sm:$0xff]  ;;  %v8626_v25 = vld [vmem:[#allocation3 + $0x3c] sm:$0xff] }
 0x51c   :  { %18460 = vmatprep.mubr.msk.f32.mxu1 %vm6287_vm4, %v7752_v30  ;;  %18484 = vmatpush3.msra.mxu0 %v14627_v15  ;;  %v8341_v15 = vld [vmem:[#allocation3 + $0x83] sm:$0xff]  ;;  %v8628_v30 = vld [vmem:[#allocation3 + $0x4c] sm:$0xff] }
 0x51d   :  { %18485 = vmatprep.subr.mxu0 %v14626_v32  ;;  %18536 = vmatprep.subr.mxu1 %v14655_v20 }
 0x51e   :  { %18409 = vmatmul.mubr.msk.f32.gmra.mxu0 %vm6287_vm4, %v7457_v28  ;;  %18537 = vmatpush3.msra.mxu1 %v14655_v20  ;;  %v8627_v20 = vld [vmem:[#allocation3 + $0x44] sm:$0xff]  ;;  %v8629_v28 = vld [vmem:[#allocation3 + $0x54] sm:$0xff] }
 0x51f   :  { %18411 = vmatprep.mubr.msk.f32.mxu0 %vm6287_vm4, %v7458_v10  ;;  %18461 = vmatmul.mubr.msk.f32.gmra.mxu1 %vm6287_vm4, %v7753_v50 }
 0x520   :  { %18463 = vmatprep.mubr.msk.f32.mxu1 %vm6287_vm4, %v7754_v33  ;;  %18486 = vmatpush3.msra.mxu0 %v14626_v32  ;;  %v8624_v32 = vld [vmem:[#allocation3 + $0x2c] sm:$0xff] }
 0x521   :  { %18487 = vmatprep.subr.mxu0 %v14625_v18  ;;  %18538 = vmatprep.subr.mxu1 %v14654_v16 }
 0x522   :  { %18412 = vmatmul.mubr.msk.f32.gmra.mxu0 %vm6287_vm4, %v7459_v39  ;;  %18539 = vmatpush3.msra.mxu1 %v14654_v16  ;;  %v8631_v16 = vld [vmem:[#allocation3 + $0x64] sm:$0xff]  ;;  %v8632_v39 = vld [vmem:[#allocation3 + $0x6c] sm:$0xff] }
 0x523   :  { %18414 = vmatprep.mubr.msk.f32.mxu0 %vm6287_vm4, %v7460_v61  ;;  %18464 = vmatmul.mubr.msk.f32.gmra.mxu1 %vm6287_vm4, %v7755_v46 }
 0x524   :  { %18466 = vmatprep.mubr.msk.f32.mxu1 %vm6287_vm4, %v7756_v27  ;;  %18488 = vmatpush3.msra.mxu0 %v14625_v18  ;;  %v8630_v18 = vld [vmem:[#allocation3 + $0x5c] sm:$0xff] }
 0x525   :  { %18489 = vmatprep.subr.mxu0 %v14624_v49  ;;  %18622 = vmatprep.subr.mxu1 %v27175_v54 }
 0x526   :  { %18415 = vmatmul.mubr.msk.f32.gmra.mxu0 %vm6287_vm4, %v7461_v4  ;;  %v8633_v4 = vld [vmem:[#allocation3 + $0x74] sm:$0xff] }
 0x527   :  { %18417 = vmatprep.mubr.msk.f32.mxu0 %vm6287_vm4, %v7462_v53  ;;  %18467 = vmatmul.mubr.msk.f32.gmra.mxu1 %vm6287_vm4, %v7757_v37  ;;  %v8634_v37 = vld [vmem:[#allocation3 + $0x7c] sm:$0xff] }
 0x528   :  { %18469 = vmatprep.mubr.msk.f32.mxu1 %vm6287_vm4, %v7758_v22  ;;  %18490 = vmatpush3.msra.mxu0 %v14624_v49 }
 0x529   :  { %18573 = vmatprep.subr.mxu0 %v14691_v42 }
 0x52a   :  { %18418 = vmatmul.mubr.msk.f32.gmra.mxu0 %vm6287_vm4, %v7463_v52 }
 0x52b   :  { %18420 = vmatprep.mubr.msk.f32.mxu0 %vm6287_vm4, %v7464_v38  ;;  %18470 = vmatmul.mubr.msk.f32.gmra.mxu1 %vm6287_vm4, %v7759_v51  ;;  %v8635_v51 = vld [vmem:[#allocation3 + $0x84] sm:$0xff] }
 0x52c   :  { %18472 = vmatprep.mubr.msk.f32.mxu1 %vm6287_vm4, %v7760_v8 }
 0x52e   :  { %18421 = vmatmul.mubr.msk.f32.gmra.mxu0 %vm6287_vm4, %v7465_v58  ;;  %v8636_v58 = vld [vmem:[#allocation3 + $0x8c] sm:$0xff] }
 0x52f   :  { %18423 = vmatprep.mubr.msk.f32.mxu0 %vm6287_vm4, %v7466_v26  ;;  %18473 = vmatmul.mubr.msk.f32.gmra.mxu1 %vm6287_vm4, %v7761_v56 }
 0x530   :  { %18540 = vmatprep.mubr.msk.f32.mxu1 %vm6287_vm4, %v8328_v1 }
 0x532   :  { %18424 = vmatmul.mubr.msk.f32.gmra.mxu0 %vm6287_vm4, %v7467_v35 }
 0x533   :  { %18491 = vmatprep.mubr.msk.f32.mxu0 %vm6287_vm4, %v23541_v19  ;;  %18541 = vmatmul.mubr.msk.f32.vlgmr.msra.gmra.mxu1 %vm6287_vm4, %v8329_v60  ;;  %v8333_v19 = vld [vmem:[#allocation3 + $0x43] sm:$0xff]  ;;  %v8637_v60 = vld [vmem:[#allocation3 + $0x94] sm:$0xff] }
 0x534   :  { %18543 = vmatprep.mubr.msk.f32.mxu1 %vm6287_vm4, %v8330_v13 }
 0x536   :  { %18492 = vmatmul.mubr.msk.f32.vlgmr.msra.gmra.mxu0 %vm6287_vm4, %v23548_v24  ;;  %v14689_v24 = vld [vmem:[%s27012_s5 + $0x228] sm:$0xff] }
 0x537   :  { %18494 = vmatprep.mubr.msk.f32.mxu0 %vm6287_vm4, %v23557_v44  ;;  %18544 = vmatmul.mubr.msk.f32.gmra.mxu1 %vm6287_vm4, %v8331_v17  ;;  %v8334_v44 = vld [vmem:[#allocation3 + $0x4b] sm:$0xff]  ;;  %v8638_v17 = vld [vmem:[#allocation3 + $0x9c] sm:$0xff] }
 0x538   :  { %18574 = vmatpush3.msra.mxu0 %v14691_v42  ;;  %18546 = vmatprep.mubr.msk.f32.mxu1 %vm6287_vm4, %v8332_v47 }
 0x539   :  { %18575 = vmatprep.subr.mxu0 %v14690_v11 }
 0x53a   :  { %18495 = vmatmul.mubr.msk.f32.gmra.mxu0 %vm6287_vm4, %v23564_v62  ;;  %v14688_v62 = vld [vmem:[%s27012_s5 + $0x220] sm:$0xff] }
 0x53b   :  { %18497 = vmatprep.mubr.msk.f32.mxu0 %vm6287_vm4, %v23573_v0  ;;  %18547 = vmatmul.mubr.msk.f32.gmra.mxu1 %vm6287_vm4, %v8333_v19  ;;  %v8336_v0 = vld [vmem:[#allocation3 + $0x5b] sm:$0xff] }
 0x53c   :  { %18549 = vmatprep.mubr.msk.f32.mxu1 %vm6287_vm4, %v8334_v44  ;;  %18576 = vmatpush3.msra.mxu0 %v14690_v11 }
 0x53d   :  { %18577 = vmatprep.subr.mxu0 %v14689_v24 }
 0x53e   :  { %18498 = vmatmul.mubr.msk.f32.gmra.mxu0 %vm6287_vm4, %v23580_v2  ;;  %v14687_v2 = vld [vmem:[%s27012_s5 + $0x218] sm:$0xff] }
 0x53f   :  { %18500 = vmatprep.mubr.msk.f32.mxu0 %vm6287_vm4, %v23589_v48  ;;  %18550 = vmatmul.mubr.msk.f32.gmra.mxu1 %vm6287_vm4, %v8335_v36  ;;  %v8338_v48 = vld [vmem:[#allocation3 + $0x6b] sm:$0xff] }
 0x540   :  { %18552 = vmatprep.mubr.msk.f32.mxu1 %vm6287_vm4, %v8336_v0  ;;  %18578 = vmatpush3.msra.mxu0 %v14689_v24  ;;  %v8639_v24 = vld [vmem:[#allocation3 + $0xa4] sm:$0xff]  ;;  %v8640_v36 = vld [vmem:[#allocation3 + $0xac] sm:$0xff] }
 0x541   :  { %18579 = vmatprep.subr.mxu0 %v14688_v62 }
 0x542   :  { %18501 = vmatmul.mubr.msk.f32.gmra.mxu0 %vm6287_vm4, %v23596_v57  ;;  %v14686_v57 = vld [vmem:[%s27012_s5 + $0x210] sm:$0xff] }
 0x543   :  { %18503 = vmatprep.mubr.msk.f32.mxu0 %vm6287_vm4, %v23605_v45  ;;  %18553 = vmatmul.mubr.msk.f32.gmra.mxu1 %vm6287_vm4, %v8337_v9  ;;  %v8340_v45 = vld [vmem:[#allocation3 + $0x7b] sm:$0xff] }
 0x544   :  { %18555 = vmatprep.mubr.msk.f32.mxu1 %vm6287_vm4, %v8338_v48  ;;  %18580 = vmatpush3.msra.mxu0 %v14688_v62 }
 0x545   :  { %18581 = vmatprep.subr.mxu0 %v14687_v2 }
 0x546   :  { %18504 = vmatmul.mubr.msk.f32.gmra.mxu0 %vm6287_vm4, %v23612_v41  ;;  %v14685_v41 = vld [vmem:[%s27012_s5 + $0x208] sm:$0xff] }
 0x547   :  { %18506 = vmatprep.mubr.msk.f32.mxu0 %vm6287_vm4, %v23621_v12  ;;  %18556 = vmatmul.mubr.msk.f32.gmra.mxu1 %vm6287_vm4, %v8339_v43  ;;  %v8342_v12 = vld [vmem:[#allocation3 + $0x8b] sm:$0xff]  ;;  %v8642_v43 = vld [vmem:[#allocation3 + $0xbc] sm:$0xff] }
 0x548   :  { %18558 = vmatprep.mubr.msk.f32.mxu1 %vm6287_vm4, %v8340_v45  ;;  %18582 = vmatpush3.msra.mxu0 %v14687_v2  ;;  %v8641_v2 = vld [vmem:[#allocation3 + $0xb4] sm:$0xff] }
 0x549   :  { %18583 = vmatprep.subr.mxu0 %v14686_v57 }
 0x54a   :  { %18507 = vmatmul.mubr.msk.f32.gmra.mxu0 %vm6287_vm4, %v23628_v3  ;;  %v14684_v3 = vld [vmem:[%s27012_s5 + $0x200] sm:$0xff] }
 0x54b   :  { %18509 = vmatprep.mubr.msk.f32.mxu0 %vm6287_vm4, %v23637_v40  ;;  %18559 = vmatmul.mubr.msk.f32.gmra.mxu1 %vm6287_vm4, %v8341_v15  ;;  %v8344_v40 = vld [vmem:[#allocation3 + $0x9b] sm:$0xff] }
 0x54c   :  { %18561 = vmatprep.mubr.msk.f32.mxu1 %vm6287_vm4, %v8342_v12  ;;  %18584 = vmatpush3.msra.mxu0 %v14686_v57  ;;  %v14726_v12 = vld [vmem:[%s27014_s7 + $0xb8] sm:$0xff] }
 0x54d   :  { %18585 = vmatprep.subr.mxu0 %v14685_v41  ;;  %18623 = vmatpush3.msra.mxu1 %v14726_v12 }
 0x54e   :  { %18510 = vmatmul.mubr.msk.f32.gmra.mxu0 %vm6287_vm4, %v23641_v55  ;;  %v8346_v55 = vld [vmem:[#allocation3 + $0xab] sm:$0xff]  ;;  %18624 = vmatprep.subr.mxu1 %v27175_v54 }
 0x54f   :  { %18512 = vmatprep.mubr.msk.f32.mxu0 %vm6287_vm4, %v23650_v23  ;;  %18562 = vmatmul.mubr.msk.f32.gmra.mxu1 %vm6287_vm4, %v8343_v6  ;;  %v8347_v23 = vld [vmem:[#allocation3 + $0xb3] sm:$0xff] }
 0x550   :  { %18564 = vmatprep.mubr.msk.f32.mxu1 %vm6287_vm4, %v8344_v40  ;;  %18586 = vmatpush3.msra.mxu0 %v14685_v41  ;;  %v8643_v41 = vld [vmem:[#allocation3 + $0xc4] sm:$0xff]  ;;  %v9002_v40 = vld [vmem:[%s27014_s7 + $0x58] sm:$0xff] }
 0x551   :  { %18587 = vmatprep.subr.mxu0 %v14684_v3 }
 0x552   :  { %18513 = vmatmul.mubr.msk.f32.gmra.mxu0 %vm6287_vm4, %v23654_v5  ;;  %v8348_v5 = vld [vmem:[#allocation3 + $0xbb] sm:$0xff] }
 0x553   :  { %18515 = vmatprep.mubr.msk.f32.mxu0 %vm6287_vm4, %v23660_v21  ;;  %18565 = vmatmul.mubr.msk.f32.gmra.mxu1 %vm6287_vm4, %v8345_v63  ;;  %v8053_v21 = vld [vmem:[#allocation3 + $0xb2] sm:$0xff] }
 0x554   :  { %18567 = vmatprep.mubr.msk.f32.mxu1 %vm6287_vm4, %v8346_v55  ;;  %18588 = vmatpush3.msra.mxu0 %v14684_v3 }
 0x555   :  { %18649 = vmatprep.subr.mxu0 %v27175_v54 }
 0x556   :  { %18516 = vmatmul.mubr.msk.f32.gmra.mxu0 %vm6287_vm4, %v23664_v7  ;;  %v8055_v7 = vld [vmem:[#allocation3 + $0xc2] sm:$0xff] }
 0x557   :  { %18518 = vmatprep.mubr.msk.f32.mxu0 %vm6287_vm4, %v23670_v31  ;;  %18568 = vmatmul.mubr.msk.f32.gmra.mxu1 %vm6287_vm4, %v8347_v23  ;;  %v8622_v31 = vld [vmem:[#allocation3 + $0x1c] sm:$0xff]  ;;  %v14725_v23 = vld [vmem:[%s27014_s7 + $0xb0] sm:$0xff] }
 0x558   :  { %18570 = vmatprep.mubr.msk.f32.mxu1 %vm6287_vm4, %v8348_v5  ;;  %18625 = vmatpush3.msra.mxu1 %v14725_v23 }
 0x559   :  { %18626 = vmatprep.subr.mxu1 %v27175_v54 }
 0x55a   :  { %18519 = vmatmul.mubr.msk.f32.gmra.mxu0 %vm6287_vm4, %v8053_v21 }
 0x55b   :  { %18521 = vmatprep.mubr.msk.f32.mxu0 %vm6287_vm4, %v8054_v29  ;;  %18571 = vmatmul.mubr.msk.f32.gmra.mxu1 %vm6287_vm4, %v8349_v14  ;;  %v9001_v29 = vld [vmem:[%s27014_s7 + $0x50] sm:$0xff] }
 0x55c   :  { %18646 = vmatprep.mubr.msk.f32.mxu1 %vm20160_vm1, %v27175_v54 }
 0x55e   :  { %18522 = vmatmul.mubr.msk.f32.gmra.mxu0 %vm6287_vm4, %v8055_v7 }
 0x55f   :  { %18589 = vmatprep.mubr.msk.f32.mxu0 %vm6287_vm4, %v8622_v31  ;;  %v14724_v31 = vld [vmem:[%s27014_s7 + $0xa8] sm:$0xff] }
 0x560   :  { %18627 = vmatpush3.msra.mxu1 %v14724_v31  ;;  %v8993_v31 = vld [vmem:[%s27014_s7 + $0x10] sm:$0xff] }
 0x561   :  { %18628 = vmatprep.subr.mxu1 %v27175_v54 }
 0x562   :  { %18590 = vmatmul.mubr.msk.f32.vlgmr.msra.gmra.mxu0 %vm6287_vm4, %v8623_v34 }
 0x563   :  { %18592 = vmatprep.mubr.msk.f32.mxu0 %vm6287_vm4, %v8624_v32  ;;  %18650 = vmatpush3.msra.mxu0 %v9002_v40 }
 0x564   :  { %18651 = vmatprep.subr.mxu0 %v27175_v54 }
 0x565   :  { %18652 = vmatpush3.msra.mxu0 %v9001_v29 }
 0x566   :  { %18593 = vmatmul.mubr.msk.f32.gmra.mxu0 %vm6287_vm4, %v8625_v59  ;;  %18653 = vmatprep.subr.mxu0 %v27175_v54 }
 0x567   :  { %18595 = vmatprep.mubr.msk.f32.mxu0 %vm6287_vm4, %v8626_v25  ;;  %v9000_v25 = vld [vmem:[%s27014_s7 + $0x48] sm:$0xff] }
 0x568   :  { %18654 = vmatpush3.msra.mxu0 %v9000_v25  ;;  %v14716_v25 = vld [vmem:[%s27014_s7 + $0x68] sm:$0xff] }
 0x569   :  { %18655 = vmatprep.subr.mxu0 %v27175_v54 }
 0x56a   :  { %18596 = vmatmul.mubr.msk.f32.gmra.mxu0 %vm6287_vm4, %v8627_v20  ;;  %v14723_v20 = vld [vmem:[%s27014_s7 + $0xa0] sm:$0xff] }
 0x56b   :  { %18598 = vmatprep.mubr.msk.f32.mxu0 %vm6287_vm4, %v8628_v30  ;;  %18629 = vmatpush3.msra.mxu1 %v14723_v20 }
 0x56c   :  { %18630 = vmatprep.subr.mxu1 %v27175_v54 }
 0x56e   :  { %18599 = vmatmul.mubr.msk.f32.gmra.mxu0 %vm6287_vm4, %v8629_v28  ;;  %v18248_v10 = vpop.f32.mrf.mxu1 }
 0x56f   :  { %18601 = vmatprep.mubr.msk.f32.mxu0 %vm6287_vm4, %v8630_v18  ;;  %v8999_v18 = vld [vmem:[%s27014_s7 + $0x40] sm:$0xff] }
 0x570   :  { %v23859_v50 = vpop.f32.mrf.mxu1  ;;  %v18199_v33 = vpop.f32.mrf.mxu0  ;;  %18656 = vmatpush3.msra.mxu0 %v8999_v18 }
 0x571   :  { %v23862_v61 = vadd.f32 %v18248_v10, %v18199_v33  ;;  %18657 = vmatprep.subr.mxu0 %v27175_v54 }
 0x572   :  { %18602 = vmatmul.mubr.msk.f32.gmra.mxu0 %vm6287_vm4, %v8631_v16  ;;  %v18251_v46 = vpop.f32.mrf.mxu1  ;;  %v23865_v49 = vpop.f32.mrf.mxu0 }
 0x573   :  { %18604 = vmatprep.mubr.msk.f32.mxu0 %vm6287_vm4, %v8632_v39  ;;  %v14722_v39 = vld [vmem:[%s27014_s7 + $0x98] sm:$0xff] }
 0x574   :  { %v23867_v27 = vpop.f32.mrf.mxu1  ;;  %v18202_v53 = vpop.f32.mrf.mxu0  ;;  %18631 = vmatpush3.msra.mxu1 %v14722_v39 }
 0x575   :  { %v23870_v42 = vadd.f32 %v18251_v46, %v18202_v53  ;;  %v8998_v53 = vld [vmem:[%s27014_s7 + $0x38] sm:$0xff]  ;;  %18632 = vmatprep.subr.mxu1 %v27175_v54 }
 0x576   :  { %18605 = vmatmul.mubr.msk.f32.gmra.mxu0 %vm6287_vm4, %v8633_v4  ;;  %v18254_v22 = vpop.f32.mrf.mxu1  ;;  %v23873_v52 = vpop.f32.mrf.mxu0 }
 0x577   :  { %18607 = vmatprep.mubr.msk.f32.mxu0 %vm6287_vm4, %v8634_v37  ;;  %18658 = vmatpush3.msra.mxu0 %v8998_v53  ;;  %v14715_v53 = vld [vmem:[%s27014_s7 + $0x60] sm:$0xff] }
 0x578   :  { %v23875_v38 = vpop.f32.mrf.mxu1  ;;  %18659 = vmatprep.subr.mxu0 %v27175_v54 }
 0x579   :  { %v18205_v8 = vpop.f32.mrf.mxu0 }
 0x57a   :  { %18608 = vmatmul.mubr.msk.f32.gmra.mxu0 %vm6287_vm4, %v8635_v51  ;;  %v23878_v26 = vadd.f32 %v18254_v22, %v18205_v8  ;;  %v18257_v56 = vpop.f32.mrf.mxu1  ;;  %v14721_v8 = vld [vmem:[%s27014_s7 + $0x90] sm:$0xff] }
 0x57b   :  { %18610 = vmatprep.mubr.msk.f32.mxu0 %vm6287_vm4, %v8636_v58  ;;  %v23881_v1 = vpop.f32.mrf.mxu0  ;;  %18633 = vmatpush3.msra.mxu1 %v14721_v8 }
 0x57c   :  { %v6779_v35 = vpop.f32.mrf.mxu1  ;;  %18634 = vmatprep.subr.mxu1 %v27175_v54 }
 0x57d   :  { %v18208_v13 = vpop.f32.mrf.mxu0  ;;  %v8997_v35 = vld [vmem:[%s27014_s7 + $0x30] sm:$0xff] }
 0x57e   :  { %18611 = vmatmul.mubr.msk.f32.gmra.mxu0 %vm6287_vm4, %v8637_v60  ;;  %v18260_v11 = vpop.f32.mrf.mxu1 }
 0x57f   :  { %18613 = vmatprep.mubr.msk.f32.mxu0 %vm6287_vm4, %v8638_v17  ;;  %v6538_v47 = vpop.f32.mrf.mxu0  ;;  %18660 = vmatpush3.msra.mxu0 %v8997_v35  ;;  %v14720_v11 = vld [vmem:[%s27014_s7 + $0x88] sm:$0xff] }
 0x580   :  { %v6789_v19 = vpop.f32.mrf.mxu1  ;;  %18661 = vmatprep.subr.mxu0 %v27175_v54  ;;  %18635 = vmatpush3.msra.mxu1 %v14720_v11 }
 0x581   :  { %v18211_v44 = vpop.f32.mrf.mxu0  ;;  %18636 = vmatprep.subr.mxu1 %v27175_v54 }
 0x582   :  { %18614 = vmatmul.mubr.msk.f32.gmra.mxu0 %vm6287_vm4, %v8639_v24  ;;  %v8996_v44 = vld [vmem:[%s27014_s7 + $0x28] sm:$0xff] }
 0x583   :  { %v18263_v62 = vpop.f32.mrf.mxu1  ;;  %18616 = vmatprep.mubr.msk.f32.mxu0 %vm6287_vm4, %v8640_v36  ;;  %v6548_v0 = vpop.f32.mrf.mxu0  ;;  %18662 = vmatpush3.msra.mxu0 %v8996_v44 }
 0x584   :  { %18663 = vmatprep.subr.mxu0 %v27175_v54 }
 0x585   :  { %v6799_v9 = vpop.f32.mrf.mxu1 }
 0x586   :  { %v18214_v48 = vpop.f32.mrf.mxu0  ;;  %18617 = vmatmul.mubr.msk.f32.gmra.mxu0 %vm6287_vm4, %v8641_v2 }
 0x587   :  { %v18266_v57 = vpop.f32.mrf.mxu1  ;;  %18619 = vmatprep.mubr.msk.f32.mxu0 %vm6287_vm4, %v8642_v43 }
 0x588   :  { %v6558_v45 = vpop.f32.mrf.mxu0 }
 0x589   :  { %v6809_v15 = vpop.f32.mrf.mxu1 }
 0x58a   :  { %v18217_v6 = vpop.f32.mrf.mxu0  ;;  %18620 = vmatmul.mubr.msk.f32.gmra.mxu0 %vm6287_vm4, %v8643_v41 }
 0x58b   :  { %v18269_v3 = vpop.f32.mrf.mxu1  ;;  %18673 = vmatprep.mubr.msk.f32.mxu0 %vm20160_vm1, %v27175_v54 }
 0x58c   :  { %v6568_v63 = vpop.f32.mrf.mxu0  ;;  %v8995_v3 = vld [vmem:[%s27014_s7 + $0x20] sm:$0xff] }
 0x58d   :  { %v6819_v55 = vpop.f32.mrf.mxu1  ;;  %18664 = vmatpush3.msra.mxu0 %v8995_v3  ;;  %v14718_v63 = vld [vmem:[%s27014_s7 + $0x78] sm:$0xff] }
 0x58e   :  { %v18220_v5 = vpop.f32.mrf.mxu0  ;;  %18665 = vmatprep.subr.mxu0 %v27175_v54 }
 0x58f   :  { %v18272_v21 = vpop.f32.mrf.mxu1  ;;  %v8994_v5 = vld [vmem:[%s27014_s7 + $0x18] sm:$0xff] }
 0x590   :  { %v6578_v14 = vpop.f32.mrf.mxu0  ;;  %18666 = vmatpush3.msra.mxu0 %v8994_v5 }
 0x591   :  { %v23907_v7 = vpop.f32.mrf.mxu1  ;;  %18667 = vmatprep.subr.mxu0 %v27175_v54 }
 0x592   :  { %v18223_v34 = vpop.f32.mrf.mxu0  ;;  %18668 = vmatpush3.msra.mxu0 %v8993_v31 }
 0x593   :  { %v23913_v32 = vadd.f32 %v18272_v21, %v18223_v34  ;;  %v18275_v59 = vpop.f32.mrf.mxu1  ;;  %v14717_v21 = vld [vmem:[%s27014_s7 + $0x70] sm:$0xff]  ;;  %18669 = vmatprep.subr.mxu0 %v27175_v54 }
 0x594   :  { %v23922_v30 = vpop.f32.mrf.mxu0 }
 0x595   :  { %v23924_v28 = vpop.f32.mrf.mxu1 }
 0x596   :  { %v18226_v10 = vpop.f32.mrf.mxu0 }
 0x597   :  { %v23931_v16 = vadd.f32 %v18275_v59, %v18226_v10  ;;  %v18278_v33 = vpop.f32.mrf.mxu1  ;;  %v8992_v10 = vld [vmem:[%s27014_s7 + $0x8] sm:$0xff] }
 0x598   :  { %v23937_v46 = vpop.f32.mrf.mxu0  ;;  %18670 = vmatpush3.msra.mxu0 %v8992_v10 }
 0x599   :  { %v23939_v4 = vpop.f32.mrf.mxu1  ;;  %18671 = vmatprep.subr.mxu0 %v27175_v54 }
 0x59a   :  { %v18229_v37 = vpop.f32.mrf.mxu0 }
 0x59b   :  { %v23945_v22 = vadd.f32 %v18278_v33, %v18229_v37  ;;  %v18346_v51 = vpop.f32.mrf.mxu1  ;;  %v8991_v37 = vld [vmem:[%s27014_s7] sm:$0xff] }
 0x59c   :  { %v23951_v58 = vpop.f32.mrf.mxu0  ;;  %18672 = vmatpush3.msra.mxu0 %v8991_v37 }
 0x59d   :  { %v23953_v56 = vpop.f32.mrf.mxu1  ;;  %18703 = vmatprep.subr.mxu0 %v27175_v54 }
 0x59e   :  { %v18297_v60 = vpop.f32.mrf.mxu0 }
 0x59f   :  { %v7131_v13 = vadd.f32 %v18297_v60, %v23862_v61  ;;  %v18349_v17 = vpop.f32.mrf.mxu1 }
 0x5a0   :  { %v23964_v47 = vpop.f32.mrf.mxu0 }
 0x5a1   :  { %v23966_v19 = vpop.f32.mrf.mxu1  ;;  %v23968_v24 = vadd.f32 %v18346_v51, %v7131_v13 }
 0x5a2   :  { %v18300_v61 = vpop.f32.mrf.mxu0 }
 0x5a3   :  { %v7133_v36 = vadd.f32 %v18300_v61, %v23870_v42  ;;  %v18352_v62 = vpop.f32.mrf.mxu1  ;;  %v14719_v42 = vld [vmem:[%s27014_s7 + $0x80] sm:$0xff] }
 0x5a4   :  { %v23976_v0 = vpop.f32.mrf.mxu0  ;;  %18637 = vmatpush3.msra.mxu1 %v14719_v42 }
 0x5a5   :  { %v23978_v9 = vpop.f32.mrf.mxu1  ;;  %v23980_v2 = vadd.f32 %v18349_v17, %v7133_v36  ;;  %18638 = vmatprep.subr.mxu1 %v27175_v54 }
 0x5a6   :  { %v18303_v48 = vpop.f32.mrf.mxu0  ;;  %18639 = vmatpush3.msra.mxu1 %v14718_v63 }
 0x5a7   :  { %v7135_v43 = vadd.f32 %v18303_v48, %v23878_v26  ;;  %v18355_v57 = vpop.f32.mrf.mxu1  ;;  %18640 = vmatprep.subr.mxu1 %v27175_v54 }
 0x5a8   :  { %v23983_v45 = vpop.f32.mrf.mxu0  ;;  %18641 = vmatpush3.msra.mxu1 %v14717_v21 }
 0x5a9   :  { %v7345_v15 = vpop.f32.mrf.mxu1  ;;  %v23985_v41 = vadd.f32 %v18352_v62, %v7135_v43  ;;  %18642 = vmatprep.subr.mxu1 %v27175_v54 }
 0x5aa   :  { %v18306_v12 = vpop.f32.mrf.mxu0  ;;  %18643 = vmatpush3.msra.mxu1 %v14716_v25 }
 0x5ab   :  { %v18358_v6 = vpop.f32.mrf.mxu1  ;;  %18644 = vmatprep.subr.mxu1 %v27175_v54 }
 0x5ac   :  { %v7051_v26 = vpop.f32.mrf.mxu0  ;;  %18645 = vmatpush3.msra.mxu1 %v14715_v53 }
 0x5ad   :  { %v7355_v40 = vpop.f32.mrf.mxu1  ;;  %18676 = vmatprep.subr.mxu1 %v27175_v54 }
 0x5ae   :  { %v18309_v55 = vpop.f32.mrf.mxu0 }
 0x5af   :  { %v18361_v23 = vpop.f32.mrf.mxu1 }
 0x5b0   :  { %v7061_v29 = vpop.f32.mrf.mxu0 }
 0x5b1   :  { %v7365_v14 = vpop.f32.mrf.mxu1 }
 0x5b2   :  { %v18312_v34 = vpop.f32.mrf.mxu0 }
 0x5b3   :  { %v18364_v59 = vpop.f32.mrf.mxu1 }
 0x5b4   :  { %v7071_v20 = vpop.f32.mrf.mxu0 }
 0x5b5   :  { %v7375_v18 = vpop.f32.mrf.mxu1 }
 0x5b6   :  { %v18315_v33 = vpop.f32.mrf.mxu0 }
 0x5b7   :  { %v18367_v39 = vpop.f32.mrf.mxu1 }
 0x5b8   :  { %v7081_v51 = vpop.f32.mrf.mxu0 }
 0x5b9   :  { %v7385_v8 = vpop.f32.mrf.mxu1 }
 0x5ba   :  { %v18318_v35 = vpop.f32.mrf.mxu0 }
 0x5bb   :  { %v18370_v60 = vpop.f32.mrf.mxu1 }
 0x5bc   :  { %v7091_v13 = vpop.f32.mrf.mxu0 }
 0x5bd   :  { %v7395_v17 = vpop.f32.mrf.mxu1 }
 0x5be   :  { %v18321_v11 = vpop.f32.mrf.mxu0 }
 0x5bf   :  { %v7147_v44 = vadd.f32 %v18321_v11, %v23913_v32  ;;  %v18373_v61 = vpop.f32.mrf.mxu1 }
 0x5c0   :  { %v7101_v36 = vpop.f32.mrf.mxu0 }
 0x5c1   :  { %v24028_v62 = vpop.f32.mrf.mxu1  ;;  %v7441_v48 = vadd.f32 %v18370_v60, %v7147_v44 }
 0x5c2   :  { %v18324_v43 = vpop.f32.mrf.mxu0 }
 0x5c3   :  { %v7149_v57 = vadd.f32 %v18324_v43, %v23931_v16  ;;  %v18376_v15 = vpop.f32.mrf.mxu1 }
 0x5c4   :  { %v7111_v42 = vpop.f32.mrf.mxu0 }
 0x5c5   :  { %v24031_v12 = vpop.f32.mrf.mxu1  ;;  %v7443_v6 = vadd.f32 %v18373_v61, %v7149_v57  ;;  %v6830_v57 = vadd.f32 %v23907_v7, %v23922_v30  ;;  %v6850_v7 = vadd.f32 %v23939_v4, %v23951_v58 }
 0x5c6   :  { %v18327_v3 = vpop.f32.mrf.mxu0 }
 0x5c7   :  { %v7151_v26 = vadd.f32 %v18327_v3, %v23945_v22  ;;  %v24034_v40 = vpop.f32.mrf.mxu1 }
 0x5c8   :  { %v7121_v63 = vpop.f32.mrf.mxu0 }
 0x5c9   :  { %v24036_v32 = vpop.f32.mrf.mxu1  ;;  %v7445_v55 = vadd.f32 %v18376_v15, %v7151_v26  ;;  %v7146_v26 = vadd.f32 %v7101_v36, %v6830_v57 }
 0x5ca   :  { %v18395_v23 = vpop.f32.mrf.mxu0 }
 0x5cb   :  { %v24039_v5 = vadd.f32 %v18395_v23, %v23968_v24  ;;  %v24041_v21 = vpop.f32.mrf.mxu1 }
 0x5cc   :  { %v24043_v16 = vpop.f32.mrf.mxu0 }
 0x5cd   :  { %v24045_v29 = vpop.f32.mrf.mxu1 }
 0x5ce   :  { %v18398_v14 = vpop.f32.mrf.mxu0 }
 0x5cf   :  { %v24048_v31 = vadd.f32 %v18398_v14, %v23980_v2  ;;  %v24050_v22 = vpop.f32.mrf.mxu1 }
 0x5d0   :  { %v24052_v34 = vpop.f32.mrf.mxu0 }
 0x5d1   :  { %v24054_v59 = vpop.f32.mrf.mxu1 }
 0x5d2   :  { %v18401_v25 = vpop.f32.mrf.mxu0 }
 0x5d3   :  { %v24057_v24 = vadd.f32 %v18401_v25, %v23985_v41  ;;  %v18453_v20 = vpop.f32.mrf.mxu1  ;;  %v6840_v25 = vadd.f32 %v23924_v28, %v23937_v46 }
 0x5d4   :  { %v24059_v18 = vpop.f32.mrf.mxu0 }
 0x5d5   :  { %v7933_v10 = vpop.f32.mrf.mxu1 }
 0x5d6   :  { %v18404_v33 = vpop.f32.mrf.mxu0 }
 0x5d7   :  { %v18456_v39 = vpop.f32.mrf.mxu1  ;;  %v7148_v33 = vadd.f32 %v7111_v42, %v6840_v25 }
 0x5d8   :  { %v7639_v53 = vpop.f32.mrf.mxu0 }
 0x5d9   :  { %v7943_v37 = vpop.f32.mrf.mxu1 }
 0x5da   :  { %v18407_v2 = vpop.f32.mrf.mxu0  ;;  %v7440_v37 = vadd.f32 %v7395_v17, %v7146_v26 }
 0x5db   :  { %v18459_v51 = vpop.f32.mrf.mxu1 }
 0x5dc   :  { %v7649_v8 = vpop.f32.mrf.mxu0 }
 0x5dd   :  { %v7953_v35 = vpop.f32.mrf.mxu1  ;;  %v7150_v8 = vadd.f32 %v7121_v63, %v6850_v7 }
 0x5de   :  { %v18410_v60 = vpop.f32.mrf.mxu0 }
 0x5df   :  { %v18462_v13 = vpop.f32.mrf.mxu1  ;;  %v7444_v4 = vadd.f32 %v24031_v12, %v7150_v8  ;;  %v6750_v8 = vadd.f32 %v23859_v50, %v23865_v49 }
 0x5e0   :  { %v7659_v11 = vpop.f32.mrf.mxu0 }
 0x5e1   :  { %v7963_v44 = vpop.f32.mrf.mxu1 }
 0x5e2   :  { %v18413_v61 = vpop.f32.mrf.mxu0 }
 0x5e3   :  { %v18465_v43 = vpop.f32.mrf.mxu1 }
 0x5e4   :  { %v7669_v41 = vpop.f32.mrf.mxu0 }
 0x5e5   :  { %v7973_v15 = vpop.f32.mrf.mxu1 }
 0x5e6   :  { %v18416_v3 = vpop.f32.mrf.mxu0 }
 0x5e7   :  { %v24063_v23 = vpop.f32.mrf.mxu1 }
 0x5e8   :  { %v7679_v14 = vpop.f32.mrf.mxu0 }
 0x5e9   :  { %v24067_v20 = vpop.f32.mrf.mxu1 }
 0x5ea   :  { %v18419_v10 = vpop.f32.mrf.mxu0 }
 0x5eb   :  { %v24069_v39 = vadd.f32 %v18419_v10, %v7441_v48  ;;  %v24071_v53 = vpop.f32.mrf.mxu1  ;;  %v7442_v48 = vadd.f32 %v24028_v62, %v7148_v33 }
 0x5ec   :  { %v7689_v2 = vpop.f32.mrf.mxu0 }
 0x5ed   :  { %v24075_v30 = vadd.f32 %v7689_v2, %v7440_v37  ;;  %v24077_v36 = vpop.f32.mrf.mxu1 }
 0x5ee   :  { %v18422_v51 = vpop.f32.mrf.mxu0 }
 0x5ef   :  { %v24079_v28 = vadd.f32 %v18422_v51, %v7443_v6  ;;  %v24081_v46 = vpop.f32.mrf.mxu1 }
 0x5f0   :  { %v7699_v42 = vpop.f32.mrf.mxu0 }
 0x5f1   :  { %v24084_v35 = vadd.f32 %v7699_v42, %v7442_v48  ;;  %v24086_v17 = vpop.f32.mrf.mxu1 }
 0x5f2   :  { %v18425_v60 = vpop.f32.mrf.mxu0 }
 0x5f3   :  { %v24088_v13 = vadd.f32 %v18425_v60, %v7445_v55  ;;  %v18542_v63 = vpop.f32.mrf.mxu1  ;;  %v7130_v60 = vadd.f32 %v23964_v47, %v6750_v8 }
 0x5f4   :  { %v7709_v58 = vpop.f32.mrf.mxu0 }
 0x5f5   :  { %v24091_v11 = vadd.f32 %v7709_v58, %v7444_v4  ;;  %v8491_v61 = vpop.f32.mrf.mxu1  ;;  %v6760_v4 = vadd.f32 %v23867_v27, %v23873_v52 }
 0x5f6   :  { %v18493_v6 = vpop.f32.mrf.mxu0 }
 0x5f7   :  { %v18545_v62 = vpop.f32.mrf.mxu1 }
 0x5f8   :  { %v8197_v44 = vpop.f32.mrf.mxu0 }
 0x5f9   :  { %v8501_v3 = vpop.f32.mrf.mxu1 }
 0x5fa   :  { %v18496_v43 = vpop.f32.mrf.mxu0 }
 0x5fb   :  { %v24093_v25 = vpop.f32.mrf.mxu1 }
 0x5fc   :  { %v8207_v41 = vpop.f32.mrf.mxu0 }
 0x5fd   :  { %v24095_v12 = vpop.f32.mrf.mxu1 }
 0x5fe   :  { %v18499_v57 = vpop.f32.mrf.mxu0 }
 0x5ff   :  { %v18551_v2 = vpop.f32.mrf.mxu1 }
 0x600   :  { %v8217_v15 = vpop.f32.mrf.mxu0 }
 0x601   :  { %v8521_v48 = vpop.f32.mrf.mxu1 }
 0x602   :  { %v18502_v26 = vpop.f32.mrf.mxu0 }
 0x603   :  { %v7132_v26 = vadd.f32 %v23976_v0, %v6760_v4  ;;  %v8013_v0 = vadd.f32 %v24034_v40, %v24039_v5 }
 0x604   :  { %v8227_v14 = vpop.f32.mrf.mxu0 }
 0x605   :  { %v18554_v14 = vpop.f32.mrf.mxu1  ;;  %v7426_v47 = vadd.f32 %v23966_v19, %v7132_v26  ;;  %v8015_v19 = vadd.f32 %v24041_v21, %v24048_v31 }
 0x606   :  { %v18505_v55 = vpop.f32.mrf.mxu0 }
 0x607   :  { %v8531_v27 = vpop.f32.mrf.mxu1  ;;  %v7720_v2 = vadd.f32 %v24052_v34, %v7426_v47  ;;  %v8309_v34 = vadd.f32 %v18496_v43, %v8015_v19 }
 0x608   :  { %v8237_v10 = vpop.f32.mrf.mxu0 }
 0x609   :  { %v7424_v10 = vadd.f32 %v23953_v56, %v7130_v60  ;;  %v8014_v40 = vadd.f32 %v24045_v29, %v7720_v2 }
 0x60a   :  { %v18508_v33 = vpop.f32.mrf.mxu0 }
 0x60b   :  { %v6770_v33 = vadd.f32 %v23875_v38, %v23881_v1  ;;  %v7718_v50 = vadd.f32 %v24043_v16, %v7424_v10  ;;  %v18557_v16 = vpop.f32.mrf.mxu1 }
 0x60c   :  { %v8247_v37 = vpop.f32.mrf.mxu0 }
 0x60d   :  { %v7134_v49 = vadd.f32 %v23983_v45, %v6770_v33  ;;  %v8012_v38 = vadd.f32 %v24036_v32, %v7718_v50 }
 0x60e   :  { %v18511_v7 = vpop.f32.mrf.mxu0 }
 0x60f   :  { %v8307_v7 = vadd.f32 %v18493_v6, %v8013_v0  ;;  %v7428_v1 = vadd.f32 %v23978_v9, %v7134_v49  ;;  %v8306_v45 = vadd.f32 %v8197_v44, %v8012_v38  ;;  %v8308_v6 = vadd.f32 %v8207_v41, %v8014_v40  ;;  %v24133_v9 = vld [vmem:[%s27013_s6] ss:$0 sm:$0xff]  ;;  %v14753_v40 = vld [vmem:[%s27014_s7 + $0x178] sm:$0xff] }
 0x610   :  { %v8257_v51 = vpop.f32.mrf.mxu0  ;;  %v8017_v44 = vadd.f32 %v24050_v22, %v24057_v24  ;;  %v8603_v41 = vadd.f32 %v18545_v62, %v8309_v34 }
 0x611   :  { %v7722_v8 = vadd.f32 %v24059_v18, %v7428_v1  ;;  %v8601_v48 = vadd.f32 %v18542_v63, %v8307_v7  ;;  %v8600_v31 = vadd.f32 %v8491_v61, %v8306_v45  ;;  %v8602_v26 = vadd.f32 %v8501_v3, %v8308_v6 }
 0x612   :  { %v18514_v42 = vpop.f32.mrf.mxu0  ;;  %v8311_v60 = vadd.f32 %v18499_v57, %v8017_v44  ;;  %v14752_v44 = vld [vmem:[%s27014_s7 + $0x170] sm:$0xff] }
 0x613   :  { %v8541_v42 = vpop.f32.mrf.mxu1  ;;  %v8016_v18 = vadd.f32 %v24054_v59, %v7722_v8 }
 0x614   :  { %v8267_v58 = vpop.f32.mrf.mxu0  ;;  %v8605_v57 = vadd.f32 %v24093_v25, %v8311_v60 }
 0x615   :  { %v18560_v4 = vpop.f32.mrf.mxu1  ;;  %v8310_v14 = vadd.f32 %v8217_v15, %v8016_v18  ;;  %v14751_v18 = vld [vmem:[%s27014_s7 + $0x168] sm:$0xff] }
 0x616   :  { %v24103_v55 = vpop.f32.mrf.mxu0  ;;  %v14736_v4 = vld [vmem:[%s27014_s7 + $0xf8] sm:$0xff] }
 0x617   :  { %v8551_v49 = vpop.f32.mrf.mxu1  ;;  %v8604_v27 = vadd.f32 %v24095_v12, %v8310_v14  ;;  %v14740_v12 = vld [vmem:[%s27014_s7 + $0x118] sm:$0xff]  ;;  %v8029_v14 = vadd.f32 %v24063_v23, %v24069_v39 }
 0x618   :  { %v24108_v37 = vpop.f32.mrf.mxu0  ;;  %v14746_v49 = vld [vmem:[%s27014_s7 + $0x140] sm:$0xff] }
 0x619   :  { %v18563_v1 = vpop.f32.mrf.mxu1  ;;  %v8323_v39 = vadd.f32 %v24103_v55, %v8029_v14 }
 0x61a   :  { %v24113_v52 = vpop.f32.mrf.mxu0 }
 0x61b   :  { %v8561_v34 = vpop.f32.mrf.mxu1 }
 0x61c   :  { %v24118_v56 = vpop.f32.mrf.mxu0  ;;  %v14729_v34 = vld [vmem:[%s27014_s7 + $0xc0] sm:$0xff] }
 0x61e   :  { %v24122_v51 = vpop.f32.mrf.mxu0 }
 0x620   :  { %v24128_v5 = vpop.f32.mrf.mxu0 }
 0x622   :  { %v18591_v32 = vpop.f32.mrf.mxu0 }
 0x623   :  { %v8895_v21 = vadd.f32 %v18591_v32, %v8601_v48  ;;  %v14739_v32 = vld [vmem:[%s27014_s7 + $0x110] sm:$0xff] }
 0x624   :  { %v8785_v29 = vpop.f32.mrf.mxu0 }
 0x625   :  { %v8924_v43 = vadd.f32 %v24133_v9, %v8895_v21  ;;  %v8894_v63 = vadd.f32 %v8785_v29, %v8600_v31  ;;  %v14738_v31 = vld [vmem:[%s27014_s7 + $0x108] sm:$0xff]  ;;  %v18566_v29 = vpop.f32.mrf.mxu1 }
 0x626   :  { %v18594_v58 = vpop.f32.mrf.mxu0 }
 0x627   :  { %v8946_v10 = vmax.f32 %v8924_v43, 0.0  ;;  %v8923_v33 = vadd.f32 %v24133_v9, %v8894_v63  ;;  %v8897_v50 = vadd.f32 %v18594_v58, %v8603_v41  ;;  %v14737_v43 = vld [vmem:[%s27014_s7 + $0x100] sm:$0xff]  ;;  %v14749_v58 = vld [vmem:[%s27014_s7 + $0x158] sm:$0xff] }
 0x628   :  { %v8795_v22 = vpop.f32.mrf.mxu0  ;;  %v14750_v63 = vld [vmem:[%s27014_s7 + $0x160] sm:$0xff] }
 0x629   :  { %8969 = vst.msk [vmem:[#allocation4 + $0x8] sm:$0xff] %vm8967_vm6, %v8946_v10  ;;  %v8945_v24 = vmax.f32 %v8923_v33, 0.0  ;;  %v8926_v59 = vadd.f32 %v24133_v9, %v8897_v50  ;;  %v8896_v61 = vadd.f32 %v8795_v22, %v8602_v26  ;;  %v8571_v26 = vpop.f32.mrf.mxu1  ;;  %v14735_v33 = vld [vmem:[%s27014_s7 + $0xf0] sm:$0xff]  ;;  %v8028_v22 = vadd.f32 %v24067_v20, %v24075_v30 }
 0x62a   :  { %v18597_v62 = vpop.f32.mrf.mxu0  ;;  %v14748_v50 = vld [vmem:[%s27014_s7 + $0x150] sm:$0xff]  ;;  %v8031_v20 = vadd.f32 %v24071_v53, %v24079_v28  ;;  %v8030_v53 = vadd.f32 %v24077_v36, %v24084_v35  ;;  %v8033_v36 = vadd.f32 %v24081_v46, %v24088_v13  ;;  %v8032_v46 = vadd.f32 %v24086_v17, %v24091_v11  ;;  %v14743_v17 = vld [vmem:[%s27014_s7 + $0x128] sm:$0xff] }
 0x62b   :  { %8968 = vst.msk [vmem:[#allocation4] sm:$0xff] %vm8967_vm6, %v8945_v24  ;;  %v8948_v47 = vmax.f32 %v8926_v59, 0.0  ;;  %v8925_v15 = vadd.f32 %v24133_v9, %v8896_v61  ;;  %v8899_v3 = vadd.f32 %v18597_v62, %v8605_v57  ;;  %v14734_v24 = vld [vmem:[%s27014_s7 + $0xe8] sm:$0xff]  ;;  %v18569_v61 = vpop.f32.mrf.mxu1  ;;  %v8322_v55 = vadd.f32 %v24108_v37, %v8028_v22  ;;  %v14733_v57 = vld [vmem:[%s27014_s7 + $0xe0] sm:$0xff]  ;;  %v14778_v22 = vld [vmem:[%s27014_s7 + $0x230] sm:$0xff] }
 0x62c   :  { %v8805_v0 = vpop.f32.mrf.mxu0  ;;  %v14747_v59 = vld [vmem:[%s27014_s7 + $0x148] sm:$0xff]  ;;  %v8325_v62 = vadd.f32 %v24113_v52, %v8031_v20  ;;  %v8617_v37 = vadd.f32 %v18566_v29, %v8323_v39  ;;  %v14776_v20 = vld [vmem:[%s27014_s7 + $0x220] sm:$0xff] }
 0x62d   :  { %8971 = vst.msk [vmem:[#allocation4 + $0x18] sm:$0xff] %vm8967_vm6, %v8948_v47  ;;  %v8947_v2 = vmax.f32 %v8925_v15, 0.0  ;;  %v8928_v7 = vadd.f32 %v24133_v9, %v8899_v3  ;;  %v8898_v38 = vadd.f32 %v8805_v0, %v8604_v27  ;;  %v14732_v47 = vld [vmem:[%s27014_s7 + $0xd8] sm:$0xff]  ;;  %v8581_v52 = vpop.f32.mrf.mxu1  ;;  %v8324_v3 = vadd.f32 %v24118_v56, %v8030_v53  ;;  %v14744_v56 = vld [vmem:[%s27014_s7 + $0x130] sm:$0xff]  ;;  %v14773_v53 = vld [vmem:[%s27014_s7 + $0x208] sm:$0xff] }
 0x62e   :  { %v18600_v16 = vpop.f32.mrf.mxu0  ;;  %v14745_v15 = vld [vmem:[%s27014_s7 + $0x138] sm:$0xff]  ;;  %v8616_v0 = vadd.f32 %v8571_v26, %v8322_v55 }
 0x62f   :  { %8970 = vst.msk [vmem:[#allocation4 + $0x10] sm:$0xff] %vm8967_vm6, %v8947_v2  ;;  %v8950_v25 = vmax.f32 %v8928_v7, 0.0  ;;  %v8927_v45 = vadd.f32 %v24133_v9, %v8898_v38  ;;  %v14731_v2 = vld [vmem:[%s27014_s7 + $0xd0] sm:$0xff]  ;;  %v8619_v7 = vadd.f32 %v18569_v61, %v8325_v62  ;;  %v8327_v38 = vadd.f32 %v24122_v51, %v8033_v36  ;;  %v18572_v11 = vpop.f32.mrf.mxu1  ;;  %v14775_v55 = vld [vmem:[%s27014_s7 + $0x218] sm:$0xff]  ;;  %v14760_v62 = vld [vmem:[%s27014_s7 + $0x1a8] sm:$0xff] }
 0x630   :  { %v8815_v19 = vpop.f32.mrf.mxu0  ;;  %v8618_v51 = vadd.f32 %v8581_v52, %v8324_v3  ;;  %v14757_v52 = vld [vmem:[%s27014_s7 + $0x190] sm:$0xff]  ;;  %v14756_v36 = vld [vmem:[%s27014_s7 + $0x188] sm:$0xff] }
 0x631   :  { %8973 = vst.msk [vmem:[#allocation4 + $0x28] sm:$0xff] %vm8967_vm6, %v8950_v25  ;;  %v8949_v8 = vmax.f32 %v8927_v45, 0.0  ;;  %v14730_v25 = vld [vmem:[%s27014_s7 + $0xc8] sm:$0xff]  ;;  %v8326_v19 = vadd.f32 %v24128_v5, %v8032_v46  ;;  %v14770_v3 = vld [vmem:[%s27014_s7 + $0x1f0] sm:$0xff] }
 0x632   :  { %v18603_v48 = vpop.f32.mrf.mxu0  ;;  %v9003_v6 = vld [vmem:[#allocation4 + $0x1] sm:$0x1]  ;;  %v8990_v42 = vld [vmem:[#allocation4] sm:$0x1]  ;;  %v9427_v46 = vld [vmem:[#allocation4 + $0x5] sm:$0x1] }
 0x633   :  { %8972 = vst.msk [vmem:[#allocation4 + $0x20] sm:$0xff] %vm8967_vm6, %v8949_v8  ;;  %18647 = vmatmul.mubr.msk.f32.vlgmr.msra.gmra.mxu1 %vm8967_vm6, %v9003_v6  ;;  %18674 = vmatmul.mubr.msk.f32.vlgmr.msra.gmra.mxu0 %vm8967_vm6, %v8990_v42  ;;  %v14742_v6 = vld [vmem:[%s27014_s7 + $0x120] sm:$0xff] }
 0x634   :  { %18677 = vmatpush3.msra.mxu1 %v14740_v12  ;;  %18704 = vmatpush3.msra.mxu0 %v14753_v40  ;;  %v8825_v21 = vpop.f32.mrf.mxu0 }
 0x635   :  { %18678 = vmatprep.subr.mxu1 %v27175_v54  ;;  %18705 = vmatprep.subr.mxu0 %v27175_v54  ;;  %v8591_v21 = vpop.f32.mrf.mxu1 }
 0x636   :  { %18679 = vmatpush3.msra.mxu1 %v14739_v32  ;;  %18706 = vmatpush3.msra.mxu0 %v14752_v44  ;;  %v18606_v60 = vpop.f32.mrf.mxu0  ;;  %v8621_v44 = vadd.f32 %v18572_v11, %v8327_v38  ;;  %v14804_v38 = vld [vmem:[%s27014_s7 + $0x2f0] sm:$0xff]  ;;  %v14788_v11 = vld [vmem:[%s27014_s7 + $0x278] sm:$0xff] }
 0x637   :  { %18680 = vmatprep.subr.mxu1 %v27175_v54  ;;  %18707 = vmatprep.subr.mxu0 %v27175_v54 }
 0x638   :  { %18681 = vmatpush3.msra.mxu1 %v14738_v31  ;;  %18708 = vmatpush3.msra.mxu0 %v14751_v18  ;;  %v8835_v41 = vpop.f32.mrf.mxu0  ;;  %v14766_v18 = vld [vmem:[%s27014_s7 + $0x1d8] sm:$0xff] }
 0x639   :  { %18682 = vmatprep.subr.mxu1 %v27175_v54  ;;  %18709 = vmatprep.subr.mxu0 %v27175_v54  ;;  %v9251_v41 = vld [vmem:[#allocation4 + $0x3] sm:$0x1] }
 0x63a   :  { %18683 = vmatpush3.msra.mxu1 %v14737_v43  ;;  %18710 = vmatpush3.msra.mxu0 %v14750_v63  ;;  %v18609_v10 = vpop.f32.mrf.mxu0  ;;  %v9163_v63 = vld [vmem:[#allocation4 + $0x2] sm:$0x1] }
 0x63b   :  { %18684 = vmatprep.subr.mxu1 %v27175_v54  ;;  %18711 = vmatprep.subr.mxu0 %v27175_v54 }
 0x63c   :  { %18685 = vmatpush3.msra.mxu1 %v14736_v4  ;;  %18712 = vmatpush3.msra.mxu0 %v14749_v58  ;;  %v8845_v23 = vpop.f32.mrf.mxu0  ;;  %v14779_v4 = vld [vmem:[%s27014_s7 + $0x238] sm:$0xff]  ;;  %v8620_v58 = vadd.f32 %v8591_v21, %v8326_v19  ;;  %v14800_v19 = vld [vmem:[%s27014_s7 + $0x2d0] sm:$0xff]  ;;  %v14781_v21 = vld [vmem:[%s27014_s7 + $0x240] sm:$0xff] }
 0x63d   :  { %18686 = vmatprep.subr.mxu1 %v27175_v54  ;;  %18713 = vmatprep.subr.mxu0 %v27175_v54 }
 0x63e   :  { %18687 = vmatpush3.msra.mxu1 %v14735_v33  ;;  %18714 = vmatpush3.msra.mxu0 %v14748_v50  ;;  %v18612_v30 = vpop.f32.mrf.mxu0  ;;  %v14765_v50 = vld [vmem:[%s27014_s7 + $0x1d0] sm:$0xff] }
 0x63f   :  { %18688 = vmatprep.subr.mxu1 %v27175_v54  ;;  %18715 = vmatprep.subr.mxu0 %v27175_v54  ;;  %v14762_v30 = vld [vmem:[%s27014_s7 + $0x1b8] sm:$0xff] }
 0x640   :  { %18689 = vmatpush3.msra.mxu1 %v14734_v24  ;;  %18716 = vmatpush3.msra.mxu0 %v14747_v59  ;;  %v8855_v28 = vpop.f32.mrf.mxu0  ;;  %v14764_v24 = vld [vmem:[%s27014_s7 + $0x1c8] sm:$0xff] }
 0x641   :  { %18690 = vmatprep.subr.mxu1 %v27175_v54  ;;  %18717 = vmatprep.subr.mxu0 %v27175_v54  ;;  %v14777_v59 = vld [vmem:[%s27014_s7 + $0x228] sm:$0xff]  ;;  %v14759_v28 = vld [vmem:[%s27014_s7 + $0x1a0] sm:$0xff] }
 0x642   :  { %18691 = vmatpush3.msra.mxu1 %v14733_v57  ;;  %18718 = vmatpush3.msra.mxu0 %v14746_v49  ;;  %v18615_v35 = vpop.f32.mrf.mxu0  ;;  %v14761_v57 = vld [vmem:[%s27014_s7 + $0x1b0] sm:$0xff] }
 0x643   :  { %v8911_v27 = vadd.f32 %v18615_v35, %v8617_v37  ;;  %18692 = vmatprep.subr.mxu1 %v27175_v54  ;;  %18719 = vmatprep.subr.mxu0 %v27175_v54  ;;  %v14774_v49 = vld [vmem:[%s27014_s7 + $0x210] sm:$0xff]  ;;  %v14772_v37 = vld [vmem:[%s27014_s7 + $0x200] sm:$0xff]  ;;  %v14769_v35 = vld [vmem:[%s27014_s7 + $0x1e8] sm:$0xff] }
 0x644   :  { %18693 = vmatpush3.msra.mxu1 %v14732_v47  ;;  %18720 = vmatpush3.msra.mxu0 %v14745_v15  ;;  %v8865_v13 = vpop.f32.mrf.mxu0  ;;  %v14758_v47 = vld [vmem:[%s27014_s7 + $0x198] sm:$0xff] }
 0x645   :  { %v8940_v1 = vadd.f32 %v24133_v9, %v8911_v27  ;;  %v8910_v16 = vadd.f32 %v8865_v13, %v8616_v0  ;;  %18694 = vmatprep.subr.mxu1 %v27175_v54  ;;  %18721 = vmatprep.subr.mxu0 %v27175_v54  ;;  %v14771_v15 = vld [vmem:[%s27014_s7 + $0x1f8] sm:$0xff]  ;;  %v14755_v27 = vld [vmem:[%s27014_s7 + $0x180] sm:$0xff] }
 0x646   :  { %18695 = vmatpush3.msra.mxu1 %v14731_v2  ;;  %18722 = vmatpush3.msra.mxu0 %v14744_v56  ;;  %v18618_v45 = vpop.f32.mrf.mxu0  ;;  %v14768_v0 = vld [vmem:[%s27014_s7 + $0x1e0] sm:$0xff]  ;;  %v14792_v2 = vld [vmem:[%s27014_s7 + $0x298] sm:$0xff] }
 0x647   :  { %v8962_v8 = vmax.f32 %v8940_v1, 0.0  ;;  %v8939_v12 = vadd.f32 %v24133_v9, %v8910_v16  ;;  %v8913_v40 = vadd.f32 %v18618_v45, %v8619_v7  ;;  %18696 = vmatprep.subr.mxu1 %v27175_v54  ;;  %18723 = vmatprep.subr.mxu0 %v27175_v54  ;;  %v9339_v56 = vld [vmem:[#allocation4 + $0x4] sm:$0x1]  ;;  %v14791_v7 = vld [vmem:[%s27014_s7 + $0x290] sm:$0xff]  ;;  %v14790_v1 = vld [vmem:[%s27014_s7 + $0x288] sm:$0xff] }
 0x648   :  { %18697 = vmatpush3.msra.mxu1 %v14730_v25  ;;  %18724 = vmatpush3.msra.mxu0 %v14743_v17  ;;  %v8875_v48 = vpop.f32.mrf.mxu0  ;;  %v14805_v13 = vld [vmem:[%s27014_s7 + $0x2f8] sm:$0xff]  ;;  %v14803_v16 = vld [vmem:[%s27014_s7 + $0x2e8] sm:$0xff]  ;;  %v14789_v25 = vld [vmem:[%s27014_s7 + $0x280] sm:$0xff] }
 0x649   :  { %8985 = vst.msk [vmem:[#allocation4 + $0x88] sm:$0xff] %vm8967_vm6, %v8962_v8  ;;  %v8961_v5 = vmax.f32 %v8939_v12, 0.0  ;;  %v8942_v42 = vadd.f32 %v24133_v9, %v8913_v40  ;;  %v8912_v32 = vadd.f32 %v8875_v48, %v8618_v51  ;;  %18698 = vmatprep.subr.mxu1 %v27175_v54  ;;  %18725 = vmatprep.subr.mxu0 %v27175_v54  ;;  %v14802_v17 = vld [vmem:[%s27014_s7 + $0x2e0] sm:$0xff]  ;;  %v14801_v45 = vld [vmem:[%s27014_s7 + $0x2d8] sm:$0xff]  ;;  %v14787_v51 = vld [vmem:[%s27014_s7 + $0x270] sm:$0xff] }
 0x64a   :  { %18699 = vmatpush3.msra.mxu1 %v14729_v34  ;;  %18700 = vmatprep.mubr.msk.f32.mxu1 %vm20160_vm1, %v27175_v54  ;;  %v18621_v31 = vpop.f32.mrf.mxu0  ;;  %v14786_v8 = vld [vmem:[%s27014_s7 + $0x268] sm:$0xff]  ;;  %v14785_v40 = vld [vmem:[%s27014_s7 + $0x260] sm:$0xff]  ;;  %v14784_v48 = vld [vmem:[%s27014_s7 + $0x258] sm:$0xff] }
 0x64b   :  { %8984 = vst.msk [vmem:[#allocation4 + $0x80] sm:$0xff] %vm8967_vm6, %v8961_v5  ;;  %v8964_v29 = vmax.f32 %v8942_v42, 0.0  ;;  %v8941_v60 = vadd.f32 %v24133_v9, %v8912_v32  ;;  %18726 = vmatpush3.msra.mxu0 %v14742_v6  ;;  %18727 = vmatprep.mubr.msk.f32.mxu0 %vm20160_vm1, %v27175_v54  ;;  %v8915_v43 = vadd.f32 %v18621_v31, %v8621_v44  ;;  %v14799_v12 = vld [vmem:[%s27014_s7 + $0x2c8] sm:$0xff]  ;;  %v14798_v34 = vld [vmem:[%s27014_s7 + $0x2c0] sm:$0xff]  ;;  %v14797_v6 = vld [vmem:[%s27014_s7 + $0x2b8] sm:$0xff] }
 0x64c   :  { %18701 = vmatmul.mubr.msk.f32.vlgmr.msra.gmra.mxu1 %vm8967_vm6, %v9163_v63  ;;  %18728 = vmatmul.mubr.msk.f32.vlgmr.msra.gmra.mxu0 %vm8967_vm6, %v9251_v41  ;;  %v8885_v26 = vpop.f32.mrf.mxu0  ;;  %v14783_v5 = vld [vmem:[%s27014_s7 + $0x250] sm:$0xff]  ;;  %v14782_v32 = vld [vmem:[%s27014_s7 + $0x248] sm:$0xff]  ;;  %v14794_v31 = vld [vmem:[%s27014_s7 + $0x2a0] sm:$0xff] }
 0x64d   :  { %8987 = vst.msk [vmem:[#allocation4 + $0x98] sm:$0xff] %vm8967_vm6, %v8964_v29  ;;  %v8963_v14 = vmax.f32 %v8941_v60, 0.0  ;;  %v8944_v10 = vadd.f32 %v24133_v9, %v8915_v43  ;;  %18730 = vmatprep.subr.mxu1 %v27175_v54  ;;  %18757 = vmatprep.subr.mxu0 %v27175_v54  ;;  %v8914_v33 = vadd.f32 %v8885_v26, %v8620_v58  ;;  %v14796_v42 = vld [vmem:[%s27014_s7 + $0x2b0] sm:$0xff]  ;;  %v14795_v44 = vld [vmem:[%s27014_s7 + $0x2a8] sm:$0xff]  ;;  %v9515_v29 = vld [vmem:[#allocation4 + $0x6] sm:$0x1] }
 0x64e   :  { %18731 = vmatpush3.msra.mxu1 %v14766_v18  ;;  %18758 = vmatpush3.msra.mxu0 %v14779_v4  ;;  %v14818_v18 = vld [vmem:[%s27014_s7 + $0x358] sm:$0xff]  ;;  %v9603_v60 = vld [vmem:[#allocation4 + $0xd] sm:$0x1]  ;;  %v14817_v63 = vld [vmem:[%s27014_s7 + $0x350] sm:$0xff] }
 0x64f   :  { %8986 = vst.msk [vmem:[#allocation4 + $0x90] sm:$0xff] %vm8967_vm6, %v8963_v14  ;;  %v8966_v23 = vmax.f32 %v8944_v10, 0.0  ;;  %v8943_v39 = vadd.f32 %v24133_v9, %v8914_v33  ;;  %18732 = vmatprep.subr.mxu1 %v27175_v54  ;;  %18759 = vmatprep.subr.mxu0 %v27175_v54  ;;  %v14763_v9 = vld [vmem:[%s27014_s7 + $0x1c0] sm:$0xff]  ;;  %v14831_v43 = vld [vmem:[%s27014_s7 + $0x3b8] sm:$0xff]  ;;  %v14830_v41 = vld [vmem:[%s27014_s7 + $0x3b0] sm:$0xff] }
 0x650   :  { %18733 = vmatpush3.msra.mxu1 %v14765_v50  ;;  %18760 = vmatpush3.msra.mxu0 %v14778_v22  ;;  %v14816_v4 = vld [vmem:[%s27014_s7 + $0x348] sm:$0xff]  ;;  %v14815_v26 = vld [vmem:[%s27014_s7 + $0x340] sm:$0xff]  ;;  %v14814_v10 = vld [vmem:[%s27014_s7 + $0x338] sm:$0xff] }
 0x651   :  { %8989 = vst.msk [vmem:[#allocation4 + $0xa8] sm:$0xff] %vm8967_vm6, %v8966_v23  ;;  %v8965_v61 = vmax.f32 %v8943_v39, 0.0  ;;  %18734 = vmatprep.subr.mxu1 %v27175_v54  ;;  %18761 = vmatprep.subr.mxu0 %v27175_v54  ;;  %v14829_v58 = vld [vmem:[%s27014_s7 + $0x3a8] sm:$0xff]  ;;  %v14828_v14 = vld [vmem:[%s27014_s7 + $0x3a0] sm:$0xff]  ;;  %v14827_v33 = vld [vmem:[%s27014_s7 + $0x398] sm:$0xff] }
 0x652   :  { %18735 = vmatpush3.msra.mxu1 %v14764_v24  ;;  %18762 = vmatpush3.msra.mxu0 %v14777_v59  ;;  %v14813_v50 = vld [vmem:[%s27014_s7 + $0x330] sm:$0xff]  ;;  %v14812_v23 = vld [vmem:[%s27014_s7 + $0x328] sm:$0xff]  ;;  %v14811_v24 = vld [vmem:[%s27014_s7 + $0x320] sm:$0xff] }
 0x653   :  { %8988 = vst.msk [vmem:[#allocation4 + $0xa0] sm:$0xff] %vm8967_vm6, %v8965_v61  ;;  %18736 = vmatprep.subr.mxu1 %v27175_v54  ;;  %18763 = vmatprep.subr.mxu0 %v27175_v54  ;;  %v14826_v22 = vld [vmem:[%s27014_s7 + $0x390] sm:$0xff]  ;;  %v14825_v39 = vld [vmem:[%s27014_s7 + $0x388] sm:$0xff]  ;;  %v14824_v59 = vld [vmem:[%s27014_s7 + $0x380] sm:$0xff] }
 0x654   :  { %18737 = vmatpush3.msra.mxu1 %v14763_v9  ;;  %18764 = vmatpush3.msra.mxu0 %v14776_v20  ;;  %v14810_v61 = vld [vmem:[%s27014_s7 + $0x318] sm:$0xff]  ;;  %v14809_v20 = vld [vmem:[%s27014_s7 + $0x310] sm:$0xff] }
 0x655   :  { %18738 = vmatprep.subr.mxu1 %v27175_v54  ;;  %18765 = vmatprep.subr.mxu0 %v27175_v54  ;;  %v14823_v9 = vld [vmem:[%s27014_s7 + $0x378] sm:$0xff] }
 0x656   :  { %18739 = vmatpush3.msra.mxu1 %v14762_v30  ;;  %18766 = vmatpush3.msra.mxu0 %v14775_v55  ;;  %v14822_v30 = vld [vmem:[%s27014_s7 + $0x370] sm:$0xff]  ;;  %v14808_v55 = vld [vmem:[%s27014_s7 + $0x308] sm:$0xff] }
 0x657   :  { %18740 = vmatprep.subr.mxu1 %v27175_v54  ;;  %18767 = vmatprep.subr.mxu0 %v27175_v54 }
 0x658   :  { %18741 = vmatpush3.msra.mxu1 %v14761_v57  ;;  %18768 = vmatpush3.msra.mxu0 %v14774_v49  ;;  %v14821_v57 = vld [vmem:[%s27014_s7 + $0x368] sm:$0xff]  ;;  %v14807_v49 = vld [vmem:[%s27014_s7 + $0x300] sm:$0xff] }
 0x659   :  { %18742 = vmatprep.subr.mxu1 %v27175_v54  ;;  %18769 = vmatprep.subr.mxu0 %v27175_v54 }
 0x65a   :  { %18743 = vmatpush3.msra.mxu1 %v14760_v62  ;;  %18770 = vmatpush3.msra.mxu0 %v14773_v53  ;;  %v14820_v62 = vld [vmem:[%s27014_s7 + $0x360] sm:$0xff]  ;;  %v14844_v53 = vld [vmem:[%s27014_s7 + $0x418] sm:$0xff] }
 0x65b   :  { %18744 = vmatprep.subr.mxu1 %v27175_v54  ;;  %18771 = vmatprep.subr.mxu0 %v27175_v54 }
 0x65c   :  { %18745 = vmatpush3.msra.mxu1 %v14759_v28  ;;  %18772 = vmatpush3.msra.mxu0 %v14772_v37  ;;  %v9691_v28 = vld [vmem:[#allocation4 + $0xe] sm:$0x1]  ;;  %v9779_v37 = vld [vmem:[#allocation4 + $0xf] sm:$0x1] }
 0x65d   :  { %18746 = vmatprep.subr.mxu1 %v27175_v54  ;;  %18773 = vmatprep.subr.mxu0 %v27175_v54 }
 0x65e   :  { %18747 = vmatpush3.msra.mxu1 %v14758_v47  ;;  %18774 = vmatpush3.msra.mxu0 %v14771_v15  ;;  %v14857_v47 = vld [vmem:[%s27014_s7 + $0x478] sm:$0xff]  ;;  %v14843_v15 = vld [vmem:[%s27014_s7 + $0x410] sm:$0xff] }
 0x65f   :  { %18748 = vmatprep.subr.mxu1 %v27175_v54  ;;  %18775 = vmatprep.subr.mxu0 %v27175_v54 }
 0x660   :  { %18749 = vmatpush3.msra.mxu1 %v14757_v52  ;;  %18776 = vmatpush3.msra.mxu0 %v14770_v3  ;;  %v14856_v52 = vld [vmem:[%s27014_s7 + $0x470] sm:$0xff]  ;;  %v14842_v3 = vld [vmem:[%s27014_s7 + $0x408] sm:$0xff] }
 0x661   :  { %18750 = vmatprep.subr.mxu1 %v27175_v54  ;;  %18777 = vmatprep.subr.mxu0 %v27175_v54 }
 0x662   :  { %18751 = vmatpush3.msra.mxu1 %v14756_v36  ;;  %18778 = vmatpush3.msra.mxu0 %v14769_v35  ;;  %v14855_v36 = vld [vmem:[%s27014_s7 + $0x468] sm:$0xff]  ;;  %v14841_v35 = vld [vmem:[%s27014_s7 + $0x400] sm:$0xff] }
 0x663   :  { %18752 = vmatprep.subr.mxu1 %v27175_v54  ;;  %18779 = vmatprep.subr.mxu0 %v27175_v54 }
 0x664   :  { %18753 = vmatpush3.msra.mxu1 %v14755_v27  ;;  %18754 = vmatprep.mubr.msk.f32.mxu1 %vm20160_vm1, %v27175_v54  ;;  %v14854_v27 = vld [vmem:[%s27014_s7 + $0x460] sm:$0xff] }
 0x665   :  { %18780 = vmatpush3.msra.mxu0 %v14768_v0  ;;  %18781 = vmatprep.mubr.msk.f32.mxu0 %vm20160_vm1, %v27175_v54  ;;  %v14840_v0 = vld [vmem:[%s27014_s7 + $0x3f8] sm:$0xff] }
 0x666   :  { %18755 = vmatmul.mubr.msk.f32.vlgmr.msra.gmra.mxu1 %vm8967_vm6, %v9339_v56  ;;  %18782 = vmatmul.mubr.msk.f32.vlgmr.msra.gmra.mxu0 %vm8967_vm6, %v9427_v46  ;;  %v14839_v56 = vld [vmem:[%s27014_s7 + $0x3f0] sm:$0xff] }
 0x667   :  { %18784 = vmatprep.subr.mxu1 %v27175_v54  ;;  %18811 = vmatprep.subr.mxu0 %v27175_v54  ;;  %v14852_v46 = vld [vmem:[%s27014_s7 + $0x450] sm:$0xff] }
 0x668   :  { %18785 = vmatpush3.msra.mxu1 %v14792_v2  ;;  %18812 = vmatpush3.msra.mxu0 %v14805_v13  ;;  %v14853_v2 = vld [vmem:[%s27014_s7 + $0x458] sm:$0xff]  ;;  %v14838_v13 = vld [vmem:[%s27014_s7 + $0x3e8] sm:$0xff] }
 0x669   :  { %18786 = vmatprep.subr.mxu1 %v27175_v54  ;;  %18813 = vmatprep.subr.mxu0 %v27175_v54 }
 0x66a   :  { %18787 = vmatpush3.msra.mxu1 %v14791_v7  ;;  %18814 = vmatpush3.msra.mxu0 %v14804_v38  ;;  %v14851_v7 = vld [vmem:[%s27014_s7 + $0x448] sm:$0xff]  ;;  %v14837_v38 = vld [vmem:[%s27014_s7 + $0x3e0] sm:$0xff] }
 0x66b   :  { %18788 = vmatprep.subr.mxu1 %v27175_v54  ;;  %18815 = vmatprep.subr.mxu0 %v27175_v54 }
 0x66c   :  { %18789 = vmatpush3.msra.mxu1 %v14790_v1  ;;  %18816 = vmatpush3.msra.mxu0 %v14803_v16  ;;  %v14850_v1 = vld [vmem:[%s27014_s7 + $0x440] sm:$0xff]  ;;  %v14836_v16 = vld [vmem:[%s27014_s7 + $0x3d8] sm:$0xff] }
 0x66d   :  { %18790 = vmatprep.subr.mxu1 %v27175_v54  ;;  %18817 = vmatprep.subr.mxu0 %v27175_v54 }
 0x66e   :  { %18791 = vmatpush3.msra.mxu1 %v14789_v25  ;;  %18818 = vmatpush3.msra.mxu0 %v14802_v17  ;;  %v14849_v25 = vld [vmem:[%s27014_s7 + $0x438] sm:$0xff]  ;;  %v14835_v17 = vld [vmem:[%s27014_s7 + $0x3d0] sm:$0xff] }
 0x66f   :  { %18792 = vmatprep.subr.mxu1 %v27175_v54  ;;  %18819 = vmatprep.subr.mxu0 %v27175_v54 }
 0x670   :  { %18793 = vmatpush3.msra.mxu1 %v14788_v11  ;;  %18820 = vmatpush3.msra.mxu0 %v14801_v45  ;;  %v14848_v11 = vld [vmem:[%s27014_s7 + $0x430] sm:$0xff]  ;;  %v14834_v45 = vld [vmem:[%s27014_s7 + $0x3c8] sm:$0xff] }
 0x671   :  { %18794 = vmatprep.subr.mxu1 %v27175_v54  ;;  %18821 = vmatprep.subr.mxu0 %v27175_v54 }
 0x672   :  { %18795 = vmatpush3.msra.mxu1 %v14787_v51  ;;  %18822 = vmatpush3.msra.mxu0 %v14800_v19  ;;  %v14847_v51 = vld [vmem:[%s27014_s7 + $0x428] sm:$0xff]  ;;  %v14833_v19 = vld [vmem:[%s27014_s7 + $0x3c0] sm:$0xff] }
 0x673   :  { %18796 = vmatprep.subr.mxu1 %v27175_v54  ;;  %18823 = vmatprep.subr.mxu0 %v27175_v54 }
 0x674   :  { %18797 = vmatpush3.msra.mxu1 %v14786_v8  ;;  %18824 = vmatpush3.msra.mxu0 %v14799_v12  ;;  %v14846_v8 = vld [vmem:[%s27014_s7 + $0x420] sm:$0xff]  ;;  %v14870_v12 = vld [vmem:[%s27014_s7 + $0x4d8] sm:$0xff] }
 0x675   :  { %18798 = vmatprep.subr.mxu1 %v27175_v54  ;;  %18825 = vmatprep.subr.mxu0 %v27175_v54 }
 0x676   :  { %18799 = vmatpush3.msra.mxu1 %v14785_v40  ;;  %18826 = vmatpush3.msra.mxu0 %v14798_v34  ;;  %v9867_v40 = vld [vmem:[#allocation4 + $0x10] sm:$0x1]  ;;  %v9955_v34 = vld [vmem:[#allocation4 + $0x11] sm:$0x1] }
 0x677   :  { %18800 = vmatprep.subr.mxu1 %v27175_v54  ;;  %18827 = vmatprep.subr.mxu0 %v27175_v54 }
 0x678   :  { %18801 = vmatpush3.msra.mxu1 %v14784_v48  ;;  %18828 = vmatpush3.msra.mxu0 %v14797_v6  ;;  %v14883_v48 = vld [vmem:[%s27014_s7 + $0x538] sm:$0xff]  ;;  %v14869_v6 = vld [vmem:[%s27014_s7 + $0x4d0] sm:$0xff] }
 0x679   :  { %18802 = vmatprep.subr.mxu1 %v27175_v54  ;;  %18829 = vmatprep.subr.mxu0 %v27175_v54 }
 0x67a   :  { %18803 = vmatpush3.msra.mxu1 %v14783_v5  ;;  %18830 = vmatpush3.msra.mxu0 %v14796_v42  ;;  %v14882_v5 = vld [vmem:[%s27014_s7 + $0x530] sm:$0xff]  ;;  %v14868_v42 = vld [vmem:[%s27014_s7 + $0x4c8] sm:$0xff] }
 0x67b   :  { %18804 = vmatprep.subr.mxu1 %v27175_v54  ;;  %18831 = vmatprep.subr.mxu0 %v27175_v54 }
 0x67c   :  { %18805 = vmatpush3.msra.mxu1 %v14782_v32  ;;  %18832 = vmatpush3.msra.mxu0 %v14795_v44  ;;  %v14881_v32 = vld [vmem:[%s27014_s7 + $0x528] sm:$0xff]  ;;  %v14867_v44 = vld [vmem:[%s27014_s7 + $0x4c0] sm:$0xff] }
 0x67d   :  { %18806 = vmatprep.subr.mxu1 %v27175_v54  ;;  %18833 = vmatprep.subr.mxu0 %v27175_v54 }
 0x67e   :  { %18807 = vmatpush3.msra.mxu1 %v14781_v21  ;;  %18808 = vmatprep.mubr.msk.f32.mxu1 %vm20160_vm1, %v27175_v54  ;;  %v14880_v21 = vld [vmem:[%s27014_s7 + $0x520] sm:$0xff] }
 0x67f   :  { %18834 = vmatpush3.msra.mxu0 %v14794_v31  ;;  %18835 = vmatprep.mubr.msk.f32.mxu0 %vm20160_vm1, %v27175_v54  ;;  %v14866_v31 = vld [vmem:[%s27014_s7 + $0x4b8] sm:$0xff] }
 0x680   :  { %18809 = vmatmul.mubr.msk.f32.vlgmr.msra.gmra.mxu1 %vm8967_vm6, %v9515_v29  ;;  %18836 = vmatmul.mubr.msk.f32.vlgmr.msra.gmra.mxu0 %vm8967_vm6, %v9603_v60  ;;  %v14865_v29 = vld [vmem:[%s27014_s7 + $0x4b0] sm:$0xff] }
 0x681   :  { %18838 = vmatprep.subr.mxu1 %v27175_v54  ;;  %18865 = vmatprep.subr.mxu0 %v27175_v54  ;;  %v14878_v60 = vld [vmem:[%s27014_s7 + $0x510] sm:$0xff] }
 0x682   :  { %18839 = vmatpush3.msra.mxu1 %v14818_v18  ;;  %18866 = vmatpush3.msra.mxu0 %v14831_v43  ;;  %v14879_v18 = vld [vmem:[%s27014_s7 + $0x518] sm:$0xff]  ;;  %v14864_v43 = vld [vmem:[%s27014_s7 + $0x4a8] sm:$0xff] }
 0x683   :  { %18840 = vmatprep.subr.mxu1 %v27175_v54  ;;  %18867 = vmatprep.subr.mxu0 %v27175_v54 }
 0x684   :  { %18841 = vmatpush3.msra.mxu1 %v14817_v63  ;;  %18868 = vmatpush3.msra.mxu0 %v14830_v41  ;;  %v14877_v63 = vld [vmem:[%s27014_s7 + $0x508] sm:$0xff]  ;;  %v14863_v41 = vld [vmem:[%s27014_s7 + $0x4a0] sm:$0xff] }
 0x685   :  { %18842 = vmatprep.subr.mxu1 %v27175_v54  ;;  %18869 = vmatprep.subr.mxu0 %v27175_v54 }
 0x686   :  { %18843 = vmatpush3.msra.mxu1 %v14816_v4  ;;  %18870 = vmatpush3.msra.mxu0 %v14829_v58  ;;  %v14876_v4 = vld [vmem:[%s27014_s7 + $0x500] sm:$0xff]  ;;  %v14862_v58 = vld [vmem:[%s27014_s7 + $0x498] sm:$0xff] }
 0x687   :  { %18844 = vmatprep.subr.mxu1 %v27175_v54  ;;  %18871 = vmatprep.subr.mxu0 %v27175_v54 }
 0x688   :  { %18845 = vmatpush3.msra.mxu1 %v14815_v26  ;;  %18872 = vmatpush3.msra.mxu0 %v14828_v14  ;;  %v14875_v26 = vld [vmem:[%s27014_s7 + $0x4f8] sm:$0xff]  ;;  %v14861_v14 = vld [vmem:[%s27014_s7 + $0x490] sm:$0xff] }
 0x689   :  { %18846 = vmatprep.subr.mxu1 %v27175_v54  ;;  %18873 = vmatprep.subr.mxu0 %v27175_v54 }
 0x68a   :  { %18847 = vmatpush3.msra.mxu1 %v14814_v10  ;;  %18874 = vmatpush3.msra.mxu0 %v14827_v33  ;;  %v14874_v10 = vld [vmem:[%s27014_s7 + $0x4f0] sm:$0xff]  ;;  %v14860_v33 = vld [vmem:[%s27014_s7 + $0x488] sm:$0xff] }
 0x68b   :  { %18848 = vmatprep.subr.mxu1 %v27175_v54  ;;  %18875 = vmatprep.subr.mxu0 %v27175_v54 }
 0x68c   :  { %18849 = vmatpush3.msra.mxu1 %v14813_v50  ;;  %18876 = vmatpush3.msra.mxu0 %v14826_v22  ;;  %v14873_v50 = vld [vmem:[%s27014_s7 + $0x4e8] sm:$0xff]  ;;  %v14859_v22 = vld [vmem:[%s27014_s7 + $0x480] sm:$0xff] }
 0x68d   :  { %18850 = vmatprep.subr.mxu1 %v27175_v54  ;;  %18877 = vmatprep.subr.mxu0 %v27175_v54 }
 0x68e   :  { %18851 = vmatpush3.msra.mxu1 %v14812_v23  ;;  %18878 = vmatpush3.msra.mxu0 %v14825_v39  ;;  %v14872_v23 = vld [vmem:[%s27014_s7 + $0x4e0] sm:$0xff]  ;;  %v10043_v39 = vld [vmem:[#allocation4 + $0x12] sm:$0x1] }
 0x68f   :  { %18852 = vmatprep.subr.mxu1 %v27175_v54  ;;  %18879 = vmatprep.subr.mxu0 %v27175_v54 }
 0x690   :  { %18853 = vmatpush3.msra.mxu1 %v14811_v24  ;;  %18880 = vmatpush3.msra.mxu0 %v14824_v59  ;;  %v10131_v24 = vld [vmem:[#allocation4 + $0x13] sm:$0x1]  ;;  %v14896_v59 = vld [vmem:[%s27014_s7 + $0x598] sm:$0xff] }
 0x691   :  { %18854 = vmatprep.subr.mxu1 %v27175_v54  ;;  %18881 = vmatprep.subr.mxu0 %v27175_v54 }
 0x692   :  { %18855 = vmatpush3.msra.mxu1 %v14810_v61  ;;  %18882 = vmatpush3.msra.mxu0 %v14823_v9  ;;  %v14909_v61 = vld [vmem:[%s27014_s7 + $0x5f8] sm:$0xff]  ;;  %v14895_v9 = vld [vmem:[%s27014_s7 + $0x590] sm:$0xff] }
 0x693   :  { %18856 = vmatprep.subr.mxu1 %v27175_v54  ;;  %18883 = vmatprep.subr.mxu0 %v27175_v54 }
 0x694   :  { %18857 = vmatpush3.msra.mxu1 %v14809_v20  ;;  %18884 = vmatpush3.msra.mxu0 %v14822_v30  ;;  %v14908_v20 = vld [vmem:[%s27014_s7 + $0x5f0] sm:$0xff]  ;;  %v14894_v30 = vld [vmem:[%s27014_s7 + $0x588] sm:$0xff] }
 0x695   :  { %18858 = vmatprep.subr.mxu1 %v27175_v54  ;;  %18885 = vmatprep.subr.mxu0 %v27175_v54 }
 0x696   :  { %18859 = vmatpush3.msra.mxu1 %v14808_v55  ;;  %18886 = vmatpush3.msra.mxu0 %v14821_v57  ;;  %v14907_v55 = vld [vmem:[%s27014_s7 + $0x5e8] sm:$0xff]  ;;  %v14893_v57 = vld [vmem:[%s27014_s7 + $0x580] sm:$0xff] }
 0x697   :  { %18860 = vmatprep.subr.mxu1 %v27175_v54  ;;  %18887 = vmatprep.subr.mxu0 %v27175_v54 }
 0x698   :  { %18861 = vmatpush3.msra.mxu1 %v14807_v49  ;;  %18862 = vmatprep.mubr.msk.f32.mxu1 %vm20160_vm1, %v27175_v54  ;;  %v14906_v49 = vld [vmem:[%s27014_s7 + $0x5e0] sm:$0xff] }
 0x699   :  { %18888 = vmatpush3.msra.mxu0 %v14820_v62  ;;  %18889 = vmatprep.mubr.msk.f32.mxu0 %vm20160_vm1, %v27175_v54  ;;  %v14892_v62 = vld [vmem:[%s27014_s7 + $0x578] sm:$0xff] }
 0x69a   :  { %18863 = vmatmul.mubr.msk.f32.vlgmr.msra.gmra.mxu1 %vm8967_vm6, %v9691_v28  ;;  %18890 = vmatmul.mubr.msk.f32.vlgmr.msra.gmra.mxu0 %vm8967_vm6, %v9779_v37  ;;  %v14891_v28 = vld [vmem:[%s27014_s7 + $0x570] sm:$0xff] }
 0x69b   :  { %18892 = vmatprep.subr.mxu1 %v27175_v54  ;;  %18919 = vmatprep.subr.mxu0 %v27175_v54  ;;  %v14904_v37 = vld [vmem:[%s27014_s7 + $0x5d0] sm:$0xff] }
 0x69c   :  { %18893 = vmatpush3.msra.mxu1 %v14844_v53  ;;  %18920 = vmatpush3.msra.mxu0 %v14857_v47  ;;  %v14905_v53 = vld [vmem:[%s27014_s7 + $0x5d8] sm:$0xff]  ;;  %v14890_v47 = vld [vmem:[%s27014_s7 + $0x568] sm:$0xff] }
 0x69d   :  { %18894 = vmatprep.subr.mxu1 %v27175_v54  ;;  %18921 = vmatprep.subr.mxu0 %v27175_v54 }
 0x69e   :  { %18895 = vmatpush3.msra.mxu1 %v14843_v15  ;;  %18922 = vmatpush3.msra.mxu0 %v14856_v52  ;;  %v14903_v15 = vld [vmem:[%s27014_s7 + $0x5c8] sm:$0xff]  ;;  %v14889_v52 = vld [vmem:[%s27014_s7 + $0x560] sm:$0xff] }
 0x69f   :  { %18896 = vmatprep.subr.mxu1 %v27175_v54  ;;  %18923 = vmatprep.subr.mxu0 %v27175_v54 }
 0x6a0   :  { %18897 = vmatpush3.msra.mxu1 %v14842_v3  ;;  %18924 = vmatpush3.msra.mxu0 %v14855_v36  ;;  %v14902_v3 = vld [vmem:[%s27014_s7 + $0x5c0] sm:$0xff]  ;;  %v14888_v36 = vld [vmem:[%s27014_s7 + $0x558] sm:$0xff] }
 0x6a1   :  { %18898 = vmatprep.subr.mxu1 %v27175_v54  ;;  %18925 = vmatprep.subr.mxu0 %v27175_v54 }
 0x6a2   :  { %18899 = vmatpush3.msra.mxu1 %v14841_v35  ;;  %18926 = vmatpush3.msra.mxu0 %v14854_v27  ;;  %v14901_v35 = vld [vmem:[%s27014_s7 + $0x5b8] sm:$0xff]  ;;  %v14887_v27 = vld [vmem:[%s27014_s7 + $0x550] sm:$0xff] }
 0x6a3   :  { %18900 = vmatprep.subr.mxu1 %v27175_v54  ;;  %18927 = vmatprep.subr.mxu0 %v27175_v54 }
 0x6a4   :  { %18901 = vmatpush3.msra.mxu1 %v14840_v0  ;;  %18928 = vmatpush3.msra.mxu0 %v14853_v2  ;;  %v14900_v0 = vld [vmem:[%s27014_s7 + $0x5b0] sm:$0xff]  ;;  %v14886_v2 = vld [vmem:[%s27014_s7 + $0x548] sm:$0xff] }
 0x6a5   :  { %18902 = vmatprep.subr.mxu1 %v27175_v54  ;;  %18929 = vmatprep.subr.mxu0 %v27175_v54 }
 0x6a6   :  { %18903 = vmatpush3.msra.mxu1 %v14839_v56  ;;  %18930 = vmatpush3.msra.mxu0 %v14852_v46  ;;  %v14899_v56 = vld [vmem:[%s27014_s7 + $0x5a8] sm:$0xff]  ;;  %v14885_v46 = vld [vmem:[%s27014_s7 + $0x540] sm:$0xff] }
 0x6a7   :  { %18904 = vmatprep.subr.mxu1 %v27175_v54  ;;  %18931 = vmatprep.subr.mxu0 %v27175_v54 }
 0x6a8   :  { %18905 = vmatpush3.msra.mxu1 %v14838_v13  ;;  %18932 = vmatpush3.msra.mxu0 %v14851_v7  ;;  %v14898_v13 = vld [vmem:[%s27014_s7 + $0x5a0] sm:$0xff]  ;;  %v10219_v7 = vld [vmem:[#allocation4 + $0x1a] sm:$0x1] }
 0x6a9   :  { %18906 = vmatprep.subr.mxu1 %v27175_v54  ;;  %18933 = vmatprep.subr.mxu0 %v27175_v54 }
 0x6aa   :  { %18907 = vmatpush3.msra.mxu1 %v14837_v38  ;;  %18934 = vmatpush3.msra.mxu0 %v14850_v1  ;;  %v10307_v38 = vld [vmem:[#allocation4 + $0x1b] sm:$0x1]  ;;  %v14922_v1 = vld [vmem:[%s27014_s7 + $0x658] sm:$0xff] }
 0x6ab   :  { %18908 = vmatprep.subr.mxu1 %v27175_v54  ;;  %18935 = vmatprep.subr.mxu0 %v27175_v54 }
 0x6ac   :  { %18909 = vmatpush3.msra.mxu1 %v14836_v16  ;;  %18936 = vmatpush3.msra.mxu0 %v14849_v25  ;;  %v14935_v16 = vld [vmem:[%s27014_s7 + $0x6b8] sm:$0xff]  ;;  %v14921_v25 = vld [vmem:[%s27014_s7 + $0x650] sm:$0xff] }
 0x6ad   :  { %18910 = vmatprep.subr.mxu1 %v27175_v54  ;;  %18937 = vmatprep.subr.mxu0 %v27175_v54 }
 0x6ae   :  { %18911 = vmatpush3.msra.mxu1 %v14835_v17  ;;  %18938 = vmatpush3.msra.mxu0 %v14848_v11  ;;  %v14934_v17 = vld [vmem:[%s27014_s7 + $0x6b0] sm:$0xff]  ;;  %v14920_v11 = vld [vmem:[%s27014_s7 + $0x648] sm:$0xff] }
 0x6af   :  { %18912 = vmatprep.subr.mxu1 %v27175_v54  ;;  %18939 = vmatprep.subr.mxu0 %v27175_v54 }
 0x6b0   :  { %18913 = vmatpush3.msra.mxu1 %v14834_v45  ;;  %18940 = vmatpush3.msra.mxu0 %v14847_v51  ;;  %v14933_v45 = vld [vmem:[%s27014_s7 + $0x6a8] sm:$0xff]  ;;  %v14919_v51 = vld [vmem:[%s27014_s7 + $0x640] sm:$0xff] }
 0x6b1   :  { %18914 = vmatprep.subr.mxu1 %v27175_v54  ;;  %18941 = vmatprep.subr.mxu0 %v27175_v54 }
 0x6b2   :  { %18915 = vmatpush3.msra.mxu1 %v14833_v19  ;;  %18916 = vmatprep.mubr.msk.f32.mxu1 %vm20160_vm1, %v27175_v54  ;;  %v14932_v19 = vld [vmem:[%s27014_s7 + $0x6a0] sm:$0xff] }
 0x6b3   :  { %18942 = vmatpush3.msra.mxu0 %v14846_v8  ;;  %18943 = vmatprep.mubr.msk.f32.mxu0 %vm20160_vm1, %v27175_v54  ;;  %v14918_v8 = vld [vmem:[%s27014_s7 + $0x638] sm:$0xff] }
 0x6b4   :  { %18917 = vmatmul.mubr.msk.f32.vlgmr.msra.gmra.mxu1 %vm8967_vm6, %v9867_v40  ;;  %18944 = vmatmul.mubr.msk.f32.vlgmr.msra.gmra.mxu0 %vm8967_vm6, %v9955_v34  ;;  %v14917_v40 = vld [vmem:[%s27014_s7 + $0x630] sm:$0xff] }
 0x6b5   :  { %18946 = vmatprep.subr.mxu1 %v27175_v54  ;;  %18973 = vmatprep.subr.mxu0 %v27175_v54  ;;  %v14930_v34 = vld [vmem:[%s27014_s7 + $0x690] sm:$0xff] }
 0x6b6   :  { %18947 = vmatpush3.msra.mxu1 %v14870_v12  ;;  %18974 = vmatpush3.msra.mxu0 %v14883_v48  ;;  %v14931_v12 = vld [vmem:[%s27014_s7 + $0x698] sm:$0xff]  ;;  %v14916_v48 = vld [vmem:[%s27014_s7 + $0x628] sm:$0xff] }
 0x6b7   :  { %18948 = vmatprep.subr.mxu1 %v27175_v54  ;;  %18975 = vmatprep.subr.mxu0 %v27175_v54 }
 0x6b8   :  { %18949 = vmatpush3.msra.mxu1 %v14869_v6  ;;  %18976 = vmatpush3.msra.mxu0 %v14882_v5  ;;  %v14929_v6 = vld [vmem:[%s27014_s7 + $0x688] sm:$0xff] }
 0x6b9   :  { %18950 = vmatprep.subr.mxu1 %v27175_v54  ;;  %18977 = vmatprep.subr.mxu0 %v27175_v54 }
 0x6ba   :  { %18951 = vmatpush3.msra.mxu1 %v14868_v42  ;;  %18978 = vmatpush3.msra.mxu0 %v14881_v32 }
 0x6bb   :  { %18952 = vmatprep.subr.mxu1 %v27175_v54  ;;  %18979 = vmatprep.subr.mxu0 %v27175_v54 }
 0x6bc   :  { %18953 = vmatpush3.msra.mxu1 %v14867_v44  ;;  %18980 = vmatpush3.msra.mxu0 %v14880_v21  ;;  %v14915_v44 = vld [vmem:[%s27014_s7 + $0x620] sm:$0xff] }
 0x6bd   :  { %18954 = vmatprep.subr.mxu1 %v27175_v54  ;;  %18981 = vmatprep.subr.mxu0 %v27175_v54  ;;  %v14928_v21 = vld [vmem:[%s27014_s7 + $0x680] sm:$0xff] }
 0x6be   :  { %18955 = vmatpush3.msra.mxu1 %v14866_v31  ;;  %18982 = vmatpush3.msra.mxu0 %v14879_v18 }
 0x6bf   :  { %18956 = vmatprep.subr.mxu1 %v27175_v54  ;;  %18983 = vmatprep.subr.mxu0 %v27175_v54 }
 0x6c0   :  { %18957 = vmatpush3.msra.mxu1 %v14865_v29  ;;  %18984 = vmatpush3.msra.mxu0 %v14878_v60  ;;  %v14914_v29 = vld [vmem:[%s27014_s7 + $0x618] sm:$0xff] }
 0x6c1   :  { %18958 = vmatprep.subr.mxu1 %v27175_v54  ;;  %18985 = vmatprep.subr.mxu0 %v27175_v54  ;;  %v14927_v60 = vld [vmem:[%s27014_s7 + $0x678] sm:$0xff] }
 0x6c2   :  { %18959 = vmatpush3.msra.mxu1 %v14864_v43  ;;  %18986 = vmatpush3.msra.mxu0 %v14877_v63  ;;  %v14913_v43 = vld [vmem:[%s27014_s7 + $0x610] sm:$0xff] }
 0x6c3   :  { %18960 = vmatprep.subr.mxu1 %v27175_v54  ;;  %18987 = vmatprep.subr.mxu0 %v27175_v54  ;;  %v14926_v63 = vld [vmem:[%s27014_s7 + $0x670] sm:$0xff] }
 0x6c4   :  { %18961 = vmatpush3.msra.mxu1 %v14863_v41  ;;  %18988 = vmatpush3.msra.mxu0 %v14876_v4  ;;  %v14912_v41 = vld [vmem:[%s27014_s7 + $0x608] sm:$0xff] }
 0x6c5   :  { %18962 = vmatprep.subr.mxu1 %v27175_v54  ;;  %18989 = vmatprep.subr.mxu0 %v27175_v54  ;;  %v14925_v4 = vld [vmem:[%s27014_s7 + $0x668] sm:$0xff] }
 0x6c6   :  { %18963 = vmatpush3.msra.mxu1 %v14862_v58  ;;  %18990 = vmatpush3.msra.mxu0 %v14875_v26  ;;  %v14911_v58 = vld [vmem:[%s27014_s7 + $0x600] sm:$0xff] }
 0x6c7   :  { %18964 = vmatprep.subr.mxu1 %v27175_v54  ;;  %18991 = vmatprep.subr.mxu0 %v27175_v54  ;;  %v14924_v26 = vld [vmem:[%s27014_s7 + $0x660] sm:$0xff] }
 0x6c8   :  { %18965 = vmatpush3.msra.mxu1 %v14861_v14  ;;  %18992 = vmatpush3.msra.mxu0 %v14874_v10  ;;  %v10395_v14 = vld [vmem:[#allocation4 + $0x1c] sm:$0x1]  ;;  %v10483_v10 = vld [vmem:[#allocation4 + $0x1d] sm:$0x1] }
 0x6c9   :  { %18966 = vmatprep.subr.mxu1 %v27175_v54  ;;  %18993 = vmatprep.subr.mxu0 %v27175_v54 }
 0x6ca   :  { %18967 = vmatpush3.msra.mxu1 %v14860_v33  ;;  %18994 = vmatpush3.msra.mxu0 %v14873_v50  ;;  %v14948_v33 = vld [vmem:[%s27014_s7 + $0x718] sm:$0xff] }
 0x6cb   :  { %18968 = vmatprep.subr.mxu1 %v27175_v54  ;;  %18995 = vmatprep.subr.mxu0 %v27175_v54  ;;  %v14961_v50 = vld [vmem:[%s27014_s7 + $0x778] sm:$0xff] }
 0x6cc   :  { %18969 = vmatpush3.msra.mxu1 %v14859_v22  ;;  %18970 = vmatprep.mubr.msk.f32.mxu1 %vm20160_vm1, %v27175_v54  ;;  %v14947_v22 = vld [vmem:[%s27014_s7 + $0x710] sm:$0xff] }
 0x6cd   :  { %18996 = vmatpush3.msra.mxu0 %v14872_v23  ;;  %18997 = vmatprep.mubr.msk.f32.mxu0 %vm20160_vm1, %v27175_v54  ;;  %v14960_v23 = vld [vmem:[%s27014_s7 + $0x770] sm:$0xff] }
 0x6ce   :  { %18971 = vmatmul.mubr.msk.f32.vlgmr.msra.gmra.mxu1 %vm8967_vm6, %v10043_v39  ;;  %18998 = vmatmul.mubr.msk.f32.vlgmr.msra.gmra.mxu0 %vm8967_vm6, %v10131_v24  ;;  %v14946_v39 = vld [vmem:[%s27014_s7 + $0x708] sm:$0xff] }
 0x6cf   :  { %19000 = vmatprep.subr.mxu1 %v27175_v54  ;;  %19027 = vmatprep.subr.mxu0 %v27175_v54  ;;  %v14959_v24 = vld [vmem:[%s27014_s7 + $0x768] sm:$0xff] }
 0x6d0   :  { %19001 = vmatpush3.msra.mxu1 %v14896_v59  ;;  %19028 = vmatpush3.msra.mxu0 %v14909_v61  ;;  %v14945_v59 = vld [vmem:[%s27014_s7 + $0x700] sm:$0xff] }
 0x6d1   :  { %19002 = vmatprep.subr.mxu1 %v27175_v54  ;;  %19029 = vmatprep.subr.mxu0 %v27175_v54  ;;  %v14958_v61 = vld [vmem:[%s27014_s7 + $0x760] sm:$0xff] }
 0x6d2   :  { %19003 = vmatpush3.msra.mxu1 %v14895_v9  ;;  %19030 = vmatpush3.msra.mxu0 %v14908_v20  ;;  %v14944_v9 = vld [vmem:[%s27014_s7 + $0x6f8] sm:$0xff] }
 0x6d3   :  { %19004 = vmatprep.subr.mxu1 %v27175_v54  ;;  %19031 = vmatprep.subr.mxu0 %v27175_v54  ;;  %v14957_v20 = vld [vmem:[%s27014_s7 + $0x758] sm:$0xff] }
 0x6d4   :  { %19005 = vmatpush3.msra.mxu1 %v14894_v30  ;;  %19032 = vmatpush3.msra.mxu0 %v14907_v55  ;;  %v14943_v30 = vld [vmem:[%s27014_s7 + $0x6f0] sm:$0xff] }
 0x6d5   :  { %19006 = vmatprep.subr.mxu1 %v27175_v54  ;;  %19033 = vmatprep.subr.mxu0 %v27175_v54  ;;  %v14956_v55 = vld [vmem:[%s27014_s7 + $0x750] sm:$0xff] }
 0x6d6   :  { %19007 = vmatpush3.msra.mxu1 %v14893_v57  ;;  %19034 = vmatpush3.msra.mxu0 %v14906_v49 }
 0x6d7   :  { %19008 = vmatprep.subr.mxu1 %v27175_v54  ;;  %19035 = vmatprep.subr.mxu0 %v27175_v54 }
 0x6d8   :  { %19009 = vmatpush3.msra.mxu1 %v14892_v62  ;;  %19036 = vmatpush3.msra.mxu0 %v14905_v53  ;;  %v14942_v62 = vld [vmem:[%s27014_s7 + $0x6e8] sm:$0xff] }
 0x6d9   :  { %19010 = vmatprep.subr.mxu1 %v27175_v54  ;;  %19037 = vmatprep.subr.mxu0 %v27175_v54  ;;  %v14955_v53 = vld [vmem:[%s27014_s7 + $0x748] sm:$0xff] }
 0x6da   :  { %19011 = vmatpush3.msra.mxu1 %v14891_v28  ;;  %19038 = vmatpush3.msra.mxu0 %v14904_v37 }
 0x6db   :  { %19012 = vmatprep.subr.mxu1 %v27175_v54  ;;  %19039 = vmatprep.subr.mxu0 %v27175_v54 }
 0x6dc   :  { %19013 = vmatpush3.msra.mxu1 %v14890_v47  ;;  %19040 = vmatpush3.msra.mxu0 %v14903_v15  ;;  %v14941_v15 = vld [vmem:[%s27014_s7 + $0x6e0] sm:$0xff] }
 0x6dd   :  { %19014 = vmatprep.subr.mxu1 %v27175_v54  ;;  %19041 = vmatprep.subr.mxu0 %v27175_v54 }
 0x6de   :  { %19015 = vmatpush3.msra.mxu1 %v14889_v52  ;;  %19042 = vmatpush3.msra.mxu0 %v14902_v3  ;;  %v14954_v52 = vld [vmem:[%s27014_s7 + $0x740] sm:$0xff] }
 0x6df   :  { %19016 = vmatprep.subr.mxu1 %v27175_v54  ;;  %19043 = vmatprep.subr.mxu0 %v27175_v54 }
 0x6e0   :  { %19017 = vmatpush3.msra.mxu1 %v14888_v36  ;;  %19044 = vmatpush3.msra.mxu0 %v14901_v35  ;;  %v14940_v36 = vld [vmem:[%s27014_s7 + $0x6d8] sm:$0xff] }
 0x6e1   :  { %19018 = vmatprep.subr.mxu1 %v27175_v54  ;;  %19045 = vmatprep.subr.mxu0 %v27175_v54  ;;  %v14953_v35 = vld [vmem:[%s27014_s7 + $0x738] sm:$0xff] }
 0x6e2   :  { %19019 = vmatpush3.msra.mxu1 %v14887_v27  ;;  %19046 = vmatpush3.msra.mxu0 %v14900_v0  ;;  %v14939_v27 = vld [vmem:[%s27014_s7 + $0x6d0] sm:$0xff] }
 0x6e3   :  { %19020 = vmatprep.subr.mxu1 %v27175_v54  ;;  %19047 = vmatprep.subr.mxu0 %v27175_v54  ;;  %v14952_v0 = vld [vmem:[%s27014_s7 + $0x730] sm:$0xff] }
 0x6e4   :  { %19021 = vmatpush3.msra.mxu1 %v14886_v2  ;;  %19048 = vmatpush3.msra.mxu0 %v14899_v56  ;;  %v14938_v2 = vld [vmem:[%s27014_s7 + $0x6c8] sm:$0xff] }
 0x6e5   :  { %19022 = vmatprep.subr.mxu1 %v27175_v54  ;;  %19049 = vmatprep.subr.mxu0 %v27175_v54  ;;  %v14951_v56 = vld [vmem:[%s27014_s7 + $0x728] sm:$0xff] }
 0x6e6   :  { %19023 = vmatpush3.msra.mxu1 %v14885_v46  ;;  %19024 = vmatprep.mubr.msk.f32.mxu1 %vm20160_vm1, %v27175_v54  ;;  %v14937_v46 = vld [vmem:[%s27014_s7 + $0x6c0] sm:$0xff] }
 0x6e7   :  { %19050 = vmatpush3.msra.mxu0 %v14898_v13  ;;  %19051 = vmatprep.mubr.msk.f32.mxu0 %vm20160_vm1, %v27175_v54  ;;  %v14950_v13 = vld [vmem:[%s27014_s7 + $0x720] sm:$0xff] }
 0x6e8   :  { %19025 = vmatmul.mubr.msk.f32.vlgmr.msra.gmra.mxu1 %vm8967_vm6, %v10219_v7  ;;  %19052 = vmatmul.mubr.msk.f32.vlgmr.msra.gmra.mxu0 %vm8967_vm6, %v10307_v38  ;;  %v10571_v7 = vld [vmem:[#allocation4 + $0x1e] sm:$0x1]  ;;  %v10659_v38 = vld [vmem:[#allocation4 + $0x1f] sm:$0x1] }
 0x6e9   :  { %19054 = vmatprep.subr.mxu1 %v27175_v54  ;;  %19081 = vmatprep.subr.mxu0 %v27175_v54 }
 0x6ea   :  { %19055 = vmatpush3.msra.mxu1 %v14922_v1  ;;  %19082 = vmatpush3.msra.mxu0 %v14935_v16  ;;  %v14974_v1 = vld [vmem:[%s27014_s7 + $0x7d8] sm:$0xff] }
 0x6eb   :  { %19056 = vmatprep.subr.mxu1 %v27175_v54  ;;  %19083 = vmatprep.subr.mxu0 %v27175_v54  ;;  %v14987_v16 = vld [vmem:[%s27014_s7 + $0x838] sm:$0xff] }
 0x6ec   :  { %19057 = vmatpush3.msra.mxu1 %v14921_v25  ;;  %19084 = vmatpush3.msra.mxu0 %v14934_v17  ;;  %v14973_v25 = vld [vmem:[%s27014_s7 + $0x7d0] sm:$0xff] }
 0x6ed   :  { %19058 = vmatprep.subr.mxu1 %v27175_v54  ;;  %19085 = vmatprep.subr.mxu0 %v27175_v54  ;;  %v14986_v17 = vld [vmem:[%s27014_s7 + $0x830] sm:$0xff] }
 0x6ee   :  { %19059 = vmatpush3.msra.mxu1 %v14920_v11  ;;  %19086 = vmatpush3.msra.mxu0 %v14933_v45  ;;  %v14972_v11 = vld [vmem:[%s27014_s7 + $0x7c8] sm:$0xff] }
 0x6ef   :  { %19060 = vmatprep.subr.mxu1 %v27175_v54  ;;  %19087 = vmatprep.subr.mxu0 %v27175_v54  ;;  %v14985_v45 = vld [vmem:[%s27014_s7 + $0x828] sm:$0xff] }
 0x6f0   :  { %19061 = vmatpush3.msra.mxu1 %v14919_v51  ;;  %19088 = vmatpush3.msra.mxu0 %v14932_v19  ;;  %v14971_v51 = vld [vmem:[%s27014_s7 + $0x7c0] sm:$0xff] }
 0x6f1   :  { %19062 = vmatprep.subr.mxu1 %v27175_v54  ;;  %19089 = vmatprep.subr.mxu0 %v27175_v54  ;;  %v14984_v19 = vld [vmem:[%s27014_s7 + $0x820] sm:$0xff] }
 0x6f2   :  { %19063 = vmatpush3.msra.mxu1 %v14918_v8  ;;  %19090 = vmatpush3.msra.mxu0 %v14931_v12  ;;  %v14970_v8 = vld [vmem:[%s27014_s7 + $0x7b8] sm:$0xff] }
 0x6f3   :  { %19064 = vmatprep.subr.mxu1 %v27175_v54  ;;  %19091 = vmatprep.subr.mxu0 %v27175_v54  ;;  %v9086_v5 = vpop.f32.mrf.mxu1  ;;  %v9159_v42 = vpop.f32.mrf.mxu0  ;;  %v14983_v12 = vld [vmem:[%s27014_s7 + $0x818] sm:$0xff] }
 0x6f4   :  { %19065 = vmatpush3.msra.mxu1 %v14917_v40  ;;  %19092 = vmatpush3.msra.mxu0 %v14930_v34  ;;  %v24950_v32 = vadd.f32 %v9159_v42, %v9086_v5  ;;  %v14969_v40 = vld [vmem:[%s27014_s7 + $0x7b0] sm:$0xff]  ;;  %v14968_v5 = vld [vmem:[%s27014_s7 + $0x7a8] sm:$0xff] }
 0x6f5   :  { %19066 = vmatprep.subr.mxu1 %v27175_v54  ;;  %19093 = vmatprep.subr.mxu0 %v27175_v54  ;;  %v18648_v31 = vpop.f32.mrf.mxu1  ;;  %v18675_v18 = vpop.f32.mrf.mxu0  ;;  %v14982_v34 = vld [vmem:[%s27014_s7 + $0x810] sm:$0xff]  ;;  %v14981_v42 = vld [vmem:[%s27014_s7 + $0x808] sm:$0xff] }
 0x6f6   :  { %19067 = vmatpush3.msra.mxu1 %v14916_v48  ;;  %19094 = vmatpush3.msra.mxu0 %v14929_v6  ;;  %v14967_v31 = vld [vmem:[%s27014_s7 + $0x7a0] sm:$0xff] }
 0x6f7   :  { %19068 = vmatprep.subr.mxu1 %v27175_v54  ;;  %19095 = vmatprep.subr.mxu0 %v27175_v54  ;;  %v14980_v18 = vld [vmem:[%s27014_s7 + $0x800] sm:$0xff] }
 0x6f8   :  { %19069 = vmatpush3.msra.mxu1 %v14915_v44  ;;  %19096 = vmatpush3.msra.mxu0 %v14928_v21 }
 0x6f9   :  { %19070 = vmatprep.subr.mxu1 %v27175_v54  ;;  %19097 = vmatprep.subr.mxu0 %v27175_v54 }
 0x6fa   :  { %19071 = vmatpush3.msra.mxu1 %v14914_v29  ;;  %19098 = vmatpush3.msra.mxu0 %v14927_v60  ;;  %v14966_v60 = vld [vmem:[%s27014_s7 + $0x798] sm:$0xff] }
 0x6fb   :  { %19072 = vmatprep.subr.mxu1 %v27175_v54  ;;  %19099 = vmatprep.subr.mxu0 %v27175_v54 }
 0x6fc   :  { %19073 = vmatpush3.msra.mxu1 %v14913_v43  ;;  %19100 = vmatpush3.msra.mxu0 %v14926_v63  ;;  %v14979_v43 = vld [vmem:[%s27014_s7 + $0x7f8] sm:$0xff]  ;;  %v14965_v63 = vld [vmem:[%s27014_s7 + $0x790] sm:$0xff] }
 0x6fd   :  { %19074 = vmatprep.subr.mxu1 %v27175_v54  ;;  %19101 = vmatprep.subr.mxu0 %v27175_v54 }
 0x6fe   :  { %19075 = vmatpush3.msra.mxu1 %v14912_v41  ;;  %19102 = vmatpush3.msra.mxu0 %v14925_v4  ;;  %v14978_v41 = vld [vmem:[%s27014_s7 + $0x7f0] sm:$0xff]  ;;  %v14964_v4 = vld [vmem:[%s27014_s7 + $0x788] sm:$0xff] }
 0x6ff   :  { %19076 = vmatprep.subr.mxu1 %v27175_v54  ;;  %19103 = vmatprep.subr.mxu0 %v27175_v54 }
 0x700   :  { %19077 = vmatpush3.msra.mxu1 %v14911_v58  ;;  %19078 = vmatprep.mubr.msk.f32.mxu1 %vm20160_vm1, %v27175_v54  ;;  %v14977_v58 = vld [vmem:[%s27014_s7 + $0x7e8] sm:$0xff] }
 0x701   :  { %19104 = vmatpush3.msra.mxu0 %v14924_v26  ;;  %19105 = vmatprep.mubr.msk.f32.mxu0 %vm20160_vm1, %v27175_v54  ;;  %v14963_v26 = vld [vmem:[%s27014_s7 + $0x780] sm:$0xff] }
 0x702   :  { %19079 = vmatmul.mubr.msk.f32.vlgmr.msra.gmra.mxu1 %vm8967_vm6, %v10395_v14  ;;  %19106 = vmatmul.mubr.msk.f32.vlgmr.msra.gmra.mxu0 %vm8967_vm6, %v10483_v10  ;;  %v14976_v14 = vld [vmem:[%s27014_s7 + $0x7e0] sm:$0xff]  ;;  %v10747_v10 = vld [vmem:[#allocation4 + $0x20] sm:$0x1] }
 0x703   :  { %19108 = vmatprep.subr.mxu1 %v27175_v54  ;;  %19135 = vmatprep.subr.mxu0 %v27175_v54 }
 0x704   :  { %19109 = vmatpush3.msra.mxu1 %v14948_v33  ;;  %19136 = vmatpush3.msra.mxu0 %v14961_v50  ;;  %v10835_v33 = vld [vmem:[#allocation4 + $0x27] sm:$0x1] }
 0x705   :  { %19110 = vmatprep.subr.mxu1 %v27175_v54  ;;  %19137 = vmatprep.subr.mxu0 %v27175_v54  ;;  %v15000_v50 = vld [vmem:[%s27014_s7 + $0x898] sm:$0xff] }
 0x706   :  { %19111 = vmatpush3.msra.mxu1 %v14947_v22  ;;  %19138 = vmatpush3.msra.mxu0 %v14960_v23  ;;  %v15013_v22 = vld [vmem:[%s27014_s7 + $0x8f8] sm:$0xff]  ;;  %v14999_v23 = vld [vmem:[%s27014_s7 + $0x890] sm:$0xff] }
 0x707   :  { %19112 = vmatprep.subr.mxu1 %v27175_v54  ;;  %19139 = vmatprep.subr.mxu0 %v27175_v54 }
 0x708   :  { %19113 = vmatpush3.msra.mxu1 %v14946_v39  ;;  %19140 = vmatpush3.msra.mxu0 %v14959_v24  ;;  %v15012_v39 = vld [vmem:[%s27014_s7 + $0x8f0] sm:$0xff]  ;;  %v14998_v24 = vld [vmem:[%s27014_s7 + $0x888] sm:$0xff] }
 0x709   :  { %19114 = vmatprep.subr.mxu1 %v27175_v54  ;;  %19141 = vmatprep.subr.mxu0 %v27175_v54 }
 0x70a   :  { %19115 = vmatpush3.msra.mxu1 %v14945_v59  ;;  %19142 = vmatpush3.msra.mxu0 %v14958_v61  ;;  %v15011_v59 = vld [vmem:[%s27014_s7 + $0x8e8] sm:$0xff]  ;;  %v14997_v61 = vld [vmem:[%s27014_s7 + $0x880] sm:$0xff] }
 0x70b   :  { %19116 = vmatprep.subr.mxu1 %v27175_v54  ;;  %19143 = vmatprep.subr.mxu0 %v27175_v54 }
 0x70c   :  { %19117 = vmatpush3.msra.mxu1 %v14944_v9  ;;  %19144 = vmatpush3.msra.mxu0 %v14957_v20  ;;  %v9246_v57 = vpop.f32.mrf.mxu1  ;;  %v9334_v49 = vpop.f32.mrf.mxu0  ;;  %v15010_v9 = vld [vmem:[%s27014_s7 + $0x8e0] sm:$0xff]  ;;  %v14996_v20 = vld [vmem:[%s27014_s7 + $0x878] sm:$0xff] }
 0x70d   :  { %19118 = vmatprep.subr.mxu1 %v27175_v54  ;;  %19145 = vmatprep.subr.mxu0 %v27175_v54  ;;  %v9250_v28 = vadd.f32 %v9246_v57, %v24950_v32  ;;  %v15008_v57 = vld [vmem:[%s27014_s7 + $0x8d0] sm:$0xff] }
 0x70e   :  { %19119 = vmatpush3.msra.mxu1 %v14943_v30  ;;  %19146 = vmatpush3.msra.mxu0 %v14956_v55  ;;  %v18702_v37 = vpop.f32.mrf.mxu1  ;;  %v18729_v47 = vpop.f32.mrf.mxu0  ;;  %v15009_v30 = vld [vmem:[%s27014_s7 + $0x8d8] sm:$0xff]  ;;  %v14995_v55 = vld [vmem:[%s27014_s7 + $0x870] sm:$0xff] }
 0x70f   :  { %19120 = vmatprep.subr.mxu1 %v27175_v54  ;;  %19147 = vmatprep.subr.mxu0 %v27175_v54  ;;  %v25063_v3 = vadd.f32 %v9334_v49, %v9250_v28  ;;  %v15007_v28 = vld [vmem:[%s27014_s7 + $0x8c8] sm:$0xff] }
 0x710   :  { %19121 = vmatpush3.msra.mxu1 %v14942_v62  ;;  %19148 = vmatpush3.msra.mxu0 %v14955_v53  ;;  %v14994_v53 = vld [vmem:[%s27014_s7 + $0x868] sm:$0xff] }
 0x711   :  { %19122 = vmatprep.subr.mxu1 %v27175_v54  ;;  %19149 = vmatprep.subr.mxu0 %v27175_v54 }
 0x712   :  { %19123 = vmatpush3.msra.mxu1 %v14941_v15  ;;  %19150 = vmatpush3.msra.mxu0 %v14954_v52  ;;  %v14993_v52 = vld [vmem:[%s27014_s7 + $0x860] sm:$0xff] }
 0x713   :  { %19124 = vmatprep.subr.mxu1 %v27175_v54  ;;  %19151 = vmatprep.subr.mxu0 %v27175_v54 }
 0x714   :  { %19125 = vmatpush3.msra.mxu1 %v14940_v36  ;;  %19152 = vmatpush3.msra.mxu0 %v14953_v35  ;;  %v14992_v35 = vld [vmem:[%s27014_s7 + $0x858] sm:$0xff] }
 0x715   :  { %19126 = vmatprep.subr.mxu1 %v27175_v54  ;;  %19153 = vmatprep.subr.mxu0 %v27175_v54 }
 0x716   :  { %19127 = vmatpush3.msra.mxu1 %v14939_v27  ;;  %19154 = vmatpush3.msra.mxu0 %v14952_v0  ;;  %v15005_v27 = vld [vmem:[%s27014_s7 + $0x8b8] sm:$0xff]  ;;  %v14991_v0 = vld [vmem:[%s27014_s7 + $0x850] sm:$0xff] }
 0x717   :  { %19128 = vmatprep.subr.mxu1 %v27175_v54  ;;  %19155 = vmatprep.subr.mxu0 %v27175_v54 }
 0x718   :  { %19129 = vmatpush3.msra.mxu1 %v14938_v2  ;;  %19156 = vmatpush3.msra.mxu0 %v14951_v56  ;;  %v15004_v2 = vld [vmem:[%s27014_s7 + $0x8b0] sm:$0xff]  ;;  %v14990_v56 = vld [vmem:[%s27014_s7 + $0x848] sm:$0xff] }
 0x719   :  { %19130 = vmatprep.subr.mxu1 %v27175_v54  ;;  %19157 = vmatprep.subr.mxu0 %v27175_v54 }
 0x71a   :  { %19131 = vmatpush3.msra.mxu1 %v14937_v46  ;;  %19132 = vmatprep.mubr.msk.f32.mxu1 %vm20160_vm1, %v27175_v54  ;;  %v15003_v46 = vld [vmem:[%s27014_s7 + $0x8a8] sm:$0xff] }
 0x71b   :  { %19158 = vmatpush3.msra.mxu0 %v14950_v13  ;;  %19159 = vmatprep.mubr.msk.f32.mxu0 %vm20160_vm1, %v27175_v54  ;;  %v14989_v13 = vld [vmem:[%s27014_s7 + $0x840] sm:$0xff] }
 0x71c   :  { %19133 = vmatmul.mubr.msk.f32.vlgmr.msra.gmra.mxu1 %vm8967_vm6, %v10571_v7  ;;  %19160 = vmatmul.mubr.msk.f32.vlgmr.msra.gmra.mxu0 %vm8967_vm6, %v10659_v38  ;;  %v15002_v7 = vld [vmem:[%s27014_s7 + $0x8a0] sm:$0xff] }
 0x71d   :  { %19162 = vmatprep.subr.mxu1 %v27175_v54  ;;  %19189 = vmatprep.subr.mxu0 %v27175_v54  ;;  %v10923_v38 = vld [vmem:[#allocation4 + $0x28] sm:$0x1] }
 0x71e   :  { %19163 = vmatpush3.msra.mxu1 %v14974_v1  ;;  %19190 = vmatpush3.msra.mxu0 %v14987_v16  ;;  %v11011_v1 = vld [vmem:[#allocation4 + $0x29] sm:$0x1]  ;;  %v15026_v16 = vld [vmem:[%s27014_s7 + $0x958] sm:$0xff] }
 0x71f   :  { %19164 = vmatprep.subr.mxu1 %v27175_v54  ;;  %19191 = vmatprep.subr.mxu0 %v27175_v54 }
 0x720   :  { %19165 = vmatpush3.msra.mxu1 %v14973_v25  ;;  %19192 = vmatpush3.msra.mxu0 %v14986_v17  ;;  %v15039_v25 = vld [vmem:[%s27014_s7 + $0x9b8] sm:$0xff]  ;;  %v15025_v17 = vld [vmem:[%s27014_s7 + $0x950] sm:$0xff] }
 0x721   :  { %19166 = vmatprep.subr.mxu1 %v27175_v54  ;;  %19193 = vmatprep.subr.mxu0 %v27175_v54 }
 0x722   :  { %19167 = vmatpush3.msra.mxu1 %v14972_v11  ;;  %19194 = vmatpush3.msra.mxu0 %v14985_v45  ;;  %v15038_v11 = vld [vmem:[%s27014_s7 + $0x9b0] sm:$0xff]  ;;  %v15024_v45 = vld [vmem:[%s27014_s7 + $0x948] sm:$0xff] }
 0x723   :  { %19168 = vmatprep.subr.mxu1 %v27175_v54  ;;  %19195 = vmatprep.subr.mxu0 %v27175_v54 }
 0x724   :  { %19169 = vmatpush3.msra.mxu1 %v14971_v51  ;;  %19196 = vmatpush3.msra.mxu0 %v14984_v19  ;;  %v15037_v51 = vld [vmem:[%s27014_s7 + $0x9a8] sm:$0xff]  ;;  %v15023_v19 = vld [vmem:[%s27014_s7 + $0x940] sm:$0xff] }
 0x725   :  { %19170 = vmatprep.subr.mxu1 %v27175_v54  ;;  %19197 = vmatprep.subr.mxu0 %v27175_v54 }
 0x726   :  { %19171 = vmatpush3.msra.mxu1 %v14970_v8  ;;  %19198 = vmatpush3.msra.mxu0 %v14983_v12  ;;  %v9422_v48 = vpop.f32.mrf.mxu1  ;;  %v9510_v6 = vpop.f32.mrf.mxu0  ;;  %v15036_v8 = vld [vmem:[%s27014_s7 + $0x9a0] sm:$0xff]  ;;  %v15022_v12 = vld [vmem:[%s27014_s7 + $0x938] sm:$0xff] }
 0x727   :  { %19172 = vmatprep.subr.mxu1 %v27175_v54  ;;  %19199 = vmatprep.subr.mxu0 %v27175_v54  ;;  %v9426_v32 = vadd.f32 %v9422_v48, %v25063_v3  ;;  %v15006_v3 = vld [vmem:[%s27014_s7 + $0x8c0] sm:$0xff]  ;;  %v15034_v48 = vld [vmem:[%s27014_s7 + $0x990] sm:$0xff] }
 0x728   :  { %19173 = vmatpush3.msra.mxu1 %v14969_v40  ;;  %19200 = vmatpush3.msra.mxu0 %v14982_v34  ;;  %v18756_v44 = vpop.f32.mrf.mxu1  ;;  %v18783_v21 = vpop.f32.mrf.mxu0  ;;  %v15035_v40 = vld [vmem:[%s27014_s7 + $0x998] sm:$0xff]  ;;  %v15021_v34 = vld [vmem:[%s27014_s7 + $0x930] sm:$0xff] }
 0x729   :  { %19174 = vmatprep.subr.mxu1 %v27175_v54  ;;  %19201 = vmatprep.subr.mxu0 %v27175_v54  ;;  %v25168_v29 = vadd.f32 %v9510_v6, %v9426_v32  ;;  %v15033_v32 = vld [vmem:[%s27014_s7 + $0x988] sm:$0xff] }
 0x72a   :  { %19175 = vmatpush3.msra.mxu1 %v14968_v5  ;;  %19202 = vmatpush3.msra.mxu0 %v14981_v42  ;;  %v15020_v42 = vld [vmem:[%s27014_s7 + $0x928] sm:$0xff] }
 0x72b   :  { %19176 = vmatprep.subr.mxu1 %v27175_v54  ;;  %19203 = vmatprep.subr.mxu0 %v27175_v54 }
 0x72c   :  { %19177 = vmatpush3.msra.mxu1 %v14967_v31  ;;  %19204 = vmatpush3.msra.mxu0 %v14980_v18  ;;  %v15019_v18 = vld [vmem:[%s27014_s7 + $0x920] sm:$0xff] }
 0x72d   :  { %19178 = vmatprep.subr.mxu1 %v27175_v54  ;;  %19205 = vmatprep.subr.mxu0 %v27175_v54 }
 0x72e   :  { %19179 = vmatpush3.msra.mxu1 %v14966_v60  ;;  %19206 = vmatpush3.msra.mxu0 %v14979_v43  ;;  %v15018_v43 = vld [vmem:[%s27014_s7 + $0x918] sm:$0xff] }
 0x72f   :  { %19180 = vmatprep.subr.mxu1 %v27175_v54  ;;  %19207 = vmatprep.subr.mxu0 %v27175_v54 }
 0x730   :  { %19181 = vmatpush3.msra.mxu1 %v14965_v63  ;;  %19208 = vmatpush3.msra.mxu0 %v14978_v41  ;;  %v15031_v63 = vld [vmem:[%s27014_s7 + $0x978] sm:$0xff]  ;;  %v15017_v41 = vld [vmem:[%s27014_s7 + $0x910] sm:$0xff] }
 0x731   :  { %19182 = vmatprep.subr.mxu1 %v27175_v54  ;;  %19209 = vmatprep.subr.mxu0 %v27175_v54 }
 0x732   :  { %19183 = vmatpush3.msra.mxu1 %v14964_v4  ;;  %19210 = vmatpush3.msra.mxu0 %v14977_v58  ;;  %v15030_v4 = vld [vmem:[%s27014_s7 + $0x970] sm:$0xff]  ;;  %v15016_v58 = vld [vmem:[%s27014_s7 + $0x908] sm:$0xff] }
 0x733   :  { %19184 = vmatprep.subr.mxu1 %v27175_v54  ;;  %19211 = vmatprep.subr.mxu0 %v27175_v54 }
 0x734   :  { %19185 = vmatpush3.msra.mxu1 %v14963_v26  ;;  %19186 = vmatprep.mubr.msk.f32.mxu1 %vm20160_vm1, %v27175_v54  ;;  %v15029_v26 = vld [vmem:[%s27014_s7 + $0x968] sm:$0xff] }
 0x735   :  { %19212 = vmatpush3.msra.mxu0 %v14976_v14  ;;  %19213 = vmatprep.mubr.msk.f32.mxu0 %vm20160_vm1, %v27175_v54  ;;  %v15015_v14 = vld [vmem:[%s27014_s7 + $0x900] sm:$0xff] }
 0x736   :  { %19187 = vmatmul.mubr.msk.f32.vlgmr.msra.gmra.mxu1 %vm8967_vm6, %v10747_v10  ;;  %19214 = vmatmul.mubr.msk.f32.vlgmr.msra.gmra.mxu0 %vm8967_vm6, %v10835_v33  ;;  %v15028_v10 = vld [vmem:[%s27014_s7 + $0x960] sm:$0xff] }
 0x737   :  { %19216 = vmatprep.subr.mxu1 %v27175_v54  ;;  %19243 = vmatprep.subr.mxu0 %v27175_v54  ;;  %v11099_v33 = vld [vmem:[#allocation4 + $0x2a] sm:$0x1] }
 0x738   :  { %19217 = vmatpush3.msra.mxu1 %v15000_v50  ;;  %19244 = vmatpush3.msra.mxu0 %v15013_v22  ;;  %v11187_v50 = vld [vmem:[#allocation4 + $0x2b] sm:$0x1]  ;;  %v15052_v22 = vld [vmem:[%s27014_s7 + $0xa18] sm:$0xff] }
 0x739   :  { %19218 = vmatprep.subr.mxu1 %v27175_v54  ;;  %19245 = vmatprep.subr.mxu0 %v27175_v54 }
 0x73a   :  { %19219 = vmatpush3.msra.mxu1 %v14999_v23  ;;  %19246 = vmatpush3.msra.mxu0 %v15012_v39  ;;  %v15065_v23 = vld [vmem:[%s27014_s7 + $0xa78] sm:$0xff]  ;;  %v15051_v39 = vld [vmem:[%s27014_s7 + $0xa10] sm:$0xff] }
 0x73b   :  { %19220 = vmatprep.subr.mxu1 %v27175_v54  ;;  %19247 = vmatprep.subr.mxu0 %v27175_v54 }
 0x73c   :  { %19221 = vmatpush3.msra.mxu1 %v14998_v24  ;;  %19248 = vmatpush3.msra.mxu0 %v15011_v59  ;;  %v15064_v24 = vld [vmem:[%s27014_s7 + $0xa70] sm:$0xff]  ;;  %v15050_v59 = vld [vmem:[%s27014_s7 + $0xa08] sm:$0xff] }
 0x73d   :  { %19222 = vmatprep.subr.mxu1 %v27175_v54  ;;  %19249 = vmatprep.subr.mxu0 %v27175_v54 }
 0x73e   :  { %19223 = vmatpush3.msra.mxu1 %v14997_v61  ;;  %19250 = vmatpush3.msra.mxu0 %v15010_v9  ;;  %v15063_v61 = vld [vmem:[%s27014_s7 + $0xa68] sm:$0xff]  ;;  %v15049_v9 = vld [vmem:[%s27014_s7 + $0xa00] sm:$0xff] }
 0x73f   :  { %19224 = vmatprep.subr.mxu1 %v27175_v54  ;;  %19251 = vmatprep.subr.mxu0 %v27175_v54 }
 0x740   :  { %19225 = vmatpush3.msra.mxu1 %v14996_v20  ;;  %19252 = vmatpush3.msra.mxu0 %v15009_v30  ;;  %v9598_v49 = vpop.f32.mrf.mxu1  ;;  %v9686_v62 = vpop.f32.mrf.mxu0  ;;  %v15062_v20 = vld [vmem:[%s27014_s7 + $0xa60] sm:$0xff]  ;;  %v15048_v30 = vld [vmem:[%s27014_s7 + $0x9f8] sm:$0xff] }
 0x741   :  { %19226 = vmatprep.subr.mxu1 %v27175_v54  ;;  %19253 = vmatprep.subr.mxu0 %v27175_v54  ;;  %v9602_v37 = vadd.f32 %v9598_v49, %v25168_v29  ;;  %v15032_v29 = vld [vmem:[%s27014_s7 + $0x980] sm:$0xff]  ;;  %v15060_v49 = vld [vmem:[%s27014_s7 + $0xa50] sm:$0xff] }
 0x742   :  { %19227 = vmatpush3.msra.mxu1 %v14995_v55  ;;  %19254 = vmatpush3.msra.mxu0 %v15008_v57  ;;  %v18810_v47 = vpop.f32.mrf.mxu1  ;;  %v18837_v15 = vpop.f32.mrf.mxu0  ;;  %v15061_v55 = vld [vmem:[%s27014_s7 + $0xa58] sm:$0xff]  ;;  %v15047_v57 = vld [vmem:[%s27014_s7 + $0x9f0] sm:$0xff] }
 0x743   :  { %19228 = vmatprep.subr.mxu1 %v27175_v54  ;;  %19255 = vmatprep.subr.mxu0 %v27175_v54  ;;  %v25273_v36 = vadd.f32 %v9686_v62, %v9602_v37  ;;  %v15059_v37 = vld [vmem:[%s27014_s7 + $0xa48] sm:$0xff] }
 0x744   :  { %19229 = vmatpush3.msra.mxu1 %v14994_v53  ;;  %19256 = vmatpush3.msra.mxu0 %v15007_v28  ;;  %v15046_v28 = vld [vmem:[%s27014_s7 + $0x9e8] sm:$0xff] }
 0x745   :  { %19230 = vmatprep.subr.mxu1 %v27175_v54  ;;  %19257 = vmatprep.subr.mxu0 %v27175_v54 }
 0x746   :  { %19231 = vmatpush3.msra.mxu1 %v14993_v52  ;;  %19258 = vmatpush3.msra.mxu0 %v15006_v3  ;;  %v15045_v3 = vld [vmem:[%s27014_s7 + $0x9e0] sm:$0xff] }
 0x747   :  { %19232 = vmatprep.subr.mxu1 %v27175_v54  ;;  %19259 = vmatprep.subr.mxu0 %v27175_v54 }
 0x748   :  { %19233 = vmatpush3.msra.mxu1 %v14992_v35  ;;  %19260 = vmatpush3.msra.mxu0 %v15005_v27  ;;  %v15044_v27 = vld [vmem:[%s27014_s7 + $0x9d8] sm:$0xff] }
 0x749   :  { %19234 = vmatprep.subr.mxu1 %v27175_v54  ;;  %19261 = vmatprep.subr.mxu0 %v27175_v54 }
 0x74a   :  { %19235 = vmatpush3.msra.mxu1 %v14991_v0  ;;  %19262 = vmatpush3.msra.mxu0 %v15004_v2  ;;  %v15057_v0 = vld [vmem:[%s27014_s7 + $0xa38] sm:$0xff]  ;;  %v15043_v2 = vld [vmem:[%s27014_s7 + $0x9d0] sm:$0xff] }
 0x74b   :  { %19236 = vmatprep.subr.mxu1 %v27175_v54  ;;  %19263 = vmatprep.subr.mxu0 %v27175_v54 }
 0x74c   :  { %19237 = vmatpush3.msra.mxu1 %v14990_v56  ;;  %19264 = vmatpush3.msra.mxu0 %v15003_v46  ;;  %v15056_v56 = vld [vmem:[%s27014_s7 + $0xa30] sm:$0xff]  ;;  %v15042_v46 = vld [vmem:[%s27014_s7 + $0x9c8] sm:$0xff] }
 0x74d   :  { %19238 = vmatprep.subr.mxu1 %v27175_v54  ;;  %19265 = vmatprep.subr.mxu0 %v27175_v54 }
 0x74e   :  { %19239 = vmatpush3.msra.mxu1 %v14989_v13  ;;  %19240 = vmatprep.mubr.msk.f32.mxu1 %vm20160_vm1, %v27175_v54  ;;  %v15055_v13 = vld [vmem:[%s27014_s7 + $0xa28] sm:$0xff] }
 0x74f   :  { %19266 = vmatpush3.msra.mxu0 %v15002_v7  ;;  %19267 = vmatprep.mubr.msk.f32.mxu0 %vm20160_vm1, %v27175_v54  ;;  %v15041_v7 = vld [vmem:[%s27014_s7 + $0x9c0] sm:$0xff] }
 0x750   :  { %19241 = vmatmul.mubr.msk.f32.vlgmr.msra.gmra.mxu1 %vm8967_vm6, %v10923_v38  ;;  %19268 = vmatmul.mubr.msk.f32.vlgmr.msra.gmra.mxu0 %vm8967_vm6, %v11011_v1  ;;  %v15054_v38 = vld [vmem:[%s27014_s7 + $0xa20] sm:$0xff] }
 0x751   :  { %19270 = vmatprep.subr.mxu1 %v27175_v54  ;;  %19297 = vmatprep.subr.mxu0 %v27175_v54  ;;  %v11275_v1 = vld [vmem:[#allocation4 + $0x2c] sm:$0x1] }
 0x752   :  { %19271 = vmatpush3.msra.mxu1 %v15026_v16  ;;  %19298 = vmatpush3.msra.mxu0 %v15039_v25  ;;  %v11363_v16 = vld [vmem:[#allocation4 + $0x2d] sm:$0x1]  ;;  %v15078_v25 = vld [vmem:[%s27014_s7 + $0xb8] sm:$0xff] }
 0x753   :  { %19272 = vmatprep.subr.mxu1 %v27175_v54  ;;  %19299 = vmatprep.subr.mxu0 %v27175_v54 }
 0x754   :  { %19273 = vmatpush3.msra.mxu1 %v15025_v17  ;;  %19300 = vmatpush3.msra.mxu0 %v15038_v11  ;;  %v11467_v17 = vld [vmem:[%s27014_s7 + $0x58] sm:$0xff]  ;;  %v15077_v11 = vld [vmem:[%s27014_s7 + $0xb0] sm:$0xff] }
 0x755   :  { %19274 = vmatprep.subr.mxu1 %v27175_v54  ;;  %19301 = vmatprep.subr.mxu0 %v27175_v54 }
 0x756   :  { %19275 = vmatpush3.msra.mxu1 %v15024_v45  ;;  %19302 = vmatpush3.msra.mxu0 %v15037_v51  ;;  %v11466_v45 = vld [vmem:[%s27014_s7 + $0x50] sm:$0xff]  ;;  %v15076_v51 = vld [vmem:[%s27014_s7 + $0xa8] sm:$0xff] }
 0x757   :  { %19276 = vmatprep.subr.mxu1 %v27175_v54  ;;  %19303 = vmatprep.subr.mxu0 %v27175_v54 }
 0x758   :  { %19277 = vmatpush3.msra.mxu1 %v15023_v19  ;;  %19304 = vmatpush3.msra.mxu0 %v15036_v8  ;;  %v11465_v19 = vld [vmem:[%s27014_s7 + $0x48] sm:$0xff]  ;;  %v15075_v8 = vld [vmem:[%s27014_s7 + $0xa0] sm:$0xff] }
 0x759   :  { %19278 = vmatprep.subr.mxu1 %v27175_v54  ;;  %19305 = vmatprep.subr.mxu0 %v27175_v54 }
 0x75a   :  { %19279 = vmatpush3.msra.mxu1 %v15022_v12  ;;  %19306 = vmatpush3.msra.mxu0 %v15035_v40  ;;  %v9774_v6 = vpop.f32.mrf.mxu1  ;;  %v9862_v5 = vpop.f32.mrf.mxu0  ;;  %v11464_v12 = vld [vmem:[%s27014_s7 + $0x40] sm:$0xff]  ;;  %v15074_v40 = vld [vmem:[%s27014_s7 + $0x98] sm:$0xff] }
 0x75b   :  { %19280 = vmatprep.subr.mxu1 %v27175_v54  ;;  %19307 = vmatprep.subr.mxu0 %v27175_v54  ;;  %v9778_v44 = vadd.f32 %v9774_v6, %v25273_v36  ;;  %v15058_v36 = vld [vmem:[%s27014_s7 + $0xa40] sm:$0xff]  ;;  %v11462_v6 = vld [vmem:[%s27014_s7 + $0x30] sm:$0xff] }
 0x75c   :  { %19281 = vmatpush3.msra.mxu1 %v15021_v34  ;;  %19308 = vmatpush3.msra.mxu0 %v15034_v48  ;;  %v18864_v21 = vpop.f32.mrf.mxu1  ;;  %v18891_v31 = vpop.f32.mrf.mxu0  ;;  %v11463_v34 = vld [vmem:[%s27014_s7 + $0x38] sm:$0xff]  ;;  %v15073_v48 = vld [vmem:[%s27014_s7 + $0x90] sm:$0xff] }
 0x75d   :  { %19282 = vmatprep.subr.mxu1 %v27175_v54  ;;  %19309 = vmatprep.subr.mxu0 %v27175_v54  ;;  %v25378_v60 = vadd.f32 %v9862_v5, %v9778_v44  ;;  %v11461_v44 = vld [vmem:[%s27014_s7 + $0x28] sm:$0xff] }
 0x75e   :  { %19283 = vmatpush3.msra.mxu1 %v15020_v42  ;;  %19310 = vmatpush3.msra.mxu0 %v15033_v32  ;;  %v15072_v32 = vld [vmem:[%s27014_s7 + $0x88] sm:$0xff] }
 0x75f   :  { %19284 = vmatprep.subr.mxu1 %v27175_v54  ;;  %19311 = vmatprep.subr.mxu0 %v27175_v54 }
 0x760   :  { %19285 = vmatpush3.msra.mxu1 %v15019_v18  ;;  %19312 = vmatpush3.msra.mxu0 %v15032_v29  ;;  %v15071_v29 = vld [vmem:[%s27014_s7 + $0x80] sm:$0xff] }
 0x761   :  { %19286 = vmatprep.subr.mxu1 %v27175_v54  ;;  %19313 = vmatprep.subr.mxu0 %v27175_v54 }
 0x762   :  { %19287 = vmatpush3.msra.mxu1 %v15018_v43  ;;  %19314 = vmatpush3.msra.mxu0 %v15031_v63  ;;  %v15070_v63 = vld [vmem:[%s27014_s7 + $0x78] sm:$0xff] }
 0x763   :  { %19288 = vmatprep.subr.mxu1 %v27175_v54  ;;  %19315 = vmatprep.subr.mxu0 %v27175_v54 }
 0x764   :  { %19289 = vmatpush3.msra.mxu1 %v15017_v41  ;;  %19316 = vmatpush3.msra.mxu0 %v15030_v4  ;;  %v11459_v41 = vld [vmem:[%s27014_s7 + $0x18] sm:$0xff]  ;;  %v15069_v4 = vld [vmem:[%s27014_s7 + $0x70] sm:$0xff] }
 0x765   :  { %19290 = vmatprep.subr.mxu1 %v27175_v54  ;;  %19317 = vmatprep.subr.mxu0 %v27175_v54 }
 0x766   :  { %19291 = vmatpush3.msra.mxu1 %v15016_v58  ;;  %19318 = vmatpush3.msra.mxu0 %v15029_v26  ;;  %v11458_v58 = vld [vmem:[%s27014_s7 + $0x10] sm:$0xff]  ;;  %v15068_v26 = vld [vmem:[%s27014_s7 + $0x68] sm:$0xff] }
 0x767   :  { %19292 = vmatprep.subr.mxu1 %v27175_v54  ;;  %19319 = vmatprep.subr.mxu0 %v27175_v54 }
 0x768   :  { %19293 = vmatpush3.msra.mxu1 %v15015_v14  ;;  %19294 = vmatprep.mubr.msk.f32.mxu1 %vm20160_vm1, %v27175_v54  ;;  %v11457_v14 = vld [vmem:[%s27014_s7 + $0x8] sm:$0xff] }
 0x769   :  { %19320 = vmatpush3.msra.mxu0 %v15028_v10  ;;  %19321 = vmatprep.mubr.msk.f32.mxu0 %vm20160_vm1, %v27175_v54  ;;  %v15067_v10 = vld [vmem:[%s27014_s7 + $0x60] sm:$0xff] }
 0x76a   :  { %19295 = vmatmul.mubr.msk.f32.vlgmr.msra.gmra.mxu1 %vm8967_vm6, %v11099_v33  ;;  %19322 = vmatmul.mubr.msk.f32.vlgmr.msra.gmra.mxu0 %vm8967_vm6, %v11187_v50  ;;  %v11456_v33 = vld [vmem:[%s27014_s7] sm:$0xff]  ;;  %v11468_v50 = vld [vmem:[#allocation4 + $0x83] sm:$0x1] }
 0x76b   :  { %19324 = vmatprep.subr.mxu1 %v27175_v54  ;;  %19351 = vmatprep.subr.mxu0 %v27175_v54 }
 0x76c   :  { %19325 = vmatpush3.msra.mxu1 %v15052_v22  ;;  %19352 = vmatpush3.msra.mxu0 %v15065_v23  ;;  %v11455_v22 = vld [vmem:[#allocation4 + $0x82] sm:$0x1] }
 0x76d   :  { %19326 = vmatprep.subr.mxu1 %v27175_v54  ;;  %19353 = vmatprep.subr.mxu0 %v27175_v54  ;;  %v15092_v23 = vld [vmem:[%s27014_s7 + $0x118] sm:$0xff] }
 0x76e   :  { %19327 = vmatpush3.msra.mxu1 %v15051_v39  ;;  %19354 = vmatpush3.msra.mxu0 %v15064_v24  ;;  %v15105_v39 = vld [vmem:[%s27014_s7 + $0x178] sm:$0xff]  ;;  %v15091_v24 = vld [vmem:[%s27014_s7 + $0x110] sm:$0xff] }
 0x76f   :  { %19328 = vmatprep.subr.mxu1 %v27175_v54  ;;  %19355 = vmatprep.subr.mxu0 %v27175_v54 }
 0x770   :  { %19329 = vmatpush3.msra.mxu1 %v15050_v59  ;;  %19356 = vmatpush3.msra.mxu0 %v15063_v61  ;;  %v15104_v59 = vld [vmem:[%s27014_s7 + $0x170] sm:$0xff]  ;;  %v15090_v61 = vld [vmem:[%s27014_s7 + $0x108] sm:$0xff] }
 0x771   :  { %19330 = vmatprep.subr.mxu1 %v27175_v54  ;;  %19357 = vmatprep.subr.mxu0 %v27175_v54 }
 0x772   :  { %19331 = vmatpush3.msra.mxu1 %v15049_v9  ;;  %19358 = vmatpush3.msra.mxu0 %v15062_v20  ;;  %v15103_v9 = vld [vmem:[%s27014_s7 + $0x168] sm:$0xff]  ;;  %v15089_v20 = vld [vmem:[%s27014_s7 + $0x100] sm:$0xff] }
 0x773   :  { %19332 = vmatprep.subr.mxu1 %v27175_v54  ;;  %19359 = vmatprep.subr.mxu0 %v27175_v54 }
 0x774   :  { %19333 = vmatpush3.msra.mxu1 %v15048_v30  ;;  %19360 = vmatpush3.msra.mxu0 %v15061_v55  ;;  %v9950_v62 = vpop.f32.mrf.mxu1  ;;  %v10038_v53 = vpop.f32.mrf.mxu0  ;;  %v15102_v30 = vld [vmem:[%s27014_s7 + $0x160] sm:$0xff]  ;;  %v15088_v55 = vld [vmem:[%s27014_s7 + $0xf8] sm:$0xff] }
 0x775   :  { %19334 = vmatprep.subr.mxu1 %v27175_v54  ;;  %19361 = vmatprep.subr.mxu0 %v27175_v54  ;;  %v9954_v47 = vadd.f32 %v9950_v62, %v25378_v60  ;;  %v11460_v60 = vld [vmem:[%s27014_s7 + $0x20] sm:$0xff]  ;;  %v15100_v62 = vld [vmem:[%s27014_s7 + $0x150] sm:$0xff] }
 0x776   :  { %19335 = vmatpush3.msra.mxu1 %v15047_v57  ;;  %19362 = vmatpush3.msra.mxu0 %v15060_v49  ;;  %v18918_v15 = vpop.f32.mrf.mxu1  ;;  %v18945_v52 = vpop.f32.mrf.mxu0  ;;  %v15101_v57 = vld [vmem:[%s27014_s7 + $0x158] sm:$0xff]  ;;  %v15087_v49 = vld [vmem:[%s27014_s7 + $0xf0] sm:$0xff] }
 0x777   :  { %19336 = vmatprep.subr.mxu1 %v27175_v54  ;;  %19363 = vmatprep.subr.mxu0 %v27175_v54  ;;  %v25483_v35 = vadd.f32 %v10038_v53, %v9954_v47  ;;  %v15099_v47 = vld [vmem:[%s27014_s7 + $0x148] sm:$0xff] }
 0x778   :  { %19337 = vmatpush3.msra.mxu1 %v15046_v28  ;;  %19364 = vmatpush3.msra.mxu0 %v15059_v37  ;;  %v15086_v37 = vld [vmem:[%s27014_s7 + $0xe8] sm:$0xff] }
 0x779   :  { %19338 = vmatprep.subr.mxu1 %v27175_v54  ;;  %19365 = vmatprep.subr.mxu0 %v27175_v54 }
 0x77a   :  { %19339 = vmatpush3.msra.mxu1 %v15045_v3  ;;  %19366 = vmatpush3.msra.mxu0 %v15058_v36  ;;  %v15085_v36 = vld [vmem:[%s27014_s7 + $0xe0] sm:$0xff] }
 0x77b   :  { %19340 = vmatprep.subr.mxu1 %v27175_v54  ;;  %19367 = vmatprep.subr.mxu0 %v27175_v54 }
 0x77c   :  { %19341 = vmatpush3.msra.mxu1 %v15044_v27  ;;  %19368 = vmatpush3.msra.mxu0 %v15057_v0  ;;  %v15084_v0 = vld [vmem:[%s27014_s7 + $0xd8] sm:$0xff] }
 0x77d   :  { %19342 = vmatprep.subr.mxu1 %v27175_v54  ;;  %19369 = vmatprep.subr.mxu0 %v27175_v54 }
 0x77e   :  { %19343 = vmatpush3.msra.mxu1 %v15043_v2  ;;  %19370 = vmatpush3.msra.mxu0 %v15056_v56  ;;  %v15097_v2 = vld [vmem:[%s27014_s7 + $0x138] sm:$0xff]  ;;  %v15083_v56 = vld [vmem:[%s27014_s7 + $0xd0] sm:$0xff] }
 0x77f   :  { %19344 = vmatprep.subr.mxu1 %v27175_v54  ;;  %19371 = vmatprep.subr.mxu0 %v27175_v54 }
 0x780   :  { %19345 = vmatpush3.msra.mxu1 %v15042_v46  ;;  %19372 = vmatpush3.msra.mxu0 %v15055_v13  ;;  %v15096_v46 = vld [vmem:[%s27014_s7 + $0x130] sm:$0xff]  ;;  %v15082_v13 = vld [vmem:[%s27014_s7 + $0xc8] sm:$0xff] }
 0x781   :  { %19346 = vmatprep.subr.mxu1 %v27175_v54  ;;  %19373 = vmatprep.subr.mxu0 %v27175_v54 }
 0x782   :  { %19347 = vmatpush3.msra.mxu1 %v15041_v7  ;;  %19348 = vmatprep.mubr.msk.f32.mxu1 %vm20160_vm1, %v27175_v54  ;;  %v15095_v7 = vld [vmem:[%s27014_s7 + $0x128] sm:$0xff] }
 0x783   :  { %19374 = vmatpush3.msra.mxu0 %v15054_v38  ;;  %19375 = vmatprep.mubr.msk.f32.mxu0 %vm20160_vm1, %v27175_v54  ;;  %v15081_v38 = vld [vmem:[%s27014_s7 + $0xc0] sm:$0xff] }
 0x784   :  { %19349 = vmatmul.mubr.msk.f32.vlgmr.msra.gmra.mxu1 %vm8967_vm6, %v11275_v1  ;;  %19376 = vmatmul.mubr.msk.f32.vlgmr.msra.gmra.mxu0 %vm8967_vm6, %v11363_v16  ;;  %v15094_v1 = vld [vmem:[%s27014_s7 + $0x120] sm:$0xff]  ;;  %v11627_v16 = vld [vmem:[#allocation4 + $0x84] sm:$0x1] }
 0x785   :  { %19378 = vmatprep.subr.mxu1 %v27175_v54  ;;  %19405 = vmatprep.subr.mxu0 %v27175_v54 }
 0x786   :  { %19379 = vmatpush3.msra.mxu1 %v15078_v25  ;;  %19406 = vmatpush3.msra.mxu0 %v11467_v17  ;;  %v11714_v25 = vld [vmem:[#allocation4 + $0x85] sm:$0x1] }
 0x787   :  { %19380 = vmatprep.subr.mxu1 %v27175_v54  ;;  %19407 = vmatprep.subr.mxu0 %v27175_v54  ;;  %v15118_v17 = vld [vmem:[%s27014_s7 + $0x1d8] sm:$0xff] }
 0x788   :  { %19381 = vmatpush3.msra.mxu1 %v15077_v11  ;;  %19408 = vmatpush3.msra.mxu0 %v11466_v45  ;;  %v15131_v11 = vld [vmem:[%s27014_s7 + $0x238] sm:$0xff]  ;;  %v15117_v45 = vld [vmem:[%s27014_s7 + $0x1d0] sm:$0xff] }
 0x789   :  { %19382 = vmatprep.subr.mxu1 %v27175_v54  ;;  %19409 = vmatprep.subr.mxu0 %v27175_v54 }
 0x78a   :  { %19383 = vmatpush3.msra.mxu1 %v15076_v51  ;;  %19410 = vmatpush3.msra.mxu0 %v11465_v19  ;;  %v15130_v51 = vld [vmem:[%s27014_s7 + $0x230] sm:$0xff]  ;;  %v15116_v19 = vld [vmem:[%s27014_s7 + $0x1c8] sm:$0xff] }
 0x78b   :  { %19384 = vmatprep.subr.mxu1 %v27175_v54  ;;  %19411 = vmatprep.subr.mxu0 %v27175_v54 }
 0x78c   :  { %19385 = vmatpush3.msra.mxu1 %v15075_v8  ;;  %19412 = vmatpush3.msra.mxu0 %v11464_v12  ;;  %v15129_v8 = vld [vmem:[%s27014_s7 + $0x228] sm:$0xff]  ;;  %v15115_v12 = vld [vmem:[%s27014_s7 + $0x1c0] sm:$0xff] }
 0x78d   :  { %19386 = vmatprep.subr.mxu1 %v27175_v54  ;;  %19413 = vmatprep.subr.mxu0 %v27175_v54 }
 0x78e   :  { %19387 = vmatpush3.msra.mxu1 %v15074_v40  ;;  %19414 = vmatpush3.msra.mxu0 %v11463_v34  ;;  %v10126_v5 = vpop.f32.mrf.mxu1  ;;  %v10214_v42 = vpop.f32.mrf.mxu0  ;;  %v15128_v40 = vld [vmem:[%s27014_s7 + $0x220] sm:$0xff]  ;;  %v15114_v34 = vld [vmem:[%s27014_s7 + $0x1b8] sm:$0xff] }
 0x78f   :  { %19388 = vmatprep.subr.mxu1 %v27175_v54  ;;  %19415 = vmatprep.subr.mxu0 %v27175_v54  ;;  %v10130_v21 = vadd.f32 %v10126_v5, %v25483_v35  ;;  %v15098_v35 = vld [vmem:[%s27014_s7 + $0x140] sm:$0xff]  ;;  %v15126_v5 = vld [vmem:[%s27014_s7 + $0x210] sm:$0xff] }
 0x790   :  { %19389 = vmatpush3.msra.mxu1 %v15073_v48  ;;  %19416 = vmatpush3.msra.mxu0 %v11462_v6  ;;  %v18972_v31 = vpop.f32.mrf.mxu1  ;;  %v18999_v18 = vpop.f32.mrf.mxu0  ;;  %v15127_v48 = vld [vmem:[%s27014_s7 + $0x218] sm:$0xff]  ;;  %v15113_v6 = vld [vmem:[%s27014_s7 + $0x1b0] sm:$0xff] }
 0x791   :  { %19390 = vmatprep.subr.mxu1 %v27175_v54  ;;  %19417 = vmatprep.subr.mxu0 %v27175_v54  ;;  %v25588_v43 = vadd.f32 %v10214_v42, %v10130_v21  ;;  %v15125_v21 = vld [vmem:[%s27014_s7 + $0x208] sm:$0xff] }
 0x792   :  { %19391 = vmatpush3.msra.mxu1 %v15072_v32  ;;  %19418 = vmatpush3.msra.mxu0 %v11461_v44  ;;  %v15112_v44 = vld [vmem:[%s27014_s7 + $0x1a8] sm:$0xff] }
 0x793   :  { %19392 = vmatprep.subr.mxu1 %v27175_v54  ;;  %19419 = vmatprep.subr.mxu0 %v27175_v54 }
 0x794   :  { %19393 = vmatpush3.msra.mxu1 %v15071_v29  ;;  %19420 = vmatpush3.msra.mxu0 %v11460_v60  ;;  %v15111_v60 = vld [vmem:[%s27014_s7 + $0x1a0] sm:$0xff] }
 0x795   :  { %19394 = vmatprep.subr.mxu1 %v27175_v54  ;;  %19421 = vmatprep.subr.mxu0 %v27175_v54 }
 0x796   :  { %19395 = vmatpush3.msra.mxu1 %v15070_v63  ;;  %19422 = vmatpush3.msra.mxu0 %v11459_v41  ;;  %v15110_v41 = vld [vmem:[%s27014_s7 + $0x198] sm:$0xff] }
 0x797   :  { %19396 = vmatprep.subr.mxu1 %v27175_v54  ;;  %19423 = vmatprep.subr.mxu0 %v27175_v54 }
 0x798   :  { %19397 = vmatpush3.msra.mxu1 %v15069_v4  ;;  %19424 = vmatpush3.msra.mxu0 %v11458_v58  ;;  %v15123_v4 = vld [vmem:[%s27014_s7 + $0x1f8] sm:$0xff]  ;;  %v15109_v58 = vld [vmem:[%s27014_s7 + $0x190] sm:$0xff] }
 0x799   :  { %19398 = vmatprep.subr.mxu1 %v27175_v54  ;;  %19425 = vmatprep.subr.mxu0 %v27175_v54 }
 0x79a   :  { %19399 = vmatpush3.msra.mxu1 %v15068_v26  ;;  %19426 = vmatpush3.msra.mxu0 %v11457_v14  ;;  %v15122_v26 = vld [vmem:[%s27014_s7 + $0x1f0] sm:$0xff]  ;;  %v15108_v14 = vld [vmem:[%s27014_s7 + $0x188] sm:$0xff] }
 0x79b   :  { %19400 = vmatprep.subr.mxu1 %v27175_v54  ;;  %19427 = vmatprep.subr.mxu0 %v27175_v54 }
 0x79c   :  { %19401 = vmatpush3.msra.mxu1 %v15067_v10  ;;  %19402 = vmatprep.mubr.msk.f32.mxu1 %vm20160_vm1, %v27175_v54  ;;  %v15121_v10 = vld [vmem:[%s27014_s7 + $0x1e8] sm:$0xff] }
 0x79d   :  { %19428 = vmatpush3.msra.mxu0 %v11456_v33  ;;  %19429 = vmatprep.mubr.msk.f32.mxu0 %vm20160_vm1, %v27175_v54  ;;  %v15107_v33 = vld [vmem:[%s27014_s7 + $0x180] sm:$0xff] }
 0x79e   :  { %19403 = vmatmul.mubr.msk.f32.vlgmr.msra.gmra.mxu1 %vm8967_vm6, %v11468_v50  ;;  %19430 = vmatmul.mubr.msk.f32.vlgmr.msra.gmra.mxu0 %vm8967_vm6, %v11455_v22  ;;  %v15120_v50 = vld [vmem:[%s27014_s7 + $0x1e0] sm:$0xff]  ;;  %v11801_v22 = vld [vmem:[#allocation4 + $0x86] sm:$0x1] }
 0x79f   :  { %19432 = vmatprep.subr.mxu1 %v27175_v54  ;;  %19459 = vmatprep.subr.mxu0 %v27175_v54 }
 0x7a0   :  { %19433 = vmatpush3.msra.mxu1 %v15092_v23  ;;  %19460 = vmatpush3.msra.mxu0 %v15105_v39  ;;  %v11888_v23 = vld [vmem:[#allocation4 + $0x87] sm:$0x1] }
 0x7a1   :  { %19434 = vmatprep.subr.mxu1 %v27175_v54  ;;  %19461 = vmatprep.subr.mxu0 %v27175_v54  ;;  %v15144_v39 = vld [vmem:[%s27014_s7 + $0x298] sm:$0xff] }
 0x7a2   :  { %19435 = vmatpush3.msra.mxu1 %v15091_v24  ;;  %19462 = vmatpush3.msra.mxu0 %v15104_v59  ;;  %v15157_v24 = vld [vmem:[%s27014_s7 + $0x2f8] sm:$0xff]  ;;  %v15143_v59 = vld [vmem:[%s27014_s7 + $0x290] sm:$0xff] }
 0x7a3   :  { %19436 = vmatprep.subr.mxu1 %v27175_v54  ;;  %19463 = vmatprep.subr.mxu0 %v27175_v54 }
 0x7a4   :  { %19437 = vmatpush3.msra.mxu1 %v15090_v61  ;;  %19464 = vmatpush3.msra.mxu0 %v15103_v9  ;;  %v15156_v61 = vld [vmem:[%s27014_s7 + $0x2f0] sm:$0xff]  ;;  %v15142_v9 = vld [vmem:[%s27014_s7 + $0x288] sm:$0xff] }
 0x7a5   :  { %19438 = vmatprep.subr.mxu1 %v27175_v54  ;;  %19465 = vmatprep.subr.mxu0 %v27175_v54 }
 0x7a6   :  { %19439 = vmatpush3.msra.mxu1 %v15089_v20  ;;  %19466 = vmatpush3.msra.mxu0 %v15102_v30  ;;  %v15155_v20 = vld [vmem:[%s27014_s7 + $0x2e8] sm:$0xff]  ;;  %v15141_v30 = vld [vmem:[%s27014_s7 + $0x280] sm:$0xff] }
 0x7a7   :  { %19440 = vmatprep.subr.mxu1 %v27175_v54  ;;  %19467 = vmatprep.subr.mxu0 %v27175_v54 }
 0x7a8   :  { %19441 = vmatpush3.msra.mxu1 %v15088_v55  ;;  %19468 = vmatpush3.msra.mxu0 %v15101_v57  ;;  %v10302_v53 = vpop.f32.mrf.mxu1  ;;  %v10390_v28 = vpop.f32.mrf.mxu0  ;;  %v15154_v55 = vld [vmem:[%s27014_s7 + $0x2e0] sm:$0xff]  ;;  %v15140_v57 = vld [vmem:[%s27014_s7 + $0x278] sm:$0xff] }
 0x7a9   :  { %19442 = vmatprep.subr.mxu1 %v27175_v54  ;;  %19469 = vmatprep.subr.mxu0 %v27175_v54  ;;  %v10306_v15 = vadd.f32 %v10302_v53, %v25588_v43  ;;  %v15124_v43 = vld [vmem:[%s27014_s7 + $0x200] sm:$0xff]  ;;  %v15152_v53 = vld [vmem:[%s27014_s7 + $0x2d0] sm:$0xff] }
 0x7aa   :  { %19443 = vmatpush3.msra.mxu1 %v15087_v49  ;;  %19470 = vmatpush3.msra.mxu0 %v15100_v62  ;;  %v19026_v52 = vpop.f32.mrf.mxu1  ;;  %v19053_v3 = vpop.f32.mrf.mxu0  ;;  %v15153_v49 = vld [vmem:[%s27014_s7 + $0x2d8] sm:$0xff]  ;;  %v15139_v62 = vld [vmem:[%s27014_s7 + $0x270] sm:$0xff] }
 0x7ab   :  { %19444 = vmatprep.subr.mxu1 %v27175_v54  ;;  %19471 = vmatprep.subr.mxu0 %v27175_v54  ;;  %v25693_v27 = vadd.f32 %v10390_v28, %v10306_v15  ;;  %v15151_v15 = vld [vmem:[%s27014_s7 + $0x2c8] sm:$0xff] }
 0x7ac   :  { %19445 = vmatpush3.msra.mxu1 %v15086_v37  ;;  %19472 = vmatpush3.msra.mxu0 %v15099_v47  ;;  %v15138_v47 = vld [vmem:[%s27014_s7 + $0x268] sm:$0xff] }
 0x7ad   :  { %19446 = vmatprep.subr.mxu1 %v27175_v54  ;;  %19473 = vmatprep.subr.mxu0 %v27175_v54 }
 0x7ae   :  { %19447 = vmatpush3.msra.mxu1 %v15085_v36  ;;  %19474 = vmatpush3.msra.mxu0 %v15098_v35  ;;  %v15137_v35 = vld [vmem:[%s27014_s7 + $0x260] sm:$0xff] }
 0x7af   :  { %19448 = vmatprep.subr.mxu1 %v27175_v54  ;;  %19475 = vmatprep.subr.mxu0 %v27175_v54 }
 0x7b0   :  { %19449 = vmatpush3.msra.mxu1 %v15084_v0  ;;  %19476 = vmatpush3.msra.mxu0 %v15097_v2  ;;  %v15136_v2 = vld [vmem:[%s27014_s7 + $0x258] sm:$0xff] }
 0x7b1   :  { %19450 = vmatprep.subr.mxu1 %v27175_v54  ;;  %19477 = vmatprep.subr.mxu0 %v27175_v54 }
 0x7b2   :  { %19451 = vmatpush3.msra.mxu1 %v15083_v56  ;;  %19478 = vmatpush3.msra.mxu0 %v15096_v46  ;;  %v15149_v56 = vld [vmem:[%s27014_s7 + $0x2b8] sm:$0xff]  ;;  %v15135_v46 = vld [vmem:[%s27014_s7 + $0x250] sm:$0xff] }
 0x7b3   :  { %19452 = vmatprep.subr.mxu1 %v27175_v54  ;;  %19479 = vmatprep.subr.mxu0 %v27175_v54 }
 0x7b4   :  { %19453 = vmatpush3.msra.mxu1 %v15082_v13  ;;  %19480 = vmatpush3.msra.mxu0 %v15095_v7  ;;  %v15148_v13 = vld [vmem:[%s27014_s7 + $0x2b0] sm:$0xff]  ;;  %v15134_v7 = vld [vmem:[%s27014_s7 + $0x248] sm:$0xff] }
 0x7b5   :  { %19454 = vmatprep.subr.mxu1 %v27175_v54  ;;  %19481 = vmatprep.subr.mxu0 %v27175_v54 }
 0x7b6   :  { %19455 = vmatpush3.msra.mxu1 %v15081_v38  ;;  %19456 = vmatprep.mubr.msk.f32.mxu1 %vm20160_vm1, %v27175_v54  ;;  %v15147_v38 = vld [vmem:[%s27014_s7 + $0x2a8] sm:$0xff] }
 0x7b7   :  { %19482 = vmatpush3.msra.mxu0 %v15094_v1  ;;  %19483 = vmatprep.mubr.msk.f32.mxu0 %vm20160_vm1, %v27175_v54  ;;  %v15133_v1 = vld [vmem:[%s27014_s7 + $0x240] sm:$0xff] }
 0x7b8   :  { %19457 = vmatmul.mubr.msk.f32.vlgmr.msra.gmra.mxu1 %vm8967_vm6, %v11627_v16  ;;  %19484 = vmatmul.mubr.msk.f32.vlgmr.msra.gmra.mxu0 %vm8967_vm6, %v11714_v25  ;;  %v15146_v16 = vld [vmem:[%s27014_s7 + $0x2a0] sm:$0xff] }
 0x7b9   :  { %19486 = vmatprep.subr.mxu1 %v27175_v54  ;;  %19513 = vmatprep.subr.mxu0 %v27175_v54  ;;  %v11975_v25 = vld [vmem:[#allocation4 + $0x88] sm:$0x1] }
 0x7ba   :  { %19487 = vmatpush3.msra.mxu1 %v15118_v17  ;;  %19514 = vmatpush3.msra.mxu0 %v15131_v11  ;;  %v12062_v17 = vld [vmem:[#allocation4 + $0x8f] sm:$0x1]  ;;  %v15170_v11 = vld [vmem:[%s27014_s7 + $0x358] sm:$0xff] }
 0x7bb   :  { %19488 = vmatprep.subr.mxu1 %v27175_v54  ;;  %19515 = vmatprep.subr.mxu0 %v27175_v54 }
 0x7bc   :  { %19489 = vmatpush3.msra.mxu1 %v15117_v45  ;;  %19516 = vmatpush3.msra.mxu0 %v15130_v51  ;;  %v15183_v45 = vld [vmem:[%s27014_s7 + $0x3b8] sm:$0xff]  ;;  %v15169_v51 = vld [vmem:[%s27014_s7 + $0x350] sm:$0xff] }
 0x7bd   :  { %19490 = vmatprep.subr.mxu1 %v27175_v54  ;;  %19517 = vmatprep.subr.mxu0 %v27175_v54 }
 0x7be   :  { %19491 = vmatpush3.msra.mxu1 %v15116_v19  ;;  %19518 = vmatpush3.msra.mxu0 %v15129_v8  ;;  %v15182_v19 = vld [vmem:[%s27014_s7 + $0x3b0] sm:$0xff]  ;;  %v15168_v8 = vld [vmem:[%s27014_s7 + $0x348] sm:$0xff] }
 0x7bf   :  { %19492 = vmatprep.subr.mxu1 %v27175_v54  ;;  %19519 = vmatprep.subr.mxu0 %v27175_v54 }
 0x7c0   :  { %19493 = vmatpush3.msra.mxu1 %v15115_v12  ;;  %19520 = vmatpush3.msra.mxu0 %v15128_v40  ;;  %v15181_v12 = vld [vmem:[%s27014_s7 + $0x3a8] sm:$0xff]  ;;  %v15167_v40 = vld [vmem:[%s27014_s7 + $0x340] sm:$0xff] }
 0x7c1   :  { %19494 = vmatprep.subr.mxu1 %v27175_v54  ;;  %19521 = vmatprep.subr.mxu0 %v27175_v54 }
 0x7c2   :  { %19495 = vmatpush3.msra.mxu1 %v15114_v34  ;;  %19522 = vmatpush3.msra.mxu0 %v15127_v48  ;;  %v10478_v42 = vpop.f32.mrf.mxu1  ;;  %v10566_v32 = vpop.f32.mrf.mxu0  ;;  %v15180_v34 = vld [vmem:[%s27014_s7 + $0x3a0] sm:$0xff]  ;;  %v15166_v48 = vld [vmem:[%s27014_s7 + $0x338] sm:$0xff] }
 0x7c3   :  { %19496 = vmatprep.subr.mxu1 %v27175_v54  ;;  %19523 = vmatprep.subr.mxu0 %v27175_v54  ;;  %v10482_v31 = vadd.f32 %v10478_v42, %v25693_v27  ;;  %v15150_v27 = vld [vmem:[%s27014_s7 + $0x2c0] sm:$0xff]  ;;  %v15178_v42 = vld [vmem:[%s27014_s7 + $0x390] sm:$0xff] }
 0x7c4   :  { %19497 = vmatpush3.msra.mxu1 %v15113_v6  ;;  %19524 = vmatpush3.msra.mxu0 %v15126_v5  ;;  %v19080_v18 = vpop.f32.mrf.mxu1  ;;  %v19107_v29 = vpop.f32.mrf.mxu0  ;;  %v15179_v6 = vld [vmem:[%s27014_s7 + $0x398] sm:$0xff]  ;;  %v15165_v5 = vld [vmem:[%s27014_s7 + $0x330] sm:$0xff] }
 0x7c5   :  { %19498 = vmatprep.subr.mxu1 %v27175_v54  ;;  %19525 = vmatprep.subr.mxu0 %v27175_v54  ;;  %v25798_v63 = vadd.f32 %v10566_v32, %v10482_v31  ;;  %v15177_v31 = vld [vmem:[%s27014_s7 + $0x388] sm:$0xff] }
 0x7c6   :  { %19499 = vmatpush3.msra.mxu1 %v15112_v44  ;;  %19526 = vmatpush3.msra.mxu0 %v15125_v21  ;;  %v15164_v21 = vld [vmem:[%s27014_s7 + $0x328] sm:$0xff] }
 0x7c7   :  { %19500 = vmatprep.subr.mxu1 %v27175_v54  ;;  %19527 = vmatprep.subr.mxu0 %v27175_v54 }
 0x7c8   :  { %19501 = vmatpush3.msra.mxu1 %v15111_v60  ;;  %19528 = vmatpush3.msra.mxu0 %v15124_v43  ;;  %v15163_v43 = vld [vmem:[%s27014_s7 + $0x320] sm:$0xff] }
 0x7c9   :  { %19502 = vmatprep.subr.mxu1 %v27175_v54  ;;  %19529 = vmatprep.subr.mxu0 %v27175_v54 }
 0x7ca   :  { %19503 = vmatpush3.msra.mxu1 %v15110_v41  ;;  %19530 = vmatpush3.msra.mxu0 %v15123_v4  ;;  %v15162_v4 = vld [vmem:[%s27014_s7 + $0x318] sm:$0xff] }
 0x7cb   :  { %19504 = vmatprep.subr.mxu1 %v27175_v54  ;;  %19531 = vmatprep.subr.mxu0 %v27175_v54 }
 0x7cc   :  { %19505 = vmatpush3.msra.mxu1 %v15109_v58  ;;  %19532 = vmatpush3.msra.mxu0 %v15122_v26  ;;  %v15175_v58 = vld [vmem:[%s27014_s7 + $0x378] sm:$0xff]  ;;  %v15161_v26 = vld [vmem:[%s27014_s7 + $0x310] sm:$0xff] }
 0x7cd   :  { %19506 = vmatprep.subr.mxu1 %v27175_v54  ;;  %19533 = vmatprep.subr.mxu0 %v27175_v54 }
 0x7ce   :  { %19507 = vmatpush3.msra.mxu1 %v15108_v14  ;;  %19534 = vmatpush3.msra.mxu0 %v15121_v10  ;;  %v15174_v14 = vld [vmem:[%s27014_s7 + $0x370] sm:$0xff]  ;;  %v15160_v10 = vld [vmem:[%s27014_s7 + $0x308] sm:$0xff] }
 0x7cf   :  { %19508 = vmatprep.subr.mxu1 %v27175_v54  ;;  %19535 = vmatprep.subr.mxu0 %v27175_v54 }
 0x7d0   :  { %19509 = vmatpush3.msra.mxu1 %v15107_v33  ;;  %19510 = vmatprep.mubr.msk.f32.mxu1 %vm20160_vm1, %v27175_v54  ;;  %v15173_v33 = vld [vmem:[%s27014_s7 + $0x368] sm:$0xff] }
 0x7d1   :  { %19536 = vmatpush3.msra.mxu0 %v15120_v50  ;;  %19537 = vmatprep.mubr.msk.f32.mxu0 %vm20160_vm1, %v27175_v54  ;;  %v15159_v50 = vld [vmem:[%s27014_s7 + $0x300] sm:$0xff] }
 0x7d2   :  { %19511 = vmatmul.mubr.msk.f32.vlgmr.msra.gmra.mxu1 %vm8967_vm6, %v11801_v22  ;;  %19538 = vmatmul.mubr.msk.f32.vlgmr.msra.gmra.mxu0 %vm8967_vm6, %v11888_v23  ;;  %v15172_v22 = vld [vmem:[%s27014_s7 + $0x360] sm:$0xff]  ;;  %v12149_v23 = vld [vmem:[#allocation4 + $0x90] sm:$0x1] }
 0x7d3   :  { %19540 = vmatprep.subr.mxu1 %v27175_v54  ;;  %19567 = vmatprep.subr.mxu0 %v27175_v54 }
 0x7d4   :  { %19541 = vmatpush3.msra.mxu1 %v15144_v39  ;;  %19568 = vmatpush3.msra.mxu0 %v15157_v24  ;;  %v12236_v39 = vld [vmem:[#allocation4 + $0x91] sm:$0x1]  ;;  %v15196_v24 = vld [vmem:[%s27014_s7 + $0x418] sm:$0xff] }
 0x7d5   :  { %19542 = vmatprep.subr.mxu1 %v27175_v54  ;;  %19569 = vmatprep.subr.mxu0 %v27175_v54 }
 0x7d6   :  { %19543 = vmatpush3.msra.mxu1 %v15143_v59  ;;  %19570 = vmatpush3.msra.mxu0 %v15156_v61  ;;  %v15209_v59 = vld [vmem:[%s27014_s7 + $0x478] sm:$0xff]  ;;  %v15195_v61 = vld [vmem:[%s27014_s7 + $0x410] sm:$0xff] }
 0x7d7   :  { %19544 = vmatprep.subr.mxu1 %v27175_v54  ;;  %19571 = vmatprep.subr.mxu0 %v27175_v54 }
 0x7d8   :  { %19545 = vmatpush3.msra.mxu1 %v15142_v9  ;;  %19572 = vmatpush3.msra.mxu0 %v15155_v20  ;;  %v15208_v9 = vld [vmem:[%s27014_s7 + $0x470] sm:$0xff]  ;;  %v15194_v20 = vld [vmem:[%s27014_s7 + $0x408] sm:$0xff] }
 0x7d9   :  { %19546 = vmatprep.subr.mxu1 %v27175_v54  ;;  %19573 = vmatprep.subr.mxu0 %v27175_v54 }
 0x7da   :  { %19547 = vmatpush3.msra.mxu1 %v15141_v30  ;;  %19574 = vmatpush3.msra.mxu0 %v15154_v55  ;;  %v15207_v30 = vld [vmem:[%s27014_s7 + $0x468] sm:$0xff]  ;;  %v15193_v55 = vld [vmem:[%s27014_s7 + $0x400] sm:$0xff] }
 0x7db   :  { %19548 = vmatprep.subr.mxu1 %v27175_v54  ;;  %19575 = vmatprep.subr.mxu0 %v27175_v54 }
 0x7dc   :  { %19549 = vmatpush3.msra.mxu1 %v15140_v57  ;;  %19576 = vmatpush3.msra.mxu0 %v15153_v49  ;;  %v10654_v28 = vpop.f32.mrf.mxu1  ;;  %v10742_v37 = vpop.f32.mrf.mxu0  ;;  %v15206_v57 = vld [vmem:[%s27014_s7 + $0x460] sm:$0xff]  ;;  %v15192_v49 = vld [vmem:[%s27014_s7 + $0x3f8] sm:$0xff] }
 0x7dd   :  { %19550 = vmatprep.subr.mxu1 %v27175_v54  ;;  %19577 = vmatprep.subr.mxu0 %v27175_v54  ;;  %v10658_v52 = vadd.f32 %v10654_v28, %v25798_v63  ;;  %v15176_v63 = vld [vmem:[%s27014_s7 + $0x380] sm:$0xff]  ;;  %v15204_v28 = vld [vmem:[%s27014_s7 + $0x450] sm:$0xff] }
 0x7de   :  { %19551 = vmatpush3.msra.mxu1 %v15139_v62  ;;  %19578 = vmatpush3.msra.mxu0 %v15152_v53  ;;  %v19134_v3 = vpop.f32.mrf.mxu1  ;;  %v19161_v36 = vpop.f32.mrf.mxu0  ;;  %v15205_v62 = vld [vmem:[%s27014_s7 + $0x458] sm:$0xff]  ;;  %v15191_v53 = vld [vmem:[%s27014_s7 + $0x3f0] sm:$0xff] }
 0x7df   :  { %19552 = vmatprep.subr.mxu1 %v27175_v54  ;;  %19579 = vmatprep.subr.mxu0 %v27175_v54  ;;  %v25903_v0 = vadd.f32 %v10742_v37, %v10658_v52  ;;  %v15203_v52 = vld [vmem:[%s27014_s7 + $0x448] sm:$0xff] }
 0x7e0   :  { %19553 = vmatpush3.msra.mxu1 %v15138_v47  ;;  %19580 = vmatpush3.msra.mxu0 %v15151_v15  ;;  %v15190_v15 = vld [vmem:[%s27014_s7 + $0x3e8] sm:$0xff] }
 0x7e1   :  { %19554 = vmatprep.subr.mxu1 %v27175_v54  ;;  %19581 = vmatprep.subr.mxu0 %v27175_v54 }
 0x7e2   :  { %19555 = vmatpush3.msra.mxu1 %v15137_v35  ;;  %19582 = vmatpush3.msra.mxu0 %v15150_v27  ;;  %v15189_v35 = vld [vmem:[%s27014_s7 + $0x3e0] sm:$0xff] }
 0x7e3   :  { %19556 = vmatprep.subr.mxu1 %v27175_v54  ;;  %19583 = vmatprep.subr.mxu0 %v27175_v54  ;;  %v15202_v27 = vld [vmem:[%s27014_s7 + $0x440] sm:$0xff] }
 0x7e4   :  { %19557 = vmatpush3.msra.mxu1 %v15136_v2  ;;  %19584 = vmatpush3.msra.mxu0 %v15149_v56  ;;  %v15201_v2 = vld [vmem:[%s27014_s7 + $0x438] sm:$0xff]  ;;  %v15187_v56 = vld [vmem:[%s27014_s7 + $0x3d0] sm:$0xff] }
 0x7e5   :  { %19558 = vmatprep.subr.mxu1 %v27175_v54  ;;  %19585 = vmatprep.subr.mxu0 %v27175_v54 }
 0x7e6   :  { %19559 = vmatpush3.msra.mxu1 %v15135_v46  ;;  %19586 = vmatpush3.msra.mxu0 %v15148_v13  ;;  %v15200_v46 = vld [vmem:[%s27014_s7 + $0x430] sm:$0xff]  ;;  %v15186_v13 = vld [vmem:[%s27014_s7 + $0x3c8] sm:$0xff] }
 0x7e7   :  { %19560 = vmatprep.subr.mxu1 %v27175_v54  ;;  %19587 = vmatprep.subr.mxu0 %v27175_v54 }
 0x7e8   :  { %19561 = vmatpush3.msra.mxu1 %v15134_v7  ;;  %19588 = vmatpush3.msra.mxu0 %v15147_v38  ;;  %v15199_v7 = vld [vmem:[%s27014_s7 + $0x428] sm:$0xff]  ;;  %v15185_v38 = vld [vmem:[%s27014_s7 + $0x3c0] sm:$0xff] }
 0x7e9   :  { %19562 = vmatprep.subr.mxu1 %v27175_v54  ;;  %19589 = vmatprep.subr.mxu0 %v27175_v54 }
 0x7ea   :  { %19563 = vmatpush3.msra.mxu1 %v15133_v1  ;;  %19564 = vmatprep.mubr.msk.f32.mxu1 %vm20160_vm1, %v27175_v54  ;;  %v15198_v1 = vld [vmem:[%s27014_s7 + $0x420] sm:$0xff] }
 0x7eb   :  { %19590 = vmatpush3.msra.mxu0 %v15146_v16  ;;  %19591 = vmatprep.mubr.msk.f32.mxu0 %vm20160_vm1, %v27175_v54  ;;  %v12323_v16 = vld [vmem:[#allocation4 + $0x92] sm:$0x1] }
 0x7ec   :  { %19565 = vmatmul.mubr.msk.f32.vlgmr.msra.gmra.mxu1 %vm8967_vm6, %v11975_v25  ;;  %19592 = vmatmul.mubr.msk.f32.vlgmr.msra.gmra.mxu0 %vm8967_vm6, %v12062_v17  ;;  %v12410_v25 = vld [vmem:[#allocation4 + $0x93] sm:$0x1]  ;;  %v15222_v17 = vld [vmem:[%s27014_s7 + $0x4d8] sm:$0xff] }
 0x7ed   :  { %19594 = vmatprep.subr.mxu1 %v27175_v54  ;;  %19621 = vmatprep.subr.mxu0 %v27175_v54 }
 0x7ee   :  { %19595 = vmatpush3.msra.mxu1 %v15170_v11  ;;  %19622 = vmatpush3.msra.mxu0 %v15183_v45  ;;  %v15235_v11 = vld [vmem:[%s27014_s7 + $0x538] sm:$0xff]  ;;  %v15221_v45 = vld [vmem:[%s27014_s7 + $0x4d0] sm:$0xff] }
 0x7ef   :  { %19596 = vmatprep.subr.mxu1 %v27175_v54  ;;  %19623 = vmatprep.subr.mxu0 %v27175_v54 }
 0x7f0   :  { %19597 = vmatpush3.msra.mxu1 %v15169_v51  ;;  %19624 = vmatpush3.msra.mxu0 %v15182_v19  ;;  %v15234_v51 = vld [vmem:[%s27014_s7 + $0x530] sm:$0xff]  ;;  %v15220_v19 = vld [vmem:[%s27014_s7 + $0x4c8] sm:$0xff] }
 0x7f1   :  { %19598 = vmatprep.subr.mxu1 %v27175_v54  ;;  %19625 = vmatprep.subr.mxu0 %v27175_v54 }
 0x7f2   :  { %19599 = vmatpush3.msra.mxu1 %v15168_v8  ;;  %19626 = vmatpush3.msra.mxu0 %v15181_v12  ;;  %v15233_v8 = vld [vmem:[%s27014_s7 + $0x528] sm:$0xff]  ;;  %v15219_v12 = vld [vmem:[%s27014_s7 + $0x4c0] sm:$0xff] }
 0x7f3   :  { %19600 = vmatprep.subr.mxu1 %v27175_v54  ;;  %19627 = vmatprep.subr.mxu0 %v27175_v54 }
 0x7f4   :  { %19601 = vmatpush3.msra.mxu1 %v15167_v40  ;;  %19628 = vmatpush3.msra.mxu0 %v15180_v34  ;;  %v15232_v40 = vld [vmem:[%s27014_s7 + $0x520] sm:$0xff]  ;;  %v15218_v34 = vld [vmem:[%s27014_s7 + $0x4b8] sm:$0xff] }
 0x7f5   :  { %19602 = vmatprep.subr.mxu1 %v27175_v54  ;;  %19629 = vmatprep.subr.mxu0 %v27175_v54 }
 0x7f6   :  { %19603 = vmatpush3.msra.mxu1 %v15166_v48  ;;  %19630 = vmatpush3.msra.mxu0 %v15179_v6  ;;  %v10830_v32 = vpop.f32.mrf.mxu1  ;;  %v10918_v44 = vpop.f32.mrf.mxu0  ;;  %v15231_v48 = vld [vmem:[%s27014_s7 + $0x518] sm:$0xff]  ;;  %v15217_v6 = vld [vmem:[%s27014_s7 + $0x4b0] sm:$0xff] }
 0x7f7   :  { %19604 = vmatprep.subr.mxu1 %v27175_v54  ;;  %19631 = vmatprep.subr.mxu0 %v27175_v54  ;;  %v10834_v18 = vadd.f32 %v10830_v32, %v25903_v0  ;;  %v15188_v0 = vld [vmem:[%s27014_s7 + $0x3d8] sm:$0xff] }
 0x7f8   :  { %19605 = vmatpush3.msra.mxu1 %v15165_v5  ;;  %19632 = vmatpush3.msra.mxu0 %v15178_v42  ;;  %v19188_v29 = vpop.f32.mrf.mxu1  ;;  %v19215_v60 = vpop.f32.mrf.mxu0  ;;  %v15230_v5 = vld [vmem:[%s27014_s7 + $0x510] sm:$0xff] }
 0x7f9   :  { %19606 = vmatprep.subr.mxu1 %v27175_v54  ;;  %19633 = vmatprep.subr.mxu0 %v27175_v54  ;;  %v26008_v41 = vadd.f32 %v10918_v44, %v10834_v18  ;;  %v15216_v44 = vld [vmem:[%s27014_s7 + $0x4a8] sm:$0xff]  ;;  %v15215_v29 = vld [vmem:[%s27014_s7 + $0x4a0] sm:$0xff] }
 0x7fa   :  { %19607 = vmatpush3.msra.mxu1 %v15164_v21  ;;  %19634 = vmatpush3.msra.mxu0 %v15177_v31  ;;  %v15229_v21 = vld [vmem:[%s27014_s7 + $0x508] sm:$0xff]  ;;  %v15228_v60 = vld [vmem:[%s27014_s7 + $0x500] sm:$0xff] }
 0x7fb   :  { %19608 = vmatprep.subr.mxu1 %v27175_v54  ;;  %19635 = vmatprep.subr.mxu0 %v27175_v54 }
 0x7fc   :  { %19609 = vmatpush3.msra.mxu1 %v15163_v43  ;;  %19636 = vmatpush3.msra.mxu0 %v15176_v63  ;;  %v15214_v43 = vld [vmem:[%s27014_s7 + $0x498] sm:$0xff] }
 0x7fd   :  { %19610 = vmatprep.subr.mxu1 %v27175_v54  ;;  %19637 = vmatprep.subr.mxu0 %v27175_v54  ;;  %v15227_v63 = vld [vmem:[%s27014_s7 + $0x4f8] sm:$0xff] }
 0x7fe   :  { %19611 = vmatpush3.msra.mxu1 %v15162_v4  ;;  %19638 = vmatpush3.msra.mxu0 %v15175_v58  ;;  %v15213_v4 = vld [vmem:[%s27014_s7 + $0x490] sm:$0xff] }
 0x7ff   :  { %19612 = vmatprep.subr.mxu1 %v27175_v54  ;;  %19639 = vmatprep.subr.mxu0 %v27175_v54  ;;  %v15226_v58 = vld [vmem:[%s27014_s7 + $0x4f0] sm:$0xff] }
 0x800   :  { %19613 = vmatpush3.msra.mxu1 %v15161_v26  ;;  %19640 = vmatpush3.msra.mxu0 %v15174_v14  ;;  %v15212_v26 = vld [vmem:[%s27014_s7 + $0x488] sm:$0xff] }
 0x801   :  { %19614 = vmatprep.subr.mxu1 %v27175_v54  ;;  %19641 = vmatprep.subr.mxu0 %v27175_v54  ;;  %v15225_v14 = vld [vmem:[%s27014_s7 + $0x4e8] sm:$0xff] }
 0x802   :  { %19615 = vmatpush3.msra.mxu1 %v15160_v10  ;;  %19642 = vmatpush3.msra.mxu0 %v15173_v33  ;;  %v15211_v10 = vld [vmem:[%s27014_s7 + $0x480] sm:$0xff] }
 0x803   :  { %19616 = vmatprep.subr.mxu1 %v27175_v54  ;;  %19643 = vmatprep.subr.mxu0 %v27175_v54  ;;  %v15224_v33 = vld [vmem:[%s27014_s7 + $0x4e0] sm:$0xff] }
 0x804   :  { %19617 = vmatpush3.msra.mxu1 %v15159_v50  ;;  %19618 = vmatprep.mubr.msk.f32.mxu1 %vm20160_vm1, %v27175_v54  ;;  %v12497_v50 = vld [vmem:[#allocation4 + $0x94] sm:$0x1] }
 0x805   :  { %19644 = vmatpush3.msra.mxu0 %v15172_v22  ;;  %19645 = vmatprep.mubr.msk.f32.mxu0 %vm20160_vm1, %v27175_v54 }
 0x806   :  { %19619 = vmatmul.mubr.msk.f32.vlgmr.msra.gmra.mxu1 %vm8967_vm6, %v12149_v23  ;;  %19646 = vmatmul.mubr.msk.f32.vlgmr.msra.gmra.mxu0 %vm8967_vm6, %v12236_v39  ;;  %v12584_v23 = vld [vmem:[#allocation4 + $0x95] sm:$0x1]  ;;  %v15248_v39 = vld [vmem:[%s27014_s7 + $0x598] sm:$0xff] }
 0x807   :  { %19648 = vmatprep.subr.mxu1 %v27175_v54  ;;  %19675 = vmatprep.subr.mxu0 %v27175_v54 }
 0x808   :  { %19649 = vmatpush3.msra.mxu1 %v15196_v24  ;;  %19676 = vmatpush3.msra.mxu0 %v15209_v59  ;;  %v15261_v24 = vld [vmem:[%s27014_s7 + $0x5f8] sm:$0xff]  ;;  %v15260_v59 = vld [vmem:[%s27014_s7 + $0x5f0] sm:$0xff] }
 0x809   :  { %19650 = vmatprep.subr.mxu1 %v27175_v54  ;;  %19677 = vmatprep.subr.mxu0 %v27175_v54 }
 0x80a   :  { %19651 = vmatpush3.msra.mxu1 %v15195_v61  ;;  %19678 = vmatpush3.msra.mxu0 %v15208_v9  ;;  %v15246_v9 = vld [vmem:[%s27014_s7 + $0x588] sm:$0xff] }
 0x80b   :  { %19652 = vmatprep.subr.mxu1 %v27175_v54  ;;  %19679 = vmatprep.subr.mxu0 %v27175_v54 }
 0x80c   :  { %19653 = vmatpush3.msra.mxu1 %v15194_v20  ;;  %19680 = vmatpush3.msra.mxu0 %v15207_v30  ;;  %v15259_v20 = vld [vmem:[%s27014_s7 + $0x5e8] sm:$0xff] }
 0x80d   :  { %19654 = vmatprep.subr.mxu1 %v27175_v54  ;;  %19681 = vmatprep.subr.mxu0 %v27175_v54 }
 0x80e   :  { %19655 = vmatpush3.msra.mxu1 %v15193_v55  ;;  %19682 = vmatpush3.msra.mxu0 %v15206_v57  ;;  %v15245_v55 = vld [vmem:[%s27014_s7 + $0x580] sm:$0xff] }
 0x80f   :  { %19656 = vmatprep.subr.mxu1 %v27175_v54  ;;  %19683 = vmatprep.subr.mxu0 %v27175_v54  ;;  %v15258_v57 = vld [vmem:[%s27014_s7 + $0x5e0] sm:$0xff] }
 0x810   :  { %19657 = vmatpush3.msra.mxu1 %v15192_v49  ;;  %19684 = vmatpush3.msra.mxu0 %v15205_v62  ;;  %v26096_v37 = vpop.f32.mrf.mxu1  ;;  %v26098_v47 = vpop.f32.mrf.mxu0  ;;  %v15244_v49 = vld [vmem:[%s27014_s7 + $0x578] sm:$0xff] }
 0x811   :  { %19658 = vmatprep.subr.mxu1 %v27175_v54  ;;  %19685 = vmatprep.subr.mxu0 %v27175_v54  ;;  %v11010_v22 = vadd.f32 %v26096_v37, %v26008_v41  ;;  %v15247_v41 = vld [vmem:[%s27014_s7 + $0x590] sm:$0xff]  ;;  %v15257_v62 = vld [vmem:[%s27014_s7 + $0x5d8] sm:$0xff] }
 0x812   :  { %19659 = vmatpush3.msra.mxu1 %v15191_v53  ;;  %19686 = vmatpush3.msra.mxu0 %v15204_v28  ;;  %v19242_v3 = vpop.f32.mrf.mxu1  ;;  %v19269_v36 = vpop.f32.mrf.mxu0  ;;  %v15243_v28 = vld [vmem:[%s27014_s7 + $0x570] sm:$0xff] }
 0x813   :  { %19660 = vmatprep.subr.mxu1 %v27175_v54  ;;  %19687 = vmatprep.subr.mxu0 %v27175_v54  ;;  %v11098_v61 = vadd.f32 %v26098_v47, %v11010_v22  ;;  %v15256_v37 = vld [vmem:[%s27014_s7 + $0x5d0] sm:$0xff]  ;;  %v15255_v3 = vld [vmem:[%s27014_s7 + $0x5c8] sm:$0xff] }
 0x814   :  { %19661 = vmatpush3.msra.mxu1 %v15190_v15  ;;  %19688 = vmatpush3.msra.mxu0 %v15203_v52  ;;  %v15242_v52 = vld [vmem:[%s27014_s7 + $0x568] sm:$0xff]  ;;  %v15278_v22 = vld [vmem:[%s27014_s7 + $0x670] sm:$0xff] }
 0x815   :  { %19662 = vmatprep.subr.mxu1 %v27175_v54  ;;  %19689 = vmatprep.subr.mxu0 %v27175_v54 }
 0x816   :  { %19663 = vmatpush3.msra.mxu1 %v15189_v35  ;;  %19690 = vmatpush3.msra.mxu0 %v15202_v27  ;;  %v11451_v35 = vld [vmem:[%s27015_s8] sm:$0x1] }
 0x817   :  { %19664 = vmatprep.subr.mxu1 %v27175_v54  ;;  %19691 = vmatprep.subr.mxu0 %v27175_v54 }
 0x818   :  { %19665 = vmatpush3.msra.mxu1 %v15188_v0  ;;  %19692 = vmatpush3.msra.mxu0 %v15201_v2  ;;  %v15241_v2 = vld [vmem:[%s27014_s7 + $0x560] sm:$0xff] }
 0x819   :  { %19666 = vmatprep.subr.mxu1 %v27175_v54  ;;  %19693 = vmatprep.subr.mxu0 %v27175_v54 }
 0x81a   :  { %19667 = vmatpush3.msra.mxu1 %v15187_v56  ;;  %19694 = vmatpush3.msra.mxu0 %v15200_v46  ;;  %v15254_v56 = vld [vmem:[%s27014_s7 + $0x5c0] sm:$0xff] }
 0x81b   :  { %19668 = vmatprep.subr.mxu1 %v27175_v54  ;;  %19695 = vmatprep.subr.mxu0 %v27175_v54 }
 0x81c   :  { %19669 = vmatpush3.msra.mxu1 %v15186_v13  ;;  %19696 = vmatpush3.msra.mxu0 %v15199_v7  ;;  %v15240_v13 = vld [vmem:[%s27014_s7 + $0x558] sm:$0xff] }
 0x81d   :  { %19670 = vmatprep.subr.mxu1 %v27175_v54  ;;  %19697 = vmatprep.subr.mxu0 %v27175_v54  ;;  %v15253_v7 = vld [vmem:[%s27014_s7 + $0x5b8] sm:$0xff] }
 0x81e   :  { %19671 = vmatpush3.msra.mxu1 %v15185_v38  ;;  %19672 = vmatprep.mubr.msk.f32.mxu1 %vm20160_vm1, %v27175_v54 }
 0x81f   :  { %19698 = vmatpush3.msra.mxu0 %v15198_v1  ;;  %19699 = vmatprep.mubr.msk.f32.mxu0 %vm20160_vm1, %v27175_v54  ;;  %v15239_v1 = vld [vmem:[%s27014_s7 + $0x550] sm:$0xff] }
 0x820   :  { %19673 = vmatmul.mubr.msk.f32.vlgmr.msra.gmra.mxu1 %vm8967_vm6, %v12323_v16  ;;  %19700 = vmatmul.mubr.msk.f32.vlgmr.msra.gmra.mxu0 %vm8967_vm6, %v12410_v25  ;;  %v15252_v16 = vld [vmem:[%s27014_s7 + $0x5b0] sm:$0xff]  ;;  %v15238_v25 = vld [vmem:[%s27014_s7 + $0x548] sm:$0xff] }
 0x821   :  { %19702 = vmatprep.subr.mxu1 %v27175_v54  ;;  %19729 = vmatprep.subr.mxu0 %v27175_v54 }
 0x822   :  { %19703 = vmatpush3.msra.mxu1 %v15222_v17  ;;  %19730 = vmatpush3.msra.mxu0 %v15235_v11  ;;  %v15251_v17 = vld [vmem:[%s27014_s7 + $0x5a8] sm:$0xff]  ;;  %v15237_v11 = vld [vmem:[%s27014_s7 + $0x540] sm:$0xff] }
 0x823   :  { %19704 = vmatprep.subr.mxu1 %v27175_v54  ;;  %19731 = vmatprep.subr.mxu0 %v27175_v54 }
 0x824   :  { %19705 = vmatpush3.msra.mxu1 %v15221_v45  ;;  %19732 = vmatpush3.msra.mxu0 %v15234_v51  ;;  %v15250_v45 = vld [vmem:[%s27014_s7 + $0x5a0] sm:$0xff]  ;;  %v12671_v51 = vld [vmem:[#allocation4 + $0x9c] sm:$0x1] }
 0x825   :  { %19706 = vmatprep.subr.mxu1 %v27175_v54  ;;  %19733 = vmatprep.subr.mxu0 %v27175_v54 }
 0x826   :  { %19707 = vmatpush3.msra.mxu1 %v15220_v19  ;;  %19734 = vmatpush3.msra.mxu0 %v15233_v8  ;;  %v12758_v19 = vld [vmem:[#allocation4 + $0x9d] sm:$0x1]  ;;  %v15274_v8 = vld [vmem:[%s27014_s7 + $0x658] sm:$0xff] }
 0x827   :  { %19708 = vmatprep.subr.mxu1 %v27175_v54  ;;  %19735 = vmatprep.subr.mxu0 %v27175_v54 }
 0x828   :  { %19709 = vmatpush3.msra.mxu1 %v15219_v12  ;;  %19736 = vmatpush3.msra.mxu0 %v15232_v40  ;;  %v15287_v12 = vld [vmem:[%s27014_s7 + $0x6b8] sm:$0xff]  ;;  %v15273_v40 = vld [vmem:[%s27014_s7 + $0x650] sm:$0xff] }
 0x829   :  { %19710 = vmatprep.subr.mxu1 %v27175_v54  ;;  %19737 = vmatprep.subr.mxu0 %v27175_v54 }
 0x82a   :  { %19711 = vmatpush3.msra.mxu1 %v15218_v34  ;;  %19738 = vmatpush3.msra.mxu0 %v15231_v48  ;;  %v26202_v42 = vpop.f32.mrf.mxu1  ;;  %v26204_v32 = vpop.f32.mrf.mxu0  ;;  %v15286_v34 = vld [vmem:[%s27014_s7 + $0x6b0] sm:$0xff]  ;;  %v15272_v48 = vld [vmem:[%s27014_s7 + $0x648] sm:$0xff] }
 0x82b   :  { %19712 = vmatprep.subr.mxu1 %v27175_v54  ;;  %19739 = vmatprep.subr.mxu0 %v27175_v54  ;;  %v11186_v30 = vadd.f32 %v26202_v42, %v11098_v61  ;;  %v15284_v42 = vld [vmem:[%s27014_s7 + $0x6a0] sm:$0xff]  ;;  %v12932_v61 = vld [vmem:[#allocation4 + $0x9f] sm:$0x1] }
 0x82c   :  { %19713 = vmatpush3.msra.mxu1 %v15217_v6  ;;  %19740 = vmatpush3.msra.mxu0 %v15230_v5  ;;  %v19296_v31 = vpop.f32.mrf.mxu1  ;;  %v19323_v18 = vpop.f32.mrf.mxu0  ;;  %v15285_v6 = vld [vmem:[%s27014_s7 + $0x6a8] sm:$0xff]  ;;  %v15271_v5 = vld [vmem:[%s27014_s7 + $0x640] sm:$0xff] }
 0x82d   :  { %19714 = vmatprep.subr.mxu1 %v27175_v54  ;;  %19741 = vmatprep.subr.mxu0 %v27175_v54  ;;  %v11274_v53 = vadd.f32 %v26204_v32, %v11186_v30  ;;  %v15270_v32 = vld [vmem:[%s27014_s7 + $0x638] sm:$0xff]  ;;  %v15282_v31 = vld [vmem:[%s27014_s7 + $0x690] sm:$0xff] }
 0x82e   :  { %19715 = vmatpush3.msra.mxu1 %v15216_v44  ;;  %19742 = vmatpush3.msra.mxu0 %v15229_v21  ;;  %v15283_v44 = vld [vmem:[%s27014_s7 + $0x698] sm:$0xff]  ;;  %v15269_v21 = vld [vmem:[%s27014_s7 + $0x630] sm:$0xff] }
 0x82f   :  { %19716 = vmatprep.subr.mxu1 %v27175_v54  ;;  %19743 = vmatprep.subr.mxu0 %v27175_v54  ;;  %v15299_v30 = vld [vmem:[%s27014_s7 + $0x710] sm:$0xff] }
 0x830   :  { %19717 = vmatpush3.msra.mxu1 %v15215_v29  ;;  %19744 = vmatpush3.msra.mxu0 %v15228_v60  ;;  %v15268_v60 = vld [vmem:[%s27014_s7 + $0x628] sm:$0xff] }
 0x831   :  { %19718 = vmatprep.subr.mxu1 %v27175_v54  ;;  %19745 = vmatprep.subr.mxu0 %v27175_v54 }
 0x832   :  { %19719 = vmatpush3.msra.mxu1 %v15214_v43  ;;  %19746 = vmatpush3.msra.mxu0 %v15227_v63  ;;  %v15281_v43 = vld [vmem:[%s27014_s7 + $0x688] sm:$0xff] }
 0x833   :  { %19720 = vmatprep.subr.mxu1 %v27175_v54  ;;  %19747 = vmatprep.subr.mxu0 %v27175_v54 }
 0x834   :  { %19721 = vmatpush3.msra.mxu1 %v15213_v4  ;;  %19748 = vmatpush3.msra.mxu0 %v15226_v58 }
 0x835   :  { %19722 = vmatprep.subr.mxu1 %v27175_v54  ;;  %19749 = vmatprep.subr.mxu0 %v27175_v54 }
 0x836   :  { %19723 = vmatpush3.msra.mxu1 %v15212_v26  ;;  %19750 = vmatpush3.msra.mxu0 %v15225_v14  ;;  %v15267_v26 = vld [vmem:[%s27014_s7 + $0x620] sm:$0xff] }
 0x837   :  { %19724 = vmatprep.subr.mxu1 %v27175_v54  ;;  %19751 = vmatprep.subr.mxu0 %v27175_v54  ;;  %v15280_v14 = vld [vmem:[%s27014_s7 + $0x680] sm:$0xff] }
 0x838   :  { %19725 = vmatpush3.msra.mxu1 %v15211_v10  ;;  %19726 = vmatprep.mubr.msk.f32.mxu1 %vm20160_vm1, %v27175_v54  ;;  %v15266_v10 = vld [vmem:[%s27014_s7 + $0x618] sm:$0xff] }
 0x839   :  { %19752 = vmatpush3.msra.mxu0 %v15224_v33  ;;  %19753 = vmatprep.mubr.msk.f32.mxu0 %vm20160_vm1, %v27175_v54  ;;  %v15279_v33 = vld [vmem:[%s27014_s7 + $0x678] sm:$0xff] }
 0x83a   :  { %19727 = vmatmul.mubr.msk.f32.vlgmr.msra.gmra.mxu1 %vm8967_vm6, %v12497_v50  ;;  %19754 = vmatmul.mubr.msk.f32.vlgmr.msra.gmra.mxu0 %vm8967_vm6, %v12584_v23  ;;  %v15265_v50 = vld [vmem:[%s27014_s7 + $0x610] sm:$0xff]  ;;  %v15264_v23 = vld [vmem:[%s27014_s7 + $0x608] sm:$0xff] }
 0x83b   :  { %19756 = vmatprep.subr.mxu1 %v27175_v54  ;;  %19783 = vmatprep.subr.mxu0 %v27175_v54 }
 0x83c   :  { %19757 = vmatpush3.msra.mxu1 %v15248_v39  ;;  %19784 = vmatpush3.msra.mxu0 %v15261_v24  ;;  %v15277_v39 = vld [vmem:[%s27014_s7 + $0x668] sm:$0xff]  ;;  %v15263_v24 = vld [vmem:[%s27014_s7 + $0x600] sm:$0xff] }
 0x83d   :  { %19758 = vmatprep.subr.mxu1 %v27175_v54  ;;  %19785 = vmatprep.subr.mxu0 %v27175_v54 }
 0x83e   :  { %19759 = vmatpush3.msra.mxu1 %v15247_v41  ;;  %19786 = vmatpush3.msra.mxu0 %v15260_v59  ;;  %v15276_v41 = vld [vmem:[%s27014_s7 + $0x660] sm:$0xff]  ;;  %v12845_v59 = vld [vmem:[#allocation4 + $0x9e] sm:$0x1] }
 0x83f   :  { %19760 = vmatprep.subr.mxu1 %v27175_v54  ;;  %19787 = vmatprep.subr.mxu0 %v27175_v54 }
 0x840   :  { %19761 = vmatpush3.msra.mxu1 %v15246_v9  ;;  %19788 = vmatpush3.msra.mxu0 %v15259_v20  ;;  %v15300_v9 = vld [vmem:[%s27014_s7 + $0x718] sm:$0xff] }
 0x841   :  { %19762 = vmatprep.subr.mxu1 %v27175_v54  ;;  %19789 = vmatprep.subr.mxu0 %v27175_v54  ;;  %v15313_v20 = vld [vmem:[%s27014_s7 + $0x778] sm:$0xff] }
 0x842   :  { %19763 = vmatpush3.msra.mxu1 %v15245_v55  ;;  %19790 = vmatpush3.msra.mxu0 %v15258_v57  ;;  %v15312_v55 = vld [vmem:[%s27014_s7 + $0x770] sm:$0xff]  ;;  %v15298_v57 = vld [vmem:[%s27014_s7 + $0x708] sm:$0xff] }
 0x843   :  { %19764 = vmatprep.subr.mxu1 %v27175_v54  ;;  %19791 = vmatprep.subr.mxu0 %v27175_v54 }
 0x844   :  { %19765 = vmatpush3.msra.mxu1 %v15244_v49  ;;  %19792 = vmatpush3.msra.mxu0 %v15257_v62  ;;  %v11358_v47 = vpop.f32.mrf.mxu1  ;;  %v11446_v15 = vpop.f32.mrf.mxu0  ;;  %v15311_v49 = vld [vmem:[%s27014_s7 + $0x768] sm:$0xff]  ;;  %v15297_v62 = vld [vmem:[%s27014_s7 + $0x700] sm:$0xff] }
 0x845   :  { %19766 = vmatprep.subr.mxu1 %v27175_v54  ;;  %19793 = vmatprep.subr.mxu0 %v27175_v54  ;;  %v11362_v36 = vadd.f32 %v11358_v47, %v11274_v53  ;;  %v15310_v53 = vld [vmem:[%s27014_s7 + $0x760] sm:$0xff]  ;;  %v15295_v47 = vld [vmem:[%s27014_s7 + $0x6f0] sm:$0xff] }
 0x846   :  { %19767 = vmatpush3.msra.mxu1 %v15243_v28  ;;  %19794 = vmatpush3.msra.mxu0 %v15256_v37  ;;  %v19350_v27 = vpop.f32.mrf.mxu1  ;;  %v19377_v0 = vpop.f32.mrf.mxu0  ;;  %v15296_v28 = vld [vmem:[%s27014_s7 + $0x6f8] sm:$0xff] }
 0x847   :  { %19768 = vmatprep.subr.mxu1 %v27175_v54  ;;  %19795 = vmatprep.subr.mxu0 %v27175_v54  ;;  %v11450_v46 = vadd.f32 %v11446_v15, %v11362_v36  ;;  %v15309_v37 = vld [vmem:[%s27014_s7 + $0x758] sm:$0xff]  ;;  %v15308_v15 = vld [vmem:[%s27014_s7 + $0x750] sm:$0xff]  ;;  %v15294_v36 = vld [vmem:[%s27014_s7 + $0x6e8] sm:$0xff] }
 0x848   :  { %19769 = vmatpush3.msra.mxu1 %v15242_v52  ;;  %19796 = vmatpush3.msra.mxu0 %v15255_v3 }
 0x849   :  { %19770 = vmatprep.subr.mxu1 %v27175_v54  ;;  %19797 = vmatprep.subr.mxu0 %v27175_v54  ;;  %v11452_v38 = vadd.f32 %v11451_v35, %v11450_v46  ;;  %v15307_v35 = vld [vmem:[%s27014_s7 + $0x748] sm:$0xff]  ;;  %v15306_v46 = vld [vmem:[%s27014_s7 + $0x740] sm:$0xff] }
 0x84a   :  { %19771 = vmatpush3.msra.mxu1 %v15241_v2  ;;  %19798 = vmatpush3.msra.mxu0 %v15254_v56  ;;  %v15293_v56 = vld [vmem:[%s27014_s7 + $0x6e0] sm:$0xff] }
 0x84b   :  { %19772 = vmatprep.subr.mxu1 %v27175_v54  ;;  %19799 = vmatprep.subr.mxu0 %v27175_v54  ;;  %11454 = vst.msk [vmem:[#allocation5] sm:$0x1] %vm11453_vm7, %v11452_v38  ;;  %v15305_v38 = vld [vmem:[%s27014_s7 + $0x738] sm:$0xff] }
 0x84c   :  { %19773 = vmatpush3.msra.mxu1 %v15240_v13  ;;  %19800 = vmatpush3.msra.mxu0 %v15253_v7  ;;  %v15292_v7 = vld [vmem:[%s27014_s7 + $0x6d8] sm:$0xff] }
 0x84d   :  { %19774 = vmatprep.subr.mxu1 %v27175_v54  ;;  %19801 = vmatprep.subr.mxu0 %v27175_v54 }
 0x84e   :  { %19775 = vmatpush3.msra.mxu1 %v15239_v1  ;;  %19802 = vmatpush3.msra.mxu0 %v15252_v16  ;;  %v15291_v1 = vld [vmem:[%s27014_s7 + $0x6d0] sm:$0xff] }
 0x84f   :  { %19776 = vmatprep.subr.mxu1 %v27175_v54  ;;  %19803 = vmatprep.subr.mxu0 %v27175_v54  ;;  %v15304_v16 = vld [vmem:[%s27014_s7 + $0x730] sm:$0xff] }
 0x850   :  { %19777 = vmatpush3.msra.mxu1 %v15238_v25  ;;  %19804 = vmatpush3.msra.mxu0 %v15251_v17  ;;  %v15290_v25 = vld [vmem:[%s27014_s7 + $0x6c8] sm:$0xff] }
 0x851   :  { %19778 = vmatprep.subr.mxu1 %v27175_v54  ;;  %19805 = vmatprep.subr.mxu0 %v27175_v54  ;;  %v15303_v17 = vld [vmem:[%s27014_s7 + $0x728] sm:$0xff] }
 0x852   :  { %19779 = vmatpush3.msra.mxu1 %v15237_v11  ;;  %19780 = vmatprep.mubr.msk.f32.mxu1 %vm20160_vm1, %v27175_v54  ;;  %v15289_v11 = vld [vmem:[%s27014_s7 + $0x6c0] sm:$0xff] }
 0x853   :  { %19806 = vmatpush3.msra.mxu0 %v15250_v45  ;;  %19807 = vmatprep.mubr.msk.f32.mxu0 %vm20160_vm1, %v27175_v54  ;;  %v15302_v45 = vld [vmem:[%s27014_s7 + $0x720] sm:$0xff] }
 0x854   :  { %19781 = vmatmul.mubr.msk.f32.vlgmr.msra.gmra.mxu1 %vm8967_vm6, %v12671_v51  ;;  %19808 = vmatmul.mubr.msk.f32.vlgmr.msra.gmra.mxu0 %vm8967_vm6, %v12758_v19  ;;  %v13019_v51 = vld [vmem:[#allocation4 + $0xa0] sm:$0x1]  ;;  %v13106_v19 = vld [vmem:[#allocation4 + $0xa1] sm:$0x1] }
 0x855   :  { %19810 = vmatprep.subr.mxu1 %v27175_v54  ;;  %19837 = vmatprep.subr.mxu0 %v27175_v54 }
 0x856   :  { %19811 = vmatpush3.msra.mxu1 %v15274_v8  ;;  %19838 = vmatpush3.msra.mxu0 %v15287_v12  ;;  %v15326_v8 = vld [vmem:[%s27014_s7 + $0x7d8] sm:$0xff] }
 0x857   :  { %19812 = vmatprep.subr.mxu1 %v27175_v54  ;;  %19839 = vmatprep.subr.mxu0 %v27175_v54  ;;  %v15339_v12 = vld [vmem:[%s27014_s7 + $0x838] sm:$0xff] }
 0x858   :  { %19813 = vmatpush3.msra.mxu1 %v15273_v40  ;;  %19840 = vmatpush3.msra.mxu0 %v15286_v34  ;;  %v15325_v40 = vld [vmem:[%s27014_s7 + $0x7d0] sm:$0xff] }
 0x859   :  { %19814 = vmatprep.subr.mxu1 %v27175_v54  ;;  %19841 = vmatprep.subr.mxu0 %v27175_v54  ;;  %v15338_v34 = vld [vmem:[%s27014_s7 + $0x830] sm:$0xff] }
 0x85a   :  { %19815 = vmatpush3.msra.mxu1 %v15272_v48  ;;  %19842 = vmatpush3.msra.mxu0 %v15285_v6  ;;  %v15324_v48 = vld [vmem:[%s27014_s7 + $0x7c8] sm:$0xff] }
 0x85b   :  { %19816 = vmatprep.subr.mxu1 %v27175_v54  ;;  %19843 = vmatprep.subr.mxu0 %v27175_v54  ;;  %v15337_v6 = vld [vmem:[%s27014_s7 + $0x828] sm:$0xff] }
 0x85c   :  { %19817 = vmatpush3.msra.mxu1 %v15271_v5  ;;  %19844 = vmatpush3.msra.mxu0 %v15284_v42  ;;  %v15323_v5 = vld [vmem:[%s27014_s7 + $0x7c0] sm:$0xff] }
 0x85d   :  { %19818 = vmatprep.subr.mxu1 %v27175_v54  ;;  %19845 = vmatprep.subr.mxu0 %v27175_v54  ;;  %v15336_v42 = vld [vmem:[%s27014_s7 + $0x820] sm:$0xff] }
 0x85e   :  { %19819 = vmatpush3.msra.mxu1 %v15270_v32  ;;  %19846 = vmatpush3.msra.mxu0 %v15283_v44  ;;  %v11550_v18 = vpop.f32.mrf.mxu1  ;;  %v11623_v29 = vpop.f32.mrf.mxu0  ;;  %v15322_v32 = vld [vmem:[%s27014_s7 + $0x7b8] sm:$0xff] }
 0x85f   :  { %19820 = vmatprep.subr.mxu1 %v27175_v54  ;;  %19847 = vmatprep.subr.mxu0 %v27175_v54  ;;  %v26427_v63 = vadd.f32 %v11623_v29, %v11550_v18  ;;  %v15335_v44 = vld [vmem:[%s27014_s7 + $0x818] sm:$0xff] }
 0x860   :  { %19821 = vmatpush3.msra.mxu1 %v15269_v21  ;;  %19848 = vmatpush3.msra.mxu0 %v15282_v31  ;;  %v19404_v4 = vpop.f32.mrf.mxu1  ;;  %v19431_v58 = vpop.f32.mrf.mxu0  ;;  %v15321_v21 = vld [vmem:[%s27014_s7 + $0x7b0] sm:$0xff] }
 0x861   :  { %19822 = vmatprep.subr.mxu1 %v27175_v54  ;;  %19849 = vmatprep.subr.mxu0 %v27175_v54  ;;  %v15334_v31 = vld [vmem:[%s27014_s7 + $0x810] sm:$0xff] }
 0x862   :  { %19823 = vmatpush3.msra.mxu1 %v15268_v60  ;;  %19850 = vmatpush3.msra.mxu0 %v15281_v43  ;;  %v15320_v60 = vld [vmem:[%s27014_s7 + $0x7a8] sm:$0xff] }
 0x863   :  { %19824 = vmatprep.subr.mxu1 %v27175_v54  ;;  %19851 = vmatprep.subr.mxu0 %v27175_v54  ;;  %v15333_v43 = vld [vmem:[%s27014_s7 + $0x808] sm:$0xff] }
 0x864   :  { %19825 = vmatpush3.msra.mxu1 %v15267_v26  ;;  %19852 = vmatpush3.msra.mxu0 %v15280_v14  ;;  %v15319_v26 = vld [vmem:[%s27014_s7 + $0x7a0] sm:$0xff] }
 0x865   :  { %19826 = vmatprep.subr.mxu1 %v27175_v54  ;;  %19853 = vmatprep.subr.mxu0 %v27175_v54  ;;  %v15332_v14 = vld [vmem:[%s27014_s7 + $0x800] sm:$0xff] }
 0x866   :  { %19827 = vmatpush3.msra.mxu1 %v15266_v10  ;;  %19854 = vmatpush3.msra.mxu0 %v15279_v33  ;;  %v15318_v33 = vld [vmem:[%s27014_s7 + $0x798] sm:$0xff] }
 0x867   :  { %19828 = vmatprep.subr.mxu1 %v27175_v54  ;;  %19855 = vmatprep.subr.mxu0 %v27175_v54 }
 0x868   :  { %19829 = vmatpush3.msra.mxu1 %v15265_v50  ;;  %19856 = vmatpush3.msra.mxu0 %v15278_v22  ;;  %v15331_v50 = vld [vmem:[%s27014_s7 + $0x7f8] sm:$0xff]  ;;  %v15317_v22 = vld [vmem:[%s27014_s7 + $0x790] sm:$0xff] }
 0x869   :  { %19830 = vmatprep.subr.mxu1 %v27175_v54  ;;  %19857 = vmatprep.subr.mxu0 %v27175_v54 }
 0x86a   :  { %19831 = vmatpush3.msra.mxu1 %v15264_v23  ;;  %19858 = vmatpush3.msra.mxu0 %v15277_v39  ;;  %v15330_v23 = vld [vmem:[%s27014_s7 + $0x7f0] sm:$0xff]  ;;  %v15316_v39 = vld [vmem:[%s27014_s7 + $0x788] sm:$0xff] }
 0x86b   :  { %19832 = vmatprep.subr.mxu1 %v27175_v54  ;;  %19859 = vmatprep.subr.mxu0 %v27175_v54 }
 0x86c   :  { %19833 = vmatpush3.msra.mxu1 %v15263_v24  ;;  %19834 = vmatprep.mubr.msk.f32.mxu1 %vm20160_vm1, %v27175_v54  ;;  %v15329_v24 = vld [vmem:[%s27014_s7 + $0x7e8] sm:$0xff] }
 0x86d   :  { %19860 = vmatpush3.msra.mxu0 %v15276_v41  ;;  %19861 = vmatprep.mubr.msk.f32.mxu0 %vm20160_vm1, %v27175_v54  ;;  %v15315_v41 = vld [vmem:[%s27014_s7 + $0x780] sm:$0xff] }
 0x86e   :  { %19835 = vmatmul.mubr.msk.f32.vlgmr.msra.gmra.mxu1 %vm8967_vm6, %v12845_v59  ;;  %19862 = vmatmul.mubr.msk.f32.vlgmr.msra.gmra.mxu0 %vm8967_vm6, %v12932_v61  ;;  %v15328_v59 = vld [vmem:[%s27014_s7 + $0x7e0] sm:$0xff]  ;;  %v13193_v61 = vld [vmem:[#allocation4 + $0xa2] sm:$0x1] }
 0x86f   :  { %19864 = vmatprep.subr.mxu1 %v27175_v54  ;;  %19891 = vmatprep.subr.mxu0 %v27175_v54 }
 0x870   :  { %19865 = vmatpush3.msra.mxu1 %v15300_v9  ;;  %19892 = vmatpush3.msra.mxu0 %v15313_v20  ;;  %v13280_v9 = vld [vmem:[#allocation4 + $0xa9] sm:$0x1]  ;;  %v15352_v20 = vld [vmem:[%s27014_s7 + $0x898] sm:$0xff] }
 0x871   :  { %19866 = vmatprep.subr.mxu1 %v27175_v54  ;;  %19893 = vmatprep.subr.mxu0 %v27175_v54 }
 0x872   :  { %19867 = vmatpush3.msra.mxu1 %v15299_v30  ;;  %19894 = vmatpush3.msra.mxu0 %v15312_v55  ;;  %v15365_v30 = vld [vmem:[%s27014_s7 + $0x8f8] sm:$0xff]  ;;  %v15351_v55 = vld [vmem:[%s27014_s7 + $0x890] sm:$0xff] }
 0x873   :  { %19868 = vmatprep.subr.mxu1 %v27175_v54  ;;  %19895 = vmatprep.subr.mxu0 %v27175_v54 }
 0x874   :  { %19869 = vmatpush3.msra.mxu1 %v15298_v57  ;;  %19896 = vmatpush3.msra.mxu0 %v15311_v49  ;;  %v15364_v57 = vld [vmem:[%s27014_s7 + $0x8f0] sm:$0xff]  ;;  %v15350_v49 = vld [vmem:[%s27014_s7 + $0x888] sm:$0xff] }
 0x875   :  { %19870 = vmatprep.subr.mxu1 %v27175_v54  ;;  %19897 = vmatprep.subr.mxu0 %v27175_v54 }
 0x876   :  { %19871 = vmatpush3.msra.mxu1 %v15297_v62  ;;  %19898 = vmatpush3.msra.mxu0 %v15310_v53  ;;  %v15363_v62 = vld [vmem:[%s27014_s7 + $0x8e8] sm:$0xff]  ;;  %v15349_v53 = vld [vmem:[%s27014_s7 + $0x880] sm:$0xff] }
 0x877   :  { %19872 = vmatprep.subr.mxu1 %v27175_v54  ;;  %19899 = vmatprep.subr.mxu0 %v27175_v54 }
 0x878   :  { %19873 = vmatpush3.msra.mxu1 %v15296_v28  ;;  %19900 = vmatpush3.msra.mxu0 %v15309_v37  ;;  %v11709_v52 = vpop.f32.mrf.mxu1  ;;  %v11796_v3 = vpop.f32.mrf.mxu0  ;;  %v15362_v28 = vld [vmem:[%s27014_s7 + $0x8e0] sm:$0xff]  ;;  %v15348_v37 = vld [vmem:[%s27014_s7 + $0x878] sm:$0xff] }
 0x879   :  { %19874 = vmatprep.subr.mxu1 %v27175_v54  ;;  %19901 = vmatprep.subr.mxu0 %v27175_v54  ;;  %v11713_v27 = vadd.f32 %v11709_v52, %v26427_v63  ;;  %v15360_v52 = vld [vmem:[%s27014_s7 + $0x8d0] sm:$0xff] }
 0x87a   :  { %19875 = vmatpush3.msra.mxu1 %v15295_v47  ;;  %19902 = vmatpush3.msra.mxu0 %v15308_v15  ;;  %v19458_v0 = vpop.f32.mrf.mxu1  ;;  %v19485_v2 = vpop.f32.mrf.mxu0  ;;  %v15361_v47 = vld [vmem:[%s27014_s7 + $0x8d8] sm:$0xff]  ;;  %v15347_v15 = vld [vmem:[%s27014_s7 + $0x870] sm:$0xff] }
 0x87b   :  { %19876 = vmatprep.subr.mxu1 %v27175_v54  ;;  %19903 = vmatprep.subr.mxu0 %v27175_v54  ;;  %v26540_v13 = vadd.f32 %v11796_v3, %v11713_v27  ;;  %v15359_v27 = vld [vmem:[%s27014_s7 + $0x8c8] sm:$0xff] }
 0x87c   :  { %19877 = vmatpush3.msra.mxu1 %v15294_v36  ;;  %19904 = vmatpush3.msra.mxu0 %v15307_v35  ;;  %v15346_v35 = vld [vmem:[%s27014_s7 + $0x868] sm:$0xff] }
 0x87d   :  { %19878 = vmatprep.subr.mxu1 %v27175_v54  ;;  %19905 = vmatprep.subr.mxu0 %v27175_v54 }
 0x87e   :  { %19879 = vmatpush3.msra.mxu1 %v15293_v56  ;;  %19906 = vmatpush3.msra.mxu0 %v15306_v46  ;;  %v15345_v46 = vld [vmem:[%s27014_s7 + $0x860] sm:$0xff] }
 0x87f   :  { %19880 = vmatprep.subr.mxu1 %v27175_v54  ;;  %19907 = vmatprep.subr.mxu0 %v27175_v54 }
 0x880   :  { %19881 = vmatpush3.msra.mxu1 %v15292_v7  ;;  %19908 = vmatpush3.msra.mxu0 %v15305_v38  ;;  %v15344_v38 = vld [vmem:[%s27014_s7 + $0x858] sm:$0xff] }
 0x881   :  { %19882 = vmatprep.subr.mxu1 %v27175_v54  ;;  %19909 = vmatprep.subr.mxu0 %v27175_v54 }
 0x882   :  { %19883 = vmatpush3.msra.mxu1 %v15291_v1  ;;  %19910 = vmatpush3.msra.mxu0 %v15304_v16  ;;  %v15357_v1 = vld [vmem:[%s27014_s7 + $0x8b8] sm:$0xff]  ;;  %v15343_v16 = vld [vmem:[%s27014_s7 + $0x850] sm:$0xff] }
 0x883   :  { %19884 = vmatprep.subr.mxu1 %v27175_v54  ;;  %19911 = vmatprep.subr.mxu0 %v27175_v54 }
 0x884   :  { %19885 = vmatpush3.msra.mxu1 %v15290_v25  ;;  %19912 = vmatpush3.msra.mxu0 %v15303_v17  ;;  %v15356_v25 = vld [vmem:[%s27014_s7 + $0x8b0] sm:$0xff]  ;;  %v15342_v17 = vld [vmem:[%s27014_s7 + $0x848] sm:$0xff] }
 0x885   :  { %19886 = vmatprep.subr.mxu1 %v27175_v54  ;;  %19913 = vmatprep.subr.mxu0 %v27175_v54 }
 0x886   :  { %19887 = vmatpush3.msra.mxu1 %v15289_v11  ;;  %19888 = vmatprep.mubr.msk.f32.mxu1 %vm20160_vm1, %v27175_v54  ;;  %v15355_v11 = vld [vmem:[%s27014_s7 + $0x8a8] sm:$0xff] }
 0x887   :  { %19914 = vmatpush3.msra.mxu0 %v15302_v45  ;;  %19915 = vmatprep.mubr.msk.f32.mxu0 %vm20160_vm1, %v27175_v54  ;;  %v15341_v45 = vld [vmem:[%s27014_s7 + $0x840] sm:$0xff] }
 0x888   :  { %19889 = vmatmul.mubr.msk.f32.vlgmr.msra.gmra.mxu1 %vm8967_vm6, %v13019_v51  ;;  %19916 = vmatmul.mubr.msk.f32.vlgmr.msra.gmra.mxu0 %vm8967_vm6, %v13106_v19  ;;  %v15354_v51 = vld [vmem:[%s27014_s7 + $0x8a0] sm:$0xff] }
 0x889   :  { %19918 = vmatprep.subr.mxu1 %v27175_v54  ;;  %19945 = vmatprep.subr.mxu0 %v27175_v54  ;;  %v13367_v19 = vld [vmem:[#allocation4 + $0xaa] sm:$0x1] }
 0x88a   :  { %19919 = vmatpush3.msra.mxu1 %v15326_v8  ;;  %19946 = vmatpush3.msra.mxu0 %v15339_v12  ;;  %v13454_v8 = vld [vmem:[#allocation4 + $0xab] sm:$0x1]  ;;  %v15378_v12 = vld [vmem:[%s27014_s7 + $0x958] sm:$0xff] }
 0x88b   :  { %19920 = vmatprep.subr.mxu1 %v27175_v54  ;;  %19947 = vmatprep.subr.mxu0 %v27175_v54 }
 0x88c   :  { %19921 = vmatpush3.msra.mxu1 %v15325_v40  ;;  %19948 = vmatpush3.msra.mxu0 %v15338_v34  ;;  %v15391_v40 = vld [vmem:[%s27014_s7 + $0x9b8] sm:$0xff]  ;;  %v15377_v34 = vld [vmem:[%s27014_s7 + $0x950] sm:$0xff] }
 0x88d   :  { %19922 = vmatprep.subr.mxu1 %v27175_v54  ;;  %19949 = vmatprep.subr.mxu0 %v27175_v54 }
 0x88e   :  { %19923 = vmatpush3.msra.mxu1 %v15324_v48  ;;  %19950 = vmatpush3.msra.mxu0 %v15337_v6  ;;  %v15390_v48 = vld [vmem:[%s27014_s7 + $0x9b0] sm:$0xff]  ;;  %v15376_v6 = vld [vmem:[%s27014_s7 + $0x948] sm:$0xff] }
 0x88f   :  { %19924 = vmatprep.subr.mxu1 %v27175_v54  ;;  %19951 = vmatprep.subr.mxu0 %v27175_v54 }
 0x890   :  { %19925 = vmatpush3.msra.mxu1 %v15323_v5  ;;  %19952 = vmatpush3.msra.mxu0 %v15336_v42  ;;  %v15389_v5 = vld [vmem:[%s27014_s7 + $0x9a8] sm:$0xff]  ;;  %v15375_v42 = vld [vmem:[%s27014_s7 + $0x940] sm:$0xff] }
 0x891   :  { %19926 = vmatprep.subr.mxu1 %v27175_v54  ;;  %19953 = vmatprep.subr.mxu0 %v27175_v54 }
 0x892   :  { %19927 = vmatpush3.msra.mxu1 %v15322_v32  ;;  %19954 = vmatpush3.msra.mxu0 %v15335_v44  ;;  %v11883_v18 = vpop.f32.mrf.mxu1  ;;  %v11970_v29 = vpop.f32.mrf.mxu0  ;;  %v15388_v32 = vld [vmem:[%s27014_s7 + $0x9a0] sm:$0xff]  ;;  %v15374_v44 = vld [vmem:[%s27014_s7 + $0x938] sm:$0xff] }
 0x893   :  { %19928 = vmatprep.subr.mxu1 %v27175_v54  ;;  %19955 = vmatprep.subr.mxu0 %v27175_v54  ;;  %v11887_v63 = vadd.f32 %v11883_v18, %v26540_v13  ;;  %v15358_v13 = vld [vmem:[%s27014_s7 + $0x8c0] sm:$0xff]  ;;  %v15386_v18 = vld [vmem:[%s27014_s7 + $0x990] sm:$0xff] }
 0x894   :  { %19929 = vmatpush3.msra.mxu1 %v15321_v21  ;;  %19956 = vmatpush3.msra.mxu0 %v15334_v31  ;;  %v19512_v4 = vpop.f32.mrf.mxu1  ;;  %v19539_v58 = vpop.f32.mrf.mxu0  ;;  %v15387_v21 = vld [vmem:[%s27014_s7 + $0x998] sm:$0xff]  ;;  %v15373_v31 = vld [vmem:[%s27014_s7 + $0x930] sm:$0xff] }
 0x895   :  { %19930 = vmatprep.subr.mxu1 %v27175_v54  ;;  %19957 = vmatprep.subr.mxu0 %v27175_v54  ;;  %v26645_v10 = vadd.f32 %v11970_v29, %v11887_v63  ;;  %v15385_v63 = vld [vmem:[%s27014_s7 + $0x988] sm:$0xff] }
 0x896   :  { %19931 = vmatpush3.msra.mxu1 %v15320_v60  ;;  %19958 = vmatpush3.msra.mxu0 %v15333_v43  ;;  %v15372_v43 = vld [vmem:[%s27014_s7 + $0x928] sm:$0xff] }
 0x897   :  { %19932 = vmatprep.subr.mxu1 %v27175_v54  ;;  %19959 = vmatprep.subr.mxu0 %v27175_v54 }
 0x898   :  { %19933 = vmatpush3.msra.mxu1 %v15319_v26  ;;  %19960 = vmatpush3.msra.mxu0 %v15332_v14  ;;  %v15371_v14 = vld [vmem:[%s27014_s7 + $0x920] sm:$0xff] }
 0x899   :  { %19934 = vmatprep.subr.mxu1 %v27175_v54  ;;  %19961 = vmatprep.subr.mxu0 %v27175_v54 }
 0x89a   :  { %19935 = vmatpush3.msra.mxu1 %v15318_v33  ;;  %19962 = vmatpush3.msra.mxu0 %v15331_v50  ;;  %v15370_v50 = vld [vmem:[%s27014_s7 + $0x918] sm:$0xff] }
 0x89b   :  { %19936 = vmatprep.subr.mxu1 %v27175_v54  ;;  %19963 = vmatprep.subr.mxu0 %v27175_v54 }
 0x89c   :  { %19937 = vmatpush3.msra.mxu1 %v15317_v22  ;;  %19964 = vmatpush3.msra.mxu0 %v15330_v23  ;;  %v15383_v22 = vld [vmem:[%s27014_s7 + $0x978] sm:$0xff]  ;;  %v15369_v23 = vld [vmem:[%s27014_s7 + $0x910] sm:$0xff] }
 0x89d   :  { %19938 = vmatprep.subr.mxu1 %v27175_v54  ;;  %19965 = vmatprep.subr.mxu0 %v27175_v54 }
 0x89e   :  { %19939 = vmatpush3.msra.mxu1 %v15316_v39  ;;  %19966 = vmatpush3.msra.mxu0 %v15329_v24  ;;  %v15382_v39 = vld [vmem:[%s27014_s7 + $0x970] sm:$0xff]  ;;  %v15368_v24 = vld [vmem:[%s27014_s7 + $0x908] sm:$0xff] }
 0x89f   :  { %19940 = vmatprep.subr.mxu1 %v27175_v54  ;;  %19967 = vmatprep.subr.mxu0 %v27175_v54 }
 0x8a0   :  { %19941 = vmatpush3.msra.mxu1 %v15315_v41  ;;  %19942 = vmatprep.mubr.msk.f32.mxu1 %vm20160_vm1, %v27175_v54  ;;  %v15381_v41 = vld [vmem:[%s27014_s7 + $0x968] sm:$0xff] }
 0x8a1   :  { %19968 = vmatpush3.msra.mxu0 %v15328_v59  ;;  %19969 = vmatprep.mubr.msk.f32.mxu0 %vm20160_vm1, %v27175_v54  ;;  %v15367_v59 = vld [vmem:[%s27014_s7 + $0x900] sm:$0xff] }
 0x8a2   :  { %19943 = vmatmul.mubr.msk.f32.vlgmr.msra.gmra.mxu1 %vm8967_vm6, %v13193_v61  ;;  %19970 = vmatmul.mubr.msk.f32.vlgmr.msra.gmra.mxu0 %vm8967_vm6, %v13280_v9  ;;  %v15380_v61 = vld [vmem:[%s27014_s7 + $0x960] sm:$0xff] }
 0x8a3   :  { %19972 = vmatprep.subr.mxu1 %v27175_v54  ;;  %19999 = vmatprep.subr.mxu0 %v27175_v54  ;;  %v13541_v9 = vld [vmem:[#allocation4 + $0xac] sm:$0x1] }
 0x8a4   :  { %19973 = vmatpush3.msra.mxu1 %v15352_v20  ;;  %20000 = vmatpush3.msra.mxu0 %v15365_v30  ;;  %v13628_v20 = vld [vmem:[#allocation4 + $0xad] sm:$0x1]  ;;  %v15404_v30 = vld [vmem:[%s27014_s7 + $0xa18] sm:$0xff] }
 0x8a5   :  { %19974 = vmatprep.subr.mxu1 %v27175_v54  ;;  %20001 = vmatprep.subr.mxu0 %v27175_v54 }
 0x8a6   :  { %19975 = vmatpush3.msra.mxu1 %v15351_v55  ;;  %20002 = vmatpush3.msra.mxu0 %v15364_v57  ;;  %v15417_v55 = vld [vmem:[%s27014_s7 + $0xa78] sm:$0xff]  ;;  %v15403_v57 = vld [vmem:[%s27014_s7 + $0xa10] sm:$0xff] }
 0x8a7   :  { %19976 = vmatprep.subr.mxu1 %v27175_v54  ;;  %20003 = vmatprep.subr.mxu0 %v27175_v54 }
 0x8a8   :  { %19977 = vmatpush3.msra.mxu1 %v15350_v49  ;;  %20004 = vmatpush3.msra.mxu0 %v15363_v62  ;;  %v15416_v49 = vld [vmem:[%s27014_s7 + $0xa70] sm:$0xff]  ;;  %v15402_v62 = vld [vmem:[%s27014_s7 + $0xa08] sm:$0xff] }
 0x8a9   :  { %19978 = vmatprep.subr.mxu1 %v27175_v54  ;;  %20005 = vmatprep.subr.mxu0 %v27175_v54 }
 0x8aa   :  { %19979 = vmatpush3.msra.mxu1 %v15349_v53  ;;  %20006 = vmatpush3.msra.mxu0 %v15362_v28  ;;  %v15415_v53 = vld [vmem:[%s27014_s7 + $0xa68] sm:$0xff]  ;;  %v15401_v28 = vld [vmem:[%s27014_s7 + $0xa00] sm:$0xff] }
 0x8ab   :  { %19980 = vmatprep.subr.mxu1 %v27175_v54  ;;  %20007 = vmatprep.subr.mxu0 %v27175_v54 }
 0x8ac   :  { %19981 = vmatpush3.msra.mxu1 %v15348_v37  ;;  %20008 = vmatpush3.msra.mxu0 %v15361_v47  ;;  %v12057_v3 = vpop.f32.mrf.mxu1  ;;  %v12144_v36 = vpop.f32.mrf.mxu0  ;;  %v15414_v37 = vld [vmem:[%s27014_s7 + $0xa60] sm:$0xff]  ;;  %v15400_v47 = vld [vmem:[%s27014_s7 + $0x9f8] sm:$0xff] }
 0x8ad   :  { %19982 = vmatprep.subr.mxu1 %v27175_v54  ;;  %20009 = vmatprep.subr.mxu0 %v27175_v54  ;;  %v12061_v0 = vadd.f32 %v12057_v3, %v26645_v10  ;;  %v15384_v10 = vld [vmem:[%s27014_s7 + $0x980] sm:$0xff]  ;;  %v15412_v3 = vld [vmem:[%s27014_s7 + $0xa50] sm:$0xff] }
 0x8ae   :  { %19983 = vmatpush3.msra.mxu1 %v15347_v15  ;;  %20010 = vmatpush3.msra.mxu0 %v15360_v52  ;;  %v19566_v2 = vpop.f32.mrf.mxu1  ;;  %v19593_v56 = vpop.f32.mrf.mxu0  ;;  %v15413_v15 = vld [vmem:[%s27014_s7 + $0xa58] sm:$0xff]  ;;  %v15399_v52 = vld [vmem:[%s27014_s7 + $0x9f0] sm:$0xff] }
 0x8af   :  { %19984 = vmatprep.subr.mxu1 %v27175_v54  ;;  %20011 = vmatprep.subr.mxu0 %v27175_v54  ;;  %v26750_v7 = vadd.f32 %v12144_v36, %v12061_v0  ;;  %v15411_v0 = vld [vmem:[%s27014_s7 + $0xa48] sm:$0xff] }
 0x8b0   :  { %19985 = vmatpush3.msra.mxu1 %v15346_v35  ;;  %20012 = vmatpush3.msra.mxu0 %v15359_v27  ;;  %v15398_v27 = vld [vmem:[%s27014_s7 + $0x9e8] sm:$0xff] }
 0x8b1   :  { %19986 = vmatprep.subr.mxu1 %v27175_v54  ;;  %20013 = vmatprep.subr.mxu0 %v27175_v54 }
 0x8b2   :  { %19987 = vmatpush3.msra.mxu1 %v15345_v46  ;;  %20014 = vmatpush3.msra.mxu0 %v15358_v13  ;;  %v15397_v13 = vld [vmem:[%s27014_s7 + $0x9e0] sm:$0xff] }
 0x8b3   :  { %19988 = vmatprep.subr.mxu1 %v27175_v54  ;;  %20015 = vmatprep.subr.mxu0 %v27175_v54 }
 0x8b4   :  { %19989 = vmatpush3.msra.mxu1 %v15344_v38  ;;  %20016 = vmatpush3.msra.mxu0 %v15357_v1  ;;  %v15396_v1 = vld [vmem:[%s27014_s7 + $0x9d8] sm:$0xff] }
 0x8b5   :  { %19990 = vmatprep.subr.mxu1 %v27175_v54  ;;  %20017 = vmatprep.subr.mxu0 %v27175_v54 }
 0x8b6   :  { %19991 = vmatpush3.msra.mxu1 %v15343_v16  ;;  %20018 = vmatpush3.msra.mxu0 %v15356_v25  ;;  %v15409_v16 = vld [vmem:[%s27014_s7 + $0xa38] sm:$0xff]  ;;  %v15395_v25 = vld [vmem:[%s27014_s7 + $0x9d0] sm:$0xff] }
 0x8b7   :  { %19992 = vmatprep.subr.mxu1 %v27175_v54  ;;  %20019 = vmatprep.subr.mxu0 %v27175_v54 }
 0x8b8   :  { %19993 = vmatpush3.msra.mxu1 %v15342_v17  ;;  %20020 = vmatpush3.msra.mxu0 %v15355_v11  ;;  %v15408_v17 = vld [vmem:[%s27014_s7 + $0xa30] sm:$0xff]  ;;  %v15394_v11 = vld [vmem:[%s27014_s7 + $0x9c8] sm:$0xff] }
 0x8b9   :  { %19994 = vmatprep.subr.mxu1 %v27175_v54  ;;  %20021 = vmatprep.subr.mxu0 %v27175_v54 }
 0x8ba   :  { %19995 = vmatpush3.msra.mxu1 %v15341_v45  ;;  %19996 = vmatprep.mubr.msk.f32.mxu1 %vm20160_vm1, %v27175_v54  ;;  %v15407_v45 = vld [vmem:[%s27014_s7 + $0xa28] sm:$0xff] }
 0x8bb   :  { %20022 = vmatpush3.msra.mxu0 %v15354_v51  ;;  %20023 = vmatprep.mubr.msk.f32.mxu0 %vm20160_vm1, %v27175_v54  ;;  %v15393_v51 = vld [vmem:[%s27014_s7 + $0x9c0] sm:$0xff] }
 0x8bc   :  { %19997 = vmatmul.mubr.msk.f32.vlgmr.msra.gmra.mxu1 %vm8967_vm6, %v13367_v19  ;;  %20024 = vmatmul.mubr.msk.f32.vlgmr.msra.gmra.mxu0 %vm8967_vm6, %v13454_v8  ;;  %v15406_v19 = vld [vmem:[%s27014_s7 + $0xa20] sm:$0xff] }
 0x8bd   :  { %20026 = vmatprep.subr.mxu1 %v27175_v54  ;;  %20053 = vmatprep.subr.mxu0 %v27175_v54  ;;  %v13715_v8 = vld [vmem:[#allocation4 + $0xae] sm:$0x1] }
 0x8be   :  { %20027 = vmatpush3.msra.mxu1 %v15378_v12  ;;  %20054 = vmatpush3.msra.mxu0 %v15391_v40  ;;  %v13802_v12 = vld [vmem:[#allocation4 + $0xaf] sm:$0x1] }
 0x8bf   :  { %20028 = vmatprep.subr.mxu1 %v27175_v54  ;;  %20055 = vmatprep.subr.mxu0 %v27175_v54 }
 0x8c0   :  { %20029 = vmatpush3.msra.mxu1 %v15377_v34  ;;  %20056 = vmatpush3.msra.mxu0 %v15390_v48 }
 0x8c1   :  { %20030 = vmatprep.subr.mxu1 %v27175_v54  ;;  %20057 = vmatprep.subr.mxu0 %v27175_v54 }
 0x8c2   :  { %20031 = vmatpush3.msra.mxu1 %v15376_v6  ;;  %20058 = vmatpush3.msra.mxu0 %v15389_v5 }
 0x8c3   :  { %20032 = vmatprep.subr.mxu1 %v27175_v54  ;;  %20059 = vmatprep.subr.mxu0 %v27175_v54 }
 0x8c4   :  { %20033 = vmatpush3.msra.mxu1 %v15375_v42  ;;  %20060 = vmatpush3.msra.mxu0 %v15388_v32 }
 0x8c5   :  { %20034 = vmatprep.subr.mxu1 %v27175_v54  ;;  %20061 = vmatprep.subr.mxu0 %v27175_v54 }
 0x8c6   :  { %20035 = vmatpush3.msra.mxu1 %v15374_v44  ;;  %20062 = vmatpush3.msra.mxu0 %v15387_v21  ;;  %v12231_v29 = vpop.f32.mrf.mxu1  ;;  %v12318_v60 = vpop.f32.mrf.mxu0 }
 0x8c7   :  { %20036 = vmatprep.subr.mxu1 %v27175_v54  ;;  %20063 = vmatprep.subr.mxu0 %v27175_v54  ;;  %v12235_v4 = vadd.f32 %v12231_v29, %v26750_v7  ;;  %v15410_v7 = vld [vmem:[%s27014_s7 + $0xa40] sm:$0xff] }
 0x8c8   :  { %20037 = vmatpush3.msra.mxu1 %v15373_v31  ;;  %20064 = vmatpush3.msra.mxu0 %v15386_v18  ;;  %v19620_v58 = vpop.f32.mrf.mxu1  ;;  %v19647_v26 = vpop.f32.mrf.mxu0 }
 0x8c9   :  { %20038 = vmatprep.subr.mxu1 %v27175_v54  ;;  %20065 = vmatprep.subr.mxu0 %v27175_v54  ;;  %v26855_v33 = vadd.f32 %v12318_v60, %v12235_v4 }
 0x8ca   :  { %20039 = vmatpush3.msra.mxu1 %v15372_v43  ;;  %20066 = vmatpush3.msra.mxu0 %v15385_v63 }
 0x8cb   :  { %20040 = vmatprep.subr.mxu1 %v27175_v54  ;;  %20067 = vmatprep.subr.mxu0 %v27175_v54 }
 0x8cc   :  { %20041 = vmatpush3.msra.mxu1 %v15371_v14  ;;  %20068 = vmatpush3.msra.mxu0 %v15384_v10 }
 0x8cd   :  { %20042 = vmatprep.subr.mxu1 %v27175_v54  ;;  %20069 = vmatprep.subr.mxu0 %v27175_v54 }
 0x8ce   :  { %20043 = vmatpush3.msra.mxu1 %v15370_v50  ;;  %20070 = vmatpush3.msra.mxu0 %v15383_v22 }
 0x8cf   :  { %20044 = vmatprep.subr.mxu1 %v27175_v54  ;;  %20071 = vmatprep.subr.mxu0 %v27175_v54 }
 0x8d0   :  { %20045 = vmatpush3.msra.mxu1 %v15369_v23  ;;  %20072 = vmatpush3.msra.mxu0 %v15382_v39 }
 0x8d1   :  { %20046 = vmatprep.subr.mxu1 %v27175_v54  ;;  %20073 = vmatprep.subr.mxu0 %v27175_v54 }
 0x8d2   :  { %20047 = vmatpush3.msra.mxu1 %v15368_v24  ;;  %20074 = vmatpush3.msra.mxu0 %v15381_v41 }
 0x8d3   :  { %20048 = vmatprep.subr.mxu1 %v27175_v54  ;;  %20075 = vmatprep.subr.mxu0 %v27175_v54 }
 0x8d4   :  { %20049 = vmatpush3.msra.mxu1 %v15367_v59  ;;  %20050 = vmatprep.mubr.msk.f32.mxu1 %vm20160_vm1, %v27175_v54 }
 0x8d5   :  { %20076 = vmatpush3.msra.mxu0 %v15380_v61  ;;  %20077 = vmatprep.mubr.msk.f32.mxu0 %vm20160_vm1, %v27175_v54 }
 0x8d6   :  { %20051 = vmatmul.mubr.msk.f32.vlgmr.msra.gmra.mxu1 %vm8967_vm6, %v13541_v9  ;;  %20078 = vmatmul.mubr.msk.f32.vlgmr.msra.gmra.mxu0 %vm8967_vm6, %v13628_v20 }
 0x8d7   :  { %20080 = vmatprep.subr.mxu1 %v27175_v54  ;;  %20107 = vmatprep.subr.mxu0 %v27175_v54 }
 0x8d8   :  { %20081 = vmatpush3.msra.mxu1 %v15404_v30  ;;  %20108 = vmatpush3.msra.mxu0 %v15417_v55 }
 0x8d9   :  { %20082 = vmatprep.subr.mxu1 %v27175_v54  ;;  %20109 = vmatprep.subr.mxu0 %v27175_v54 }
 0x8da   :  { %20083 = vmatpush3.msra.mxu1 %v15403_v57  ;;  %20110 = vmatpush3.msra.mxu0 %v15416_v49 }
 0x8db   :  { %20084 = vmatprep.subr.mxu1 %v27175_v54  ;;  %20111 = vmatprep.subr.mxu0 %v27175_v54 }
 0x8dc   :  { %20085 = vmatpush3.msra.mxu1 %v15402_v62  ;;  %20112 = vmatpush3.msra.mxu0 %v15415_v53 }
 0x8dd   :  { %20086 = vmatprep.subr.mxu1 %v27175_v54  ;;  %20113 = vmatprep.subr.mxu0 %v27175_v54 }
 0x8de   :  { %20087 = vmatpush3.msra.mxu1 %v15401_v28  ;;  %20114 = vmatpush3.msra.mxu0 %v15414_v37 }
 0x8df   :  { %20088 = vmatprep.subr.mxu1 %v27175_v54  ;;  %20115 = vmatprep.subr.mxu0 %v27175_v54 }
 0x8e0   :  { %20089 = vmatpush3.msra.mxu1 %v15400_v47  ;;  %20116 = vmatpush3.msra.mxu0 %v15413_v15  ;;  %v12405_v36 = vpop.f32.mrf.mxu1  ;;  %v12492_v35 = vpop.f32.mrf.mxu0 }
 0x8e1   :  { %20090 = vmatprep.subr.mxu1 %v27175_v54  ;;  %20117 = vmatprep.subr.mxu0 %v27175_v54  ;;  %v12409_v2 = vadd.f32 %v12405_v36, %v26855_v33 }
 0x8e2   :  { %20091 = vmatpush3.msra.mxu1 %v15399_v52  ;;  %20118 = vmatpush3.msra.mxu0 %v15412_v3  ;;  %v19674_v56 = vpop.f32.mrf.mxu1  ;;  %v19701_v46 = vpop.f32.mrf.mxu0 }
 0x8e3   :  { %20092 = vmatprep.subr.mxu1 %v27175_v54  ;;  %20119 = vmatprep.subr.mxu0 %v27175_v54  ;;  %v12496_v38 = vadd.f32 %v12492_v35, %v12409_v2  ;;  %v13889_v35 = vld [vmem:[%s27015_s8] sm:$0x1] }
 0x8e4   :  { %20093 = vmatpush3.msra.mxu1 %v15398_v27  ;;  %20120 = vmatpush3.msra.mxu0 %v15411_v0 }
 0x8e5   :  { %20094 = vmatprep.subr.mxu1 %v27175_v54  ;;  %20121 = vmatprep.subr.mxu0 %v27175_v54 }
 0x8e6   :  { %20095 = vmatpush3.msra.mxu1 %v15397_v13  ;;  %20122 = vmatpush3.msra.mxu0 %v15410_v7 }
 0x8e7   :  { %20096 = vmatprep.subr.mxu1 %v27175_v54  ;;  %20123 = vmatprep.subr.mxu0 %v27175_v54 }
 0x8e8   :  { %20097 = vmatpush3.msra.mxu1 %v15396_v1  ;;  %20124 = vmatpush3.msra.mxu0 %v15409_v16 }
 0x8e9   :  { %20098 = vmatprep.subr.mxu1 %v27175_v54  ;;  %20125 = vmatprep.subr.mxu0 %v27175_v54 }
 0x8ea   :  { %20099 = vmatpush3.msra.mxu1 %v15395_v25  ;;  %20126 = vmatpush3.msra.mxu0 %v15408_v17 }
 0x8eb   :  { %20100 = vmatprep.subr.mxu1 %v27175_v54  ;;  %20127 = vmatprep.subr.mxu0 %v27175_v54 }
 0x8ec   :  { %20101 = vmatpush3.msra.mxu1 %v15394_v11  ;;  %20128 = vmatpush3.msra.mxu0 %v15407_v45 }
 0x8ed   :  { %20102 = vmatprep.subr.mxu1 %v27175_v54  ;;  %20129 = vmatprep.subr.mxu0 %v27175_v54 }
 0x8ee   :  { %20103 = vmatpush3.msra.mxu1 %v15393_v51  ;;  %20104 = vmatprep.mubr.msk.f32.mxu1 %vm20160_vm1, %v27175_v54 }
 0x8ef   :  { %20130 = vmatpush3.msra.mxu0 %v15406_v19  ;;  %20131 = vmatprep.mubr.msk.f32.mxu0 %vm20160_vm1, %v27175_v54 }
 0x8f0   :  { %20105 = vmatmul.mubr.msk.f32.vlgmr.msra.gmra.mxu1 %vm8967_vm6, %v13715_v8  ;;  %20132 = vmatmul.mubr.msk.f32.vlgmr.msra.gmra.mxu0 %vm8967_vm6, %v13802_v12 }
 0x8fa   :  { %v12579_v40 = vpop.f32.mrf.mxu1  ;;  %v12666_v34 = vpop.f32.mrf.mxu0 }
 0x8fb   :  { %v12583_v48 = vadd.f32 %v12579_v40, %v12496_v38 }
 0x8fc   :  { %v19728_v6 = vpop.f32.mrf.mxu1  ;;  %v19755_v5 = vpop.f32.mrf.mxu0 }
 0x8fd   :  { %v12670_v42 = vadd.f32 %v12666_v34, %v12583_v48 }
 0x914   :  { %v12753_v32 = vpop.f32.mrf.mxu1  ;;  %v12840_v44 = vpop.f32.mrf.mxu0 }
 0x915   :  { %v12757_v21 = vadd.f32 %v12753_v32, %v12670_v42 }
 0x916   :  { %v19782_v31 = vpop.f32.mrf.mxu1  ;;  %v19809_v18 = vpop.f32.mrf.mxu0 }
 0x917   :  { %v12844_v29 = vadd.f32 %v12840_v44, %v12757_v21 }
 0x92e   :  { %v12927_v60 = vpop.f32.mrf.mxu1  ;;  %v13014_v54 = vpop.f32.mrf.mxu0 }
 0x92f   :  { %v12931_v43 = vadd.f32 %v12927_v60, %v12844_v29 }
 0x930   :  { %v19836_v63 = vpop.f32.mrf.mxu1  ;;  %v19863_v4 = vpop.f32.mrf.mxu0 }
 0x931   :  { %v13018_v58 = vadd.f32 %v13014_v54, %v12931_v43 }
 0x948   :  { %v13101_v26 = vpop.f32.mrf.mxu1  ;;  %v13188_v14 = vpop.f32.mrf.mxu0 }
 0x949   :  { %v13105_v10 = vadd.f32 %v13101_v26, %v13018_v58 }
 0x94a   :  { %v19890_v33 = vpop.f32.mrf.mxu1  ;;  %v19917_v50 = vpop.f32.mrf.mxu0 }
 0x94b   :  { %v13192_v22 = vadd.f32 %v13188_v14, %v13105_v10 }
 0x962   :  { %v13275_v23 = vpop.f32.mrf.mxu1  ;;  %v13362_v39 = vpop.f32.mrf.mxu0 }
 0x963   :  { %v13279_v24 = vadd.f32 %v13275_v23, %v13192_v22 }
 0x964   :  { %v19944_v41 = vpop.f32.mrf.mxu1  ;;  %v19971_v59 = vpop.f32.mrf.mxu0 }
 0x965   :  { %v13366_v61 = vadd.f32 %v13362_v39, %v13279_v24 }
 0x97c   :  { %v13449_v9 = vpop.f32.mrf.mxu1  ;;  %v13536_v20 = vpop.f32.mrf.mxu0 }
 0x97d   :  { %v13453_v28 = vadd.f32 %v13449_v9, %v13366_v61 }
 0x97e   :  { %v19998_v30 = vpop.f32.mrf.mxu1  ;;  %v20025_v55 = vpop.f32.mrf.mxu0 }
 0x97f   :  { %v13540_v37 = vadd.f32 %v13536_v20, %v13453_v28 }
 0x996   :  { %v13623_v57 = vpop.f32.mrf.mxu1  ;;  %v13710_v49 = vpop.f32.mrf.mxu0 }
 0x997   :  { %v13627_v47 = vadd.f32 %v13623_v57, %v13540_v37 }
 0x998   :  { %v20052_v62 = vpop.f32.mrf.mxu1  ;;  %v20079_v53 = vpop.f32.mrf.mxu0 }
 0x999   :  { %v13714_v15 = vadd.f32 %v13710_v49, %v13627_v47 }
 0x9b0   :  { %v13797_v52 = vpop.f32.mrf.mxu1  ;;  %v13884_v3 = vpop.f32.mrf.mxu0 }
 0x9b1   :  { %v13801_v36 = vadd.f32 %v13797_v52, %v13714_v15 }
 0x9b2   :  { %v20106_v27 = vpop.f32.mrf.mxu1  ;;  %v20133_v0 = vpop.f32.mrf.mxu0 }
 0x9b3   :  { %v13888_v2 = vadd.f32 %v13884_v3, %v13801_v36 }
 0x9b5   :  { %v13890_v56 = vadd.f32 %v13889_v35, %v13888_v2 }
 0x9b7   :  { %13891 = vst.msk [vmem:[#allocation5 + $0x1] sm:$0x1] %vm11453_vm7, %v13890_v56 }
 0x9b8   :  { %20148 = shalt.err (!%p20145_p4)
}
 0x9b9   :  { %13901 = dma.vmem_to_hbm [thread:$0]  %s13899_s15, 32, %s27016_s9, [#allocation6]  }
 0x9ba   :  { %20157 = dma.done.wait [#allocation6], 32  }
 0x9bb   :  { %20158 = vsyncadd [#allocation6], 4294967264 }
 0x9bc   :  { %13905 = vsyncpa [#allocation6], 1 }

</bundles_post_ra>
